<compile_context>
chip_gen: v7x
topology: tpu7x:2x2x1
jax: 0.10.0
libtpu: 0.0.40
codegen_flags: <defaults>
</compile_context>

<pallas_src>
import functools

import jax
import jax.numpy as jnp
from jax import lax
from jax.experimental import pallas as pl
from jax.experimental.pallas import tpu as pltpu

# ----------------------------- model hyper-params -----------------------------
IMG_SIZE = 32                    # image_encoder.img_size
PATCH = 8
GRID = IMG_SIZE // PATCH         # 4 -> image embedding is (EMBED, 4, 4)
S = GRID * GRID                  # 16 image tokens
EMBED = 32                       # prompt / image embedding dim
HEADS = 2
DH = EMBED // HEADS
MLP_DIM = 64
PE_F = EMBED // 2                # random fourier features per coordinate pair
NUM_MASK_TOKENS = 4              # 3 multimask + 1
UP_C1, UP_C2 = 16, 8             # mask-decoder upscaling channels
LOW = 4 * GRID                   # low-res mask side (16)
MASK_THRESHOLD = 0.0
SLAB_W = 128                     # lane width of the packed parameter slab


# ------------------------------ shared helpers ---------------------------------
def _layernorm(x, g, b, eps):
    mu = jnp.mean(x, axis=-1, keepdims=True)
    var = jnp.mean((x - mu) ** 2, axis=-1, keepdims=True)
    return (x - mu) * lax.rsqrt(var + eps) * g + b


def _fourier_pe(coords01, gauss):
    """Random fourier positional encoding, coords in [0,1] -> (..., EMBED)."""
    c = 2.0 * coords01 - 1.0
    proj = jnp.matmul(c, gauss) * (2.0 * jnp.pi)
    return jnp.concatenate([jnp.sin(proj), jnp.cos(proj)], axis=-1)


# ------------------------- packed parameter slab layout ------------------------
def _slab_layout():
    """Static (offset, rows, cols) layout of every parameter in the 128-lane slab."""
    entries = [
        # --- image encoder ---
        ("patch_w", (3 * PATCH * PATCH, EMBED)), ("patch_b", (1, EMBED)),
        ("pos_emb", (S, EMBED)),
        ("ln1_g", (1, EMBED)), ("ln1_b", (1, EMBED)),
        ("qkv_w", (EMBED, 3 * EMBED)), ("qkv_b", (1, 3 * EMBED)),
        ("proj_w", (EMBED, EMBED)), ("proj_b", (1, EMBED)),
        ("ln2_g", (1, EMBED)), ("ln2_b", (1, EMBED)),
        ("mlp_w1", (EMBED, MLP_DIM)), ("mlp_b1", (1, MLP_DIM)),
        ("mlp_w2", (MLP_DIM, EMBED)), ("mlp_b2", (1, EMBED)),
        ("neck_w", (EMBED, EMBED)), ("neck_b", (1, EMBED)),
        ("neck_ln_g", (1, EMBED)), ("neck_ln_b", (1, EMBED)),
        # --- prompt encoder / mask decoder ---
        ("dense_pe", (S, EMBED)),
        ("no_mask", (1, EMBED)),
        ("out_tokens", (1 + NUM_MASK_TOKENS, EMBED)),
        ("attn_qkv_w", (4 * EMBED, 3 * EMBED)), ("attn_qkv_b", (4, 3 * EMBED)),
        ("attn_o_w", (4 * EMBED, EMBED)), ("attn_o_b", (4, EMBED)),
        ("dec_ln_g", (4, EMBED)), ("dec_ln_b", (4, EMBED)),
        ("dec_mlp_w1", (EMBED, MLP_DIM)), ("dec_mlp_b1", (1, MLP_DIM)),
        ("dec_mlp_w2", (MLP_DIM, EMBED)), ("dec_mlp_b2", (1, EMBED)),
        ("up1_w", (EMBED, UP_C1)), ("up1_b", (1, UP_C1)),
        ("up2_w", (UP_C1, UP_C2)), ("up2_b", (1, UP_C2)),
        ("hyper_w1_bd", (NUM_MASK_TOKENS * EMBED, NUM_MASK_TOKENS * EMBED)),
        ("hyper_b1_cat", (1, NUM_MASK_TOKENS * EMBED)),
        ("hyper_w2_bd", (NUM_MASK_TOKENS * EMBED, NUM_MASK_TOKENS * UP_C2)),
        ("hyper_b2_cat", (1, NUM_MASK_TOKENS * UP_C2)),
        ("bd_mask_wide", (NUM_MASK_TOKENS, NUM_MASK_TOKENS * EMBED)),
        ("bd_mask_narrow", (NUM_MASK_TOKENS, NUM_MASK_TOKENS * UP_C2)),
        ("iou_w1", (EMBED, EMBED)), ("iou_b1", (1, EMBED)),
        ("iou_w2", (EMBED, NUM_MASK_TOKENS)), ("iou_b2", (1, NUM_MASK_TOKENS)),
    ]
    layout, off = {}, 0
    for name, (r, c) in entries:
        layout[name] = (off, r, c)
        off += ((r + 7) // 8) * 8          # keep every entry sublane(8)-aligned
    return layout, off


def pack_params(P):
    """Pack all parameters into one 128-lane slab + the dense upsample matrix."""
    f32 = jnp.float32
    layout, total_rows = _slab_layout()

    # fold pixel mean/std normalization into the patch-embedding weights
    inv_std = 1.0 / P["pixel_std"]
    scale = jnp.repeat(inv_std, PATCH * PATCH)                 # channel-major flatten
    shift = jnp.repeat(-P["pixel_mean"] * inv_std, PATCH * PATCH)
    patch_w = P["patch_w"] * scale[:, None]
    patch_b = (P["patch_b"] + shift @ P["patch_w"]).reshape(1, EMBED)

    # grid-invariant dense positional encoding (hoisted out of the kernel)
    t = (jnp.arange(GRID, dtype=f32) + 0.5) / GRID
    yy, xx = jnp.meshgrid(t, t, indexing="ij")
    gridc = jnp.stack([xx, yy], axis=-1).reshape(S, 2)
    dense_pe = _fourier_pe(gridc, P["pe_gauss"])

    # hypernetwork MLPs as block-diagonal matrices (4 tiny MLPs -> 2 dense matmuls)
    E4 = NUM_MASK_TOKENS * EMBED
    w1bd = jnp.zeros((E4, E4), f32)
    w2bd = jnp.zeros((E4, NUM_MASK_TOKENS * UP_C2), f32)
    for i in range(NUM_MASK_TOKENS):
        w1bd = w1bd.at[i * EMBED:(i + 1) * EMBED, i * EMBED:(i + 1) * EMBED].set(P["hyper_w1"][i])
        w2bd = w2bd.at[i * EMBED:(i + 1) * EMBED, i * UP_C2:(i + 1) * UP_C2].set(P["hyper_w2"][i])

    vals = {
        "patch_w": patch_w, "patch_b": patch_b,
        "pos_emb": P["pos_emb"],
        "ln1_g": P["ln1_g"].reshape(1, EMBED), "ln1_b": P["ln1_b"].reshape(1, EMBED),
        "qkv_w": P["qkv_w"], "qkv_b": P["qkv_b"].reshape(1, 3 * EMBED),
        "proj_w": P["proj_w"], "proj_b": P["proj_b"].reshape(1, EMBED),
        "ln2_g": P["ln2_g"].reshape(1, EMBED), "ln2_b": P["ln2_b"].reshape(1, EMBED),
        "mlp_w1": P["mlp_w1"], "mlp_b1": P["mlp_b1"].reshape(1, MLP_DIM),
        "mlp_w2": P["mlp_w2"], "mlp_b2": P["mlp_b2"].reshape(1, EMBED),
        "neck_w": P["neck_w"], "neck_b": P["neck_b"].reshape(1, EMBED),
        "neck_ln_g": P["neck_ln_g"].reshape(1, EMBED),
        "neck_ln_b": P["neck_ln_b"].reshape(1, EMBED),
        "dense_pe": dense_pe,
        "no_mask": P["no_mask_embed"].reshape(1, EMBED),
        "out_tokens": jnp.concatenate([P["iou_token"], P["mask_tokens"]], axis=0),
        "attn_qkv_w": P["attn_qkv_w"].reshape(4 * EMBED, 3 * EMBED),
        "attn_qkv_b": P["attn_qkv_b"].reshape(4, 3 * EMBED),
        "attn_o_w": P["attn_o_w"].reshape(4 * EMBED, EMBED),
        "attn_o_b": P["attn_o_b"].reshape(4, EMBED),
        "dec_ln_g": P["dec_ln_g"], "dec_ln_b": P["dec_ln_b"],
        "dec_mlp_w1": P["dec_mlp_w1"], "dec_mlp_b1": P["dec_mlp_b1"].reshape(1, MLP_DIM),
        "dec_mlp_w2": P["dec_mlp_w2"], "dec_mlp_b2": P["dec_mlp_b2"].reshape(1, EMBED),
        "up1_w": P["up1_w"], "up1_b": P["up1_b"].reshape(1, UP_C1),
        "up2_w": P["up2_w"], "up2_b": P["up2_b"].reshape(1, UP_C2),
        "hyper_w1_bd": w1bd, "hyper_b1_cat": P["hyper_b1"].reshape(1, E4),
        "hyper_w2_bd": w2bd, "hyper_b2_cat": P["hyper_b2"].reshape(1, NUM_MASK_TOKENS * UP_C2),
        "bd_mask_wide": jnp.kron(jnp.eye(NUM_MASK_TOKENS, dtype=f32),
                                 jnp.ones((1, EMBED), f32)),
        "bd_mask_narrow": jnp.kron(jnp.eye(NUM_MASK_TOKENS, dtype=f32),
                                   jnp.ones((1, UP_C2), f32)),
        "iou_w1": P["iou_w1"], "iou_b1": P["iou_b1"].reshape(1, EMBED),
        "iou_w2": P["iou_w2"], "iou_b2": P["iou_b2"].reshape(1, NUM_MASK_TOKENS),
    }

    slab = jnp.zeros((total_rows, SLAB_W), f32)
    for name, (off, r, c) in layout.items():
        slab = slab.at[off:off + r, :c].set(vals[name].astype(f32))

    # constant nearest-4x upsample matrix (the two nearest-2x upsamples of the
    # ConvTranspose2d stand-in commute with the pointwise linears and are folded
    # into a single lane-dense S -> LOW*LOW matmul)
    pidx = jnp.arange(LOW * LOW)
    r_, c_ = pidx // LOW, pidx % LOW
    src_idx = (r_ // (LOW // GRID)) * GRID + (c_ // (LOW // GRID))
    ups = jax.nn.one_hot(src_idx, S, dtype=f32).T                    # (S, 256)

    return {"slab": slab, "ups": ups}


# --------------------------- fused SAM kernel (per image) ----------------------
def _build_kernel(layout, Bp, n_sparse):
    """Encoder + prompt/mask decoder for one image, all prompt groups unrolled."""
    f32 = jnp.float32
    att_scale = 1.0 / (DH ** 0.5)

    def kernel(patch_ref, sparse_ref, slab_ref, ups_ref, out_ref):
        def rd(name):
            off, r, c = layout[name]
            return slab_ref[off:off + r, :c]

        def mha(q_in, k_in, v_in, wqkv, bqkv, wo, bo):
            # fused QKV matmul for self-attention; slice ACTIVATIONS per head
            if q_in is k_in and k_in is v_in:
                qkv = jnp.dot(q_in, wqkv, preferred_element_type=f32) + bqkv
                q, k, v = qkv[:, :EMBED], qkv[:, EMBED:2 * EMBED], qkv[:, 2 * EMBED:]
            else:
                q = jnp.dot(q_in, wqkv[:, :EMBED], preferred_element_type=f32) + bqkv[:, :EMBED]
                k = (jnp.dot(k_in, wqkv[:, EMBED:2 * EMBED], preferred_element_type=f32)
                     + bqkv[:, EMBED:2 * EMBED])
                v = (jnp.dot(v_in, wqkv[:, 2 * EMBED:], preferred_element_type=f32)
                     + bqkv[:, 2 * EMBED:])
            outs = []
            for hh in range(HEADS):
                sl = slice(hh * DH, (hh + 1) * DH)
                s = lax.dot_general(q[:, sl], k[:, sl], (((1,), (1,)), ((), ())),
                                    preferred_element_type=f32) * att_scale
                p = jax.nn.softmax(s, axis=-1)
                outs.append(jnp.dot(p, v[:, sl], preferred_element_type=f32))
            o = jnp.concatenate(outs, axis=-1)
            return jnp.dot(o, wo, preferred_element_type=f32) + bo

        # ----------------- image encoder (reduced ViT + neck) -----------------
        x = jnp.dot(patch_ref[0], rd("patch_w"), preferred_element_type=f32) + rd("patch_b")
        x = x + rd("pos_emb")
        h = _layernorm(x, rd("ln1_g"), rd("ln1_b"), 1e-5)
        x = x + mha(h, h, h, rd("qkv_w"), rd("qkv_b"), rd("proj_w"), rd("proj_b"))
        h = _layernorm(x, rd("ln2_g"), rd("ln2_b"), 1e-5)
        h = jax.nn.gelu(jnp.dot(h, rd("mlp_w1"), preferred_element_type=f32) + rd("mlp_b1"))
        x = x + jnp.dot(h, rd("mlp_w2"), preferred_element_type=f32) + rd("mlp_b2")
        x = jnp.dot(x, rd("neck_w"), preferred_element_type=f32) + rd("neck_b")
        src0 = _layernorm(x, rd("neck_ln_g"), rd("neck_ln_b"), 1e-6)       # (S, EMBED)

        # ----------------- mask decoder: hoisted / shared loads ---------------
        pos = rd("dense_pe")
        src_base = src0 + rd("no_mask")
        out_tok = rd("out_tokens")
        sparse_all = sparse_ref[0]
        ups = ups_ref[...]

        ow, _, _ = layout["attn_qkv_w"]
        obq, _, _ = layout["attn_qkv_b"]
        oo, _, _ = layout["attn_o_w"]
        obo, _, _ = layout["attn_o_b"]
        og, _, _ = layout["dec_ln_g"]
        olb, _, _ = layout["dec_ln_b"]
        attn_w = [(slab_ref[ow + i * EMBED: ow + (i + 1) * EMBED, :3 * EMBED],
                   slab_ref[obq + i: obq + i + 1, :3 * EMBED],
                   slab_ref[oo + i * EMBED: oo + (i + 1) * EMBED, :EMBED],
                   slab_ref[obo + i: obo + i + 1, :EMBED]) for i in range(4)]
        ln_w = [(slab_ref[og + i: og + i + 1, :EMBED],
                 slab_ref[olb + i: olb + i + 1, :EMBED]) for i in range(4)]

        dmw1, dmb1 = rd("dec_mlp_w1"), rd("dec_mlp_b1")
        dmw2, dmb2 = rd("dec_mlp_w2"), rd("dec_mlp_b2")
        u1w, u1b, u2w, u2b = rd("up1_w"), rd("up1_b"), rd("up2_w"), rd("up2_b")
        w1bd, b1c = rd("hyper_w1_bd"), rd("hyper_b1_cat")
        w2bd, b2c = rd("hyper_w2_bd"), rd("hyper_b2_cat")
        mwide, mnarrow = rd("bd_mask_wide"), rd("bd_mask_narrow")
        iw1, ib1, iw2, ib2 = rd("iou_w1"), rd("iou_b1"), rd("iou_w2"), rd("iou_b2")

        def dec_attn(q_in, k_in, v_in, i):
            wq, bq, wo, bo = attn_w[i]
            return mha(q_in, k_in, v_in, wq, bq, wo, bo)

        def dec_ln(y, i):
            g, b = ln_w[i]
            return _layernorm(y, g, b, 1e-5)

        # ----------------- per prompt-group decode (unrolled, stays in vregs) --
        group_rows = []
        for g in range(Bp):
            sp = sparse_all[g * n_sparse:(g + 1) * n_sparse, :]
            tokens = jnp.concatenate([out_tok, sp], axis=0)               # (ST, EMBED)
            src = src_base

            # two-way transformer block + final token->image attention
            tokens = tokens + dec_attn(tokens, tokens, tokens, 0)
            tokens = dec_ln(tokens, 0)
            tokens = tokens + dec_attn(tokens, src + pos, src, 1)
            tokens = dec_ln(tokens, 1)
            hm = jnp.maximum(jnp.dot(tokens, dmw1, preferred_element_type=f32) + dmb1, 0.0)
            hm = jnp.dot(hm, dmw2, preferred_element_type=f32) + dmb2
            tokens = dec_ln(tokens + hm, 2)
            src = src + dec_attn(src + pos, tokens, tokens, 2)
            src = dec_ln(src, 3)
            tokens = tokens + dec_attn(tokens, src + pos, src, 3)

            # output upscaling (pointwise at 4x4; nearest 4x folded into `ups`)
            feat = jax.nn.gelu(jnp.dot(src, u1w, preferred_element_type=f32) + u1b)
            feat = jax.nn.gelu(jnp.dot(feat, u2w, preferred_element_type=f32) + u2b)  # (S, UP_C2)

            # hypernetwork MLPs as lane-dense block-diagonal matmuls
            mask_tok = tokens[1:1 + NUM_MASK_TOKENS, :]                   # (4, EMBED)
            t_layout = jnp.concatenate([mask_tok] * NUM_MASK_TOKENS, axis=1) * mwide
            h1 = jnp.maximum(jnp.dot(t_layout, w1bd, preferred_element_type=f32) + b1c, 0.0)
            h2 = (jnp.dot(h1, w2bd, preferred_element_type=f32) + b2c) * mnarrow   # (4, 4*UP_C2)
            feat_rep = jnp.concatenate([feat] * NUM_MASK_TOKENS, axis=1)           # (S, 4*UP_C2)
            m4 = lax.dot_general(h2, feat_rep, (((1,), (1,)), ((), ())),
                                 preferred_element_type=f32)                       # (4, S)
            masks_g = jnp.dot(m4, ups, preferred_element_type=f32)                 # (4, 256)

            # IoU head, merged into the lane-dense output slab as an extra row
            it = tokens[0:1, :]
            i1 = jnp.maximum(jnp.dot(it, iw1, preferred_element_type=f32) + ib1, 0.0)
            iou = jnp.dot(i1, iw2, preferred_element_type=f32) + ib2               # (1, 4)
            iou_row = jnp.concatenate(
                [iou, jnp.zeros((1, LOW * LOW - NUM_MASK_TOKENS), f32)], axis=1)

            group_rows.append(jnp.concatenate([masks_g, iou_row], axis=0))         # (5, 256)

        out_ref[0] = jnp.concatenate(group_rows, axis=0)                  # (Bp*5, 256)

    return kernel


# ------------------------------ parameter init --------------------------------
def init_params(key):
    ks = iter(jax.random.split(key, 64))

    def nrm(shape, s=0.02):
        return s * jax.random.normal(next(ks), shape, jnp.float32)

    def zeros(shape):
        return jnp.zeros(shape, jnp.float32)

    def ones(shape):
        return jnp.ones(shape, jnp.float32)

    P = {}
    # --- image encoder (reduced ViT: one block + linear neck) ---
    P["patch_w"] = nrm((3 * PATCH * PATCH, EMBED)); P["patch_b"] = zeros((EMBED,))
    P["pos_emb"] = nrm((S, EMBED))
    P["ln1_g"] = ones((EMBED,)); P["ln1_b"] = zeros((EMBED,))
    P["qkv_w"] = nrm((EMBED, 3 * EMBED)); P["qkv_b"] = zeros((3 * EMBED,))
    P["proj_w"] = nrm((EMBED, EMBED)); P["proj_b"] = zeros((EMBED,))
    P["ln2_g"] = ones((EMBED,)); P["ln2_b"] = zeros((EMBED,))
    P["mlp_w1"] = nrm((EMBED, MLP_DIM)); P["mlp_b1"] = zeros((MLP_DIM,))
    P["mlp_w2"] = nrm((MLP_DIM, EMBED)); P["mlp_b2"] = zeros((EMBED,))
    P["neck_w"] = nrm((EMBED, EMBED)); P["neck_b"] = zeros((EMBED,))
    P["neck_ln_g"] = ones((EMBED,)); P["neck_ln_b"] = zeros((EMBED,))
    # --- prompt encoder ---
    P["pe_gauss"] = jax.random.normal(next(ks), (2, PE_F), jnp.float32)
    P["point_embed"] = nrm((2, EMBED))          # label 0 / 1 embeddings
    P["not_a_point"] = nrm((EMBED,))
    P["no_mask_embed"] = nrm((EMBED,))
    # --- mask decoder (4 attn blocks: self, t2i, i2t, final; q|k|v stacked last dim) ---
    P["iou_token"] = nrm((1, EMBED))
    P["mask_tokens"] = nrm((NUM_MASK_TOKENS, EMBED))
    P["attn_qkv_w"] = nrm((4, EMBED, 3 * EMBED)); P["attn_qkv_b"] = zeros((4, 1, 3 * EMBED))
    P["attn_o_w"] = nrm((4, EMBED, EMBED)); P["attn_o_b"] = zeros((4, 1, EMBED))
    P["dec_ln_g"] = ones((4, EMBED)); P["dec_ln_b"] = zeros((4, EMBED))
    P["dec_mlp_w1"] = nrm((EMBED, MLP_DIM)); P["dec_mlp_b1"] = zeros((MLP_DIM,))
    P["dec_mlp_w2"] = nrm((MLP_DIM, EMBED)); P["dec_mlp_b2"] = zeros((EMBED,))
    P["up1_w"] = nrm((EMBED, UP_C1)); P["up1_b"] = zeros((UP_C1,))
    P["up2_w"] = nrm((UP_C1, UP_C2)); P["up2_b"] = zeros((UP_C2,))
    P["hyper_w1"] = nrm((NUM_MASK_TOKENS, EMBED, EMBED))
    P["hyper_b1"] = zeros((NUM_MASK_TOKENS, EMBED))
    P["hyper_w2"] = nrm((NUM_MASK_TOKENS, EMBED, UP_C2))
    P["hyper_b2"] = zeros((NUM_MASK_TOKENS, UP_C2))
    P["iou_w1"] = nrm((EMBED, EMBED)); P["iou_b1"] = zeros((EMBED,))
    P["iou_w2"] = nrm((EMBED, NUM_MASK_TOKENS)); P["iou_b2"] = zeros((NUM_MASK_TOKENS,))
    # --- pixel mean/std buffers (same values as the PyTorch module) ---
    P["pixel_mean"] = jnp.array([123.675, 116.28, 103.53], jnp.float32)
    P["pixel_std"] = jnp.array([58.395, 57.12, 57.375], jnp.float32)
    return P


# ------------------------------- end-to-end -----------------------------------
@functools.partial(jax.jit,
                   static_argnames=("multimask_output", "input_size", "original_size"))
def _sam_forward(images, point_coords, point_labels, P, packed, *,
                 multimask_output, input_size, original_size):
    B, _, h, w = images.shape
    Bp, N = point_labels.shape[1], point_labels.shape[2]
    n_sparse = N + 1

    # --- preprocess: pad with the per-channel mean; mean/std normalization is folded
    #     into the packed patch-embedding weights, so padding maps to exactly 0 just
    #     like the reference "normalize then zero-pad". ---
    mean = P["pixel_mean"].reshape(1, 3, 1, 1)
    canvas = jnp.broadcast_to(mean, (B, 3, IMG_SIZE, IMG_SIZE))
    canvas = canvas.at[:, :, :h, :w].set(images)
    patches = canvas.reshape(B, 3, GRID, PATCH, GRID, PATCH)
    patches = jnp.transpose(patches, (0, 2, 4, 1, 3, 5)).reshape(B, S, 3 * PATCH * PATCH)

    # --- prompt encoder (sparse part) hoisted to the wrapper: fourier PE + label
    #     embedding + trailing not-a-point padding token per prompt group ---
    coords01 = (point_coords + 0.5) / IMG_SIZE                       # (B, Bp, N, 2)
    pt_tok = _fourier_pe(coords01, P["pe_gauss"])
    pt_tok = pt_tok + jax.nn.one_hot(point_labels, 2, dtype=jnp.float32) @ P["point_embed"]
    nap = jnp.broadcast_to(P["not_a_point"].reshape(1, 1, 1, EMBED), (B, Bp, 1, EMBED))
    sparse = jnp.concatenate([pt_tok, nap], axis=2).reshape(B, Bp * n_sparse, EMBED)

    # --- single fused pallas_call: encoder + decoder, one grid step per image ---
    # TODO(synk): TinyViT/ImageEncoderViT backbone reduced to a single ViT block + linear neck.
    layout, total_rows = _slab_layout()
    kernel = _build_kernel(layout, Bp, n_sparse)
    out_rows = Bp * (NUM_MASK_TOKENS + 1)

    raw = pl.pallas_call(
        kernel,
        out_shape=jax.ShapeDtypeStruct((B, out_rows, LOW * LOW), jnp.float32),
        grid=(B,),
        in_specs=[
            pl.BlockSpec((1, S, 3 * PATCH * PATCH), lambda b: (b, 0, 0)),
            pl.BlockSpec((1, Bp * n_sparse, EMBED), lambda b: (b, 0, 0)),
            pl.BlockSpec((total_rows, SLAB_W), lambda b: (0, 0)),
            pl.BlockSpec((S, LOW * LOW), lambda b: (0, 0)),
        ],
        out_specs=pl.BlockSpec((1, out_rows, LOW * LOW), lambda b: (b, 0, 0)),
        compiler_params=pltpu.CompilerParams(dimension_semantics=("parallel",)),
        cost_estimate=pl.CostEstimate(flops=2_000_000, transcendentals=4_000,
                                      bytes_accessed=900_000),
    )(patches, sparse, packed["slab"], packed["ups"])

    raw = raw.reshape(B, Bp, NUM_MASK_TOKENS + 1, LOW * LOW)
    masks_lr = raw[:, :, :NUM_MASK_TOKENS, :].reshape(B, Bp, NUM_MASK_TOKENS, LOW, LOW)
    iou_pred = raw[:, :, NUM_MASK_TOKENS, :NUM_MASK_TOKENS]

    if multimask_output:
        masks_lr, iou_pred = masks_lr[:, :, 1:], iou_pred[:, :, 1:]
    else:
        masks_lr, iou_pred = masks_lr[:, :, :1], iou_pred[:, :, :1]

    # --- postprocess_masks: upsample to model input size, strip padding, resize ---
    # TODO(synk): F.interpolate(bilinear, align_corners=False) handled with jax.image.resize glue.
    Cm = masks_lr.shape[2]
    m = masks_lr.reshape(B * Bp, Cm, LOW, LOW)
    m = jax.image.resize(m, (B * Bp, Cm, IMG_SIZE, IMG_SIZE), method="bilinear")
    m = m[..., :input_size[0], :input_size[1]]
    m = jax.image.resize(m, (B * Bp, Cm) + tuple(original_size), method="bilinear")
    masks = (m > MASK_THRESHOLD).reshape(B, Bp, Cm, *original_size)
    return masks, iou_pred, masks_lr


def mobile_sam_forward(batched_input, multimask_output, P, packed):
    """Mirrors MobileSam.forward: list of per-image dicts in, list of dicts out."""
    images = jnp.stack([rec["image"] for rec in batched_input], axis=0)
    point_coords = jnp.stack([rec["point_coords"] for rec in batched_input], axis=0)
    point_labels = jnp.stack([rec["point_labels"] for rec in batched_input], axis=0)
    # TODO(synk): all records assumed to share input/original sizes so the batch jits together.
    input_size = tuple(int(s) for s in batched_input[0]["image"].shape[-2:])
    original_size = tuple(int(s) for s in batched_input[0]["original_size"])

    masks, iou_pred, low_res = _sam_forward(
        images, point_coords, point_labels, P, packed,
        multimask_output=multimask_output,
        input_size=input_size, original_size=original_size)

    outputs = []
    for b in range(len(batched_input)):
        outputs.append({"masks": masks[b],
                        "iou_predictions": iou_pred[b],
                        "low_res_logits": low_res[b]})
    return outputs


# ----------------------------------- main --------------------------------------
if __name__ == "__main__":
    key = jax.random.PRNGKey(0)
    P = init_params(jax.random.PRNGKey(42))
    packed = pack_params(P)

    k1, k2, k3, k4 = jax.random.split(key, 4)
    h, w = 28, 30                       # pre-padding model-input size (< IMG_SIZE)
    original_size = (56, 60)
    img1 = jax.random.uniform(k1, (3, h, w), jnp.float32) * 255.0
    img2 = jax.random.uniform(k2, (3, h, w), jnp.float32) * 255.0
    pts1 = jax.random.uniform(k3, (2, 3, 2), jnp.float32) * jnp.array([w, h], jnp.float32)
    pts2 = jax.random.uniform(k4, (2, 3, 2), jnp.float32) * jnp.array([w, h], jnp.float32)
    labels = jnp.array([[1, 1, 0], [1, 0, 0]], jnp.int32)

    batched_input = [
        {"image": img1, "original_size": original_size,
         "point_coords": pts1, "point_labels": labels},
        {"image": img2, "original_size": original_size,
         "point_coords": pts2, "point_labels": labels},
    ]

    outputs = mobile_sam_forward(batched_input, multimask_output=True, P=P, packed=packed)
    for out in outputs:
        jax.block_until_ready(out["masks"])
        jax.block_until_ready(out["iou_predictions"])
        jax.block_until_ready(out["low_res_logits"])

    assert outputs[0]["masks"].shape == (2, 3, 56, 60)
    assert outputs[0]["masks"].dtype == jnp.bool_
    assert outputs[0]["iou_predictions"].shape == (2, 3)
    assert outputs[0]["low_res_logits"].shape == (2, 3, 16, 16)
    print("KERNEL_OK")
</pallas_src>

<mosaic_0001>
module attributes {stable_mosaic.version = 11 : i64} {
  func.func @kernel(%arg0: i32, %arg1: memref<1x16x192xf32, #tpu.memory_space<vmem>>, %arg2: memref<1x8x32xf32, #tpu.memory_space<vmem>>, %arg3: memref<1360x128xf32, #tpu.memory_space<vmem>>, %arg4: memref<16x256xf32, #tpu.memory_space<vmem>>, %arg5: memref<1x10x256xf32, #tpu.memory_space<vmem>>) attributes {dimension_semantics = [#tpu.dimension_semantics<parallel>], iteration_bounds = array<i64: 2>, scalar_prefetch = 0 : i64, scratch_operands = 0 : i64, tpu.core_type = #tpu.core_type<tc>, window_params = [{transform_indices = @transform_0, window_bounds = array<i64: 1, 16, 192>}, {transform_indices = @transform_1, window_bounds = array<i64: 1, 8, 32>}, {pipeline_mode = #tpu.pipeline_mode<synchronous>, transform_indices = @transform_2, window_bounds = array<i64: 1360, 128>}, {pipeline_mode = #tpu.pipeline_mode<synchronous>, transform_indices = @transform_3, window_bounds = array<i64: 16, 256>}, {transform_indices = @transform_4, window_bounds = array<i64: 1, 10, 256>}]} {
    %c0 = arith.constant 0 : index
    %c0_0 = arith.constant 0 : index
    %c0_1 = arith.constant 0 : index
    %0 = vector.load %arg1[%c0, %c0_0, %c0_1] : memref<1x16x192xf32, #tpu.memory_space<vmem>>, vector<1x16x192xf32>
    %1 = vector.shape_cast %0 : vector<1x16x192xf32> to vector<16x192xf32>
    %c0_2 = arith.constant 0 : index
    %c0_3 = arith.constant 0 : index
    %2 = vector.load %arg3[%c0_2, %c0_3] : memref<1360x128xf32, #tpu.memory_space<vmem>>, vector<192x32xf32>
    %cst = arith.constant dense<0.000000e+00> : vector<16x32xf32>
    %3 = tpu.matmul %1, %2, %cst {dimension_numbers = #tpu.dot_dimension_numbers<[1], [0], [0], [1], [0, 0, 1, 1], [], []>} : vector<16x192xf32>, vector<192x32xf32>, vector<16x32xf32> -> vector<16x32xf32>
    %c192 = arith.constant 192 : index
    %c0_4 = arith.constant 0 : index
    %4 = vector.load %arg3[%c192, %c0_4] : memref<1360x128xf32, #tpu.memory_space<vmem>>, vector<1x32xf32>
    %5 = vector.broadcast %4 : vector<1x32xf32> to vector<16x32xf32>
    %6 = arith.addf %3, %5 : vector<16x32xf32>
    %c200 = arith.constant 200 : index
    %c0_5 = arith.constant 0 : index
    %7 = vector.load %arg3[%c200, %c0_5] : memref<1360x128xf32, #tpu.memory_space<vmem>>, vector<16x32xf32>
    %8 = arith.addf %6, %7 : vector<16x32xf32>
    %c216 = arith.constant 216 : index
    %c0_6 = arith.constant 0 : index
    %9 = vector.load %arg3[%c216, %c0_6] : memref<1360x128xf32, #tpu.memory_space<vmem>>, vector<1x32xf32>
    %c224 = arith.constant 224 : index
    %c0_7 = arith.constant 0 : index
    %10 = vector.load %arg3[%c224, %c0_7] : memref<1360x128xf32, #tpu.memory_space<vmem>>, vector<1x32xf32>
    %cst_8 = arith.constant dense<0.000000e+00> : vector<16xf32>
    %11 = vector.multi_reduction <add>, %8, %cst_8 [1] : vector<16x32xf32> to vector<16xf32>
    %12 = vector.shape_cast %11 : vector<16xf32> to vector<16x1xf32>
    %cst_9 = arith.constant 3.200000e+01 : f32
    %13 = vector.broadcast %cst_9 : f32 to vector<16x1xf32>
    %14 = arith.divf %12, %13 : vector<16x1xf32>
    %15 = vector.broadcast %14 : vector<16x1xf32> to vector<16x32xf32>
    %16 = arith.subf %8, %15 : vector<16x32xf32>
    %17 = arith.mulf %16, %16 : vector<16x32xf32>
    %cst_10 = arith.constant dense<0.000000e+00> : vector<16xf32>
    %18 = vector.multi_reduction <add>, %17, %cst_10 [1] : vector<16x32xf32> to vector<16xf32>
    %19 = vector.shape_cast %18 : vector<16xf32> to vector<16x1xf32>
    %cst_11 = arith.constant 3.200000e+01 : f32
    %20 = vector.broadcast %cst_11 : f32 to vector<16x1xf32>
    %21 = arith.divf %19, %20 : vector<16x1xf32>
    %22 = vector.broadcast %14 : vector<16x1xf32> to vector<16x32xf32>
    %23 = arith.subf %8, %22 : vector<16x32xf32>
    %cst_12 = arith.constant 9.99999974E-6 : f32
    %24 = vector.broadcast %cst_12 : f32 to vector<16x1xf32>
    %25 = arith.addf %21, %24 : vector<16x1xf32>
    %26 = math.rsqrt %25 : vector<16x1xf32>
    %27 = vector.broadcast %26 : vector<16x1xf32> to vector<16x32xf32>
    %28 = arith.mulf %23, %27 : vector<16x32xf32>
    %29 = vector.broadcast %9 : vector<1x32xf32> to vector<16x32xf32>
    %30 = arith.mulf %28, %29 : vector<16x32xf32>
    %31 = vector.broadcast %10 : vector<1x32xf32> to vector<16x32xf32>
    %32 = arith.addf %30, %31 : vector<16x32xf32>
    %c232 = arith.constant 232 : index
    %c0_13 = arith.constant 0 : index
    %33 = vector.load %arg3[%c232, %c0_13] : memref<1360x128xf32, #tpu.memory_space<vmem>>, vector<32x96xf32>
    %c264 = arith.constant 264 : index
    %c0_14 = arith.constant 0 : index
    %34 = vector.load %arg3[%c264, %c0_14] : memref<1360x128xf32, #tpu.memory_space<vmem>>, vector<1x96xf32>
    %c272 = arith.constant 272 : index
    %c0_15 = arith.constant 0 : index
    %35 = vector.load %arg3[%c272, %c0_15] : memref<1360x128xf32, #tpu.memory_space<vmem>>, vector<32x32xf32>
    %c304 = arith.constant 304 : index
    %c0_16 = arith.constant 0 : index
    %36 = vector.load %arg3[%c304, %c0_16] : memref<1360x128xf32, #tpu.memory_space<vmem>>, vector<1x32xf32>
    %cst_17 = arith.constant dense<0.000000e+00> : vector<16x96xf32>
    %37 = tpu.matmul %32, %33, %cst_17 {dimension_numbers = #tpu.dot_dimension_numbers<[1], [0], [0], [1], [0, 0, 1, 1], [], []>} : vector<16x32xf32>, vector<32x96xf32>, vector<16x96xf32> -> vector<16x96xf32>
    %38 = vector.broadcast %34 : vector<1x96xf32> to vector<16x96xf32>
    %39 = arith.addf %37, %38 : vector<16x96xf32>
    %40 = vector.extract_strided_slice %39 {offsets = [0, 0], sizes = [16, 32], strides = [1, 1]} : vector<16x96xf32> to vector<16x32xf32>
    %41 = vector.extract_strided_slice %39 {offsets = [0, 32], sizes = [16, 32], strides = [1, 1]} : vector<16x96xf32> to vector<16x32xf32>
    %42 = vector.extract_strided_slice %39 {offsets = [0, 64], sizes = [16, 32], strides = [1, 1]} : vector<16x96xf32> to vector<16x32xf32>
    %43 = vector.extract_strided_slice %40 {offsets = [0, 0], sizes = [16, 16], strides = [1, 1]} : vector<16x32xf32> to vector<16x16xf32>
    %44 = vector.extract_strided_slice %41 {offsets = [0, 0], sizes = [16, 16], strides = [1, 1]} : vector<16x32xf32> to vector<16x16xf32>
    %cst_18 = arith.constant dense<0.000000e+00> : vector<16x16xf32>
    %45 = tpu.matmul %43, %44, %cst_18 {dimension_numbers = #tpu.dot_dimension_numbers<[1], [1], [0], [0], [0, 0, 1, 0], [], []>} : vector<16x16xf32>, vector<16x16xf32>, vector<16x16xf32> -> vector<16x16xf32>
    %cst_19 = arith.constant 2.500000e-01 : f32
    %46 = vector.broadcast %cst_19 : f32 to vector<16x16xf32>
    %47 = arith.mulf %45, %46 : vector<16x16xf32>
    %cst_20 = arith.constant dense<0xFF800000> : vector<16xf32>
    %48 = vector.multi_reduction <maximumf>, %47, %cst_20 [1] : vector<16x16xf32> to vector<16xf32>
    %cst_21 = arith.constant 0xFF800000 : f32
    %49 = vector.broadcast %cst_21 : f32 to vector<16xf32>
    %50 = arith.maximumf %49, %48 : vector<16xf32>
    %51 = vector.shape_cast %50 : vector<16xf32> to vector<16x1xf32>
    %52 = vector.broadcast %51 : vector<16x1xf32> to vector<16x16xf32>
    %53 = arith.subf %47, %52 : vector<16x16xf32>
    %54 = math.exp %53 : vector<16x16xf32>
    %cst_22 = arith.constant dense<0.000000e+00> : vector<16xf32>
    %55 = vector.multi_reduction <add>, %54, %cst_22 [1] : vector<16x16xf32> to vector<16xf32>
    %56 = vector.shape_cast %55 : vector<16xf32> to vector<16x1xf32>
    %57 = vector.broadcast %56 : vector<16x1xf32> to vector<16x16xf32>
    %58 = arith.divf %54, %57 : vector<16x16xf32>
    %59 = vector.extract_strided_slice %42 {offsets = [0, 0], sizes = [16, 16], strides = [1, 1]} : vector<16x32xf32> to vector<16x16xf32>
    %cst_23 = arith.constant dense<0.000000e+00> : vector<16x16xf32>
    %60 = tpu.matmul %58, %59, %cst_23 {dimension_numbers = #tpu.dot_dimension_numbers<[1], [0], [0], [1], [0, 0, 1, 1], [], []>} : vector<16x16xf32>, vector<16x16xf32>, vector<16x16xf32> -> vector<16x16xf32>
    %61 = vector.extract_strided_slice %40 {offsets = [0, 16], sizes = [16, 16], strides = [1, 1]} : vector<16x32xf32> to vector<16x16xf32>
    %62 = vector.extract_strided_slice %41 {offsets = [0, 16], sizes = [16, 16], strides = [1, 1]} : vector<16x32xf32> to vector<16x16xf32>
    %cst_24 = arith.constant dense<0.000000e+00> : vector<16x16xf32>
    %63 = tpu.matmul %61, %62, %cst_24 {dimension_numbers = #tpu.dot_dimension_numbers<[1], [1], [0], [0], [0, 0, 1, 0], [], []>} : vector<16x16xf32>, vector<16x16xf32>, vector<16x16xf32> -> vector<16x16xf32>
    %cst_25 = arith.constant 2.500000e-01 : f32
    %64 = vector.broadcast %cst_25 : f32 to vector<16x16xf32>
    %65 = arith.mulf %63, %64 : vector<16x16xf32>
    %cst_26 = arith.constant dense<0xFF800000> : vector<16xf32>
    %66 = vector.multi_reduction <maximumf>, %65, %cst_26 [1] : vector<16x16xf32> to vector<16xf32>
    %cst_27 = arith.constant 0xFF800000 : f32
    %67 = vector.broadcast %cst_27 : f32 to vector<16xf32>
    %68 = arith.maximumf %67, %66 : vector<16xf32>
    %69 = vector.shape_cast %68 : vector<16xf32> to vector<16x1xf32>
    %70 = vector.broadcast %69 : vector<16x1xf32> to vector<16x16xf32>
    %71 = arith.subf %65, %70 : vector<16x16xf32>
    %72 = math.exp %71 : vector<16x16xf32>
    %cst_28 = arith.constant dense<0.000000e+00> : vector<16xf32>
    %73 = vector.multi_reduction <add>, %72, %cst_28 [1] : vector<16x16xf32> to vector<16xf32>
    %74 = vector.shape_cast %73 : vector<16xf32> to vector<16x1xf32>
    %75 = vector.broadcast %74 : vector<16x1xf32> to vector<16x16xf32>
    %76 = arith.divf %72, %75 : vector<16x16xf32>
    %77 = vector.extract_strided_slice %42 {offsets = [0, 16], sizes = [16, 16], strides = [1, 1]} : vector<16x32xf32> to vector<16x16xf32>
    %cst_29 = arith.constant dense<0.000000e+00> : vector<16x16xf32>
    %78 = tpu.matmul %76, %77, %cst_29 {dimension_numbers = #tpu.dot_dimension_numbers<[1], [0], [0], [1], [0, 0, 1, 1], [], []>} : vector<16x16xf32>, vector<16x16xf32>, vector<16x16xf32> -> vector<16x16xf32>
    %79 = tpu.concatenate %60, %78 in 1 : vector<16x16xf32>, vector<16x16xf32> -> vector<16x32xf32>
    %cst_30 = arith.constant dense<0.000000e+00> : vector<16x32xf32>
    %80 = tpu.matmul %79, %35, %cst_30 {dimension_numbers = #tpu.dot_dimension_numbers<[1], [0], [0], [1], [0, 0, 1, 1], [], []>} : vector<16x32xf32>, vector<32x32xf32>, vector<16x32xf32> -> vector<16x32xf32>
    %81 = vector.broadcast %36 : vector<1x32xf32> to vector<16x32xf32>
    %82 = arith.addf %80, %81 : vector<16x32xf32>
    %83 = arith.addf %8, %82 : vector<16x32xf32>
    %c312 = arith.constant 312 : index
    %c0_31 = arith.constant 0 : index
    %84 = vector.load %arg3[%c312, %c0_31] : memref<1360x128xf32, #tpu.memory_space<vmem>>, vector<1x32xf32>
    %c320 = arith.constant 320 : index
    %c0_32 = arith.constant 0 : index
    %85 = vector.load %arg3[%c320, %c0_32] : memref<1360x128xf32, #tpu.memory_space<vmem>>, vector<1x32xf32>
    %cst_33 = arith.constant dense<0.000000e+00> : vector<16xf32>
    %86 = vector.multi_reduction <add>, %83, %cst_33 [1] : vector<16x32xf32> to vector<16xf32>
    %87 = vector.shape_cast %86 : vector<16xf32> to vector<16x1xf32>
    %cst_34 = arith.constant 3.200000e+01 : f32
    %88 = vector.broadcast %cst_34 : f32 to vector<16x1xf32>
    %89 = arith.divf %87, %88 : vector<16x1xf32>
    %90 = vector.broadcast %89 : vector<16x1xf32> to vector<16x32xf32>
    %91 = arith.subf %83, %90 : vector<16x32xf32>
    %92 = arith.mulf %91, %91 : vector<16x32xf32>
    %cst_35 = arith.constant dense<0.000000e+00> : vector<16xf32>
    %93 = vector.multi_reduction <add>, %92, %cst_35 [1] : vector<16x32xf32> to vector<16xf32>
    %94 = vector.shape_cast %93 : vector<16xf32> to vector<16x1xf32>
    %cst_36 = arith.constant 3.200000e+01 : f32
    %95 = vector.broadcast %cst_36 : f32 to vector<16x1xf32>
    %96 = arith.divf %94, %95 : vector<16x1xf32>
    %97 = vector.broadcast %89 : vector<16x1xf32> to vector<16x32xf32>
    %98 = arith.subf %83, %97 : vector<16x32xf32>
    %cst_37 = arith.constant 9.99999974E-6 : f32
    %99 = vector.broadcast %cst_37 : f32 to vector<16x1xf32>
    %100 = arith.addf %96, %99 : vector<16x1xf32>
    %101 = math.rsqrt %100 : vector<16x1xf32>
    %102 = vector.broadcast %101 : vector<16x1xf32> to vector<16x32xf32>
    %103 = arith.mulf %98, %102 : vector<16x32xf32>
    %104 = vector.broadcast %84 : vector<1x32xf32> to vector<16x32xf32>
    %105 = arith.mulf %103, %104 : vector<16x32xf32>
    %106 = vector.broadcast %85 : vector<1x32xf32> to vector<16x32xf32>
    %107 = arith.addf %105, %106 : vector<16x32xf32>
    %c328 = arith.constant 328 : index
    %c0_38 = arith.constant 0 : index
    %108 = vector.load %arg3[%c328, %c0_38] : memref<1360x128xf32, #tpu.memory_space<vmem>>, vector<32x64xf32>
    %cst_39 = arith.constant dense<0.000000e+00> : vector<16x64xf32>
    %109 = tpu.matmul %107, %108, %cst_39 {dimension_numbers = #tpu.dot_dimension_numbers<[1], [0], [0], [1], [0, 0, 1, 1], [], []>} : vector<16x32xf32>, vector<32x64xf32>, vector<16x64xf32> -> vector<16x64xf32>
    %c360 = arith.constant 360 : index
    %c0_40 = arith.constant 0 : index
    %110 = vector.load %arg3[%c360, %c0_40] : memref<1360x128xf32, #tpu.memory_space<vmem>>, vector<1x64xf32>
    %111 = vector.broadcast %110 : vector<1x64xf32> to vector<16x64xf32>
    %112 = arith.addf %109, %111 : vector<16x64xf32>
    %113 = arith.mulf %112, %112 : vector<16x64xf32>
    %114 = arith.mulf %112, %113 : vector<16x64xf32>
    %cst_41 = arith.constant 4.471500e-02 : f32
    %115 = vector.broadcast %cst_41 : f32 to vector<16x64xf32>
    %116 = arith.mulf %115, %114 : vector<16x64xf32>
    %117 = arith.addf %112, %116 : vector<16x64xf32>
    %cst_42 = arith.constant 0.797884583 : f32
    %118 = vector.broadcast %cst_42 : f32 to vector<16x64xf32>
    %119 = arith.mulf %118, %117 : vector<16x64xf32>
    %120 = math.tanh %119 : vector<16x64xf32>
    %cst_43 = arith.constant 1.000000e+00 : f32
    %121 = vector.broadcast %cst_43 : f32 to vector<16x64xf32>
    %122 = arith.addf %121, %120 : vector<16x64xf32>
    %cst_44 = arith.constant 5.000000e-01 : f32
    %123 = vector.broadcast %cst_44 : f32 to vector<16x64xf32>
    %124 = arith.mulf %123, %122 : vector<16x64xf32>
    %125 = arith.mulf %112, %124 : vector<16x64xf32>
    %c368 = arith.constant 368 : index
    %c0_45 = arith.constant 0 : index
    %126 = vector.load %arg3[%c368, %c0_45] : memref<1360x128xf32, #tpu.memory_space<vmem>>, vector<64x32xf32>
    %cst_46 = arith.constant dense<0.000000e+00> : vector<16x32xf32>
    %127 = tpu.matmul %125, %126, %cst_46 {dimension_numbers = #tpu.dot_dimension_numbers<[1], [0], [0], [1], [0, 0, 1, 1], [], []>} : vector<16x64xf32>, vector<64x32xf32>, vector<16x32xf32> -> vector<16x32xf32>
    %128 = arith.addf %83, %127 : vector<16x32xf32>
    %c432 = arith.constant 432 : index
    %c0_47 = arith.constant 0 : index
    %129 = vector.load %arg3[%c432, %c0_47] : memref<1360x128xf32, #tpu.memory_space<vmem>>, vector<1x32xf32>
    %130 = vector.broadcast %129 : vector<1x32xf32> to vector<16x32xf32>
    %131 = arith.addf %128, %130 : vector<16x32xf32>
    %c440 = arith.constant 440 : index
    %c0_48 = arith.constant 0 : index
    %132 = vector.load %arg3[%c440, %c0_48] : memref<1360x128xf32, #tpu.memory_space<vmem>>, vector<32x32xf32>
    %cst_49 = arith.constant dense<0.000000e+00> : vector<16x32xf32>
    %133 = tpu.matmul %131, %132, %cst_49 {dimension_numbers = #tpu.dot_dimension_numbers<[1], [0], [0], [1], [0, 0, 1, 1], [], []>} : vector<16x32xf32>, vector<32x32xf32>, vector<16x32xf32> -> vector<16x32xf32>
    %c472 = arith.constant 472 : index
    %c0_50 = arith.constant 0 : index
    %134 = vector.load %arg3[%c472, %c0_50] : memref<1360x128xf32, #tpu.memory_space<vmem>>, vector<1x32xf32>
    %135 = vector.broadcast %134 : vector<1x32xf32> to vector<16x32xf32>
    %136 = arith.addf %133, %135 : vector<16x32xf32>
    %c480 = arith.constant 480 : index
    %c0_51 = arith.constant 0 : index
    %137 = vector.load %arg3[%c480, %c0_51] : memref<1360x128xf32, #tpu.memory_space<vmem>>, vector<1x32xf32>
    %c488 = arith.constant 488 : index
    %c0_52 = arith.constant 0 : index
    %138 = vector.load %arg3[%c488, %c0_52] : memref<1360x128xf32, #tpu.memory_space<vmem>>, vector<1x32xf32>
    %cst_53 = arith.constant dense<0.000000e+00> : vector<16xf32>
    %139 = vector.multi_reduction <add>, %136, %cst_53 [1] : vector<16x32xf32> to vector<16xf32>
    %140 = vector.shape_cast %139 : vector<16xf32> to vector<16x1xf32>
    %cst_54 = arith.constant 3.200000e+01 : f32
    %141 = vector.broadcast %cst_54 : f32 to vector<16x1xf32>
    %142 = arith.divf %140, %141 : vector<16x1xf32>
    %143 = vector.broadcast %142 : vector<16x1xf32> to vector<16x32xf32>
    %144 = arith.subf %136, %143 : vector<16x32xf32>
    %145 = arith.mulf %144, %144 : vector<16x32xf32>
    %cst_55 = arith.constant dense<0.000000e+00> : vector<16xf32>
    %146 = vector.multi_reduction <add>, %145, %cst_55 [1] : vector<16x32xf32> to vector<16xf32>
    %147 = vector.shape_cast %146 : vector<16xf32> to vector<16x1xf32>
    %cst_56 = arith.constant 3.200000e+01 : f32
    %148 = vector.broadcast %cst_56 : f32 to vector<16x1xf32>
    %149 = arith.divf %147, %148 : vector<16x1xf32>
    %150 = vector.broadcast %142 : vector<16x1xf32> to vector<16x32xf32>
    %151 = arith.subf %136, %150 : vector<16x32xf32>
    %cst_57 = arith.constant 9.99999997E-7 : f32
    %152 = vector.broadcast %cst_57 : f32 to vector<16x1xf32>
    %153 = arith.addf %149, %152 : vector<16x1xf32>
    %154 = math.rsqrt %153 : vector<16x1xf32>
    %155 = vector.broadcast %154 : vector<16x1xf32> to vector<16x32xf32>
    %156 = arith.mulf %151, %155 : vector<16x32xf32>
    %157 = vector.broadcast %137 : vector<1x32xf32> to vector<16x32xf32>
    %158 = arith.mulf %156, %157 : vector<16x32xf32>
    %159 = vector.broadcast %138 : vector<1x32xf32> to vector<16x32xf32>
    %160 = arith.addf %158, %159 : vector<16x32xf32>
    %c496 = arith.constant 496 : index
    %c0_58 = arith.constant 0 : index
    %161 = vector.load %arg3[%c496, %c0_58] : memref<1360x128xf32, #tpu.memory_space<vmem>>, vector<16x32xf32>
    %c512 = arith.constant 512 : index
    %c0_59 = arith.constant 0 : index
    %162 = vector.load %arg3[%c512, %c0_59] : memref<1360x128xf32, #tpu.memory_space<vmem>>, vector<1x32xf32>
    %163 = vector.broadcast %162 : vector<1x32xf32> to vector<16x32xf32>
    %164 = arith.addf %160, %163 : vector<16x32xf32>
    %c520 = arith.constant 520 : index
    %c0_60 = arith.constant 0 : index
    %165 = vector.load %arg3[%c520, %c0_60] : memref<1360x128xf32, #tpu.memory_space<vmem>>, vector<5x32xf32>
    %c0_61 = arith.constant 0 : index
    %c0_62 = arith.constant 0 : index
    %c0_63 = arith.constant 0 : index
    %166 = vector.load %arg2[%c0_61, %c0_62, %c0_63] : memref<1x8x32xf32, #tpu.memory_space<vmem>>, vector<1x8x32xf32>
    %167 = vector.shape_cast %166 : vector<1x8x32xf32> to vector<8x32xf32>
    %c0_64 = arith.constant 0 : index
    %c0_65 = arith.constant 0 : index
    %168 = vector.load %arg4[%c0_64, %c0_65] : memref<16x256xf32, #tpu.memory_space<vmem>>, vector<16x256xf32>
    %c528 = arith.constant 528 : index
    %c0_66 = arith.constant 0 : index
    %169 = vector.load %arg3[%c528, %c0_66] : memref<1360x128xf32, #tpu.memory_space<vmem>>, vector<32x96xf32>
    %c656 = arith.constant 656 : index
    %c0_67 = arith.constant 0 : index
    %170 = vector.load %arg3[%c656, %c0_67] : memref<1360x128xf32, #tpu.memory_space<vmem>>, vector<1x96xf32>
    %c664 = arith.constant 664 : index
    %c0_68 = arith.constant 0 : index
    %171 = vector.load %arg3[%c664, %c0_68] : memref<1360x128xf32, #tpu.memory_space<vmem>>, vector<32x32xf32>
    %c792 = arith.constant 792 : index
    %c0_69 = arith.constant 0 : index
    %172 = vector.load %arg3[%c792, %c0_69] : memref<1360x128xf32, #tpu.memory_space<vmem>>, vector<1x32xf32>
    %c560 = arith.constant 560 : index
    %c0_70 = arith.constant 0 : index
    %173 = vector.load %arg3[%c560, %c0_70] : memref<1360x128xf32, #tpu.memory_space<vmem>>, vector<32x96xf32>
    %c657 = arith.constant 657 : index
    %c0_71 = arith.constant 0 : index
    %174 = vector.load %arg3[%c657, %c0_71] : memref<1360x128xf32, #tpu.memory_space<vmem>>, vector<1x96xf32>
    %c696 = arith.constant 696 : index
    %c0_72 = arith.constant 0 : index
    %175 = vector.load %arg3[%c696, %c0_72] : memref<1360x128xf32, #tpu.memory_space<vmem>>, vector<32x32xf32>
    %c793 = arith.constant 793 : index
    %c0_73 = arith.constant 0 : index
    %176 = vector.load %arg3[%c793, %c0_73] : memref<1360x128xf32, #tpu.memory_space<vmem>>, vector<1x32xf32>
    %c592 = arith.constant 592 : index
    %c0_74 = arith.constant 0 : index
    %177 = vector.load %arg3[%c592, %c0_74] : memref<1360x128xf32, #tpu.memory_space<vmem>>, vector<32x96xf32>
    %c658 = arith.constant 658 : index
    %c0_75 = arith.constant 0 : index
    %178 = vector.load %arg3[%c658, %c0_75] : memref<1360x128xf32, #tpu.memory_space<vmem>>, vector<1x96xf32>
    %c728 = arith.constant 728 : index
    %c0_76 = arith.constant 0 : index
    %179 = vector.load %arg3[%c728, %c0_76] : memref<1360x128xf32, #tpu.memory_space<vmem>>, vector<32x32xf32>
    %c794 = arith.constant 794 : index
    %c0_77 = arith.constant 0 : index
    %180 = vector.load %arg3[%c794, %c0_77] : memref<1360x128xf32, #tpu.memory_space<vmem>>, vector<1x32xf32>
    %c624 = arith.constant 624 : index
    %c0_78 = arith.constant 0 : index
    %181 = vector.load %arg3[%c624, %c0_78] : memref<1360x128xf32, #tpu.memory_space<vmem>>, vector<32x96xf32>
    %c659 = arith.constant 659 : index
    %c0_79 = arith.constant 0 : index
    %182 = vector.load %arg3[%c659, %c0_79] : memref<1360x128xf32, #tpu.memory_space<vmem>>, vector<1x96xf32>
    %c760 = arith.constant 760 : index
    %c0_80 = arith.constant 0 : index
    %183 = vector.load %arg3[%c760, %c0_80] : memref<1360x128xf32, #tpu.memory_space<vmem>>, vector<32x32xf32>
    %c795 = arith.constant 795 : index
    %c0_81 = arith.constant 0 : index
    %184 = vector.load %arg3[%c795, %c0_81] : memref<1360x128xf32, #tpu.memory_space<vmem>>, vector<1x32xf32>
    %c800 = arith.constant 800 : index
    %c0_82 = arith.constant 0 : index
    %185 = vector.load %arg3[%c800, %c0_82] : memref<1360x128xf32, #tpu.memory_space<vmem>>, vector<1x32xf32>
    %c808 = arith.constant 808 : index
    %c0_83 = arith.constant 0 : index
    %186 = vector.load %arg3[%c808, %c0_83] : memref<1360x128xf32, #tpu.memory_space<vmem>>, vector<1x32xf32>
    %c801 = arith.constant 801 : index
    %c0_84 = arith.constant 0 : index
    %187 = vector.load %arg3[%c801, %c0_84] : memref<1360x128xf32, #tpu.memory_space<vmem>>, vector<1x32xf32>
    %c809 = arith.constant 809 : index
    %c0_85 = arith.constant 0 : index
    %188 = vector.load %arg3[%c809, %c0_85] : memref<1360x128xf32, #tpu.memory_space<vmem>>, vector<1x32xf32>
    %c802 = arith.constant 802 : index
    %c0_86 = arith.constant 0 : index
    %189 = vector.load %arg3[%c802, %c0_86] : memref<1360x128xf32, #tpu.memory_space<vmem>>, vector<1x32xf32>
    %c810 = arith.constant 810 : index
    %c0_87 = arith.constant 0 : index
    %190 = vector.load %arg3[%c810, %c0_87] : memref<1360x128xf32, #tpu.memory_space<vmem>>, vector<1x32xf32>
    %c803 = arith.constant 803 : index
    %c0_88 = arith.constant 0 : index
    %191 = vector.load %arg3[%c803, %c0_88] : memref<1360x128xf32, #tpu.memory_space<vmem>>, vector<1x32xf32>
    %c811 = arith.constant 811 : index
    %c0_89 = arith.constant 0 : index
    %192 = vector.load %arg3[%c811, %c0_89] : memref<1360x128xf32, #tpu.memory_space<vmem>>, vector<1x32xf32>
    %c816 = arith.constant 816 : index
    %c0_90 = arith.constant 0 : index
    %193 = vector.load %arg3[%c816, %c0_90] : memref<1360x128xf32, #tpu.memory_space<vmem>>, vector<32x64xf32>
    %c848 = arith.constant 848 : index
    %c0_91 = arith.constant 0 : index
    %194 = vector.load %arg3[%c848, %c0_91] : memref<1360x128xf32, #tpu.memory_space<vmem>>, vector<1x64xf32>
    %c856 = arith.constant 856 : index
    %c0_92 = arith.constant 0 : index
    %195 = vector.load %arg3[%c856, %c0_92] : memref<1360x128xf32, #tpu.memory_space<vmem>>, vector<64x32xf32>
    %c920 = arith.constant 920 : index
    %c0_93 = arith.constant 0 : index
    %196 = vector.load %arg3[%c920, %c0_93] : memref<1360x128xf32, #tpu.memory_space<vmem>>, vector<1x32xf32>
    %c928 = arith.constant 928 : index
    %c0_94 = arith.constant 0 : index
    %197 = vector.load %arg3[%c928, %c0_94] : memref<1360x128xf32, #tpu.memory_space<vmem>>, vector<32x16xf32>
    %c960 = arith.constant 960 : index
    %c0_95 = arith.constant 0 : index
    %198 = vector.load %arg3[%c960, %c0_95] : memref<1360x128xf32, #tpu.memory_space<vmem>>, vector<1x16xf32>
    %c968 = arith.constant 968 : index
    %c0_96 = arith.constant 0 : index
    %199 = vector.load %arg3[%c968, %c0_96] : memref<1360x128xf32, #tpu.memory_space<vmem>>, vector<16x8xf32>
    %c984 = arith.constant 984 : index
    %c0_97 = arith.constant 0 : index
    %200 = vector.load %arg3[%c984, %c0_97] : memref<1360x128xf32, #tpu.memory_space<vmem>>, vector<1x8xf32>
    %c992 = arith.constant 992 : index
    %c0_98 = arith.constant 0 : index
    %201 = vector.load %arg3[%c992, %c0_98] : memref<1360x128xf32, #tpu.memory_space<vmem>>, vector<128x128xf32>
    %c1120 = arith.constant 1120 : index
    %c0_99 = arith.constant 0 : index
    %202 = vector.load %arg3[%c1120, %c0_99] : memref<1360x128xf32, #tpu.memory_space<vmem>>, vector<1x128xf32>
    %c1128 = arith.constant 1128 : index
    %c0_100 = arith.constant 0 : index
    %203 = vector.load %arg3[%c1128, %c0_100] : memref<1360x128xf32, #tpu.memory_space<vmem>>, vector<128x32xf32>
    %c1256 = arith.constant 1256 : index
    %c0_101 = arith.constant 0 : index
    %204 = vector.load %arg3[%c1256, %c0_101] : memref<1360x128xf32, #tpu.memory_space<vmem>>, vector<1x32xf32>
    %c1264 = arith.constant 1264 : index
    %c0_102 = arith.constant 0 : index
    %205 = vector.load %arg3[%c1264, %c0_102] : memref<1360x128xf32, #tpu.memory_space<vmem>>, vector<4x128xf32>
    %c1272 = arith.constant 1272 : index
    %c0_103 = arith.constant 0 : index
    %206 = vector.load %arg3[%c1272, %c0_103] : memref<1360x128xf32, #tpu.memory_space<vmem>>, vector<4x32xf32>
    %c1280 = arith.constant 1280 : index
    %c0_104 = arith.constant 0 : index
    %207 = vector.load %arg3[%c1280, %c0_104] : memref<1360x128xf32, #tpu.memory_space<vmem>>, vector<32x32xf32>
    %c1312 = arith.constant 1312 : index
    %c0_105 = arith.constant 0 : index
    %208 = vector.load %arg3[%c1312, %c0_105] : memref<1360x128xf32, #tpu.memory_space<vmem>>, vector<1x32xf32>
    %c1320 = arith.constant 1320 : index
    %c0_106 = arith.constant 0 : index
    %209 = vector.load %arg3[%c1320, %c0_106] : memref<1360x128xf32, #tpu.memory_space<vmem>>, vector<32x4xf32>
    %c1352 = arith.constant 1352 : index
    %c0_107 = arith.constant 0 : index
    %210 = vector.load %arg3[%c1352, %c0_107] : memref<1360x128xf32, #tpu.memory_space<vmem>>, vector<1x4xf32>
    %211 = vector.extract_strided_slice %167 {offsets = [0, 0], sizes = [4, 32], strides = [1, 1]} : vector<8x32xf32> to vector<4x32xf32>
    %212 = tpu.concatenate %165, %211 in 0 : vector<5x32xf32>, vector<4x32xf32> -> vector<9x32xf32>
    %cst_108 = arith.constant dense<0.000000e+00> : vector<9x96xf32>
    %213 = tpu.matmul %212, %169, %cst_108 {dimension_numbers = #tpu.dot_dimension_numbers<[1], [0], [0], [1], [0, 0, 1, 1], [], []>} : vector<9x32xf32>, vector<32x96xf32>, vector<9x96xf32> -> vector<9x96xf32>
    %214 = vector.broadcast %170 : vector<1x96xf32> to vector<9x96xf32>
    %215 = arith.addf %213, %214 : vector<9x96xf32>
    %216 = vector.extract_strided_slice %215 {offsets = [0, 0], sizes = [9, 32], strides = [1, 1]} : vector<9x96xf32> to vector<9x32xf32>
    %217 = vector.extract_strided_slice %215 {offsets = [0, 32], sizes = [9, 32], strides = [1, 1]} : vector<9x96xf32> to vector<9x32xf32>
    %218 = vector.extract_strided_slice %215 {offsets = [0, 64], sizes = [9, 32], strides = [1, 1]} : vector<9x96xf32> to vector<9x32xf32>
    %219 = vector.extract_strided_slice %216 {offsets = [0, 0], sizes = [9, 16], strides = [1, 1]} : vector<9x32xf32> to vector<9x16xf32>
    %220 = vector.extract_strided_slice %217 {offsets = [0, 0], sizes = [9, 16], strides = [1, 1]} : vector<9x32xf32> to vector<9x16xf32>
    %cst_109 = arith.constant dense<0.000000e+00> : vector<9x9xf32>
    %221 = tpu.matmul %219, %220, %cst_109 {dimension_numbers = #tpu.dot_dimension_numbers<[1], [1], [0], [0], [0, 0, 1, 0], [], []>} : vector<9x16xf32>, vector<9x16xf32>, vector<9x9xf32> -> vector<9x9xf32>
    %cst_110 = arith.constant 2.500000e-01 : f32
    %222 = vector.broadcast %cst_110 : f32 to vector<9x9xf32>
    %223 = arith.mulf %221, %222 : vector<9x9xf32>
    %cst_111 = arith.constant dense<0xFF800000> : vector<9xf32>
    %224 = vector.multi_reduction <maximumf>, %223, %cst_111 [1] : vector<9x9xf32> to vector<9xf32>
    %cst_112 = arith.constant 0xFF800000 : f32
    %225 = vector.broadcast %cst_112 : f32 to vector<9xf32>
    %226 = arith.maximumf %225, %224 : vector<9xf32>
    %227 = vector.shape_cast %226 : vector<9xf32> to vector<9x1xf32>
    %228 = vector.broadcast %227 : vector<9x1xf32> to vector<9x9xf32>
    %229 = arith.subf %223, %228 : vector<9x9xf32>
    %230 = math.exp %229 : vector<9x9xf32>
    %cst_113 = arith.constant dense<0.000000e+00> : vector<9xf32>
    %231 = vector.multi_reduction <add>, %230, %cst_113 [1] : vector<9x9xf32> to vector<9xf32>
    %232 = vector.shape_cast %231 : vector<9xf32> to vector<9x1xf32>
    %233 = vector.broadcast %232 : vector<9x1xf32> to vector<9x9xf32>
    %234 = arith.divf %230, %233 : vector<9x9xf32>
    %235 = vector.extract_strided_slice %218 {offsets = [0, 0], sizes = [9, 16], strides = [1, 1]} : vector<9x32xf32> to vector<9x16xf32>
    %cst_114 = arith.constant dense<0.000000e+00> : vector<9x16xf32>
    %236 = tpu.matmul %234, %235, %cst_114 {dimension_numbers = #tpu.dot_dimension_numbers<[1], [0], [0], [1], [0, 0, 1, 1], [], []>} : vector<9x9xf32>, vector<9x16xf32>, vector<9x16xf32> -> vector<9x16xf32>
    %237 = vector.extract_strided_slice %216 {offsets = [0, 16], sizes = [9, 16], strides = [1, 1]} : vector<9x32xf32> to vector<9x16xf32>
    %238 = vector.extract_strided_slice %217 {offsets = [0, 16], sizes = [9, 16], strides = [1, 1]} : vector<9x32xf32> to vector<9x16xf32>
    %cst_115 = arith.constant dense<0.000000e+00> : vector<9x9xf32>
    %239 = tpu.matmul %237, %238, %cst_115 {dimension_numbers = #tpu.dot_dimension_numbers<[1], [1], [0], [0], [0, 0, 1, 0], [], []>} : vector<9x16xf32>, vector<9x16xf32>, vector<9x9xf32> -> vector<9x9xf32>
    %cst_116 = arith.constant 2.500000e-01 : f32
    %240 = vector.broadcast %cst_116 : f32 to vector<9x9xf32>
    %241 = arith.mulf %239, %240 : vector<9x9xf32>
    %cst_117 = arith.constant dense<0xFF800000> : vector<9xf32>
    %242 = vector.multi_reduction <maximumf>, %241, %cst_117 [1] : vector<9x9xf32> to vector<9xf32>
    %cst_118 = arith.constant 0xFF800000 : f32
    %243 = vector.broadcast %cst_118 : f32 to vector<9xf32>
    %244 = arith.maximumf %243, %242 : vector<9xf32>
    %245 = vector.shape_cast %244 : vector<9xf32> to vector<9x1xf32>
    %246 = vector.broadcast %245 : vector<9x1xf32> to vector<9x9xf32>
    %247 = arith.subf %241, %246 : vector<9x9xf32>
    %248 = math.exp %247 : vector<9x9xf32>
    %cst_119 = arith.constant dense<0.000000e+00> : vector<9xf32>
    %249 = vector.multi_reduction <add>, %248, %cst_119 [1] : vector<9x9xf32> to vector<9xf32>
    %250 = vector.shape_cast %249 : vector<9xf32> to vector<9x1xf32>
    %251 = vector.broadcast %250 : vector<9x1xf32> to vector<9x9xf32>
    %252 = arith.divf %248, %251 : vector<9x9xf32>
    %253 = vector.extract_strided_slice %218 {offsets = [0, 16], sizes = [9, 16], strides = [1, 1]} : vector<9x32xf32> to vector<9x16xf32>
    %cst_120 = arith.constant dense<0.000000e+00> : vector<9x16xf32>
    %254 = tpu.matmul %252, %253, %cst_120 {dimension_numbers = #tpu.dot_dimension_numbers<[1], [0], [0], [1], [0, 0, 1, 1], [], []>} : vector<9x9xf32>, vector<9x16xf32>, vector<9x16xf32> -> vector<9x16xf32>
    %255 = tpu.concatenate %236, %254 in 1 : vector<9x16xf32>, vector<9x16xf32> -> vector<9x32xf32>
    %cst_121 = arith.constant dense<0.000000e+00> : vector<9x32xf32>
    %256 = tpu.matmul %255, %171, %cst_121 {dimension_numbers = #tpu.dot_dimension_numbers<[1], [0], [0], [1], [0, 0, 1, 1], [], []>} : vector<9x32xf32>, vector<32x32xf32>, vector<9x32xf32> -> vector<9x32xf32>
    %257 = vector.broadcast %172 : vector<1x32xf32> to vector<9x32xf32>
    %258 = arith.addf %256, %257 : vector<9x32xf32>
    %259 = arith.addf %212, %258 : vector<9x32xf32>
    %cst_122 = arith.constant dense<0.000000e+00> : vector<9xf32>
    %260 = vector.multi_reduction <add>, %259, %cst_122 [1] : vector<9x32xf32> to vector<9xf32>
    %261 = vector.shape_cast %260 : vector<9xf32> to vector<9x1xf32>
    %cst_123 = arith.constant 3.200000e+01 : f32
    %262 = vector.broadcast %cst_123 : f32 to vector<9x1xf32>
    %263 = arith.divf %261, %262 : vector<9x1xf32>
    %264 = vector.broadcast %263 : vector<9x1xf32> to vector<9x32xf32>
    %265 = arith.subf %259, %264 : vector<9x32xf32>
    %266 = arith.mulf %265, %265 : vector<9x32xf32>
    %cst_124 = arith.constant dense<0.000000e+00> : vector<9xf32>
    %267 = vector.multi_reduction <add>, %266, %cst_124 [1] : vector<9x32xf32> to vector<9xf32>
    %268 = vector.shape_cast %267 : vector<9xf32> to vector<9x1xf32>
    %cst_125 = arith.constant 3.200000e+01 : f32
    %269 = vector.broadcast %cst_125 : f32 to vector<9x1xf32>
    %270 = arith.divf %268, %269 : vector<9x1xf32>
    %271 = vector.broadcast %263 : vector<9x1xf32> to vector<9x32xf32>
    %272 = arith.subf %259, %271 : vector<9x32xf32>
    %cst_126 = arith.constant 9.99999974E-6 : f32
    %273 = vector.broadcast %cst_126 : f32 to vector<9x1xf32>
    %274 = arith.addf %270, %273 : vector<9x1xf32>
    %275 = math.rsqrt %274 : vector<9x1xf32>
    %276 = vector.broadcast %275 : vector<9x1xf32> to vector<9x32xf32>
    %277 = arith.mulf %272, %276 : vector<9x32xf32>
    %278 = vector.broadcast %185 : vector<1x32xf32> to vector<9x32xf32>
    %279 = arith.mulf %277, %278 : vector<9x32xf32>
    %280 = vector.broadcast %186 : vector<1x32xf32> to vector<9x32xf32>
    %281 = arith.addf %279, %280 : vector<9x32xf32>
    %282 = arith.addf %164, %161 : vector<16x32xf32>
    %283 = vector.extract_strided_slice %173 {offsets = [0, 0], sizes = [32, 32], strides = [1, 1]} : vector<32x96xf32> to vector<32x32xf32>
    %cst_127 = arith.constant dense<0.000000e+00> : vector<9x32xf32>
    %284 = tpu.matmul %281, %283, %cst_127 {dimension_numbers = #tpu.dot_dimension_numbers<[1], [0], [0], [1], [0, 0, 1, 1], [], []>} : vector<9x32xf32>, vector<32x32xf32>, vector<9x32xf32> -> vector<9x32xf32>
    %285 = vector.extract_strided_slice %174 {offsets = [0, 0], sizes = [1, 32], strides = [1, 1]} : vector<1x96xf32> to vector<1x32xf32>
    %286 = vector.broadcast %285 : vector<1x32xf32> to vector<9x32xf32>
    %287 = arith.addf %284, %286 : vector<9x32xf32>
    %288 = vector.extract_strided_slice %173 {offsets = [0, 32], sizes = [32, 32], strides = [1, 1]} : vector<32x96xf32> to vector<32x32xf32>
    %cst_128 = arith.constant dense<0.000000e+00> : vector<16x32xf32>
    %289 = tpu.matmul %282, %288, %cst_128 {dimension_numbers = #tpu.dot_dimension_numbers<[1], [0], [0], [1], [0, 0, 1, 1], [], []>} : vector<16x32xf32>, vector<32x32xf32>, vector<16x32xf32> -> vector<16x32xf32>
    %290 = vector.extract_strided_slice %174 {offsets = [0, 32], sizes = [1, 32], strides = [1, 1]} : vector<1x96xf32> to vector<1x32xf32>
    %291 = vector.broadcast %290 : vector<1x32xf32> to vector<16x32xf32>
    %292 = arith.addf %289, %291 : vector<16x32xf32>
    %293 = vector.extract_strided_slice %173 {offsets = [0, 64], sizes = [32, 32], strides = [1, 1]} : vector<32x96xf32> to vector<32x32xf32>
    %cst_129 = arith.constant dense<0.000000e+00> : vector<16x32xf32>
    %294 = tpu.matmul %164, %293, %cst_129 {dimension_numbers = #tpu.dot_dimension_numbers<[1], [0], [0], [1], [0, 0, 1, 1], [], []>} : vector<16x32xf32>, vector<32x32xf32>, vector<16x32xf32> -> vector<16x32xf32>
    %295 = vector.extract_strided_slice %174 {offsets = [0, 64], sizes = [1, 32], strides = [1, 1]} : vector<1x96xf32> to vector<1x32xf32>
    %296 = vector.broadcast %295 : vector<1x32xf32> to vector<16x32xf32>
    %297 = arith.addf %294, %296 : vector<16x32xf32>
    %298 = vector.extract_strided_slice %287 {offsets = [0, 0], sizes = [9, 16], strides = [1, 1]} : vector<9x32xf32> to vector<9x16xf32>
    %299 = vector.extract_strided_slice %292 {offsets = [0, 0], sizes = [16, 16], strides = [1, 1]} : vector<16x32xf32> to vector<16x16xf32>
    %cst_130 = arith.constant dense<0.000000e+00> : vector<9x16xf32>
    %300 = tpu.matmul %298, %299, %cst_130 {dimension_numbers = #tpu.dot_dimension_numbers<[1], [1], [0], [0], [0, 0, 1, 0], [], []>} : vector<9x16xf32>, vector<16x16xf32>, vector<9x16xf32> -> vector<9x16xf32>
    %cst_131 = arith.constant 2.500000e-01 : f32
    %301 = vector.broadcast %cst_131 : f32 to vector<9x16xf32>
    %302 = arith.mulf %300, %301 : vector<9x16xf32>
    %cst_132 = arith.constant dense<0xFF800000> : vector<9xf32>
    %303 = vector.multi_reduction <maximumf>, %302, %cst_132 [1] : vector<9x16xf32> to vector<9xf32>
    %cst_133 = arith.constant 0xFF800000 : f32
    %304 = vector.broadcast %cst_133 : f32 to vector<9xf32>
    %305 = arith.maximumf %304, %303 : vector<9xf32>
    %306 = vector.shape_cast %305 : vector<9xf32> to vector<9x1xf32>
    %307 = vector.broadcast %306 : vector<9x1xf32> to vector<9x16xf32>
    %308 = arith.subf %302, %307 : vector<9x16xf32>
    %309 = math.exp %308 : vector<9x16xf32>
    %cst_134 = arith.constant dense<0.000000e+00> : vector<9xf32>
    %310 = vector.multi_reduction <add>, %309, %cst_134 [1] : vector<9x16xf32> to vector<9xf32>
    %311 = vector.shape_cast %310 : vector<9xf32> to vector<9x1xf32>
    %312 = vector.broadcast %311 : vector<9x1xf32> to vector<9x16xf32>
    %313 = arith.divf %309, %312 : vector<9x16xf32>
    %314 = vector.extract_strided_slice %297 {offsets = [0, 0], sizes = [16, 16], strides = [1, 1]} : vector<16x32xf32> to vector<16x16xf32>
    %cst_135 = arith.constant dense<0.000000e+00> : vector<9x16xf32>
    %315 = tpu.matmul %313, %314, %cst_135 {dimension_numbers = #tpu.dot_dimension_numbers<[1], [0], [0], [1], [0, 0, 1, 1], [], []>} : vector<9x16xf32>, vector<16x16xf32>, vector<9x16xf32> -> vector<9x16xf32>
    %316 = vector.extract_strided_slice %287 {offsets = [0, 16], sizes = [9, 16], strides = [1, 1]} : vector<9x32xf32> to vector<9x16xf32>
    %317 = vector.extract_strided_slice %292 {offsets = [0, 16], sizes = [16, 16], strides = [1, 1]} : vector<16x32xf32> to vector<16x16xf32>
    %cst_136 = arith.constant dense<0.000000e+00> : vector<9x16xf32>
    %318 = tpu.matmul %316, %317, %cst_136 {dimension_numbers = #tpu.dot_dimension_numbers<[1], [1], [0], [0], [0, 0, 1, 0], [], []>} : vector<9x16xf32>, vector<16x16xf32>, vector<9x16xf32> -> vector<9x16xf32>
    %cst_137 = arith.constant 2.500000e-01 : f32
    %319 = vector.broadcast %cst_137 : f32 to vector<9x16xf32>
    %320 = arith.mulf %318, %319 : vector<9x16xf32>
    %cst_138 = arith.constant dense<0xFF800000> : vector<9xf32>
    %321 = vector.multi_reduction <maximumf>, %320, %cst_138 [1] : vector<9x16xf32> to vector<9xf32>
    %cst_139 = arith.constant 0xFF800000 : f32
    %322 = vector.broadcast %cst_139 : f32 to vector<9xf32>
    %323 = arith.maximumf %322, %321 : vector<9xf32>
    %324 = vector.shape_cast %323 : vector<9xf32> to vector<9x1xf32>
    %325 = vector.broadcast %324 : vector<9x1xf32> to vector<9x16xf32>
    %326 = arith.subf %320, %325 : vector<9x16xf32>
    %327 = math.exp %326 : vector<9x16xf32>
    %cst_140 = arith.constant dense<0.000000e+00> : vector<9xf32>
    %328 = vector.multi_reduction <add>, %327, %cst_140 [1] : vector<9x16xf32> to vector<9xf32>
    %329 = vector.shape_cast %328 : vector<9xf32> to vector<9x1xf32>
    %330 = vector.broadcast %329 : vector<9x1xf32> to vector<9x16xf32>
    %331 = arith.divf %327, %330 : vector<9x16xf32>
    %332 = vector.extract_strided_slice %297 {offsets = [0, 16], sizes = [16, 16], strides = [1, 1]} : vector<16x32xf32> to vector<16x16xf32>
    %cst_141 = arith.constant dense<0.000000e+00> : vector<9x16xf32>
    %333 = tpu.matmul %331, %332, %cst_141 {dimension_numbers = #tpu.dot_dimension_numbers<[1], [0], [0], [1], [0, 0, 1, 1], [], []>} : vector<9x16xf32>, vector<16x16xf32>, vector<9x16xf32> -> vector<9x16xf32>
    %334 = tpu.concatenate %315, %333 in 1 : vector<9x16xf32>, vector<9x16xf32> -> vector<9x32xf32>
    %cst_142 = arith.constant dense<0.000000e+00> : vector<9x32xf32>
    %335 = tpu.matmul %334, %175, %cst_142 {dimension_numbers = #tpu.dot_dimension_numbers<[1], [0], [0], [1], [0, 0, 1, 1], [], []>} : vector<9x32xf32>, vector<32x32xf32>, vector<9x32xf32> -> vector<9x32xf32>
    %336 = vector.broadcast %176 : vector<1x32xf32> to vector<9x32xf32>
    %337 = arith.addf %335, %336 : vector<9x32xf32>
    %338 = arith.addf %281, %337 : vector<9x32xf32>
    %cst_143 = arith.constant dense<0.000000e+00> : vector<9xf32>
    %339 = vector.multi_reduction <add>, %338, %cst_143 [1] : vector<9x32xf32> to vector<9xf32>
    %340 = vector.shape_cast %339 : vector<9xf32> to vector<9x1xf32>
    %cst_144 = arith.constant 3.200000e+01 : f32
    %341 = vector.broadcast %cst_144 : f32 to vector<9x1xf32>
    %342 = arith.divf %340, %341 : vector<9x1xf32>
    %343 = vector.broadcast %342 : vector<9x1xf32> to vector<9x32xf32>
    %344 = arith.subf %338, %343 : vector<9x32xf32>
    %345 = arith.mulf %344, %344 : vector<9x32xf32>
    %cst_145 = arith.constant dense<0.000000e+00> : vector<9xf32>
    %346 = vector.multi_reduction <add>, %345, %cst_145 [1] : vector<9x32xf32> to vector<9xf32>
    %347 = vector.shape_cast %346 : vector<9xf32> to vector<9x1xf32>
    %cst_146 = arith.constant 3.200000e+01 : f32
    %348 = vector.broadcast %cst_146 : f32 to vector<9x1xf32>
    %349 = arith.divf %347, %348 : vector<9x1xf32>
    %350 = vector.broadcast %342 : vector<9x1xf32> to vector<9x32xf32>
    %351 = arith.subf %338, %350 : vector<9x32xf32>
    %cst_147 = arith.constant 9.99999974E-6 : f32
    %352 = vector.broadcast %cst_147 : f32 to vector<9x1xf32>
    %353 = arith.addf %349, %352 : vector<9x1xf32>
    %354 = math.rsqrt %353 : vector<9x1xf32>
    %355 = vector.broadcast %354 : vector<9x1xf32> to vector<9x32xf32>
    %356 = arith.mulf %351, %355 : vector<9x32xf32>
    %357 = vector.broadcast %187 : vector<1x32xf32> to vector<9x32xf32>
    %358 = arith.mulf %356, %357 : vector<9x32xf32>
    %359 = vector.broadcast %188 : vector<1x32xf32> to vector<9x32xf32>
    %360 = arith.addf %358, %359 : vector<9x32xf32>
    %cst_148 = arith.constant dense<0.000000e+00> : vector<9x64xf32>
    %361 = tpu.matmul %360, %193, %cst_148 {dimension_numbers = #tpu.dot_dimension_numbers<[1], [0], [0], [1], [0, 0, 1, 1], [], []>} : vector<9x32xf32>, vector<32x64xf32>, vector<9x64xf32> -> vector<9x64xf32>
    %362 = vector.broadcast %194 : vector<1x64xf32> to vector<9x64xf32>
    %363 = arith.addf %361, %362 : vector<9x64xf32>
    %cst_149 = arith.constant 0.000000e+00 : f32
    %364 = vector.broadcast %cst_149 : f32 to vector<9x64xf32>
    %365 = arith.maximumf %363, %364 : vector<9x64xf32>
    %cst_150 = arith.constant dense<0.000000e+00> : vector<9x32xf32>
    %366 = tpu.matmul %365, %195, %cst_150 {dimension_numbers = #tpu.dot_dimension_numbers<[1], [0], [0], [1], [0, 0, 1, 1], [], []>} : vector<9x64xf32>, vector<64x32xf32>, vector<9x32xf32> -> vector<9x32xf32>
    %367 = vector.broadcast %196 : vector<1x32xf32> to vector<9x32xf32>
    %368 = arith.addf %366, %367 : vector<9x32xf32>
    %369 = arith.addf %360, %368 : vector<9x32xf32>
    %cst_151 = arith.constant dense<0.000000e+00> : vector<9xf32>
    %370 = vector.multi_reduction <add>, %369, %cst_151 [1] : vector<9x32xf32> to vector<9xf32>
    %371 = vector.shape_cast %370 : vector<9xf32> to vector<9x1xf32>
    %cst_152 = arith.constant 3.200000e+01 : f32
    %372 = vector.broadcast %cst_152 : f32 to vector<9x1xf32>
    %373 = arith.divf %371, %372 : vector<9x1xf32>
    %374 = vector.broadcast %373 : vector<9x1xf32> to vector<9x32xf32>
    %375 = arith.subf %369, %374 : vector<9x32xf32>
    %376 = arith.mulf %375, %375 : vector<9x32xf32>
    %cst_153 = arith.constant dense<0.000000e+00> : vector<9xf32>
    %377 = vector.multi_reduction <add>, %376, %cst_153 [1] : vector<9x32xf32> to vector<9xf32>
    %378 = vector.shape_cast %377 : vector<9xf32> to vector<9x1xf32>
    %cst_154 = arith.constant 3.200000e+01 : f32
    %379 = vector.broadcast %cst_154 : f32 to vector<9x1xf32>
    %380 = arith.divf %378, %379 : vector<9x1xf32>
    %381 = vector.broadcast %373 : vector<9x1xf32> to vector<9x32xf32>
    %382 = arith.subf %369, %381 : vector<9x32xf32>
    %cst_155 = arith.constant 9.99999974E-6 : f32
    %383 = vector.broadcast %cst_155 : f32 to vector<9x1xf32>
    %384 = arith.addf %380, %383 : vector<9x1xf32>
    %385 = math.rsqrt %384 : vector<9x1xf32>
    %386 = vector.broadcast %385 : vector<9x1xf32> to vector<9x32xf32>
    %387 = arith.mulf %382, %386 : vector<9x32xf32>
    %388 = vector.broadcast %189 : vector<1x32xf32> to vector<9x32xf32>
    %389 = arith.mulf %387, %388 : vector<9x32xf32>
    %390 = vector.broadcast %190 : vector<1x32xf32> to vector<9x32xf32>
    %391 = arith.addf %389, %390 : vector<9x32xf32>
    %392 = arith.addf %164, %161 : vector<16x32xf32>
    %393 = vector.extract_strided_slice %177 {offsets = [0, 0], sizes = [32, 32], strides = [1, 1]} : vector<32x96xf32> to vector<32x32xf32>
    %cst_156 = arith.constant dense<0.000000e+00> : vector<16x32xf32>
    %394 = tpu.matmul %392, %393, %cst_156 {dimension_numbers = #tpu.dot_dimension_numbers<[1], [0], [0], [1], [0, 0, 1, 1], [], []>} : vector<16x32xf32>, vector<32x32xf32>, vector<16x32xf32> -> vector<16x32xf32>
    %395 = vector.extract_strided_slice %178 {offsets = [0, 0], sizes = [1, 32], strides = [1, 1]} : vector<1x96xf32> to vector<1x32xf32>
    %396 = vector.broadcast %395 : vector<1x32xf32> to vector<16x32xf32>
    %397 = arith.addf %394, %396 : vector<16x32xf32>
    %398 = vector.extract_strided_slice %177 {offsets = [0, 32], sizes = [32, 32], strides = [1, 1]} : vector<32x96xf32> to vector<32x32xf32>
    %cst_157 = arith.constant dense<0.000000e+00> : vector<9x32xf32>
    %399 = tpu.matmul %391, %398, %cst_157 {dimension_numbers = #tpu.dot_dimension_numbers<[1], [0], [0], [1], [0, 0, 1, 1], [], []>} : vector<9x32xf32>, vector<32x32xf32>, vector<9x32xf32> -> vector<9x32xf32>
    %400 = vector.extract_strided_slice %178 {offsets = [0, 32], sizes = [1, 32], strides = [1, 1]} : vector<1x96xf32> to vector<1x32xf32>
    %401 = vector.broadcast %400 : vector<1x32xf32> to vector<9x32xf32>
    %402 = arith.addf %399, %401 : vector<9x32xf32>
    %403 = vector.extract_strided_slice %177 {offsets = [0, 64], sizes = [32, 32], strides = [1, 1]} : vector<32x96xf32> to vector<32x32xf32>
    %cst_158 = arith.constant dense<0.000000e+00> : vector<9x32xf32>
    %404 = tpu.matmul %391, %403, %cst_158 {dimension_numbers = #tpu.dot_dimension_numbers<[1], [0], [0], [1], [0, 0, 1, 1], [], []>} : vector<9x32xf32>, vector<32x32xf32>, vector<9x32xf32> -> vector<9x32xf32>
    %405 = vector.extract_strided_slice %178 {offsets = [0, 64], sizes = [1, 32], strides = [1, 1]} : vector<1x96xf32> to vector<1x32xf32>
    %406 = vector.broadcast %405 : vector<1x32xf32> to vector<9x32xf32>
    %407 = arith.addf %404, %406 : vector<9x32xf32>
    %408 = vector.extract_strided_slice %397 {offsets = [0, 0], sizes = [16, 16], strides = [1, 1]} : vector<16x32xf32> to vector<16x16xf32>
    %409 = vector.extract_strided_slice %402 {offsets = [0, 0], sizes = [9, 16], strides = [1, 1]} : vector<9x32xf32> to vector<9x16xf32>
    %cst_159 = arith.constant dense<0.000000e+00> : vector<16x9xf32>
    %410 = tpu.matmul %408, %409, %cst_159 {dimension_numbers = #tpu.dot_dimension_numbers<[1], [1], [0], [0], [0, 0, 1, 0], [], []>} : vector<16x16xf32>, vector<9x16xf32>, vector<16x9xf32> -> vector<16x9xf32>
    %cst_160 = arith.constant 2.500000e-01 : f32
    %411 = vector.broadcast %cst_160 : f32 to vector<16x9xf32>
    %412 = arith.mulf %410, %411 : vector<16x9xf32>
    %cst_161 = arith.constant dense<0xFF800000> : vector<16xf32>
    %413 = vector.multi_reduction <maximumf>, %412, %cst_161 [1] : vector<16x9xf32> to vector<16xf32>
    %cst_162 = arith.constant 0xFF800000 : f32
    %414 = vector.broadcast %cst_162 : f32 to vector<16xf32>
    %415 = arith.maximumf %414, %413 : vector<16xf32>
    %416 = vector.shape_cast %415 : vector<16xf32> to vector<16x1xf32>
    %417 = vector.broadcast %416 : vector<16x1xf32> to vector<16x9xf32>
    %418 = arith.subf %412, %417 : vector<16x9xf32>
    %419 = math.exp %418 : vector<16x9xf32>
    %cst_163 = arith.constant dense<0.000000e+00> : vector<16xf32>
    %420 = vector.multi_reduction <add>, %419, %cst_163 [1] : vector<16x9xf32> to vector<16xf32>
    %421 = vector.shape_cast %420 : vector<16xf32> to vector<16x1xf32>
    %422 = vector.broadcast %421 : vector<16x1xf32> to vector<16x9xf32>
    %423 = arith.divf %419, %422 : vector<16x9xf32>
    %424 = vector.extract_strided_slice %407 {offsets = [0, 0], sizes = [9, 16], strides = [1, 1]} : vector<9x32xf32> to vector<9x16xf32>
    %cst_164 = arith.constant dense<0.000000e+00> : vector<16x16xf32>
    %425 = tpu.matmul %423, %424, %cst_164 {dimension_numbers = #tpu.dot_dimension_numbers<[1], [0], [0], [1], [0, 0, 1, 1], [], []>} : vector<16x9xf32>, vector<9x16xf32>, vector<16x16xf32> -> vector<16x16xf32>
    %426 = vector.extract_strided_slice %397 {offsets = [0, 16], sizes = [16, 16], strides = [1, 1]} : vector<16x32xf32> to vector<16x16xf32>
    %427 = vector.extract_strided_slice %402 {offsets = [0, 16], sizes = [9, 16], strides = [1, 1]} : vector<9x32xf32> to vector<9x16xf32>
    %cst_165 = arith.constant dense<0.000000e+00> : vector<16x9xf32>
    %428 = tpu.matmul %426, %427, %cst_165 {dimension_numbers = #tpu.dot_dimension_numbers<[1], [1], [0], [0], [0, 0, 1, 0], [], []>} : vector<16x16xf32>, vector<9x16xf32>, vector<16x9xf32> -> vector<16x9xf32>
    %cst_166 = arith.constant 2.500000e-01 : f32
    %429 = vector.broadcast %cst_166 : f32 to vector<16x9xf32>
    %430 = arith.mulf %428, %429 : vector<16x9xf32>
    %cst_167 = arith.constant dense<0xFF800000> : vector<16xf32>
    %431 = vector.multi_reduction <maximumf>, %430, %cst_167 [1] : vector<16x9xf32> to vector<16xf32>
    %cst_168 = arith.constant 0xFF800000 : f32
    %432 = vector.broadcast %cst_168 : f32 to vector<16xf32>
    %433 = arith.maximumf %432, %431 : vector<16xf32>
    %434 = vector.shape_cast %433 : vector<16xf32> to vector<16x1xf32>
    %435 = vector.broadcast %434 : vector<16x1xf32> to vector<16x9xf32>
    %436 = arith.subf %430, %435 : vector<16x9xf32>
    %437 = math.exp %436 : vector<16x9xf32>
    %cst_169 = arith.constant dense<0.000000e+00> : vector<16xf32>
    %438 = vector.multi_reduction <add>, %437, %cst_169 [1] : vector<16x9xf32> to vector<16xf32>
    %439 = vector.shape_cast %438 : vector<16xf32> to vector<16x1xf32>
    %440 = vector.broadcast %439 : vector<16x1xf32> to vector<16x9xf32>
    %441 = arith.divf %437, %440 : vector<16x9xf32>
    %442 = vector.extract_strided_slice %407 {offsets = [0, 16], sizes = [9, 16], strides = [1, 1]} : vector<9x32xf32> to vector<9x16xf32>
    %cst_170 = arith.constant dense<0.000000e+00> : vector<16x16xf32>
    %443 = tpu.matmul %441, %442, %cst_170 {dimension_numbers = #tpu.dot_dimension_numbers<[1], [0], [0], [1], [0, 0, 1, 1], [], []>} : vector<16x9xf32>, vector<9x16xf32>, vector<16x16xf32> -> vector<16x16xf32>
    %444 = tpu.concatenate %425, %443 in 1 : vector<16x16xf32>, vector<16x16xf32> -> vector<16x32xf32>
    %cst_171 = arith.constant dense<0.000000e+00> : vector<16x32xf32>
    %445 = tpu.matmul %444, %179, %cst_171 {dimension_numbers = #tpu.dot_dimension_numbers<[1], [0], [0], [1], [0, 0, 1, 1], [], []>} : vector<16x32xf32>, vector<32x32xf32>, vector<16x32xf32> -> vector<16x32xf32>
    %446 = vector.broadcast %180 : vector<1x32xf32> to vector<16x32xf32>
    %447 = arith.addf %445, %446 : vector<16x32xf32>
    %448 = arith.addf %164, %447 : vector<16x32xf32>
    %cst_172 = arith.constant dense<0.000000e+00> : vector<16xf32>
    %449 = vector.multi_reduction <add>, %448, %cst_172 [1] : vector<16x32xf32> to vector<16xf32>
    %450 = vector.shape_cast %449 : vector<16xf32> to vector<16x1xf32>
    %cst_173 = arith.constant 3.200000e+01 : f32
    %451 = vector.broadcast %cst_173 : f32 to vector<16x1xf32>
    %452 = arith.divf %450, %451 : vector<16x1xf32>
    %453 = vector.broadcast %452 : vector<16x1xf32> to vector<16x32xf32>
    %454 = arith.subf %448, %453 : vector<16x32xf32>
    %455 = arith.mulf %454, %454 : vector<16x32xf32>
    %cst_174 = arith.constant dense<0.000000e+00> : vector<16xf32>
    %456 = vector.multi_reduction <add>, %455, %cst_174 [1] : vector<16x32xf32> to vector<16xf32>
    %457 = vector.shape_cast %456 : vector<16xf32> to vector<16x1xf32>
    %cst_175 = arith.constant 3.200000e+01 : f32
    %458 = vector.broadcast %cst_175 : f32 to vector<16x1xf32>
    %459 = arith.divf %457, %458 : vector<16x1xf32>
    %460 = vector.broadcast %452 : vector<16x1xf32> to vector<16x32xf32>
    %461 = arith.subf %448, %460 : vector<16x32xf32>
    %cst_176 = arith.constant 9.99999974E-6 : f32
    %462 = vector.broadcast %cst_176 : f32 to vector<16x1xf32>
    %463 = arith.addf %459, %462 : vector<16x1xf32>
    %464 = math.rsqrt %463 : vector<16x1xf32>
    %465 = vector.broadcast %464 : vector<16x1xf32> to vector<16x32xf32>
    %466 = arith.mulf %461, %465 : vector<16x32xf32>
    %467 = vector.broadcast %191 : vector<1x32xf32> to vector<16x32xf32>
    %468 = arith.mulf %466, %467 : vector<16x32xf32>
    %469 = vector.broadcast %192 : vector<1x32xf32> to vector<16x32xf32>
    %470 = arith.addf %468, %469 : vector<16x32xf32>
    %471 = arith.addf %470, %161 : vector<16x32xf32>
    %472 = vector.extract_strided_slice %181 {offsets = [0, 0], sizes = [32, 32], strides = [1, 1]} : vector<32x96xf32> to vector<32x32xf32>
    %cst_177 = arith.constant dense<0.000000e+00> : vector<9x32xf32>
    %473 = tpu.matmul %391, %472, %cst_177 {dimension_numbers = #tpu.dot_dimension_numbers<[1], [0], [0], [1], [0, 0, 1, 1], [], []>} : vector<9x32xf32>, vector<32x32xf32>, vector<9x32xf32> -> vector<9x32xf32>
    %474 = vector.extract_strided_slice %182 {offsets = [0, 0], sizes = [1, 32], strides = [1, 1]} : vector<1x96xf32> to vector<1x32xf32>
    %475 = vector.broadcast %474 : vector<1x32xf32> to vector<9x32xf32>
    %476 = arith.addf %473, %475 : vector<9x32xf32>
    %477 = vector.extract_strided_slice %181 {offsets = [0, 32], sizes = [32, 32], strides = [1, 1]} : vector<32x96xf32> to vector<32x32xf32>
    %cst_178 = arith.constant dense<0.000000e+00> : vector<16x32xf32>
    %478 = tpu.matmul %471, %477, %cst_178 {dimension_numbers = #tpu.dot_dimension_numbers<[1], [0], [0], [1], [0, 0, 1, 1], [], []>} : vector<16x32xf32>, vector<32x32xf32>, vector<16x32xf32> -> vector<16x32xf32>
    %479 = vector.extract_strided_slice %182 {offsets = [0, 32], sizes = [1, 32], strides = [1, 1]} : vector<1x96xf32> to vector<1x32xf32>
    %480 = vector.broadcast %479 : vector<1x32xf32> to vector<16x32xf32>
    %481 = arith.addf %478, %480 : vector<16x32xf32>
    %482 = vector.extract_strided_slice %181 {offsets = [0, 64], sizes = [32, 32], strides = [1, 1]} : vector<32x96xf32> to vector<32x32xf32>
    %cst_179 = arith.constant dense<0.000000e+00> : vector<16x32xf32>
    %483 = tpu.matmul %470, %482, %cst_179 {dimension_numbers = #tpu.dot_dimension_numbers<[1], [0], [0], [1], [0, 0, 1, 1], [], []>} : vector<16x32xf32>, vector<32x32xf32>, vector<16x32xf32> -> vector<16x32xf32>
    %484 = vector.extract_strided_slice %182 {offsets = [0, 64], sizes = [1, 32], strides = [1, 1]} : vector<1x96xf32> to vector<1x32xf32>
    %485 = vector.broadcast %484 : vector<1x32xf32> to vector<16x32xf32>
    %486 = arith.addf %483, %485 : vector<16x32xf32>
    %487 = vector.extract_strided_slice %476 {offsets = [0, 0], sizes = [9, 16], strides = [1, 1]} : vector<9x32xf32> to vector<9x16xf32>
    %488 = vector.extract_strided_slice %481 {offsets = [0, 0], sizes = [16, 16], strides = [1, 1]} : vector<16x32xf32> to vector<16x16xf32>
    %cst_180 = arith.constant dense<0.000000e+00> : vector<9x16xf32>
    %489 = tpu.matmul %487, %488, %cst_180 {dimension_numbers = #tpu.dot_dimension_numbers<[1], [1], [0], [0], [0, 0, 1, 0], [], []>} : vector<9x16xf32>, vector<16x16xf32>, vector<9x16xf32> -> vector<9x16xf32>
    %cst_181 = arith.constant 2.500000e-01 : f32
    %490 = vector.broadcast %cst_181 : f32 to vector<9x16xf32>
    %491 = arith.mulf %489, %490 : vector<9x16xf32>
    %cst_182 = arith.constant dense<0xFF800000> : vector<9xf32>
    %492 = vector.multi_reduction <maximumf>, %491, %cst_182 [1] : vector<9x16xf32> to vector<9xf32>
    %cst_183 = arith.constant 0xFF800000 : f32
    %493 = vector.broadcast %cst_183 : f32 to vector<9xf32>
    %494 = arith.maximumf %493, %492 : vector<9xf32>
    %495 = vector.shape_cast %494 : vector<9xf32> to vector<9x1xf32>
    %496 = vector.broadcast %495 : vector<9x1xf32> to vector<9x16xf32>
    %497 = arith.subf %491, %496 : vector<9x16xf32>
    %498 = math.exp %497 : vector<9x16xf32>
    %cst_184 = arith.constant dense<0.000000e+00> : vector<9xf32>
    %499 = vector.multi_reduction <add>, %498, %cst_184 [1] : vector<9x16xf32> to vector<9xf32>
    %500 = vector.shape_cast %499 : vector<9xf32> to vector<9x1xf32>
    %501 = vector.broadcast %500 : vector<9x1xf32> to vector<9x16xf32>
    %502 = arith.divf %498, %501 : vector<9x16xf32>
    %503 = vector.extract_strided_slice %486 {offsets = [0, 0], sizes = [16, 16], strides = [1, 1]} : vector<16x32xf32> to vector<16x16xf32>
    %cst_185 = arith.constant dense<0.000000e+00> : vector<9x16xf32>
    %504 = tpu.matmul %502, %503, %cst_185 {dimension_numbers = #tpu.dot_dimension_numbers<[1], [0], [0], [1], [0, 0, 1, 1], [], []>} : vector<9x16xf32>, vector<16x16xf32>, vector<9x16xf32> -> vector<9x16xf32>
    %505 = vector.extract_strided_slice %476 {offsets = [0, 16], sizes = [9, 16], strides = [1, 1]} : vector<9x32xf32> to vector<9x16xf32>
    %506 = vector.extract_strided_slice %481 {offsets = [0, 16], sizes = [16, 16], strides = [1, 1]} : vector<16x32xf32> to vector<16x16xf32>
    %cst_186 = arith.constant dense<0.000000e+00> : vector<9x16xf32>
    %507 = tpu.matmul %505, %506, %cst_186 {dimension_numbers = #tpu.dot_dimension_numbers<[1], [1], [0], [0], [0, 0, 1, 0], [], []>} : vector<9x16xf32>, vector<16x16xf32>, vector<9x16xf32> -> vector<9x16xf32>
    %cst_187 = arith.constant 2.500000e-01 : f32
    %508 = vector.broadcast %cst_187 : f32 to vector<9x16xf32>
    %509 = arith.mulf %507, %508 : vector<9x16xf32>
    %cst_188 = arith.constant dense<0xFF800000> : vector<9xf32>
    %510 = vector.multi_reduction <maximumf>, %509, %cst_188 [1] : vector<9x16xf32> to vector<9xf32>
    %cst_189 = arith.constant 0xFF800000 : f32
    %511 = vector.broadcast %cst_189 : f32 to vector<9xf32>
    %512 = arith.maximumf %511, %510 : vector<9xf32>
    %513 = vector.shape_cast %512 : vector<9xf32> to vector<9x1xf32>
    %514 = vector.broadcast %513 : vector<9x1xf32> to vector<9x16xf32>
    %515 = arith.subf %509, %514 : vector<9x16xf32>
    %516 = math.exp %515 : vector<9x16xf32>
    %cst_190 = arith.constant dense<0.000000e+00> : vector<9xf32>
    %517 = vector.multi_reduction <add>, %516, %cst_190 [1] : vector<9x16xf32> to vector<9xf32>
    %518 = vector.shape_cast %517 : vector<9xf32> to vector<9x1xf32>
    %519 = vector.broadcast %518 : vector<9x1xf32> to vector<9x16xf32>
    %520 = arith.divf %516, %519 : vector<9x16xf32>
    %521 = vector.extract_strided_slice %486 {offsets = [0, 16], sizes = [16, 16], strides = [1, 1]} : vector<16x32xf32> to vector<16x16xf32>
    %cst_191 = arith.constant dense<0.000000e+00> : vector<9x16xf32>
    %522 = tpu.matmul %520, %521, %cst_191 {dimension_numbers = #tpu.dot_dimension_numbers<[1], [0], [0], [1], [0, 0, 1, 1], [], []>} : vector<9x16xf32>, vector<16x16xf32>, vector<9x16xf32> -> vector<9x16xf32>
    %523 = tpu.concatenate %504, %522 in 1 : vector<9x16xf32>, vector<9x16xf32> -> vector<9x32xf32>
    %cst_192 = arith.constant dense<0.000000e+00> : vector<9x32xf32>
    %524 = tpu.matmul %523, %183, %cst_192 {dimension_numbers = #tpu.dot_dimension_numbers<[1], [0], [0], [1], [0, 0, 1, 1], [], []>} : vector<9x32xf32>, vector<32x32xf32>, vector<9x32xf32> -> vector<9x32xf32>
    %525 = vector.broadcast %184 : vector<1x32xf32> to vector<9x32xf32>
    %526 = arith.addf %524, %525 : vector<9x32xf32>
    %527 = arith.addf %391, %526 : vector<9x32xf32>
    %cst_193 = arith.constant dense<0.000000e+00> : vector<16x16xf32>
    %528 = tpu.matmul %470, %197, %cst_193 {dimension_numbers = #tpu.dot_dimension_numbers<[1], [0], [0], [1], [0, 0, 1, 1], [], []>} : vector<16x32xf32>, vector<32x16xf32>, vector<16x16xf32> -> vector<16x16xf32>
    %529 = vector.broadcast %198 : vector<1x16xf32> to vector<16x16xf32>
    %530 = arith.addf %528, %529 : vector<16x16xf32>
    %531 = arith.mulf %530, %530 : vector<16x16xf32>
    %532 = arith.mulf %530, %531 : vector<16x16xf32>
    %cst_194 = arith.constant 4.471500e-02 : f32
    %533 = vector.broadcast %cst_194 : f32 to vector<16x16xf32>
    %534 = arith.mulf %533, %532 : vector<16x16xf32>
    %535 = arith.addf %530, %534 : vector<16x16xf32>
    %cst_195 = arith.constant 0.797884583 : f32
    %536 = vector.broadcast %cst_195 : f32 to vector<16x16xf32>
    %537 = arith.mulf %536, %535 : vector<16x16xf32>
    %538 = math.tanh %537 : vector<16x16xf32>
    %cst_196 = arith.constant 1.000000e+00 : f32
    %539 = vector.broadcast %cst_196 : f32 to vector<16x16xf32>
    %540 = arith.addf %539, %538 : vector<16x16xf32>
    %cst_197 = arith.constant 5.000000e-01 : f32
    %541 = vector.broadcast %cst_197 : f32 to vector<16x16xf32>
    %542 = arith.mulf %541, %540 : vector<16x16xf32>
    %543 = arith.mulf %530, %542 : vector<16x16xf32>
    %cst_198 = arith.constant dense<0.000000e+00> : vector<16x8xf32>
    %544 = tpu.matmul %543, %199, %cst_198 {dimension_numbers = #tpu.dot_dimension_numbers<[1], [0], [0], [1], [0, 0, 1, 1], [], []>} : vector<16x16xf32>, vector<16x8xf32>, vector<16x8xf32> -> vector<16x8xf32>
    %545 = vector.broadcast %200 : vector<1x8xf32> to vector<16x8xf32>
    %546 = arith.addf %544, %545 : vector<16x8xf32>
    %547 = arith.mulf %546, %546 : vector<16x8xf32>
    %548 = arith.mulf %546, %547 : vector<16x8xf32>
    %cst_199 = arith.constant 4.471500e-02 : f32
    %549 = vector.broadcast %cst_199 : f32 to vector<16x8xf32>
    %550 = arith.mulf %549, %548 : vector<16x8xf32>
    %551 = arith.addf %546, %550 : vector<16x8xf32>
    %cst_200 = arith.constant 0.797884583 : f32
    %552 = vector.broadcast %cst_200 : f32 to vector<16x8xf32>
    %553 = arith.mulf %552, %551 : vector<16x8xf32>
    %554 = math.tanh %553 : vector<16x8xf32>
    %cst_201 = arith.constant 1.000000e+00 : f32
    %555 = vector.broadcast %cst_201 : f32 to vector<16x8xf32>
    %556 = arith.addf %555, %554 : vector<16x8xf32>
    %cst_202 = arith.constant 5.000000e-01 : f32
    %557 = vector.broadcast %cst_202 : f32 to vector<16x8xf32>
    %558 = arith.mulf %557, %556 : vector<16x8xf32>
    %559 = arith.mulf %546, %558 : vector<16x8xf32>
    %560 = vector.extract_strided_slice %527 {offsets = [1, 0], sizes = [4, 32], strides = [1, 1]} : vector<9x32xf32> to vector<4x32xf32>
    %561 = tpu.concatenate %560, %560, %560, %560 in 1 : vector<4x32xf32>, vector<4x32xf32>, vector<4x32xf32>, vector<4x32xf32> -> vector<4x128xf32>
    %562 = arith.mulf %561, %205 : vector<4x128xf32>
    %cst_203 = arith.constant dense<0.000000e+00> : vector<4x128xf32>
    %563 = tpu.matmul %562, %201, %cst_203 {dimension_numbers = #tpu.dot_dimension_numbers<[1], [0], [0], [1], [0, 0, 1, 1], [], []>} : vector<4x128xf32>, vector<128x128xf32>, vector<4x128xf32> -> vector<4x128xf32>
    %564 = vector.broadcast %202 : vector<1x128xf32> to vector<4x128xf32>
    %565 = arith.addf %563, %564 : vector<4x128xf32>
    %cst_204 = arith.constant 0.000000e+00 : f32
    %566 = vector.broadcast %cst_204 : f32 to vector<4x128xf32>
    %567 = arith.maximumf %565, %566 : vector<4x128xf32>
    %cst_205 = arith.constant dense<0.000000e+00> : vector<4x32xf32>
    %568 = tpu.matmul %567, %203, %cst_205 {dimension_numbers = #tpu.dot_dimension_numbers<[1], [0], [0], [1], [0, 0, 1, 1], [], []>} : vector<4x128xf32>, vector<128x32xf32>, vector<4x32xf32> -> vector<4x32xf32>
    %569 = vector.broadcast %204 : vector<1x32xf32> to vector<4x32xf32>
    %570 = arith.addf %568, %569 : vector<4x32xf32>
    %571 = arith.mulf %570, %206 : vector<4x32xf32>
    %572 = tpu.concatenate %559, %559, %559, %559 in 1 : vector<16x8xf32>, vector<16x8xf32>, vector<16x8xf32>, vector<16x8xf32> -> vector<16x32xf32>
    %cst_206 = arith.constant dense<0.000000e+00> : vector<4x16xf32>
    %573 = tpu.matmul %571, %572, %cst_206 {dimension_numbers = #tpu.dot_dimension_numbers<[1], [1], [0], [0], [0, 0, 1, 0], [], []>} : vector<4x32xf32>, vector<16x32xf32>, vector<4x16xf32> -> vector<4x16xf32>
    %cst_207 = arith.constant dense<0.000000e+00> : vector<4x256xf32>
    %574 = tpu.matmul %573, %168, %cst_207 {dimension_numbers = #tpu.dot_dimension_numbers<[1], [0], [0], [1], [0, 0, 1, 1], [], []>} : vector<4x16xf32>, vector<16x256xf32>, vector<4x256xf32> -> vector<4x256xf32>
    %575 = vector.extract_strided_slice %527 {offsets = [0, 0], sizes = [1, 32], strides = [1, 1]} : vector<9x32xf32> to vector<1x32xf32>
    %cst_208 = arith.constant dense<0.000000e+00> : vector<1x32xf32>
    %576 = tpu.matmul %575, %207, %cst_208 {dimension_numbers = #tpu.dot_dimension_numbers<[1], [0], [0], [1], [0, 0, 1, 1], [], []>} : vector<1x32xf32>, vector<32x32xf32>, vector<1x32xf32> -> vector<1x32xf32>
    %577 = arith.addf %576, %208 : vector<1x32xf32>
    %cst_209 = arith.constant 0.000000e+00 : f32
    %578 = vector.broadcast %cst_209 : f32 to vector<1x32xf32>
    %579 = arith.maximumf %577, %578 : vector<1x32xf32>
    %cst_210 = arith.constant dense<0.000000e+00> : vector<1x4xf32>
    %580 = tpu.matmul %579, %209, %cst_210 {dimension_numbers = #tpu.dot_dimension_numbers<[1], [0], [0], [1], [0, 0, 1, 1], [], []>} : vector<1x32xf32>, vector<32x4xf32>, vector<1x4xf32> -> vector<1x4xf32>
    %581 = arith.addf %580, %210 : vector<1x4xf32>
    %cst_211 = arith.constant 0.000000e+00 : f32
    %582 = vector.broadcast %cst_211 : f32 to vector<1x252xf32>
    %583 = tpu.concatenate %581, %582 in 1 : vector<1x4xf32>, vector<1x252xf32> -> vector<1x256xf32>
    %584 = tpu.concatenate %574, %583 in 0 : vector<4x256xf32>, vector<1x256xf32> -> vector<5x256xf32>
    %585 = vector.extract_strided_slice %167 {offsets = [4, 0], sizes = [4, 32], strides = [1, 1]} : vector<8x32xf32> to vector<4x32xf32>
    %586 = tpu.concatenate %165, %585 in 0 : vector<5x32xf32>, vector<4x32xf32> -> vector<9x32xf32>
    %cst_212 = arith.constant dense<0.000000e+00> : vector<9x96xf32>
    %587 = tpu.matmul %586, %169, %cst_212 {dimension_numbers = #tpu.dot_dimension_numbers<[1], [0], [0], [1], [0, 0, 1, 1], [], []>} : vector<9x32xf32>, vector<32x96xf32>, vector<9x96xf32> -> vector<9x96xf32>
    %588 = vector.broadcast %170 : vector<1x96xf32> to vector<9x96xf32>
    %589 = arith.addf %587, %588 : vector<9x96xf32>
    %590 = vector.extract_strided_slice %589 {offsets = [0, 0], sizes = [9, 32], strides = [1, 1]} : vector<9x96xf32> to vector<9x32xf32>
    %591 = vector.extract_strided_slice %589 {offsets = [0, 32], sizes = [9, 32], strides = [1, 1]} : vector<9x96xf32> to vector<9x32xf32>
    %592 = vector.extract_strided_slice %589 {offsets = [0, 64], sizes = [9, 32], strides = [1, 1]} : vector<9x96xf32> to vector<9x32xf32>
    %593 = vector.extract_strided_slice %590 {offsets = [0, 0], sizes = [9, 16], strides = [1, 1]} : vector<9x32xf32> to vector<9x16xf32>
    %594 = vector.extract_strided_slice %591 {offsets = [0, 0], sizes = [9, 16], strides = [1, 1]} : vector<9x32xf32> to vector<9x16xf32>
    %cst_213 = arith.constant dense<0.000000e+00> : vector<9x9xf32>
    %595 = tpu.matmul %593, %594, %cst_213 {dimension_numbers = #tpu.dot_dimension_numbers<[1], [1], [0], [0], [0, 0, 1, 0], [], []>} : vector<9x16xf32>, vector<9x16xf32>, vector<9x9xf32> -> vector<9x9xf32>
    %cst_214 = arith.constant 2.500000e-01 : f32
    %596 = vector.broadcast %cst_214 : f32 to vector<9x9xf32>
    %597 = arith.mulf %595, %596 : vector<9x9xf32>
    %cst_215 = arith.constant dense<0xFF800000> : vector<9xf32>
    %598 = vector.multi_reduction <maximumf>, %597, %cst_215 [1] : vector<9x9xf32> to vector<9xf32>
    %cst_216 = arith.constant 0xFF800000 : f32
    %599 = vector.broadcast %cst_216 : f32 to vector<9xf32>
    %600 = arith.maximumf %599, %598 : vector<9xf32>
    %601 = vector.shape_cast %600 : vector<9xf32> to vector<9x1xf32>
    %602 = vector.broadcast %601 : vector<9x1xf32> to vector<9x9xf32>
    %603 = arith.subf %597, %602 : vector<9x9xf32>
    %604 = math.exp %603 : vector<9x9xf32>
    %cst_217 = arith.constant dense<0.000000e+00> : vector<9xf32>
    %605 = vector.multi_reduction <add>, %604, %cst_217 [1] : vector<9x9xf32> to vector<9xf32>
    %606 = vector.shape_cast %605 : vector<9xf32> to vector<9x1xf32>
    %607 = vector.broadcast %606 : vector<9x1xf32> to vector<9x9xf32>
    %608 = arith.divf %604, %607 : vector<9x9xf32>
    %609 = vector.extract_strided_slice %592 {offsets = [0, 0], sizes = [9, 16], strides = [1, 1]} : vector<9x32xf32> to vector<9x16xf32>
    %cst_218 = arith.constant dense<0.000000e+00> : vector<9x16xf32>
    %610 = tpu.matmul %608, %609, %cst_218 {dimension_numbers = #tpu.dot_dimension_numbers<[1], [0], [0], [1], [0, 0, 1, 1], [], []>} : vector<9x9xf32>, vector<9x16xf32>, vector<9x16xf32> -> vector<9x16xf32>
    %611 = vector.extract_strided_slice %590 {offsets = [0, 16], sizes = [9, 16], strides = [1, 1]} : vector<9x32xf32> to vector<9x16xf32>
    %612 = vector.extract_strided_slice %591 {offsets = [0, 16], sizes = [9, 16], strides = [1, 1]} : vector<9x32xf32> to vector<9x16xf32>
    %cst_219 = arith.constant dense<0.000000e+00> : vector<9x9xf32>
    %613 = tpu.matmul %611, %612, %cst_219 {dimension_numbers = #tpu.dot_dimension_numbers<[1], [1], [0], [0], [0, 0, 1, 0], [], []>} : vector<9x16xf32>, vector<9x16xf32>, vector<9x9xf32> -> vector<9x9xf32>
    %cst_220 = arith.constant 2.500000e-01 : f32
    %614 = vector.broadcast %cst_220 : f32 to vector<9x9xf32>
    %615 = arith.mulf %613, %614 : vector<9x9xf32>
    %cst_221 = arith.constant dense<0xFF800000> : vector<9xf32>
    %616 = vector.multi_reduction <maximumf>, %615, %cst_221 [1] : vector<9x9xf32> to vector<9xf32>
    %cst_222 = arith.constant 0xFF800000 : f32
    %617 = vector.broadcast %cst_222 : f32 to vector<9xf32>
    %618 = arith.maximumf %617, %616 : vector<9xf32>
    %619 = vector.shape_cast %618 : vector<9xf32> to vector<9x1xf32>
    %620 = vector.broadcast %619 : vector<9x1xf32> to vector<9x9xf32>
    %621 = arith.subf %615, %620 : vector<9x9xf32>
    %622 = math.exp %621 : vector<9x9xf32>
    %cst_223 = arith.constant dense<0.000000e+00> : vector<9xf32>
    %623 = vector.multi_reduction <add>, %622, %cst_223 [1] : vector<9x9xf32> to vector<9xf32>
    %624 = vector.shape_cast %623 : vector<9xf32> to vector<9x1xf32>
    %625 = vector.broadcast %624 : vector<9x1xf32> to vector<9x9xf32>
    %626 = arith.divf %622, %625 : vector<9x9xf32>
    %627 = vector.extract_strided_slice %592 {offsets = [0, 16], sizes = [9, 16], strides = [1, 1]} : vector<9x32xf32> to vector<9x16xf32>
    %cst_224 = arith.constant dense<0.000000e+00> : vector<9x16xf32>
    %628 = tpu.matmul %626, %627, %cst_224 {dimension_numbers = #tpu.dot_dimension_numbers<[1], [0], [0], [1], [0, 0, 1, 1], [], []>} : vector<9x9xf32>, vector<9x16xf32>, vector<9x16xf32> -> vector<9x16xf32>
    %629 = tpu.concatenate %610, %628 in 1 : vector<9x16xf32>, vector<9x16xf32> -> vector<9x32xf32>
    %cst_225 = arith.constant dense<0.000000e+00> : vector<9x32xf32>
    %630 = tpu.matmul %629, %171, %cst_225 {dimension_numbers = #tpu.dot_dimension_numbers<[1], [0], [0], [1], [0, 0, 1, 1], [], []>} : vector<9x32xf32>, vector<32x32xf32>, vector<9x32xf32> -> vector<9x32xf32>
    %631 = vector.broadcast %172 : vector<1x32xf32> to vector<9x32xf32>
    %632 = arith.addf %630, %631 : vector<9x32xf32>
    %633 = arith.addf %586, %632 : vector<9x32xf32>
    %cst_226 = arith.constant dense<0.000000e+00> : vector<9xf32>
    %634 = vector.multi_reduction <add>, %633, %cst_226 [1] : vector<9x32xf32> to vector<9xf32>
    %635 = vector.shape_cast %634 : vector<9xf32> to vector<9x1xf32>
    %cst_227 = arith.constant 3.200000e+01 : f32
    %636 = vector.broadcast %cst_227 : f32 to vector<9x1xf32>
    %637 = arith.divf %635, %636 : vector<9x1xf32>
    %638 = vector.broadcast %637 : vector<9x1xf32> to vector<9x32xf32>
    %639 = arith.subf %633, %638 : vector<9x32xf32>
    %640 = arith.mulf %639, %639 : vector<9x32xf32>
    %cst_228 = arith.constant dense<0.000000e+00> : vector<9xf32>
    %641 = vector.multi_reduction <add>, %640, %cst_228 [1] : vector<9x32xf32> to vector<9xf32>
    %642 = vector.shape_cast %641 : vector<9xf32> to vector<9x1xf32>
    %cst_229 = arith.constant 3.200000e+01 : f32
    %643 = vector.broadcast %cst_229 : f32 to vector<9x1xf32>
    %644 = arith.divf %642, %643 : vector<9x1xf32>
    %645 = vector.broadcast %637 : vector<9x1xf32> to vector<9x32xf32>
    %646 = arith.subf %633, %645 : vector<9x32xf32>
    %cst_230 = arith.constant 9.99999974E-6 : f32
    %647 = vector.broadcast %cst_230 : f32 to vector<9x1xf32>
    %648 = arith.addf %644, %647 : vector<9x1xf32>
    %649 = math.rsqrt %648 : vector<9x1xf32>
    %650 = vector.broadcast %649 : vector<9x1xf32> to vector<9x32xf32>
    %651 = arith.mulf %646, %650 : vector<9x32xf32>
    %652 = vector.broadcast %185 : vector<1x32xf32> to vector<9x32xf32>
    %653 = arith.mulf %651, %652 : vector<9x32xf32>
    %654 = vector.broadcast %186 : vector<1x32xf32> to vector<9x32xf32>
    %655 = arith.addf %653, %654 : vector<9x32xf32>
    %656 = arith.addf %164, %161 : vector<16x32xf32>
    %657 = vector.extract_strided_slice %173 {offsets = [0, 0], sizes = [32, 32], strides = [1, 1]} : vector<32x96xf32> to vector<32x32xf32>
    %cst_231 = arith.constant dense<0.000000e+00> : vector<9x32xf32>
    %658 = tpu.matmul %655, %657, %cst_231 {dimension_numbers = #tpu.dot_dimension_numbers<[1], [0], [0], [1], [0, 0, 1, 1], [], []>} : vector<9x32xf32>, vector<32x32xf32>, vector<9x32xf32> -> vector<9x32xf32>
    %659 = vector.extract_strided_slice %174 {offsets = [0, 0], sizes = [1, 32], strides = [1, 1]} : vector<1x96xf32> to vector<1x32xf32>
    %660 = vector.broadcast %659 : vector<1x32xf32> to vector<9x32xf32>
    %661 = arith.addf %658, %660 : vector<9x32xf32>
    %662 = vector.extract_strided_slice %173 {offsets = [0, 32], sizes = [32, 32], strides = [1, 1]} : vector<32x96xf32> to vector<32x32xf32>
    %cst_232 = arith.constant dense<0.000000e+00> : vector<16x32xf32>
    %663 = tpu.matmul %656, %662, %cst_232 {dimension_numbers = #tpu.dot_dimension_numbers<[1], [0], [0], [1], [0, 0, 1, 1], [], []>} : vector<16x32xf32>, vector<32x32xf32>, vector<16x32xf32> -> vector<16x32xf32>
    %664 = vector.extract_strided_slice %174 {offsets = [0, 32], sizes = [1, 32], strides = [1, 1]} : vector<1x96xf32> to vector<1x32xf32>
    %665 = vector.broadcast %664 : vector<1x32xf32> to vector<16x32xf32>
    %666 = arith.addf %663, %665 : vector<16x32xf32>
    %667 = vector.extract_strided_slice %173 {offsets = [0, 64], sizes = [32, 32], strides = [1, 1]} : vector<32x96xf32> to vector<32x32xf32>
    %cst_233 = arith.constant dense<0.000000e+00> : vector<16x32xf32>
    %668 = tpu.matmul %164, %667, %cst_233 {dimension_numbers = #tpu.dot_dimension_numbers<[1], [0], [0], [1], [0, 0, 1, 1], [], []>} : vector<16x32xf32>, vector<32x32xf32>, vector<16x32xf32> -> vector<16x32xf32>
    %669 = vector.extract_strided_slice %174 {offsets = [0, 64], sizes = [1, 32], strides = [1, 1]} : vector<1x96xf32> to vector<1x32xf32>
    %670 = vector.broadcast %669 : vector<1x32xf32> to vector<16x32xf32>
    %671 = arith.addf %668, %670 : vector<16x32xf32>
    %672 = vector.extract_strided_slice %661 {offsets = [0, 0], sizes = [9, 16], strides = [1, 1]} : vector<9x32xf32> to vector<9x16xf32>
    %673 = vector.extract_strided_slice %666 {offsets = [0, 0], sizes = [16, 16], strides = [1, 1]} : vector<16x32xf32> to vector<16x16xf32>
    %cst_234 = arith.constant dense<0.000000e+00> : vector<9x16xf32>
    %674 = tpu.matmul %672, %673, %cst_234 {dimension_numbers = #tpu.dot_dimension_numbers<[1], [1], [0], [0], [0, 0, 1, 0], [], []>} : vector<9x16xf32>, vector<16x16xf32>, vector<9x16xf32> -> vector<9x16xf32>
    %cst_235 = arith.constant 2.500000e-01 : f32
    %675 = vector.broadcast %cst_235 : f32 to vector<9x16xf32>
    %676 = arith.mulf %674, %675 : vector<9x16xf32>
    %cst_236 = arith.constant dense<0xFF800000> : vector<9xf32>
    %677 = vector.multi_reduction <maximumf>, %676, %cst_236 [1] : vector<9x16xf32> to vector<9xf32>
    %cst_237 = arith.constant 0xFF800000 : f32
    %678 = vector.broadcast %cst_237 : f32 to vector<9xf32>
    %679 = arith.maximumf %678, %677 : vector<9xf32>
    %680 = vector.shape_cast %679 : vector<9xf32> to vector<9x1xf32>
    %681 = vector.broadcast %680 : vector<9x1xf32> to vector<9x16xf32>
    %682 = arith.subf %676, %681 : vector<9x16xf32>
    %683 = math.exp %682 : vector<9x16xf32>
    %cst_238 = arith.constant dense<0.000000e+00> : vector<9xf32>
    %684 = vector.multi_reduction <add>, %683, %cst_238 [1] : vector<9x16xf32> to vector<9xf32>
    %685 = vector.shape_cast %684 : vector<9xf32> to vector<9x1xf32>
    %686 = vector.broadcast %685 : vector<9x1xf32> to vector<9x16xf32>
    %687 = arith.divf %683, %686 : vector<9x16xf32>
    %688 = vector.extract_strided_slice %671 {offsets = [0, 0], sizes = [16, 16], strides = [1, 1]} : vector<16x32xf32> to vector<16x16xf32>
    %cst_239 = arith.constant dense<0.000000e+00> : vector<9x16xf32>
    %689 = tpu.matmul %687, %688, %cst_239 {dimension_numbers = #tpu.dot_dimension_numbers<[1], [0], [0], [1], [0, 0, 1, 1], [], []>} : vector<9x16xf32>, vector<16x16xf32>, vector<9x16xf32> -> vector<9x16xf32>
    %690 = vector.extract_strided_slice %661 {offsets = [0, 16], sizes = [9, 16], strides = [1, 1]} : vector<9x32xf32> to vector<9x16xf32>
    %691 = vector.extract_strided_slice %666 {offsets = [0, 16], sizes = [16, 16], strides = [1, 1]} : vector<16x32xf32> to vector<16x16xf32>
    %cst_240 = arith.constant dense<0.000000e+00> : vector<9x16xf32>
    %692 = tpu.matmul %690, %691, %cst_240 {dimension_numbers = #tpu.dot_dimension_numbers<[1], [1], [0], [0], [0, 0, 1, 0], [], []>} : vector<9x16xf32>, vector<16x16xf32>, vector<9x16xf32> -> vector<9x16xf32>
    %cst_241 = arith.constant 2.500000e-01 : f32
    %693 = vector.broadcast %cst_241 : f32 to vector<9x16xf32>
    %694 = arith.mulf %692, %693 : vector<9x16xf32>
    %cst_242 = arith.constant dense<0xFF800000> : vector<9xf32>
    %695 = vector.multi_reduction <maximumf>, %694, %cst_242 [1] : vector<9x16xf32> to vector<9xf32>
    %cst_243 = arith.constant 0xFF800000 : f32
    %696 = vector.broadcast %cst_243 : f32 to vector<9xf32>
    %697 = arith.maximumf %696, %695 : vector<9xf32>
    %698 = vector.shape_cast %697 : vector<9xf32> to vector<9x1xf32>
    %699 = vector.broadcast %698 : vector<9x1xf32> to vector<9x16xf32>
    %700 = arith.subf %694, %699 : vector<9x16xf32>
    %701 = math.exp %700 : vector<9x16xf32>
    %cst_244 = arith.constant dense<0.000000e+00> : vector<9xf32>
    %702 = vector.multi_reduction <add>, %701, %cst_244 [1] : vector<9x16xf32> to vector<9xf32>
    %703 = vector.shape_cast %702 : vector<9xf32> to vector<9x1xf32>
    %704 = vector.broadcast %703 : vector<9x1xf32> to vector<9x16xf32>
    %705 = arith.divf %701, %704 : vector<9x16xf32>
    %706 = vector.extract_strided_slice %671 {offsets = [0, 16], sizes = [16, 16], strides = [1, 1]} : vector<16x32xf32> to vector<16x16xf32>
    %cst_245 = arith.constant dense<0.000000e+00> : vector<9x16xf32>
    %707 = tpu.matmul %705, %706, %cst_245 {dimension_numbers = #tpu.dot_dimension_numbers<[1], [0], [0], [1], [0, 0, 1, 1], [], []>} : vector<9x16xf32>, vector<16x16xf32>, vector<9x16xf32> -> vector<9x16xf32>
    %708 = tpu.concatenate %689, %707 in 1 : vector<9x16xf32>, vector<9x16xf32> -> vector<9x32xf32>
    %cst_246 = arith.constant dense<0.000000e+00> : vector<9x32xf32>
    %709 = tpu.matmul %708, %175, %cst_246 {dimension_numbers = #tpu.dot_dimension_numbers<[1], [0], [0], [1], [0, 0, 1, 1], [], []>} : vector<9x32xf32>, vector<32x32xf32>, vector<9x32xf32> -> vector<9x32xf32>
    %710 = vector.broadcast %176 : vector<1x32xf32> to vector<9x32xf32>
    %711 = arith.addf %709, %710 : vector<9x32xf32>
    %712 = arith.addf %655, %711 : vector<9x32xf32>
    %cst_247 = arith.constant dense<0.000000e+00> : vector<9xf32>
    %713 = vector.multi_reduction <add>, %712, %cst_247 [1] : vector<9x32xf32> to vector<9xf32>
    %714 = vector.shape_cast %713 : vector<9xf32> to vector<9x1xf32>
    %cst_248 = arith.constant 3.200000e+01 : f32
    %715 = vector.broadcast %cst_248 : f32 to vector<9x1xf32>
    %716 = arith.divf %714, %715 : vector<9x1xf32>
    %717 = vector.broadcast %716 : vector<9x1xf32> to vector<9x32xf32>
    %718 = arith.subf %712, %717 : vector<9x32xf32>
    %719 = arith.mulf %718, %718 : vector<9x32xf32>
    %cst_249 = arith.constant dense<0.000000e+00> : vector<9xf32>
    %720 = vector.multi_reduction <add>, %719, %cst_249 [1] : vector<9x32xf32> to vector<9xf32>
    %721 = vector.shape_cast %720 : vector<9xf32> to vector<9x1xf32>
    %cst_250 = arith.constant 3.200000e+01 : f32
    %722 = vector.broadcast %cst_250 : f32 to vector<9x1xf32>
    %723 = arith.divf %721, %722 : vector<9x1xf32>
    %724 = vector.broadcast %716 : vector<9x1xf32> to vector<9x32xf32>
    %725 = arith.subf %712, %724 : vector<9x32xf32>
    %cst_251 = arith.constant 9.99999974E-6 : f32
    %726 = vector.broadcast %cst_251 : f32 to vector<9x1xf32>
    %727 = arith.addf %723, %726 : vector<9x1xf32>
    %728 = math.rsqrt %727 : vector<9x1xf32>
    %729 = vector.broadcast %728 : vector<9x1xf32> to vector<9x32xf32>
    %730 = arith.mulf %725, %729 : vector<9x32xf32>
    %731 = vector.broadcast %187 : vector<1x32xf32> to vector<9x32xf32>
    %732 = arith.mulf %730, %731 : vector<9x32xf32>
    %733 = vector.broadcast %188 : vector<1x32xf32> to vector<9x32xf32>
    %734 = arith.addf %732, %733 : vector<9x32xf32>
    %cst_252 = arith.constant dense<0.000000e+00> : vector<9x64xf32>
    %735 = tpu.matmul %734, %193, %cst_252 {dimension_numbers = #tpu.dot_dimension_numbers<[1], [0], [0], [1], [0, 0, 1, 1], [], []>} : vector<9x32xf32>, vector<32x64xf32>, vector<9x64xf32> -> vector<9x64xf32>
    %736 = vector.broadcast %194 : vector<1x64xf32> to vector<9x64xf32>
    %737 = arith.addf %735, %736 : vector<9x64xf32>
    %cst_253 = arith.constant 0.000000e+00 : f32
    %738 = vector.broadcast %cst_253 : f32 to vector<9x64xf32>
    %739 = arith.maximumf %737, %738 : vector<9x64xf32>
    %cst_254 = arith.constant dense<0.000000e+00> : vector<9x32xf32>
    %740 = tpu.matmul %739, %195, %cst_254 {dimension_numbers = #tpu.dot_dimension_numbers<[1], [0], [0], [1], [0, 0, 1, 1], [], []>} : vector<9x64xf32>, vector<64x32xf32>, vector<9x32xf32> -> vector<9x32xf32>
    %741 = vector.broadcast %196 : vector<1x32xf32> to vector<9x32xf32>
    %742 = arith.addf %740, %741 : vector<9x32xf32>
    %743 = arith.addf %734, %742 : vector<9x32xf32>
    %cst_255 = arith.constant dense<0.000000e+00> : vector<9xf32>
    %744 = vector.multi_reduction <add>, %743, %cst_255 [1] : vector<9x32xf32> to vector<9xf32>
    %745 = vector.shape_cast %744 : vector<9xf32> to vector<9x1xf32>
    %cst_256 = arith.constant 3.200000e+01 : f32
    %746 = vector.broadcast %cst_256 : f32 to vector<9x1xf32>
    %747 = arith.divf %745, %746 : vector<9x1xf32>
    %748 = vector.broadcast %747 : vector<9x1xf32> to vector<9x32xf32>
    %749 = arith.subf %743, %748 : vector<9x32xf32>
    %750 = arith.mulf %749, %749 : vector<9x32xf32>
    %cst_257 = arith.constant dense<0.000000e+00> : vector<9xf32>
    %751 = vector.multi_reduction <add>, %750, %cst_257 [1] : vector<9x32xf32> to vector<9xf32>
    %752 = vector.shape_cast %751 : vector<9xf32> to vector<9x1xf32>
    %cst_258 = arith.constant 3.200000e+01 : f32
    %753 = vector.broadcast %cst_258 : f32 to vector<9x1xf32>
    %754 = arith.divf %752, %753 : vector<9x1xf32>
    %755 = vector.broadcast %747 : vector<9x1xf32> to vector<9x32xf32>
    %756 = arith.subf %743, %755 : vector<9x32xf32>
    %cst_259 = arith.constant 9.99999974E-6 : f32
    %757 = vector.broadcast %cst_259 : f32 to vector<9x1xf32>
    %758 = arith.addf %754, %757 : vector<9x1xf32>
    %759 = math.rsqrt %758 : vector<9x1xf32>
    %760 = vector.broadcast %759 : vector<9x1xf32> to vector<9x32xf32>
    %761 = arith.mulf %756, %760 : vector<9x32xf32>
    %762 = vector.broadcast %189 : vector<1x32xf32> to vector<9x32xf32>
    %763 = arith.mulf %761, %762 : vector<9x32xf32>
    %764 = vector.broadcast %190 : vector<1x32xf32> to vector<9x32xf32>
    %765 = arith.addf %763, %764 : vector<9x32xf32>
    %766 = arith.addf %164, %161 : vector<16x32xf32>
    %767 = vector.extract_strided_slice %177 {offsets = [0, 0], sizes = [32, 32], strides = [1, 1]} : vector<32x96xf32> to vector<32x32xf32>
    %cst_260 = arith.constant dense<0.000000e+00> : vector<16x32xf32>
    %768 = tpu.matmul %766, %767, %cst_260 {dimension_numbers = #tpu.dot_dimension_numbers<[1], [0], [0], [1], [0, 0, 1, 1], [], []>} : vector<16x32xf32>, vector<32x32xf32>, vector<16x32xf32> -> vector<16x32xf32>
    %769 = vector.extract_strided_slice %178 {offsets = [0, 0], sizes = [1, 32], strides = [1, 1]} : vector<1x96xf32> to vector<1x32xf32>
    %770 = vector.broadcast %769 : vector<1x32xf32> to vector<16x32xf32>
    %771 = arith.addf %768, %770 : vector<16x32xf32>
    %772 = vector.extract_strided_slice %177 {offsets = [0, 32], sizes = [32, 32], strides = [1, 1]} : vector<32x96xf32> to vector<32x32xf32>
    %cst_261 = arith.constant dense<0.000000e+00> : vector<9x32xf32>
    %773 = tpu.matmul %765, %772, %cst_261 {dimension_numbers = #tpu.dot_dimension_numbers<[1], [0], [0], [1], [0, 0, 1, 1], [], []>} : vector<9x32xf32>, vector<32x32xf32>, vector<9x32xf32> -> vector<9x32xf32>
    %774 = vector.extract_strided_slice %178 {offsets = [0, 32], sizes = [1, 32], strides = [1, 1]} : vector<1x96xf32> to vector<1x32xf32>
    %775 = vector.broadcast %774 : vector<1x32xf32> to vector<9x32xf32>
    %776 = arith.addf %773, %775 : vector<9x32xf32>
    %777 = vector.extract_strided_slice %177 {offsets = [0, 64], sizes = [32, 32], strides = [1, 1]} : vector<32x96xf32> to vector<32x32xf32>
    %cst_262 = arith.constant dense<0.000000e+00> : vector<9x32xf32>
    %778 = tpu.matmul %765, %777, %cst_262 {dimension_numbers = #tpu.dot_dimension_numbers<[1], [0], [0], [1], [0, 0, 1, 1], [], []>} : vector<9x32xf32>, vector<32x32xf32>, vector<9x32xf32> -> vector<9x32xf32>
    %779 = vector.extract_strided_slice %178 {offsets = [0, 64], sizes = [1, 32], strides = [1, 1]} : vector<1x96xf32> to vector<1x32xf32>
    %780 = vector.broadcast %779 : vector<1x32xf32> to vector<9x32xf32>
    %781 = arith.addf %778, %780 : vector<9x32xf32>
    %782 = vector.extract_strided_slice %771 {offsets = [0, 0], sizes = [16, 16], strides = [1, 1]} : vector<16x32xf32> to vector<16x16xf32>
    %783 = vector.extract_strided_slice %776 {offsets = [0, 0], sizes = [9, 16], strides = [1, 1]} : vector<9x32xf32> to vector<9x16xf32>
    %cst_263 = arith.constant dense<0.000000e+00> : vector<16x9xf32>
    %784 = tpu.matmul %782, %783, %cst_263 {dimension_numbers = #tpu.dot_dimension_numbers<[1], [1], [0], [0], [0, 0, 1, 0], [], []>} : vector<16x16xf32>, vector<9x16xf32>, vector<16x9xf32> -> vector<16x9xf32>
    %cst_264 = arith.constant 2.500000e-01 : f32
    %785 = vector.broadcast %cst_264 : f32 to vector<16x9xf32>
    %786 = arith.mulf %784, %785 : vector<16x9xf32>
    %cst_265 = arith.constant dense<0xFF800000> : vector<16xf32>
    %787 = vector.multi_reduction <maximumf>, %786, %cst_265 [1] : vector<16x9xf32> to vector<16xf32>
    %cst_266 = arith.constant 0xFF800000 : f32
    %788 = vector.broadcast %cst_266 : f32 to vector<16xf32>
    %789 = arith.maximumf %788, %787 : vector<16xf32>
    %790 = vector.shape_cast %789 : vector<16xf32> to vector<16x1xf32>
    %791 = vector.broadcast %790 : vector<16x1xf32> to vector<16x9xf32>
    %792 = arith.subf %786, %791 : vector<16x9xf32>
    %793 = math.exp %792 : vector<16x9xf32>
    %cst_267 = arith.constant dense<0.000000e+00> : vector<16xf32>
    %794 = vector.multi_reduction <add>, %793, %cst_267 [1] : vector<16x9xf32> to vector<16xf32>
    %795 = vector.shape_cast %794 : vector<16xf32> to vector<16x1xf32>
    %796 = vector.broadcast %795 : vector<16x1xf32> to vector<16x9xf32>
    %797 = arith.divf %793, %796 : vector<16x9xf32>
    %798 = vector.extract_strided_slice %781 {offsets = [0, 0], sizes = [9, 16], strides = [1, 1]} : vector<9x32xf32> to vector<9x16xf32>
    %cst_268 = arith.constant dense<0.000000e+00> : vector<16x16xf32>
    %799 = tpu.matmul %797, %798, %cst_268 {dimension_numbers = #tpu.dot_dimension_numbers<[1], [0], [0], [1], [0, 0, 1, 1], [], []>} : vector<16x9xf32>, vector<9x16xf32>, vector<16x16xf32> -> vector<16x16xf32>
    %800 = vector.extract_strided_slice %771 {offsets = [0, 16], sizes = [16, 16], strides = [1, 1]} : vector<16x32xf32> to vector<16x16xf32>
    %801 = vector.extract_strided_slice %776 {offsets = [0, 16], sizes = [9, 16], strides = [1, 1]} : vector<9x32xf32> to vector<9x16xf32>
    %cst_269 = arith.constant dense<0.000000e+00> : vector<16x9xf32>
    %802 = tpu.matmul %800, %801, %cst_269 {dimension_numbers = #tpu.dot_dimension_numbers<[1], [1], [0], [0], [0, 0, 1, 0], [], []>} : vector<16x16xf32>, vector<9x16xf32>, vector<16x9xf32> -> vector<16x9xf32>
    %cst_270 = arith.constant 2.500000e-01 : f32
    %803 = vector.broadcast %cst_270 : f32 to vector<16x9xf32>
    %804 = arith.mulf %802, %803 : vector<16x9xf32>
    %cst_271 = arith.constant dense<0xFF800000> : vector<16xf32>
    %805 = vector.multi_reduction <maximumf>, %804, %cst_271 [1] : vector<16x9xf32> to vector<16xf32>
    %cst_272 = arith.constant 0xFF800000 : f32
    %806 = vector.broadcast %cst_272 : f32 to vector<16xf32>
    %807 = arith.maximumf %806, %805 : vector<16xf32>
    %808 = vector.shape_cast %807 : vector<16xf32> to vector<16x1xf32>
    %809 = vector.broadcast %808 : vector<16x1xf32> to vector<16x9xf32>
    %810 = arith.subf %804, %809 : vector<16x9xf32>
    %811 = math.exp %810 : vector<16x9xf32>
    %cst_273 = arith.constant dense<0.000000e+00> : vector<16xf32>
    %812 = vector.multi_reduction <add>, %811, %cst_273 [1] : vector<16x9xf32> to vector<16xf32>
    %813 = vector.shape_cast %812 : vector<16xf32> to vector<16x1xf32>
    %814 = vector.broadcast %813 : vector<16x1xf32> to vector<16x9xf32>
    %815 = arith.divf %811, %814 : vector<16x9xf32>
    %816 = vector.extract_strided_slice %781 {offsets = [0, 16], sizes = [9, 16], strides = [1, 1]} : vector<9x32xf32> to vector<9x16xf32>
    %cst_274 = arith.constant dense<0.000000e+00> : vector<16x16xf32>
    %817 = tpu.matmul %815, %816, %cst_274 {dimension_numbers = #tpu.dot_dimension_numbers<[1], [0], [0], [1], [0, 0, 1, 1], [], []>} : vector<16x9xf32>, vector<9x16xf32>, vector<16x16xf32> -> vector<16x16xf32>
    %818 = tpu.concatenate %799, %817 in 1 : vector<16x16xf32>, vector<16x16xf32> -> vector<16x32xf32>
    %cst_275 = arith.constant dense<0.000000e+00> : vector<16x32xf32>
    %819 = tpu.matmul %818, %179, %cst_275 {dimension_numbers = #tpu.dot_dimension_numbers<[1], [0], [0], [1], [0, 0, 1, 1], [], []>} : vector<16x32xf32>, vector<32x32xf32>, vector<16x32xf32> -> vector<16x32xf32>
    %820 = vector.broadcast %180 : vector<1x32xf32> to vector<16x32xf32>
    %821 = arith.addf %819, %820 : vector<16x32xf32>
    %822 = arith.addf %164, %821 : vector<16x32xf32>
    %cst_276 = arith.constant dense<0.000000e+00> : vector<16xf32>
    %823 = vector.multi_reduction <add>, %822, %cst_276 [1] : vector<16x32xf32> to vector<16xf32>
    %824 = vector.shape_cast %823 : vector<16xf32> to vector<16x1xf32>
    %cst_277 = arith.constant 3.200000e+01 : f32
    %825 = vector.broadcast %cst_277 : f32 to vector<16x1xf32>
    %826 = arith.divf %824, %825 : vector<16x1xf32>
    %827 = vector.broadcast %826 : vector<16x1xf32> to vector<16x32xf32>
    %828 = arith.subf %822, %827 : vector<16x32xf32>
    %829 = arith.mulf %828, %828 : vector<16x32xf32>
    %cst_278 = arith.constant dense<0.000000e+00> : vector<16xf32>
    %830 = vector.multi_reduction <add>, %829, %cst_278 [1] : vector<16x32xf32> to vector<16xf32>
    %831 = vector.shape_cast %830 : vector<16xf32> to vector<16x1xf32>
    %cst_279 = arith.constant 3.200000e+01 : f32
    %832 = vector.broadcast %cst_279 : f32 to vector<16x1xf32>
    %833 = arith.divf %831, %832 : vector<16x1xf32>
    %834 = vector.broadcast %826 : vector<16x1xf32> to vector<16x32xf32>
    %835 = arith.subf %822, %834 : vector<16x32xf32>
    %cst_280 = arith.constant 9.99999974E-6 : f32
    %836 = vector.broadcast %cst_280 : f32 to vector<16x1xf32>
    %837 = arith.addf %833, %836 : vector<16x1xf32>
    %838 = math.rsqrt %837 : vector<16x1xf32>
    %839 = vector.broadcast %838 : vector<16x1xf32> to vector<16x32xf32>
    %840 = arith.mulf %835, %839 : vector<16x32xf32>
    %841 = vector.broadcast %191 : vector<1x32xf32> to vector<16x32xf32>
    %842 = arith.mulf %840, %841 : vector<16x32xf32>
    %843 = vector.broadcast %192 : vector<1x32xf32> to vector<16x32xf32>
    %844 = arith.addf %842, %843 : vector<16x32xf32>
    %845 = arith.addf %844, %161 : vector<16x32xf32>
    %846 = vector.extract_strided_slice %181 {offsets = [0, 0], sizes = [32, 32], strides = [1, 1]} : vector<32x96xf32> to vector<32x32xf32>
    %cst_281 = arith.constant dense<0.000000e+00> : vector<9x32xf32>
    %847 = tpu.matmul %765, %846, %cst_281 {dimension_numbers = #tpu.dot_dimension_numbers<[1], [0], [0], [1], [0, 0, 1, 1], [], []>} : vector<9x32xf32>, vector<32x32xf32>, vector<9x32xf32> -> vector<9x32xf32>
    %848 = vector.extract_strided_slice %182 {offsets = [0, 0], sizes = [1, 32], strides = [1, 1]} : vector<1x96xf32> to vector<1x32xf32>
    %849 = vector.broadcast %848 : vector<1x32xf32> to vector<9x32xf32>
    %850 = arith.addf %847, %849 : vector<9x32xf32>
    %851 = vector.extract_strided_slice %181 {offsets = [0, 32], sizes = [32, 32], strides = [1, 1]} : vector<32x96xf32> to vector<32x32xf32>
    %cst_282 = arith.constant dense<0.000000e+00> : vector<16x32xf32>
    %852 = tpu.matmul %845, %851, %cst_282 {dimension_numbers = #tpu.dot_dimension_numbers<[1], [0], [0], [1], [0, 0, 1, 1], [], []>} : vector<16x32xf32>, vector<32x32xf32>, vector<16x32xf32> -> vector<16x32xf32>
    %853 = vector.extract_strided_slice %182 {offsets = [0, 32], sizes = [1, 32], strides = [1, 1]} : vector<1x96xf32> to vector<1x32xf32>
    %854 = vector.broadcast %853 : vector<1x32xf32> to vector<16x32xf32>
    %855 = arith.addf %852, %854 : vector<16x32xf32>
    %856 = vector.extract_strided_slice %181 {offsets = [0, 64], sizes = [32, 32], strides = [1, 1]} : vector<32x96xf32> to vector<32x32xf32>
    %cst_283 = arith.constant dense<0.000000e+00> : vector<16x32xf32>
    %857 = tpu.matmul %844, %856, %cst_283 {dimension_numbers = #tpu.dot_dimension_numbers<[1], [0], [0], [1], [0, 0, 1, 1], [], []>} : vector<16x32xf32>, vector<32x32xf32>, vector<16x32xf32> -> vector<16x32xf32>
    %858 = vector.extract_strided_slice %182 {offsets = [0, 64], sizes = [1, 32], strides = [1, 1]} : vector<1x96xf32> to vector<1x32xf32>
    %859 = vector.broadcast %858 : vector<1x32xf32> to vector<16x32xf32>
    %860 = arith.addf %857, %859 : vector<16x32xf32>
    %861 = vector.extract_strided_slice %850 {offsets = [0, 0], sizes = [9, 16], strides = [1, 1]} : vector<9x32xf32> to vector<9x16xf32>
    %862 = vector.extract_strided_slice %855 {offsets = [0, 0], sizes = [16, 16], strides = [1, 1]} : vector<16x32xf32> to vector<16x16xf32>
    %cst_284 = arith.constant dense<0.000000e+00> : vector<9x16xf32>
    %863 = tpu.matmul %861, %862, %cst_284 {dimension_numbers = #tpu.dot_dimension_numbers<[1], [1], [0], [0], [0, 0, 1, 0], [], []>} : vector<9x16xf32>, vector<16x16xf32>, vector<9x16xf32> -> vector<9x16xf32>
    %cst_285 = arith.constant 2.500000e-01 : f32
    %864 = vector.broadcast %cst_285 : f32 to vector<9x16xf32>
    %865 = arith.mulf %863, %864 : vector<9x16xf32>
    %cst_286 = arith.constant dense<0xFF800000> : vector<9xf32>
    %866 = vector.multi_reduction <maximumf>, %865, %cst_286 [1] : vector<9x16xf32> to vector<9xf32>
    %cst_287 = arith.constant 0xFF800000 : f32
    %867 = vector.broadcast %cst_287 : f32 to vector<9xf32>
    %868 = arith.maximumf %867, %866 : vector<9xf32>
    %869 = vector.shape_cast %868 : vector<9xf32> to vector<9x1xf32>
    %870 = vector.broadcast %869 : vector<9x1xf32> to vector<9x16xf32>
    %871 = arith.subf %865, %870 : vector<9x16xf32>
    %872 = math.exp %871 : vector<9x16xf32>
    %cst_288 = arith.constant dense<0.000000e+00> : vector<9xf32>
    %873 = vector.multi_reduction <add>, %872, %cst_288 [1] : vector<9x16xf32> to vector<9xf32>
    %874 = vector.shape_cast %873 : vector<9xf32> to vector<9x1xf32>
    %875 = vector.broadcast %874 : vector<9x1xf32> to vector<9x16xf32>
    %876 = arith.divf %872, %875 : vector<9x16xf32>
    %877 = vector.extract_strided_slice %860 {offsets = [0, 0], sizes = [16, 16], strides = [1, 1]} : vector<16x32xf32> to vector<16x16xf32>
    %cst_289 = arith.constant dense<0.000000e+00> : vector<9x16xf32>
    %878 = tpu.matmul %876, %877, %cst_289 {dimension_numbers = #tpu.dot_dimension_numbers<[1], [0], [0], [1], [0, 0, 1, 1], [], []>} : vector<9x16xf32>, vector<16x16xf32>, vector<9x16xf32> -> vector<9x16xf32>
    %879 = vector.extract_strided_slice %850 {offsets = [0, 16], sizes = [9, 16], strides = [1, 1]} : vector<9x32xf32> to vector<9x16xf32>
    %880 = vector.extract_strided_slice %855 {offsets = [0, 16], sizes = [16, 16], strides = [1, 1]} : vector<16x32xf32> to vector<16x16xf32>
    %cst_290 = arith.constant dense<0.000000e+00> : vector<9x16xf32>
    %881 = tpu.matmul %879, %880, %cst_290 {dimension_numbers = #tpu.dot_dimension_numbers<[1], [1], [0], [0], [0, 0, 1, 0], [], []>} : vector<9x16xf32>, vector<16x16xf32>, vector<9x16xf32> -> vector<9x16xf32>
    %cst_291 = arith.constant 2.500000e-01 : f32
    %882 = vector.broadcast %cst_291 : f32 to vector<9x16xf32>
    %883 = arith.mulf %881, %882 : vector<9x16xf32>
    %cst_292 = arith.constant dense<0xFF800000> : vector<9xf32>
    %884 = vector.multi_reduction <maximumf>, %883, %cst_292 [1] : vector<9x16xf32> to vector<9xf32>
    %cst_293 = arith.constant 0xFF800000 : f32
    %885 = vector.broadcast %cst_293 : f32 to vector<9xf32>
    %886 = arith.maximumf %885, %884 : vector<9xf32>
    %887 = vector.shape_cast %886 : vector<9xf32> to vector<9x1xf32>
    %888 = vector.broadcast %887 : vector<9x1xf32> to vector<9x16xf32>
    %889 = arith.subf %883, %888 : vector<9x16xf32>
    %890 = math.exp %889 : vector<9x16xf32>
    %cst_294 = arith.constant dense<0.000000e+00> : vector<9xf32>
    %891 = vector.multi_reduction <add>, %890, %cst_294 [1] : vector<9x16xf32> to vector<9xf32>
    %892 = vector.shape_cast %891 : vector<9xf32> to vector<9x1xf32>
    %893 = vector.broadcast %892 : vector<9x1xf32> to vector<9x16xf32>
    %894 = arith.divf %890, %893 : vector<9x16xf32>
    %895 = vector.extract_strided_slice %860 {offsets = [0, 16], sizes = [16, 16], strides = [1, 1]} : vector<16x32xf32> to vector<16x16xf32>
    %cst_295 = arith.constant dense<0.000000e+00> : vector<9x16xf32>
    %896 = tpu.matmul %894, %895, %cst_295 {dimension_numbers = #tpu.dot_dimension_numbers<[1], [0], [0], [1], [0, 0, 1, 1], [], []>} : vector<9x16xf32>, vector<16x16xf32>, vector<9x16xf32> -> vector<9x16xf32>
    %897 = tpu.concatenate %878, %896 in 1 : vector<9x16xf32>, vector<9x16xf32> -> vector<9x32xf32>
    %cst_296 = arith.constant dense<0.000000e+00> : vector<9x32xf32>
    %898 = tpu.matmul %897, %183, %cst_296 {dimension_numbers = #tpu.dot_dimension_numbers<[1], [0], [0], [1], [0, 0, 1, 1], [], []>} : vector<9x32xf32>, vector<32x32xf32>, vector<9x32xf32> -> vector<9x32xf32>
    %899 = vector.broadcast %184 : vector<1x32xf32> to vector<9x32xf32>
    %900 = arith.addf %898, %899 : vector<9x32xf32>
    %901 = arith.addf %765, %900 : vector<9x32xf32>
    %cst_297 = arith.constant dense<0.000000e+00> : vector<16x16xf32>
    %902 = tpu.matmul %844, %197, %cst_297 {dimension_numbers = #tpu.dot_dimension_numbers<[1], [0], [0], [1], [0, 0, 1, 1], [], []>} : vector<16x32xf32>, vector<32x16xf32>, vector<16x16xf32> -> vector<16x16xf32>
    %903 = vector.broadcast %198 : vector<1x16xf32> to vector<16x16xf32>
    %904 = arith.addf %902, %903 : vector<16x16xf32>
    %905 = arith.mulf %904, %904 : vector<16x16xf32>
    %906 = arith.mulf %904, %905 : vector<16x16xf32>
    %cst_298 = arith.constant 4.471500e-02 : f32
    %907 = vector.broadcast %cst_298 : f32 to vector<16x16xf32>
    %908 = arith.mulf %907, %906 : vector<16x16xf32>
    %909 = arith.addf %904, %908 : vector<16x16xf32>
    %cst_299 = arith.constant 0.797884583 : f32
    %910 = vector.broadcast %cst_299 : f32 to vector<16x16xf32>
    %911 = arith.mulf %910, %909 : vector<16x16xf32>
    %912 = math.tanh %911 : vector<16x16xf32>
    %cst_300 = arith.constant 1.000000e+00 : f32
    %913 = vector.broadcast %cst_300 : f32 to vector<16x16xf32>
    %914 = arith.addf %913, %912 : vector<16x16xf32>
    %cst_301 = arith.constant 5.000000e-01 : f32
    %915 = vector.broadcast %cst_301 : f32 to vector<16x16xf32>
    %916 = arith.mulf %915, %914 : vector<16x16xf32>
    %917 = arith.mulf %904, %916 : vector<16x16xf32>
    %cst_302 = arith.constant dense<0.000000e+00> : vector<16x8xf32>
    %918 = tpu.matmul %917, %199, %cst_302 {dimension_numbers = #tpu.dot_dimension_numbers<[1], [0], [0], [1], [0, 0, 1, 1], [], []>} : vector<16x16xf32>, vector<16x8xf32>, vector<16x8xf32> -> vector<16x8xf32>
    %919 = vector.broadcast %200 : vector<1x8xf32> to vector<16x8xf32>
    %920 = arith.addf %918, %919 : vector<16x8xf32>
    %921 = arith.mulf %920, %920 : vector<16x8xf32>
    %922 = arith.mulf %920, %921 : vector<16x8xf32>
    %cst_303 = arith.constant 4.471500e-02 : f32
    %923 = vector.broadcast %cst_303 : f32 to vector<16x8xf32>
    %924 = arith.mulf %923, %922 : vector<16x8xf32>
    %925 = arith.addf %920, %924 : vector<16x8xf32>
    %cst_304 = arith.constant 0.797884583 : f32
    %926 = vector.broadcast %cst_304 : f32 to vector<16x8xf32>
    %927 = arith.mulf %926, %925 : vector<16x8xf32>
    %928 = math.tanh %927 : vector<16x8xf32>
    %cst_305 = arith.constant 1.000000e+00 : f32
    %929 = vector.broadcast %cst_305 : f32 to vector<16x8xf32>
    %930 = arith.addf %929, %928 : vector<16x8xf32>
    %cst_306 = arith.constant 5.000000e-01 : f32
    %931 = vector.broadcast %cst_306 : f32 to vector<16x8xf32>
    %932 = arith.mulf %931, %930 : vector<16x8xf32>
    %933 = arith.mulf %920, %932 : vector<16x8xf32>
    %934 = vector.extract_strided_slice %901 {offsets = [1, 0], sizes = [4, 32], strides = [1, 1]} : vector<9x32xf32> to vector<4x32xf32>
    %935 = tpu.concatenate %934, %934, %934, %934 in 1 : vector<4x32xf32>, vector<4x32xf32>, vector<4x32xf32>, vector<4x32xf32> -> vector<4x128xf32>
    %936 = arith.mulf %935, %205 : vector<4x128xf32>
    %cst_307 = arith.constant dense<0.000000e+00> : vector<4x128xf32>
    %937 = tpu.matmul %936, %201, %cst_307 {dimension_numbers = #tpu.dot_dimension_numbers<[1], [0], [0], [1], [0, 0, 1, 1], [], []>} : vector<4x128xf32>, vector<128x128xf32>, vector<4x128xf32> -> vector<4x128xf32>
    %938 = vector.broadcast %202 : vector<1x128xf32> to vector<4x128xf32>
    %939 = arith.addf %937, %938 : vector<4x128xf32>
    %cst_308 = arith.constant 0.000000e+00 : f32
    %940 = vector.broadcast %cst_308 : f32 to vector<4x128xf32>
    %941 = arith.maximumf %939, %940 : vector<4x128xf32>
    %cst_309 = arith.constant dense<0.000000e+00> : vector<4x32xf32>
    %942 = tpu.matmul %941, %203, %cst_309 {dimension_numbers = #tpu.dot_dimension_numbers<[1], [0], [0], [1], [0, 0, 1, 1], [], []>} : vector<4x128xf32>, vector<128x32xf32>, vector<4x32xf32> -> vector<4x32xf32>
    %943 = vector.broadcast %204 : vector<1x32xf32> to vector<4x32xf32>
    %944 = arith.addf %942, %943 : vector<4x32xf32>
    %945 = arith.mulf %944, %206 : vector<4x32xf32>
    %946 = tpu.concatenate %933, %933, %933, %933 in 1 : vector<16x8xf32>, vector<16x8xf32>, vector<16x8xf32>, vector<16x8xf32> -> vector<16x32xf32>
    %cst_310 = arith.constant dense<0.000000e+00> : vector<4x16xf32>
    %947 = tpu.matmul %945, %946, %cst_310 {dimension_numbers = #tpu.dot_dimension_numbers<[1], [1], [0], [0], [0, 0, 1, 0], [], []>} : vector<4x32xf32>, vector<16x32xf32>, vector<4x16xf32> -> vector<4x16xf32>
    %cst_311 = arith.constant dense<0.000000e+00> : vector<4x256xf32>
    %948 = tpu.matmul %947, %168, %cst_311 {dimension_numbers = #tpu.dot_dimension_numbers<[1], [0], [0], [1], [0, 0, 1, 1], [], []>} : vector<4x16xf32>, vector<16x256xf32>, vector<4x256xf32> -> vector<4x256xf32>
    %949 = vector.extract_strided_slice %901 {offsets = [0, 0], sizes = [1, 32], strides = [1, 1]} : vector<9x32xf32> to vector<1x32xf32>
    %cst_312 = arith.constant dense<0.000000e+00> : vector<1x32xf32>
    %950 = tpu.matmul %949, %207, %cst_312 {dimension_numbers = #tpu.dot_dimension_numbers<[1], [0], [0], [1], [0, 0, 1, 1], [], []>} : vector<1x32xf32>, vector<32x32xf32>, vector<1x32xf32> -> vector<1x32xf32>
    %951 = arith.addf %950, %208 : vector<1x32xf32>
    %cst_313 = arith.constant 0.000000e+00 : f32
    %952 = vector.broadcast %cst_313 : f32 to vector<1x32xf32>
    %953 = arith.maximumf %951, %952 : vector<1x32xf32>
    %cst_314 = arith.constant dense<0.000000e+00> : vector<1x4xf32>
    %954 = tpu.matmul %953, %209, %cst_314 {dimension_numbers = #tpu.dot_dimension_numbers<[1], [0], [0], [1], [0, 0, 1, 1], [], []>} : vector<1x32xf32>, vector<32x4xf32>, vector<1x4xf32> -> vector<1x4xf32>
    %955 = arith.addf %954, %210 : vector<1x4xf32>
    %cst_315 = arith.constant 0.000000e+00 : f32
    %956 = vector.broadcast %cst_315 : f32 to vector<1x252xf32>
    %957 = tpu.concatenate %955, %956 in 1 : vector<1x4xf32>, vector<1x252xf32> -> vector<1x256xf32>
    %958 = tpu.concatenate %948, %957 in 0 : vector<4x256xf32>, vector<1x256xf32> -> vector<5x256xf32>
    %959 = tpu.concatenate %584, %958 in 0 : vector<5x256xf32>, vector<5x256xf32> -> vector<10x256xf32>
    %c0_316 = arith.constant 0 : index
    %c0_317 = arith.constant 0 : index
    %c0_318 = arith.constant 0 : index
    %960 = vector.load %arg5[%c0_316, %c0_317, %c0_318] : memref<1x10x256xf32, #tpu.memory_space<vmem>>, vector<1x10x256xf32>
    %961 = vector.shape_cast %960 : vector<1x10x256xf32> to vector<10x256xf32>
    %962 = vector.shape_cast %959 : vector<10x256xf32> to vector<1x10x256xf32>
    tpu.vector_store %arg5[%c0_316, %c0_317, %c0_318], %962 {strides = array<i32>} : memref<1x10x256xf32, #tpu.memory_space<vmem>>, vector<1x10x256xf32>,
    return
  }
  func.func @transform_0(%arg0: i32) -> (i32, i32, i32) {
    %c0_i32 = arith.constant 0 : i32
    %c0_i32_0 = arith.constant 0 : i32
    %c0_i32_1 = arith.constant 0 : i32
    return %arg0, %c0_i32, %c0_i32_0 : i32, i32, i32
  }
  func.func @transform_1(%arg0: i32) -> (i32, i32, i32) {
    %c0_i32 = arith.constant 0 : i32
    %c0_i32_0 = arith.constant 0 : i32
    %c0_i32_1 = arith.constant 0 : i32
    return %arg0, %c0_i32, %c0_i32_0 : i32, i32, i32
  }
  func.func @transform_2(%arg0: i32) -> (i32, i32) {
    %c0_i32 = arith.constant 0 : i32
    %c0_i32_0 = arith.constant 0 : i32
    %c0_i32_1 = arith.constant 0 : i32
    return %c0_i32, %c0_i32_0 : i32, i32
  }
  func.func @transform_3(%arg0: i32) -> (i32, i32) {
    %c0_i32 = arith.constant 0 : i32
    %c0_i32_0 = arith.constant 0 : i32
    %c0_i32_1 = arith.constant 0 : i32
    return %c0_i32, %c0_i32_0 : i32, i32
  }
  func.func @transform_4(%arg0: i32) -> (i32, i32, i32) {
    %c0_i32 = arith.constant 0 : i32
    %c0_i32_0 = arith.constant 0 : i32
    %c0_i32_1 = arith.constant 0 : i32
    return %arg0, %c0_i32, %c0_i32_0 : i32, i32, i32
  }
}

</mosaic_0001>

<bundles_post_ra>
// kernel: _sam_forward.1
= control target key start
LH: loop header
LB: loop body
LE: loop exit
PB: predicated region body
PF: predicated region fallthrough
CT: control target
= control target key end

     0   :  { %s11761_s15 = smov 0   ;;  %s13668_s0 = inlined_call_operand.vmem [shape: f32[2,16,192], index: 0, kind: input, shape index: {}]   ;;  %s13669_s1 = inlined_call_operand.vmem [shape: f32[2,8,32], index: 1, kind: input, shape index: {}]   ;;  %s13670_s2 = inlined_call_operand.vmem [shape: f32[1360,128], index: 2, kind: input, shape index: {}]   ;;  %s13671_s3 = inlined_call_operand.vmem [shape: f32[16,256], index: 3, kind: input, shape index: {}]   ;;  %s13672_s4 = inlined_call_operand.vmem [shape: f32[2,10,256], index: 4, kind: output, shape index: {}]  }
   0x1 LB: > { %s8955_s16 = sadd.s32 4294967295, %s11721_s15   ;;  %p8959_p0 = scmp.ge.s32.totalorder %s11721_s15, 1  ;;  %s11721_s15 = sphi %s11761_s15, %s14_s15  }
   0x2   : > { %p171_p1 = scmp.lt.s32.totalorder %s11721_s15, 3 }
   0x4   : > { %p172_p2 = pnand %p8959_p0, %p171_p1 }
   0x6   : > { %175 = sbr.rel (%p172_p2) target bundleno = 22798 (0x590e), region = 36 }
   0xd   : > { %v219_v0 = vld [vmem:[%s13670_s2] sm:$0xff]  ;;  %v220_v1 = vld [vmem:[%s13670_s2 + $0x8] sm:$0xff]  ;;  %v221_v2 = vld [vmem:[%s13670_s2 + $0x10] sm:$0xff]  ;;  %p201_p3 = scmp.lt.s32.totalorder %s8955_s16, 1  ;;  %v13673_v3 = vmov 0.0|0.0   ;;  %vm248_vm0 = vcmask 523264  }
   0xe   : > { %10568 = vmatprep.subr.bf16.mxu0 %v13673_v3  ;;  %v10569_v4 = vpack.c.bf16 %v220_v1, %v219_v0  ;;  %v222_v5 = vld [vmem:[%s13670_s2 + $0x18] sm:$0xff]  ;;  %v223_v7 = vld [vmem:[%s13670_s2 + $0x20] sm:$0xff]  ;;  %v224_v8 = vld [vmem:[%s13670_s2 + $0x28] sm:$0xff]  ;;  %vm336_vm1 = vcmask 261120   ;;  %vm477_vm2 = vcmask 130048   ;;  %s11724_s20 = smov 96  }
   0xf   : > { %s13786_s16 = smov (!%p201_p3, %s8955_s16), 1  ;;  %v10572_v6 = vpack.c.bf16 %v222_v5, %v221_v2  ;;  %v10575_v9 = vpack.c.bf16 %v224_v8, %v223_v7  ;;  %v225_v10 = vld [vmem:[%s13670_s2 + $0x30] sm:$0xff]  ;;  %v226_v11 = vld [vmem:[%s13670_s2 + $0x38] sm:$0xff]  ;;  %v227_v14 = vld [vmem:[%s13670_s2 + $0x40] sm:$0xff]  ;;  %s11725_s21 = smov 80   ;;  %vm13707_vm4 = vcmask 1044480  }
  0x10   : > { %10570 = vmatpush1.bf16.msra.mxu0 %v10569_v4  ;;  %s9208_s29 = sshll.u32 %s13786_s16, 5  ;;  %v10578_v13 = vpack.c.bf16 %v226_v11, %v225_v10  ;;  %v228_v15 = vld [vmem:[%s13670_s2 + $0x48] sm:$0xff]  ;;  %v229_v17 = vld [vmem:[%s13670_s2 + $0x50] sm:$0xff]  ;;  %v230_v18 = vld [vmem:[%s13670_s2 + $0x58] sm:$0xff]  ;;  %s11726_s22 = smov 112   ;;  %vm1658_vm5 = vcmask 72704  }
  0x11   : > { %10571 = vmatprep.subr.bf16.mxu0 %v13673_v3  ;;  %s11797_s6 = scalar_lea.vmem %s13668_s0, %s9208_s29  ;;  %v10581_v16 = vpack.c.bf16 %v228_v15, %v227_v14  ;;  %v10584_v19 = vpack.c.bf16 %v230_v18, %v229_v17  ;;  %v231_v20 = vld [vmem:[%s13670_s2 + $0x60] sm:$0xff]  ;;  %v232_v21 = vld [vmem:[%s13670_s2 + $0x68] sm:$0xff]  ;;  %v233_v23 = vld [vmem:[%s13670_s2 + $0x70] sm:$0xff]  ;;  %s11727_s23 = smov 64   ;;  %vm1662_vm6 = vcmask 65536   ;;  %vm1693_vm7 = vcmask 1040384  }
  0x12   : > { %v216_v12 = vld [vmem:[%s11797_s6 + $0x8] sm:$0xff]  ;;  %v10587_v22 = vpack.c.bf16 %v232_v21, %v231_v20  ;;  %v234_v24 = vld [vmem:[%s13670_s2 + $0x78] sm:$0xff]  ;;  %v235_v26 = vld [vmem:[%s13670_s2 + $0x80] sm:$0xff]  ;;  %s11728_s24 = smov 48   ;;  %s11729_s8 = smov 16   ;;  %vm11730_vm8 = vmmov 1  }
  0x13   : > { %8966 = vmatprep.mubr.msk.f32.mxu0 %vm248_vm0, %v216_v12  ;;  %v10590_v25 = vpack.c.bf16 %v234_v24, %v233_v23  ;;  %v236_v27 = vld [vmem:[%s13670_s2 + $0x88] sm:$0xff]  ;;  %v237_v29 = vld [vmem:[%s13670_s2 + $0x90] sm:$0xff]  ;;  %v238_v30 = vld [vmem:[%s13670_s2 + $0x98] sm:$0xff]  ;;  %s8962_s26 = sshll.u32 %s13786_s16, 3  ;;  %vm2074_vm10 = vcmask 253952   ;;  %vm2486_vm11 = vcmask 122880   ;;  %s214_s19 = scalar_lea.vmem %s13672_s4, %s9208_s29 }
  0x14   : > { %10573 = vmatpush1.bf16.msra.mxu0 %v10572_v6  ;;  %v10593_v28 = vpack.c.bf16 %v236_v27, %v235_v26  ;;  %v10596_v31 = vpack.c.bf16 %v238_v30, %v237_v29  ;;  %v239_v32 = vld [vmem:[%s13670_s2 + $0xa0] sm:$0xff]  ;;  %v240_v33 = vld [vmem:[%s13670_s2 + $0xa8] sm:$0xff]  ;;  %v241_v35 = vld [vmem:[%s13670_s2 + $0xb0] sm:$0xff]  ;;  %vm11731_vm12 = vmmov 0   ;;  %s11733_s25 = smov 32   ;;  %s11734_s11 = smov 8  }
  0x15   : > { %10574 = vmatprep.subr.bf16.mxu0 %v13673_v3  ;;  %v10599_v34 = vpack.c.bf16 %v240_v33, %v239_v32  ;;  %v242_v36 = vld [vmem:[%s13670_s2 + $0xb8] sm:$0xff]  ;;  %v215_v38 = vld [vmem:[%s11797_s6] sm:$0xff]  ;;  %v217_v40 = vld [vmem:[%s11797_s6 + $0x10] sm:$0xff]  ;;  %s11735_s18 = smov 24   ;;  %vm4923_vm13 = vcmask 785408   ;;  %vm5102_vm14 = vcmask 64512  }
  0x16   : > { %v10602_v37 = vpack.c.bf16 %v242_v36, %v241_v35  ;;  %v218_v39 = vld [vmem:[%s11797_s6 + $0x18] sm:$0xff]  ;;  %v8965_v41 = vld [vmem:[%s13670_s2 + $0xc0] ss:$0 sm:$0xff]  ;;  %v330_v43 = vld [vmem:[%s13670_s2 + $0xc8] sm:$0xff]  ;;  %s12064_s6 = scalar_lea.vmem %s13669_s1, %s8962_s26  ;;  %vm5107_vm15 = vcmask 195584  }
  0x17   : > { %v331_v48 = vld [vmem:[%s13670_s2 + $0xd0] sm:$0xff]  ;;  %v376_v0 = vld [vmem:[%s13670_s2 + $0xe8] sm:$0xff]  ;;  %v378_v2 = vld [vmem:[%s13670_s2 + $0xf8] sm:$0xff] }
  0x18   : > { %10576 = vmatpush1.bf16.msra.mxu0 %v10575_v9  ;;  %v377_v1 = vld [vmem:[%s13670_s2 + $0xf0] sm:$0xff]  ;;  %v379_v5 = vld [vmem:[%s13670_s2 + $0x100] sm:$0xff]  ;;  %v8968_v14 = vld [vmem:[%s13670_s2 + $0xd8] ss:$0 sm:$0xff] }
  0x19   : > { %10577 = vmatprep.subr.bf16.mxu0 %v13673_v3  ;;  %v10604_v4 = vpack.c.bf16 %v377_v1, %v376_v0  ;;  %v10608_v6 = vpack.c.bf16 %v379_v5, %v378_v2  ;;  %v8970_v23 = vld [vmem:[%s13670_s2 + $0x108] ss:$0 sm:$0xff]  ;;  %vm11924_vm3 = vmpackc.low %vm477_vm2, %vm477_vm2 }
  0x1a   : > { %vm12125_vm9 = vmpackc.low %vm1693_vm7, %vm11730_vm8  ;;  %vm5409_vm8 = vcmask 31744  }
  0x1b   : > { %10605 = vmatprep.subr.bf16.mxu1 %v10604_v4  ;;  %vm13030_vm7 = vmpackc.low %vm336_vm1, %vm336_vm1 }
  0x1c   : > { %10579 = vmatpush1.bf16.msra.mxu0 %v10578_v13  ;;  %10607 = vmatpush3.bf16.msra.mxu1 %v10604_v4 }
  0x1d   : > { %10580 = vmatprep.subr.bf16.mxu0 %v13673_v3  ;;  %10609 = vmatprep.subr.bf16.mxu1 %v10608_v6 }
  0x20   : > { %10582 = vmatpush1.bf16.msra.mxu0 %v10581_v16  ;;  %10611 = vmatpush3.bf16.msra.mxu1 %v10608_v6  ;;  %v8969_v16 = vld [vmem:[%s13670_s2 + $0xe0] ss:$0 sm:$0xff] }
  0x21   : > { %10583 = vmatprep.subr.bf16.mxu0 %v13673_v3 }
  0x24   : > { %10585 = vmatpush1.bf16.msra.mxu0 %v10584_v19 }
  0x25   : > { %10586 = vmatprep.subr.bf16.mxu0 %v13673_v3 }
  0x28   : > { %10588 = vmatpush1.bf16.msra.mxu0 %v10587_v22 }
  0x29   : > { %10589 = vmatprep.subr.bf16.mxu0 %v13673_v3 }
  0x2c   : > { %10591 = vmatpush1.bf16.msra.mxu0 %v10590_v25 }
  0x2d   : > { %10592 = vmatprep.subr.bf16.mxu0 %v13673_v3 }
  0x30   : > { %10594 = vmatpush1.bf16.msra.mxu0 %v10593_v28 }
  0x31   : > { %10595 = vmatprep.subr.bf16.mxu0 %v13673_v3 }
  0x34   : > { %10597 = vmatpush1.bf16.msra.mxu0 %v10596_v31 }
  0x35   : > { %10598 = vmatprep.subr.bf16.mxu0 %v13673_v3 }
  0x38   : > { %10600 = vmatpush1.bf16.msra.mxu0 %v10599_v34 }
  0x39   : > { %10601 = vmatprep.subr.bf16.mxu0 %v13673_v3 }
  0x3c   : > { %10603 = vmatpush1.bf16.msra.mxu0 %v10602_v37 }
  0x3f   : > { %320 = vmatmul.mubr.f32.vlgmr.msra.gmra.mrb[0].mxu0 %v215_v38 }
  0x40   : > { %8967 = vmatprep.mubr.msk.f32.mxu0 %vm248_vm0, %v218_v39 }
  0x43   : > { %325 = vmatmul.mubr.f32.gmra.mrb[2].mxu0 %v217_v40 }
 0x112   : > { %v321_v42 = vpop.f32.mrb[0].mxu0 }
 0x113   : > { %v322_v44 = vadd.f32 %v8965_v41, %v321_v42  ;;  %v323_v45 = vpop.f32.mrb[1].mxu0 }
 0x115   : > { %v11875_v46 = vadd.f32 %v330_v43, %v322_v44 }
 0x116   : > { %v326_v47 = vpop.f32.mrb[2].mxu0 }
 0x117   : > { %v327_v49 = vadd.f32 %v8965_v41, %v326_v47  ;;  %v328_v50 = vpop.f32.mrb[3].mxu0  ;;  %v337_v51 = vsel %vm336_vm1, %v11875_v46, 0.0 }
 0x118   : > { %338 = vadd.xlane.f32.xlu0 %v337_v51 }
 0x119   : > { %v11882_v52 = vadd.f32 %v331_v48, %v327_v49 }
 0x11b   : > { %v340_v53 = vsel %vm336_vm1, %v11882_v52, 0.0 }
 0x11c   : > { %341 = vadd.xlane.f32.xlu0 %v340_v53 }
 0x1a5   : > { %v339_v54 = vpop.xlane.xlu0 %338 }
 0x1a6   : > { %v344_v55 = vmul.f32 0.03125, %v339_v54 }
 0x1a8   : > { %v346_v56 = vsub.f32 %v11875_v46, %v344_v55 }
 0x1a9   : > { %v342_v57 = vpop.xlane.xlu0 %341 }
 0x1aa   : > { %v345_v58 = vmul.f32 0.03125, %v342_v57  ;;  %v348_v59 = vmul.f32 %v346_v56, %v346_v56 }
 0x1ac   : > { %v347_v60 = vsub.f32 %v11882_v52, %v345_v58  ;;  %v350_v61 = vsel %vm336_vm1, %v348_v59, 0.0 }
 0x1ad   : > { %351 = vadd.xlane.f32.xlu1 %v350_v61 }
 0x1ae   : > { %v349_v62 = vmul.f32 %v347_v60, %v347_v60 }
 0x1b0   : > { %v353_v63 = vsel %vm336_vm1, %v349_v62, 0.0 }
 0x1b1   : > { %354 = vadd.xlane.f32.xlu1 %v353_v63 }
 0x23a   : > { %v352_v7 = vpop.xlane.xlu1 %351 }
 0x23b   : > { %v356_v8 = vmul.f32 0.03125, %v352_v7 }
 0x23d   : > { %v358_v9 = vadd.f32 1e-05, %v356_v8 }
 0x23e   : > { %v355_v10 = vpop.xlane.xlu1 %354 }
 0x23f   : > { %11477 = vrsqrt.f32 %v358_v9  ;;  %v357_v11 = vmul.f32 0.03125, %v355_v10 }
 0x241   : > { %v359_v12 = vadd.f32 1e-05, %v357_v11 }
 0x243   : > { %11479 = vrsqrt.f32 %v359_v12 }
 0x249   : > { %v11478_v13 = vpop.eup %11477 }
 0x24a   : > { %v362_v15 = vmul.f32 %v11478_v13, %v346_v56 }
 0x24c   : > { %v368_v17 = vmul.f32 %v8968_v14, %v362_v15 }
 0x24d   : > { %v11480_v18 = vpop.eup %11479 }
 0x24e   : > { %v363_v19 = vmul.f32 %v11480_v18, %v347_v60  ;;  %v374_v20 = vadd.f32 %v8969_v16, %v368_v17 }
 0x250   : > { %v369_v21 = vmul.f32 %v8968_v14, %v363_v19  ;;  %9692 = vmatprep.mubr.msk.f32.mxu1 %vm336_vm1, %v374_v20 }
 0x252   : > { %v375_v22 = vadd.f32 %v8969_v16, %v369_v21 }
 0x254   : > { %9693 = vmatmul.mubr.msk.f32.vlgmr.msra.gmra.mrb[0].mxu1 %vm336_vm1, %v375_v22 }
 0x327   : > { %v9694_v24 = vpop.f32.mrb[0].mxu1 }
 0x328   : > { %v468_v25 = vadd.f32 %v9694_v24, %v8970_v23  ;;  %v462_v26 = vpop.f32.mrb[1].mxu1 }
 0x329   : > { %v463_v27 = vadd.f32 %v8970_v23, %v462_v26 }
 0x32b   : > { %9699 = vmatprep.mubr.msk.f32.mxu1 %vm477_vm2, %v463_v27  ;;  %v11914_v28 = vpack.i.bf16 %v468_v25, %v463_v27 }
 0x32d   : > { %11278 = vrot.lane.b32.xlu0 %v11914_v28, %s11724_s20 }
 0x331   : > { %11288 = vrot.lane.b32.xlu0 %v11914_v28, %s11725_s21 }
 0x335   : > { %672 = vrot.lane.b32.xlu0 %v463_v27, %s11726_s22 }
 0x339   : > { %674 = vrot.lane.b32.xlu0 %v468_v25, %s11726_s22 }
 0x39f   : > { %v11279_v29 = vpop.permute.xlu0 %11278 }
 0x3a0   : > { %v11281_v30 = vunpack.i.h.bf16 %v11279_v29  ;;  %v11280_v31 = vunpack.i.l.bf16 %v11279_v29 }
 0x3a2   : > { %v10612_v33 = vpack.c.bf16 %v11281_v30, %v11280_v31 }
 0x3a3   : > { %v11289_v54 = vpop.permute.xlu0 %11288 }
 0x3a4   : > { %10614 = vmatprep.subr.msk.bf16.mxu1 %vm11924_vm3, %v10612_v33  ;;  %v11291_v56 = vunpack.i.h.bf16 %v11289_v54  ;;  %v11290_v57 = vunpack.i.l.bf16 %v11289_v54 }
 0x3a5   : > { %10617 = vmatpush3.bf16.xpose.msk.msra.mxu1 %vm11924_vm3, %v10612_v33 }
 0x3a6   : > { %v10622_v61 = vpack.c.bf16 %v11291_v56, %v11290_v57 }
 0x3a7   : > { %v673_v2 = vpop.permute.xlu0 %672 }
 0x3ab   : > { %v675_v4 = vpop.permute.xlu0 %674 }
 0x3ac   : > { %9700 = vmatmul.mubr.msk.f32.vlgmr.msra.gmra.mrb[2].mxu1 %vm477_vm2, %v468_v25 }
 0x47f   : > { %v9701_v34 = vpop.f32.mrb[2].mxu1 }
 0x480   : > { %v552_v35 = vpop.f32.mrb[3].mxu1  ;;  %v562_v37 = vmul.f32 0.25, %v9701_v34  ;;  %v381_v34 = vld [vmem:[%s13670_s2 + $0x110] sm:$0xff] }
 0x481   : > { %v561_v36 = vmul.f32 0.25, %v552_v35  ;;  %v382_v35 = vld [vmem:[%s13670_s2 + $0x118] sm:$0xff] }
 0x482   : > { %v566_v39 = vsel %vm477_vm2, %v562_v37, -inf }
 0x483   : > { %v563_v38 = vsel %vm477_vm2, %v561_v36, -inf }
 0x484   : > { %564 = vmax.xlane.f32.xlu1 %v563_v38  ;;  %v384_v38 = vld [vmem:[%s13670_s2 + $0x128] sm:$0xff] }
 0x488   : > { %567 = vmax.xlane.f32.xlu1 %v566_v39 }
 0x511   : > { %v565_v40 = vpop.xlane.xlu1 %564 }
 0x512   : > { %v569_v41 = vsub.f32 %v561_v36, %v565_v40  ;;  %v383_v36 = vld [vmem:[%s13670_s2 + $0x120] sm:$0xff] }
 0x513   : > { %v10636_v39 = vpack.c.bf16 %v384_v38, %v383_v36  ;;  %v1218_v38 = vld [vmem:[%s13670_s2 + $0x1c0] sm:$0xff] }
 0x514   : > { %v571_v44 = vmul.f32 1.442695, %v569_v41 }
 0x515   : > { %v568_v42 = vpop.xlane.xlu1 %567 }
 0x516   : > { %v570_v43 = vsub.f32 %v562_v37, %v568_v42  ;;  %v10632_v37 = vpack.c.bf16 %v382_v35, %v381_v34  ;;  %v1125_v34 = vld [vmem:[%s13670_s2 + $0x1a0] sm:$0xff]  ;;  %v1126_v35 = vld [vmem:[%s13670_s2 + $0x1a8] sm:$0xff] }
 0x517   : > { %v10660_v36 = vpack.c.bf16 %v1126_v35, %v1125_v34 }
 0x518   : > { %v573_v45 = vmul.f32 1.442695, %v570_v43 }
 0x51a   : > { %11481 = vpow2.f32 %v573_v45 }
 0x51b   : > { %11483 = vpow2.f32 %v571_v44 }
 0x524   : > { %v11482_v47 = vpop.eup %11481 }
 0x525   : > { %v578_v48 = vsel %vm477_vm2, %v11482_v47, 0.0  ;;  %v11484_v49 = vpop.eup %11483 }
 0x526   : > { %579 = vadd.xlane.f32.xlu1 %v578_v48  ;;  %v575_v50 = vsel %vm477_vm2, %v11484_v49, 0.0 }
 0x52a   : > { %576 = vadd.xlane.f32.xlu1 %v575_v50 }
 0x53b   : > { %11283 = vrot.lane.b32.xlu1 %v11914_v28, %s11727_s23 }
 0x5b3   : > { %v580_v51 = vpop.xlane.xlu1 %579 }
 0x5b4   : > { %11485 = vrcp.f32 %v580_v51 }
 0x5b7   : > { %v577_v53 = vpop.xlane.xlu1 %576 }
 0x5b8   : > { %11487 = vrcp.f32 %v577_v53 }
 0x5bb   : > { %v11284_v55 = vpop.permute.xlu1 %11283 }
 0x5bc   : > { %v11286_v58 = vunpack.i.h.bf16 %v11284_v55  ;;  %v11285_v59 = vunpack.i.l.bf16 %v11284_v55 }
 0x5be   : > { %v10618_v60 = vpack.c.bf16 %v11286_v58, %v11285_v59  ;;  %v11486_v62 = vpop.eup %11485 }
 0x5bf   : > { %v584_v1 = vmul.f32 %v11486_v62, %v11482_v47  ;;  %v8985_v47 = vld [vmem:[%s13670_s2 + $0x130] ss:$0 sm:$0xff] }
 0x5c0   : > { %10619 = vmatprep.subr.bf16.mxu1 %v10618_v60 }
 0x5c1   : > { %10621 = vmatpush3.bf16.msra.mxu1 %v10618_v60 }
 0x5c2   : > { %v11488_v63 = vpop.eup %11487  ;;  %10624 = vmatprep.subr.msk.bf16.mxu1 %vm11924_vm3, %v10622_v61 }
 0x5c3   : > { %v582_v0 = vmul.f32 %v11488_v63, %v11484_v49 }
 0x5c5   : > { %9706 = vmatprep.mubr.msk.f32.mxu1 %vm477_vm2, %v582_v0 }
 0x5c6   : > { %9707 = vmatmul.mubr.msk.f32.vlgmr.msra.gmra.mrb[4].mxu1 %vm477_vm2, %v584_v1  ;;  %v1011_v1 = vld [vmem:[%s13670_s2 + $0x148] sm:$0xff] }
 0x5c7   : > { %9713 = vmatprep.mubr.msk.f32.mxu1 %vm477_vm2, %v673_v2  ;;  %v1012_v2 = vld [vmem:[%s13670_s2 + $0x150] sm:$0xff] }
 0x5ca   : > { %10627 = vmatpush3.bf16.xpose.msk.msra.mxu1 %vm11924_vm3, %v10622_v61 }
 0x5d1   : > { %9714 = vmatmul.mubr.msk.f32.vlgmr.msra.gmra.mrb[6].mxu1 %vm477_vm2, %v675_v4  ;;  %v1013_v4 = vld [vmem:[%s13670_s2 + $0x158] sm:$0xff] }
 0x699   : > { %v9708_v5 = vpop.f32.mrb[4].mxu1 }
 0x69a   : > { %v663_v6 = vpop.f32.mrb[5].mxu1 }
 0x6a4   : > { %v9715_v7 = vpop.f32.mrb[6].mxu1 }
 0x6a5   : > { %v764_v8 = vmul.f32 0.25, %v9715_v7  ;;  %v754_v9 = vpop.f32.mrb[7].mxu1 }
 0x6a6   : > { %v763_v10 = vmul.f32 0.25, %v754_v9 }
 0x6a7   : > { %v768_v11 = vsel %vm477_vm2, %v764_v8, -inf }
 0x6a8   : > { %769 = vmax.xlane.f32.xlu0 %v768_v11  ;;  %v765_v12 = vsel %vm477_vm2, %v763_v10, -inf }
 0x6a9   : > { %766 = vmax.xlane.f32.xlu1 %v765_v12 }
 0x6ba   : > { %11293 = vrot.lane.b32.xlu1 %v11914_v28, %s11728_s24 }
 0x735   : > { %v770_v13 = vpop.xlane.xlu0 %769 }
 0x736   : > { %v772_v14 = vsub.f32 %v764_v8, %v770_v13  ;;  %v767_v15 = vpop.xlane.xlu1 %766 }
 0x737   : > { %v771_v16 = vsub.f32 %v763_v10, %v767_v15  ;;  %v8988_v15 = vld [vmem:[%s13670_s2 + $0x138] ss:$0 sm:$0xff] }
 0x738   : > { %v775_v17 = vmul.f32 1.442695, %v772_v14 }
 0x739   : > { %v773_v18 = vmul.f32 1.442695, %v771_v16 }
 0x73a   : > { %v11294_v19 = vpop.permute.xlu1 %11293 }
 0x73b   : > { %11489 = vpow2.f32 %v773_v18  ;;  %v11296_v20 = vunpack.i.h.bf16 %v11294_v19  ;;  %v11295_v21 = vunpack.i.l.bf16 %v11294_v19  ;;  %v8989_v19 = vld [vmem:[%s13670_s2 + $0x140] ss:$0 sm:$0xff] }
 0x73c   : > { %11491 = vpow2.f32 %v775_v17 }
 0x73d   : > { %v10628_v22 = vpack.c.bf16 %v11296_v20, %v11295_v21 }
 0x73f   : > { %10629 = vmatprep.subr.bf16.mxu1 %v10628_v22 }
 0x740   : > { %10631 = vmatpush3.bf16.msra.mxu1 %v10628_v22 }
 0x741   : > { %10633 = vmatprep.subr.bf16.mxu1 %v10632_v37 }
 0x745   : > { %v11490_v23 = vpop.eup %11489 }
 0x746   : > { %v777_v24 = vsel %vm477_vm2, %v11490_v23, 0.0  ;;  %v11492_v25 = vpop.eup %11491 }
 0x747   : > { %778 = vadd.xlane.f32.xlu0 %v777_v24  ;;  %v780_v26 = vsel %vm477_vm2, %v11492_v25, 0.0  ;;  %v1119_v24 = vld [vmem:[%s13670_s2 + $0x170] sm:$0xff] }
 0x74b   : > { %781 = vadd.xlane.f32.xlu0 %v780_v26 }
 0x7d4   : > { %v779_v27 = vpop.xlane.xlu0 %778 }
 0x7d5   : > { %11493 = vrcp.f32 %v779_v27  ;;  %v1121_v27 = vld [vmem:[%s13670_s2 + $0x180] sm:$0xff] }
 0x7d8   : > { %v782_v28 = vpop.xlane.xlu0 %781 }
 0x7d9   : > { %11495 = vrcp.f32 %v782_v28  ;;  %v1122_v28 = vld [vmem:[%s13670_s2 + $0x188] sm:$0xff] }
 0x7df   : > { %v11494_v29 = vpop.eup %11493 }
 0x7e0   : > { %v784_v30 = vmul.f32 %v11494_v29, %v11490_v23  ;;  %v10652_v29 = vpack.c.bf16 %v1122_v28, %v1121_v27 }
 0x7e2   : > { %9720 = vmatprep.mubr.msk.f32.mxu1 %vm477_vm2, %v784_v30  ;;  %v1123_v30 = vld [vmem:[%s13670_s2 + $0x190] sm:$0xff] }
 0x7e3   : > { %v11496_v31 = vpop.eup %11495 }
 0x7e4   : > { %v786_v33 = vmul.f32 %v11496_v31, %v11492_v25  ;;  %v1120_v25 = vld [vmem:[%s13670_s2 + $0x178] sm:$0xff] }
 0x7e5   : > { %v10648_v26 = vpack.c.bf16 %v1120_v25, %v1119_v24  ;;  %v1124_v31 = vld [vmem:[%s13670_s2 + $0x198] sm:$0xff] }
 0x7e6   : > { %9721 = vmatmul.mubr.msk.f32.vlgmr.msra.gmra.mrb[8].mxu1 %vm477_vm2, %v786_v33  ;;  %v10656_v33 = vpack.c.bf16 %v1124_v31, %v1123_v30 }
 0x7e7   : > { %10635 = vmatpush3.bf16.msra.mxu1 %v10632_v37  ;;  %10649 = vmatprep.subr.bf16.mxu0 %v10648_v26  ;;  %v1217_v37 = vld [vmem:[%s13670_s2 + $0x1b8] sm:$0xff] }
 0x7e8   : > { %10637 = vmatprep.subr.bf16.mxu1 %v10636_v39  ;;  %10651 = vmatpush3.bf16.msra.mxu0 %v10648_v26 }
 0x7e9   : > { %10653 = vmatprep.subr.bf16.mxu0 %v10652_v29 }
 0x7eb   : > { %10639 = vmatpush3.bf16.msra.mxu1 %v10636_v39  ;;  %v10664_v39 = vpack.c.bf16 %v1218_v38, %v1217_v37 }
 0x7ec   : > { %10655 = vmatpush3.bf16.msra.mxu0 %v10652_v29 }
 0x7ed   : > { %10657 = vmatprep.subr.bf16.mxu0 %v10656_v33 }
 0x7f0   : > { %10659 = vmatpush3.bf16.msra.mxu0 %v10656_v33 }
 0x7f1   : > { %10661 = vmatprep.subr.bf16.mxu0 %v10660_v36 }
 0x7f4   : > { %10663 = vmatpush3.bf16.msra.mxu0 %v10660_v36 }
 0x8b9   : > { %v9722_v40 = vpop.f32.mrb[8].mxu1 }
 0x8ba   : > { %878 = vrot.lane.b32.xlu1 %v9722_v40, %s11729_s8  ;;  %v865_v41 = vpop.f32.mrb[9].mxu1  ;;  %v8990_v40 = vld [vmem:[%s13670_s2 + $0x168] ss:$0 sm:$0xff] }
 0x8bb   : > { %876 = vrot.lane.b32.xlu0 %v865_v41, %s11729_s8 }
 0x92c   : > { %v879_v42 = vpop.permute.xlu1 %878 }
 0x92d   : > { %v877_v43 = vpop.permute.xlu0 %876  ;;  %v883_v45 = vsel %vm477_vm2, %v9708_v5, %v879_v42  ;;  %v10640_v5 = vpack.c.bf16 %v1012_v2, %v1011_v1  ;;  %v1219_v1 = vld [vmem:[%s13670_s2 + $0x1c8] sm:$0xff]  ;;  %v1220_v2 = vld [vmem:[%s13670_s2 + $0x1d0] sm:$0xff] }
 0x92e   : > { %v882_v44 = vsel %vm477_vm2, %v663_v6, %v877_v43  ;;  %v1014_v6 = vld [vmem:[%s13670_s2 + $0x160] sm:$0xff] }
 0x92f   : > { %9731 = vmatprep.mubr.msk.f32.mxu1 %vm336_vm1, %v882_v44  ;;  %v10644_v7 = vpack.c.bf16 %v1014_v6, %v1013_v4  ;;  %10641 = vmatprep.subr.bf16.mxu1 %v10640_v5  ;;  %v10668_v4 = vpack.c.bf16 %v1220_v2, %v1219_v1  ;;  %v1363_v6 = vld [vmem:[%s13670_s2 + $0x218] sm:$0xff] }
 0x930   : > { %9732 = vmatmul.mubr.msk.f32.vlgmr.msra.gmra.mrb[10].mxu1 %vm336_vm1, %v883_v45 }
 0x931   : > { %10643 = vmatpush3.bf16.msra.mxu1 %v10640_v5  ;;  %v1362_v5 = vld [vmem:[%s13670_s2 + $0x210] sm:$0xff] }
 0x932   : > { %10645 = vmatprep.subr.bf16.mxu1 %v10644_v7 }
 0x935   : > { %10647 = vmatpush3.bf16.msra.mxu1 %v10644_v7  ;;  %v12057_v7 = vpack.c.bf16 %v1363_v6, %v1362_v5 }
 0x936   : > { %10665 = vmatprep.subr.bf16.mxu1 %v10664_v39 }
 0xa03   : > { %v9733_v48 = vpop.f32.mrb[10].mxu1 }
 0xa04   : > { %v966_v49 = vadd.f32 %v9733_v48, %v8985_v47  ;;  %v960_v50 = vpop.f32.mrb[11].mxu1 }
 0xa05   : > { %v961_v51 = vadd.f32 %v8985_v47, %v960_v50 }
 0xa06   : > { %v11977_v53 = vadd.f32 %v966_v49, %v11882_v52 }
 0xa07   : > { %v11980_v54 = vadd.f32 %v961_v51, %v11875_v46 }
 0xa08   : > { %v976_v55 = vsel %vm336_vm1, %v11977_v53, 0.0 }
 0xa09   : > { %977 = vadd.xlane.f32.xlu0 %v976_v55  ;;  %v973_v56 = vsel %vm336_vm1, %v11980_v54, 0.0 }
 0xa0a   : > { %974 = vadd.xlane.f32.xlu1 %v973_v56 }
 0xa96   : > { %v978_v57 = vpop.xlane.xlu0 %977 }
 0xa97   : > { %v980_v58 = vmul.f32 0.03125, %v978_v57  ;;  %v975_v59 = vpop.xlane.xlu1 %974 }
 0xa98   : > { %v979_v60 = vmul.f32 0.03125, %v975_v59 }
 0xa99   : > { %v982_v61 = vsub.f32 %v11977_v53, %v980_v58 }
 0xa9a   : > { %v981_v52 = vsub.f32 %v11980_v54, %v979_v60 }
 0xa9b   : > { %v984_v62 = vmul.f32 %v982_v61, %v982_v61 }
 0xa9c   : > { %v983_v63 = vmul.f32 %v981_v52, %v981_v52 }
 0xa9d   : > { %v988_v46 = vsel %vm336_vm1, %v984_v62, 0.0 }
 0xa9e   : > { %989 = vadd.xlane.f32.xlu1 %v988_v46  ;;  %v985_v0 = vsel %vm336_vm1, %v983_v63, 0.0 }
 0xa9f   : > { %986 = vadd.xlane.f32.xlu0 %v985_v0 }
 0xb2b   : > { %v990_v8 = vpop.xlane.xlu1 %989 }
 0xb2c   : > { %v992_v9 = vmul.f32 0.03125, %v990_v8  ;;  %v987_v10 = vpop.xlane.xlu0 %986  ;;  %v1357_v8 = vld [vmem:[%s12064_s6] sm:$0xff] }
 0xb2d   : > { %v991_v11 = vmul.f32 0.03125, %v987_v10 }
 0xb2e   : > { %v994_v12 = vadd.f32 1e-05, %v992_v9 }
 0xb2f   : > { %v993_v13 = vadd.f32 1e-05, %v991_v11  ;;  %v8995_v11 = vld [vmem:[%s13670_s2 + $0x1b0] ss:$0 sm:$0xff] }
 0xb30   : > { %11497 = vrsqrt.f32 %v994_v12 }
 0xb31   : > { %11499 = vrsqrt.f32 %v993_v13  ;;  %v12071_v13 = vrot.slane %v1357_v8, 3 }
 0xb3a   : > { %v11498_v14 = vpop.eup %11497 }
 0xb3b   : > { %v11500_v16 = vpop.eup %11499  ;;  %v998_v17 = vmul.f32 %v11498_v14, %v982_v61 }
 0xb3c   : > { %v997_v18 = vmul.f32 %v11500_v16, %v981_v52  ;;  %v1365_v16 = vld [vmem:[%s13670_s2 + $0x228] sm:$0xff] }
 0xb3d   : > { %v1004_v20 = vmul.f32 %v8988_v15, %v998_v17 }
 0xb3e   : > { %v1003_v21 = vmul.f32 %v8988_v15, %v997_v18  ;;  %v1364_v15 = vld [vmem:[%s13670_s2 + $0x220] sm:$0xff] }
 0xb3f   : > { %v1010_v23 = vadd.f32 %v8989_v19, %v1004_v20 }
 0xb40   : > { %v1009_v22 = vadd.f32 %v8989_v19, %v1003_v21  ;;  %v12083_v19 = vpack.c.bf16 %v1365_v16, %v1364_v15 }
 0xb42   : > { %9742 = vmatprep.mubr.msk.f32.mxu1 %vm336_vm1, %v1009_v22  ;;  %v9002_v22 = vld [vmem:[%s13670_s2 + $0x290] ss:$0 sm:$0xff] }
 0xb43   : > { %9743 = vmatmul.mubr.msk.f32.vlgmr.msra.gmra.mrb[12].mxu1 %vm336_vm1, %v1010_v23 }
 0xb44   : > { %10667 = vmatpush3.bf16.msra.mxu1 %v10664_v39 }
 0xb45   : > { %10669 = vmatprep.subr.bf16.mxu1 %v10668_v4 }
 0xb48   : > { %10671 = vmatpush3.bf16.msra.mxu1 %v10668_v4 }
 0xb49   : > { %10673 = vmatprep.subr.bf16.mxu1 %v12057_v7 }
 0xc16   : > { %v9744_v41 = vpop.f32.mrb[12].mxu1 }
 0xc17   : > { %v1098_v42 = vadd.f32 %v9744_v41, %v8990_v40  ;;  %v1092_v43 = vpop.f32.mrb[13].mxu1 }
 0xc18   : > { %v1093_v44 = vadd.f32 %v8990_v40, %v1092_v43 }
 0xc19   : > { %v1102_v45 = vmul.f32 %v1098_v42, %v1098_v42 }
 0xc1a   : > { %v1101_v47 = vmul.f32 %v1093_v44, %v1093_v44 }
 0xc1b   : > { %v1104_v48 = vmul.f32 %v1102_v45, %v1098_v42 }
 0xc1c   : > { %v1103_v49 = vmul.f32 %v1101_v47, %v1093_v44 }
 0xc1d   : > { %v1106_v50 = vmul.f32 0.044715, %v1104_v48 }
 0xc1e   : > { %v1105_v51 = vmul.f32 0.044715, %v1103_v49 }
 0xc1f   : > { %v1108_v55 = vadd.f32 %v1106_v50, %v1098_v42 }
 0xc20   : > { %v1107_v56 = vadd.f32 %v1105_v51, %v1093_v44 }
 0xc21   : > { %v1110_v57 = vmul.f32 0.7978846, %v1108_v55 }
 0xc22   : > { %v1109_v58 = vmul.f32 0.7978846, %v1107_v56 }
 0xc23   : > { %11501 = vtanh.f32 %v1110_v57 }
 0xc24   : > { %11503 = vtanh.f32 %v1109_v58 }
 0xc2d   : > { %v11502_v59 = vpop.eup %11501 }
 0xc2e   : > { %v11504_v60 = vpop.eup %11503  ;;  %v1114_v61 = vadd.f32 1.0, %v11502_v59 }
 0xc2f   : > { %v1113_v52 = vadd.f32 1.0, %v11504_v60 }
 0xc30   : > { %v1116_v62 = vmul.f32 0.5, %v1114_v61 }
 0xc31   : > { %v1115_v63 = vmul.f32 0.5, %v1113_v52 }
 0xc32   : > { %v1118_v0 = vmul.f32 %v1116_v62, %v1098_v42 }
 0xc33   : > { %v1117_v46 = vmul.f32 %v1115_v63, %v1093_v44 }
 0xc35   : > { %9761 = vmatprep.mubr.msk.f32.mxu0 %vm248_vm0, %v1117_v46 }
 0xc36   : > { %9762 = vmatmul.mubr.msk.f32.vlgmr.msra.gmra.mrb[4].mxu0 %vm248_vm0, %v1118_v0 }
 0xd09   : > { %v9763_v9 = vpop.f32.mrb[4].mxu0 }
 0xd0a   : > { %v1209_v10 = vadd.f32 %v9763_v9, %v11977_v53  ;;  %v1199_v12 = vpop.f32.mrb[5].mxu0  ;;  %v1356_v53 = vld [vmem:[%s13670_s2 + $0x208] sm:$0x1f] }
 0xd0b   : > { %v1208_v14 = vadd.f32 %v1199_v12, %v11980_v54  ;;  %v12087_v54 = vsel %vm13707_vm4, %v1356_v53, %v12071_v13 }
 0xd0c   : > { %v1216_v18 = vadd.f32 %v8995_v11, %v1209_v10 }
 0xd0d   : > { %v1215_v17 = vadd.f32 %v8995_v11, %v1208_v14 }
 0xd0f   : > { %9772 = vmatprep.mubr.msk.f32.mxu1 %vm336_vm1, %v1215_v17 }
 0xd10   : > { %9773 = vmatmul.mubr.msk.f32.vlgmr.msra.gmra.mrb[14].mxu1 %vm336_vm1, %v1216_v18 }
 0xd11   : > { %10675 = vmatpush3.bf16.msra.mxu1 %v12057_v7  ;;  %9783 = vmatprep.mubr.msk.f32.mxu1 %vm336_vm1, %v12087_v54 }
 0xd12   : > { %10677 = vmatprep.subr.bf16.mxu1 %v12083_v19 }
 0xd15   : > { %10679 = vmatpush3.bf16.msra.mxu1 %v12083_v19 }
 0xd18   : > { %9784 = vmatmul.mubr.msk.f32.vlgmr.msra.gmra.mrb[16].mxu1 %vm336_vm1, %v12071_v13 }
 0xde3   : > { %v12098_v20 = vpop.f32.mrb[14].mxu1 }
 0xde4   : > { %v12100_v21 = vpop.f32.mrb[15].mxu1 }
 0xdeb   : > { %v9785_v23 = vpop.f32.mrb[16].mxu1 }
 0xdec   : > { %v1564_v24 = vadd.f32 %v9785_v23, %v9002_v22  ;;  %v1558_v25 = vpop.f32.mrb[17].mxu1 }
 0xded   : > { %v1559_v26 = vadd.f32 %v9002_v22, %v1558_v25 }
 0xdef   : > { %9790 = vmatprep.mubr.msk.f32.mxu0 %vm477_vm2, %v1559_v26  ;;  %v12106_v27 = vpack.i.bf16 %v1564_v24, %v1559_v26 }
 0xdf1   : > { %11298 = vrot.lane.b32.xlu0 %v12106_v27, %s11724_s20 }
 0xdf5   : > { %11308 = vrot.lane.b32.xlu0 %v12106_v27, %s11725_s21 }
 0xdf9   : > { %1771 = vrot.lane.b32.xlu0 %v1559_v26, %s11726_s22 }
 0xdfd   : > { %1773 = vrot.lane.b32.xlu0 %v1564_v24, %s11726_s22 }
 0xe63   : > { %v11299_v28 = vpop.permute.xlu0 %11298 }
 0xe64   : > { %v11301_v29 = vunpack.i.h.bf16 %v11299_v28  ;;  %v11300_v30 = vunpack.i.l.bf16 %v11299_v28 }
 0xe66   : > { %v10680_v31 = vpack.c.bf16 %v11301_v29, %v11300_v30 }
 0xe67   : > { %v11309_v55 = vpop.permute.xlu0 %11308 }
 0xe68   : > { %10682 = vmatprep.subr.msk.bf16.mxu0 %vm11924_vm3, %v10680_v31  ;;  %v11311_v57 = vunpack.i.h.bf16 %v11309_v55  ;;  %v11310_v58 = vunpack.i.l.bf16 %v11309_v55 }
 0xe69   : > { %10685 = vmatpush3.bf16.xpose.msk.msra.mxu0 %vm11924_vm3, %v10680_v31 }
 0xe6a   : > { %v10692_v62 = vpack.c.bf16 %v11311_v57, %v11310_v58 }
 0xe6b   : > { %v1772_v2 = vpop.permute.xlu0 %1771 }
 0xe6f   : > { %v1774_v4 = vpop.permute.xlu0 %1773 }
 0xe70   : > { %9791 = vmatmul.mubr.msk.f32.vlgmr.msra.gmra.mrb[6].mxu0 %vm477_vm2, %v1564_v24 }
 0xf43   : > { %v9792_v33 = vpop.f32.mrb[6].mxu0 }
 0xf44   : > { %v1647_v34 = vpop.f32.mrb[7].mxu0  ;;  %v1657_v36 = vmul.f32 0.25, %v9792_v33 }
 0xf45   : > { %v1656_v35 = vmul.f32 0.25, %v1647_v34 }
 0xf46   : > { %v1663_v38 = vsel %vm1662_vm6, %v1657_v36, -inf }
 0xf47   : > { %v1659_v37 = vsel %vm1658_vm5, %v1656_v35, -inf }
 0xf48   : > { %1660 = vmax.xlane.f32.xlu1 %v1659_v37 }
 0xf4c   : > { %1664 = vmax.xlane.f32.xlu1 %v1663_v38  ;;  %v1367_v38 = vld [vmem:[%s13670_s2 + $0x298] sm:$0xff] }
 0xfd5   : > { %v1661_v39 = vpop.xlane.xlu1 %1660 }
 0xfd6   : > { %v1666_v40 = vsub.f32 %v1656_v35, %v1661_v39  ;;  %v1368_v39 = vld [vmem:[%s13670_s2 + $0x2a0] sm:$0xff] }
 0xfd8   : > { %v1668_v43 = vmul.f32 1.442695, %v1666_v40  ;;  %v1369_v40 = vld [vmem:[%s13670_s2 + $0x2a8] sm:$0xff] }
 0xfd9   : > { %v1665_v41 = vpop.xlane.xlu1 %1664 }
 0xfda   : > { %v1667_v42 = vsub.f32 %v1657_v36, %v1665_v41  ;;  %v12166_v41 = vpack.c.bf16 %v1368_v39, %v1367_v38 }
 0xfdc   : > { %v1670_v44 = vmul.f32 1.442695, %v1667_v42  ;;  %v1370_v42 = vld [vmem:[%s13670_s2 + $0x2b0] sm:$0xff] }
 0xfde   : > { %11505 = vpow2.f32 %v1670_v44 }
 0xfdf   : > { %11507 = vpow2.f32 %v1668_v43  ;;  %v12171_v43 = vpack.c.bf16 %v1370_v42, %v1369_v40 }
 0xfe8   : > { %v11506_v45 = vpop.eup %11505 }
 0xfe9   : > { %v1675_v47 = vsel %vm1662_vm6, %v11506_v45, 0.0  ;;  %v11508_v48 = vpop.eup %11507 }
 0xfea   : > { %1676 = vadd.xlane.f32.xlu1 %v1675_v47  ;;  %v1672_v49 = vsel %vm1658_vm5, %v11508_v48, 0.0  ;;  %v8996_v47 = vld [vmem:[%s13670_s2 + $0x1d8] ss:$0 sm:$0xff] }
 0xfee   : > { %1673 = vadd.xlane.f32.xlu1 %v1672_v49  ;;  %v1299_v49 = vadd.f32 %v8996_v47, %v12100_v21 }
 0xfff   : > { %11303 = vrot.lane.b32.xlu1 %v12106_v27, %s11727_s23 }
0x1077   : > { %v1677_v50 = vpop.xlane.xlu1 %1676 }
0x1078   : > { %11509 = vrcp.f32 %v1677_v50 }
0x107b   : > { %v1674_v51 = vpop.xlane.xlu1 %1673 }
0x107c   : > { %11511 = vrcp.f32 %v1674_v51  ;;  %v1309_v51 = vsel %vm336_vm1, %v1299_v49, 0.0 }
0x107f   : > { %v11304_v56 = vpop.permute.xlu1 %11303 }
0x1080   : > { %v11306_v59 = vunpack.i.h.bf16 %v11304_v56  ;;  %v11305_v60 = vunpack.i.l.bf16 %v11304_v56 }
0x1082   : > { %v10686_v52 = vpack.c.bf16 %v11306_v59, %v11305_v60  ;;  %v11510_v63 = vpop.eup %11509 }
0x1083   : > { %v1681_v1 = vmul.f32 %v11510_v63, %v11506_v45 }
0x1084   : > { %10688 = vmatprep.subr.msk.bf16.mxu1 %vm12125_vm9, %v10686_v52 }
0x1085   : > { %10691 = vmatpush3.bf16.msk.msra.mxu1 %vm12125_vm9, %v10686_v52  ;;  %v9019_v52 = vld [vmem:[%s13670_s2 + $0x318] ss:$0 sm:$0xff] }
0x1086   : > { %v11512_v46 = vpop.eup %11511  ;;  %10694 = vmatprep.subr.msk.bf16.mxu1 %vm11924_vm3, %v10692_v62 }
0x1087   : > { %v1679_v0 = vmul.f32 %v11512_v46, %v11508_v48  ;;  %v1304_v48 = vadd.f32 %v12098_v20, %v8996_v47  ;;  %v1372_v47 = vld [vmem:[%s13670_s2 + $0x230] sm:$0xff] }
0x1089   : > { %9797 = vmatprep.mubr.msk.f32.mxu1 %vm1658_vm5, %v1679_v0  ;;  %v1312_v50 = vsel %vm336_vm1, %v1304_v48, 0.0 }
0x108a   : > { %9798 = vmatmul.mubr.msk.f32.vlgmr.msra.gmra.mrb[18].mxu1 %vm1658_vm5, %v1681_v1 }
0x108b   : > { %9804 = vmatprep.mubr.msk.f32.mxu1 %vm477_vm2, %v1772_v2 }
0x108e   : > { %10697 = vmatpush3.bf16.xpose.msk.msra.mxu1 %vm11924_vm3, %v10692_v62 }
0x1095   : > { %9805 = vmatmul.mubr.msk.f32.vlgmr.msra.gmra.mrb[20].mxu1 %vm477_vm2, %v1774_v4 }
0x115d   : > { %v12141_v5 = vpop.f32.mrb[18].mxu1 }
0x115e   : > { %v12143_v6 = vpop.f32.mrb[19].mxu1 }
0x1168   : > { %v9806_v8 = vpop.f32.mrb[20].mxu1 }
0x1169   : > { %v1863_v9 = vmul.f32 0.25, %v9806_v8  ;;  %v1853_v10 = vpop.f32.mrb[21].mxu1 }
0x116a   : > { %v1862_v11 = vmul.f32 0.25, %v1853_v10 }
0x116b   : > { %v1867_v12 = vsel %vm1662_vm6, %v1863_v9, -inf }
0x116c   : > { %1868 = vmax.xlane.f32.xlu0 %v1867_v12  ;;  %v1864_v14 = vsel %vm1658_vm5, %v1862_v11, -inf }
0x116d   : > { %1865 = vmax.xlane.f32.xlu1 %v1864_v14 }
0x117e   : > { %11313 = vrot.lane.b32.xlu1 %v12106_v27, %s11728_s24 }
0x11f9   : > { %v1869_v15 = vpop.xlane.xlu0 %1868 }
0x11fa   : > { %v1871_v16 = vsub.f32 %v1863_v9, %v1869_v15  ;;  %v1866_v53 = vpop.xlane.xlu1 %1865 }
0x11fb   : > { %v1870_v17 = vsub.f32 %v1862_v11, %v1866_v53 }
0x11fc   : > { %v1874_v18 = vmul.f32 1.442695, %v1871_v16 }
0x11fd   : > { %v1872_v22 = vmul.f32 1.442695, %v1870_v17 }
0x11fe   : > { %v11314_v23 = vpop.permute.xlu1 %11313 }
0x11ff   : > { %11513 = vpow2.f32 %v1872_v22  ;;  %v11316_v24 = vunpack.i.h.bf16 %v11314_v23  ;;  %v11315_v25 = vunpack.i.l.bf16 %v11314_v23 }
0x1200   : > { %11515 = vpow2.f32 %v1874_v18 }
0x1201   : > { %v10698_v26 = vpack.c.bf16 %v11316_v24, %v11315_v25 }
0x1203   : > { %10700 = vmatprep.subr.msk.bf16.mxu0 %vm12125_vm9, %v10698_v26 }
0x1204   : > { %10703 = vmatpush3.bf16.msk.msra.mxu0 %vm12125_vm9, %v10698_v26 }
0x1205   : > { %10705 = vmatprep.subr.bf16.mxu0 %v12166_v41 }
0x1209   : > { %v11514_v28 = vpop.eup %11513 }
0x120a   : > { %v1876_v27 = vsel %vm1658_vm5, %v11514_v28, 0.0  ;;  %v11516_v29 = vpop.eup %11515 }
0x120b   : > { %1877 = vadd.xlane.f32.xlu0 %v1876_v27  ;;  %v1879_v30 = vsel %vm1662_vm6, %v11516_v29, 0.0 }
0x120f   : > { %1880 = vadd.xlane.f32.xlu0 %v1879_v30  ;;  %v1374_v30 = vld [vmem:[%s13670_s2 + $0x240] sm:$0xff] }
0x1298   : > { %v1878_v31 = vpop.xlane.xlu0 %1877 }
0x1299   : > { %11517 = vrcp.f32 %v1878_v31  ;;  %v1375_v31 = vld [vmem:[%s13670_s2 + $0x248] sm:$0xff] }
0x129a   : > { %v11322_v39 = vpack.i.bf16 %v1375_v31, %v1374_v30 }
0x129c   : > { %v1881_v33 = vpop.xlane.xlu0 %1880 }
0x129d   : > { %11519 = vrcp.f32 %v1881_v33 }
0x12a3   : > { %v11518_v34 = vpop.eup %11517 }
0x12a4   : > { %v1883_v35 = vmul.f32 %v11518_v34, %v11514_v28  ;;  %v8999_v34 = vld [vmem:[%s13670_s2 + $0x1e0] ss:$0 sm:$0xff] }
0x12a6   : > { %9811 = vmatprep.mubr.msk.f32.mxu0 %vm1658_vm5, %v1883_v35 }
0x12a7   : > { %v11520_v36 = vpop.eup %11519 }
0x12a8   : > { %v1885_v37 = vmul.f32 %v11520_v36, %v11516_v29 }
0x12aa   : > { %9812 = vmatmul.mubr.msk.f32.vlgmr.msra.gmra.mrb[8].mxu0 %vm1658_vm5, %v1885_v37  ;;  %v9000_v37 = vld [vmem:[%s13670_s2 + $0x1e8] ss:$0 sm:$0xff] }
0x12ab   : > { %10707 = vmatpush3.bf16.msra.mxu0 %v12166_v41 }
0x12ac   : > { %10709 = vmatprep.subr.bf16.mxu0 %v12171_v43 }
0x12af   : > { %10711 = vmatpush3.bf16.msra.mxu0 %v12171_v43 }
0x137d   : > { %v9813_v44 = vpop.f32.mrb[8].mxu0 }
0x137e   : > { %1978 = vrot.lane.b32.xlu1 %v9813_v44, %s11729_s8  ;;  %v1965_v45 = vpop.f32.mrb[9].mxu0  ;;  %v9001_v44 = vld [vmem:[%s13670_s2 + $0x200] ss:$0 sm:$0xff] }
0x137f   : > { %1976 = vrot.lane.b32.xlu0 %v1965_v45, %s11729_s8 }
0x139e   : > { %1313 = vadd.xlane.f32.xlu0 %v1312_v50  ;;  %v1347_v50 = vld [vmem:[%s13670_s2 + $0x1f0] sm:$0xff] }
0x13a2   : > { %1310 = vadd.xlane.f32.xlu1 %v1309_v51 }
0x13f0   : > { %v1979_v55 = vpop.permute.xlu1 %1978 }
0x13f1   : > { %v1977_v56 = vpop.permute.xlu0 %1976  ;;  %v1983_v58 = vsel %vm477_vm2, %v12141_v5, %v1979_v55  ;;  %v12241_v55 = vld [vmem:[%s13670_s2 + $0x291] ss:$0 sm:$0xff] }
0x13f2   : > { %v1982_v57 = vsel %vm477_vm2, %v12143_v6, %v1977_v56 }
0x13f3   : > { %9822 = vmatprep.mubr.msk.f32.mxu0 %vm336_vm1, %v1982_v57 }
0x13f4   : > { %9823 = vmatmul.mubr.msk.f32.vlgmr.msra.gmra.mrb[10].mxu0 %vm336_vm1, %v1983_v58 }
0x142b   : > { %v1314_v20 = vpop.xlane.xlu0 %1313 }
0x142c   : > { %v1316_v59 = vmul.f32 0.03125, %v1314_v20 }
0x142e   : > { %v1318_v63 = vsub.f32 %v1304_v48, %v1316_v59  ;;  %v1373_v48 = vld [vmem:[%s13670_s2 + $0x238] sm:$0xff] }
0x142f   : > { %v1311_v21 = vpop.xlane.xlu1 %1310  ;;  %v11317_v57 = vpack.i.bf16 %v1373_v48, %v1372_v47  ;;  %v12254_v20 = vpack.c.bf16 %v1373_v48, %v1372_v47 }
0x1430   : > { %v1315_v60 = vmul.f32 0.03125, %v1311_v21  ;;  %v1320_v8 = vmul.f32 %v1318_v63, %v1318_v63  ;;  %v12259_v21 = vpack.c.bf16 %v1375_v31, %v1374_v30 }
0x1431   : > { %10713 = vmatprep.subr.bf16.mxu1 %v12254_v20 }
0x1432   : > { %v1317_v1 = vsub.f32 %v1299_v49, %v1315_v60  ;;  %v1324_v11 = vsel %vm336_vm1, %v1320_v8, 0.0  ;;  %10715 = vmatpush3.bf16.msra.mxu1 %v12254_v20 }
0x1433   : > { %10717 = vmatprep.subr.bf16.mxu1 %v12259_v21 }
0x1434   : > { %v1319_v10 = vmul.f32 %v1317_v1, %v1317_v1 }
0x1436   : > { %v1321_v12 = vsel %vm336_vm1, %v1319_v10, 0.0  ;;  %10719 = vmatpush3.bf16.msra.mxu1 %v12259_v21 }
0x14c7   : > { %v9824_v62 = vpop.f32.mrb[10].mxu0 }
0x14c8   : > { %v2066_v46 = vadd.f32 %v9824_v62, %v9019_v52  ;;  %v2060_v0 = vpop.f32.mrb[11].mxu0 }
0x14c9   : > { %v2061_v2 = vadd.f32 %v9019_v52, %v2060_v0 }
0x14ca   : > { %v2070_v4 = vadd.f32 %v2066_v46, %v12071_v13 }
0x14cb   : > { %v2069_v5 = vadd.f32 %v2061_v2, %v12087_v54 }
0x14cc   : > { %v2075_v6 = vsel %vm2074_vm10, %v2070_v4, 0.0 }
0x14cd   : > { %2076 = vadd.xlane.f32.xlu1 %v2075_v6  ;;  %v2071_v9 = vsel %vm336_vm1, %v2069_v5, 0.0 }
0x14ce   : > { %2072 = vadd.xlane.f32.xlu0 %v2071_v9 }
0x14d1   : > { %1325 = vadd.xlane.f32.xlu1 %v1324_v11 }
0x14d2   : > { %1322 = vadd.xlane.f32.xlu0 %v1321_v12 }
0x155a   : > { %v2077_v14 = vpop.xlane.xlu1 %2076 }
0x155b   : > { %v2079_v15 = vmul.f32 0.03125, %v2077_v14  ;;  %v2073_v16 = vpop.xlane.xlu0 %2072 }
0x155c   : > { %v2078_v13 = vmul.f32 0.03125, %v2073_v16 }
0x155d   : > { %v12201_v53 = vsub.f32 %v2070_v4, %v2079_v15  ;;  %v1348_v15 = vld [vmem:[%s13670_s2 + $0x1f8] sm:$0xff] }
0x155e   : > { %v12203_v54 = vsub.f32 %v2069_v5, %v2078_v13  ;;  %v1326_v17 = vpop.xlane.xlu1 %1325 }
0x155f   : > { %v1328_v18 = vmul.f32 0.03125, %v1326_v17  ;;  %v1323_v22 = vpop.xlane.xlu0 %1322  ;;  %v2083_v23 = vmul.f32 %v12201_v53, %v12201_v53  ;;  %v9022_v17 = vld [vmem:[%s13670_s2 + $0x320] ss:$0 sm:$0xff] }
0x1560   : > { %v1327_v24 = vmul.f32 0.03125, %v1323_v22  ;;  %v2082_v25 = vmul.f32 %v12203_v54, %v12203_v54 }
0x1561   : > { %v1330_v26 = vadd.f32 1e-06, %v1328_v18  ;;  %v2087_v28 = vsel %vm2074_vm10, %v2083_v23, 0.0 }
0x1562   : > { %v1329_v27 = vadd.f32 1e-06, %v1327_v24  ;;  %2088 = vadd.xlane.f32.xlu1 %v2087_v28  ;;  %v2084_v29 = vsel %vm336_vm1, %v2082_v25, 0.0 }
0x1563   : > { %11521 = vrsqrt.f32 %v1330_v26  ;;  %2085 = vadd.xlane.f32.xlu0 %v2084_v29 }
0x1564   : > { %11523 = vrsqrt.f32 %v1329_v27  ;;  %v9023_v27 = vld [vmem:[%s13670_s2 + $0x328] ss:$0 sm:$0xff] }
0x156d   : > { %v11522_v33 = vpop.eup %11521 }
0x156e   : > { %v11524_v35 = vpop.eup %11523  ;;  %v1334_v36 = vmul.f32 %v11522_v33, %v1318_v63 }
0x156f   : > { %v1333_v38 = vmul.f32 %v11524_v35, %v1317_v1 }
0x1570   : > { %v1340_v40 = vmul.f32 %v8999_v34, %v1334_v36 }
0x1571   : > { %v1339_v42 = vmul.f32 %v8999_v34, %v1333_v38 }
0x1572   : > { %v1346_v45 = vadd.f32 %v9000_v37, %v1340_v40 }
0x1573   : > { %v1345_v49 = vadd.f32 %v9000_v37, %v1339_v42  ;;  %11323 = vrot.lane.b32.xlu1 %v11322_v39, %s11724_s20 }
0x1574   : > { %v12236_v51 = vadd.f32 %v9001_v44, %v1346_v45 }
0x1575   : > { %v12243_v56 = vadd.f32 %v9001_v44, %v1345_v49 }
0x1576   : > { %v12271_v24 = vadd.f32 %v12236_v51, %v1348_v15 }
0x1577   : > { %13718 = vst [vmem:[#allocation2_spill] sm:$0xff] %v12243_v56  ;;  %v12246_v58 = vadd.f32 %v12243_v56, %v1347_v50  ;;  %2214 = vrot.lane.b32.xlu1 %v12241_v55, %s11724_s20 }
0x1579   : > { %9844 = vmatprep.mubr.msk.f32.mxu0 %vm336_vm1, %v12246_v58  ;;  %11318 = vrot.lane.b32.xlu0 %v11317_v57, %s11724_s20 }
0x157b   : > { %11328 = vrot.lane.b32.xlu1 %v11317_v57, %s11727_s23 }
0x157d   : > { %11333 = vrot.lane.b32.xlu0 %v11322_v39, %s11727_s23 }
0x15ef   : > { %v2089_v59 = vpop.xlane.xlu1 %2088 }
0x15f0   : > { %v2091_v60 = vmul.f32 0.03125, %v2089_v59  ;;  %v2086_v52 = vpop.xlane.xlu0 %2085 }
0x15f1   : > { %v2090_v62 = vmul.f32 0.03125, %v2086_v52 }
0x15f2   : > { %v2093_v63 = vadd.f32 1e-05, %v2091_v60 }
0x15f3   : > { %v2092_v46 = vadd.f32 1e-05, %v2090_v62  ;;  %v11324_v0 = vpop.permute.xlu1 %11323 }
0x15f4   : > { %11525 = vrsqrt.f32 %v2093_v63  ;;  %v11319_v1 = vpop.permute.xlu0 %11318  ;;  %v11326_v2 = vunpack.i.h.bf16 %v11324_v0  ;;  %v11325_v4 = vunpack.i.l.bf16 %v11324_v0 }
0x15f5   : > { %11527 = vrsqrt.f32 %v2092_v46  ;;  %v11321_v5 = vunpack.i.h.bf16 %v11319_v1  ;;  %v11320_v6 = vunpack.i.l.bf16 %v11319_v1 }
0x15f6   : > { %v10724_v10 = vpack.c.bf16 %v11326_v2, %v11325_v4 }
0x15f7   : > { %v10720_v8 = vpack.c.bf16 %v11321_v5, %v11320_v6  ;;  %v2215_v9 = vpop.permute.xlu1 %2214 }
0x15f8   : > { %v11334_v13 = vpop.permute.xlu0 %11333 }
0x15f9   : > { %10721 = vmatprep.subr.bf16.mxu0 %v10720_v8  ;;  %v11336_v26 = vunpack.i.h.bf16 %v11334_v13  ;;  %v11335_v28 = vunpack.i.l.bf16 %v11334_v13 }
0x15fa   : > { %10723 = vmatpush3.bf16.msra.mxu0 %v10720_v8 }
0x15fb   : > { %10725 = vmatprep.subr.bf16.mxu0 %v10724_v10  ;;  %v11329_v11 = vpop.permute.xlu1 %11328  ;;  %v10732_v33 = vpack.c.bf16 %v11336_v26, %v11335_v28 }
0x15fc   : > { %v11331_v12 = vunpack.i.h.bf16 %v11329_v11  ;;  %v11330_v14 = vunpack.i.l.bf16 %v11329_v11 }
0x15fe   : > { %v11526_v16 = vpop.eup %11525  ;;  %10727 = vmatpush3.bf16.msra.mxu0 %v10724_v10  ;;  %v10728_v18 = vpack.c.bf16 %v11331_v12, %v11330_v14 }
0x15ff   : > { %v11528_v22 = vpop.eup %11527  ;;  %v2097_v23 = vmul.f32 %v11526_v16, %v12201_v53 }
0x1600   : > { %v2096_v25 = vmul.f32 %v11528_v22, %v12203_v54  ;;  %10729 = vmatprep.subr.bf16.mxu1 %v10728_v18 }
0x1601   : > { %9845 = vmatmul.mubr.msk.f32.vlgmr.msra.gmra.mrb[12].mxu0 %vm336_vm1, %v12271_v24  ;;  %v2103_v29 = vmul.f32 %v9022_v17, %v2097_v23 }
0x1602   : > { %v2102_v30 = vmul.f32 %v9022_v17, %v2096_v25 }
0x1603   : > { %v12281_v53 = vadd.f32 %v9023_v27, %v2103_v29 }
0x1604   : > { %v12279_v31 = vadd.f32 %v9023_v27, %v2102_v30 }
0x1606   : > { %9833 = vmatprep.mubr.msk.f32.mxu1 %vm336_vm1, %v12279_v31 }
0x1607   : > { %9834 = vmatmul.mubr.msk.f32.vlgmr.msra.gmra.mrb[22].mxu1 %vm336_vm1, %v12281_v53 }
0x1608   : > { %10731 = vmatpush3.bf16.msra.mxu1 %v10728_v18  ;;  %9855 = vmatprep.mubr.msk.f32.mxu1 %vm336_vm1, %v12243_v56 }
0x1609   : > { %10733 = vmatprep.subr.bf16.mxu1 %v10732_v33 }
0x160c   : > { %10735 = vmatpush3.bf16.msra.mxu1 %v10732_v33 }
0x160f   : > { %9856 = vmatmul.mubr.msk.f32.vlgmr.msra.gmra.mrb[24].mxu1 %vm336_vm1, %v12236_v51 }
0x16d4   : > { %v9846_v54 = vpop.f32.mrb[12].mxu0 }
0x16d5   : > { %v2295_v34 = vadd.f32 %v9846_v54, %v2215_v9  ;;  %v2289_v35 = vpop.f32.mrb[13].mxu0 }
0x16d6   : > { %v2290_v36 = vadd.f32 %v2289_v35, %v2215_v9 }
0x16d8   : > { %v11337_v37 = vpack.i.bf16 %v2295_v34, %v2290_v36  ;;  %v12291_v38 = vpack.c.bf16 %v2295_v34, %v2290_v36 }
0x16da   : > { %v9835_v39 = vpop.f32.mrb[22].mxu1  ;;  %10738 = vmatprep.subr.msk.bf16.mxu0 %vm11924_vm3, %v12291_v38 }
0x16db   : > { %v2188_v40 = vpop.f32.mrb[23].mxu1  ;;  %10741 = vmatpush3.bf16.xpose.msk.msra.mxu0 %vm11924_vm3, %v12291_v38  ;;  %v2194_v44 = vadd.f32 %v9835_v39, %v12241_v55 }
0x16dc   : > { %v2189_v42 = vadd.f32 %v12241_v55, %v2188_v40 }
0x16de   : > { %9862 = vmatprep.mubr.msk.f32.mxu0 %vm477_vm2, %v2189_v42 }
0x16e2   : > { %v9857_v45 = vpop.f32.mrb[24].mxu1  ;;  %9863 = vmatmul.mubr.msk.f32.vlgmr.msra.gmra.mrb[14].mxu0 %vm477_vm2, %v2194_v44 }
0x16e3   : > { %v2385_v47 = vpop.f32.mrb[25].mxu1 }
0x17b5   : > { %v9864_v48 = vpop.f32.mrb[14].mxu0 }
0x17b6   : > { %v2482_v49 = vmul.f32 0.25, %v9864_v48  ;;  %v2472_v50 = vpop.f32.mrb[15].mxu0 }
0x17b7   : > { %v2481_v57 = vmul.f32 0.25, %v2472_v50 }
0x17b8   : > { %v2487_v59 = vsel %vm2486_vm11, %v2482_v49, -inf }
0x17b9   : > { %2488 = vmax.xlane.f32.xlu0 %v2487_v59  ;;  %v2483_v60 = vsel %vm477_vm2, %v2481_v57, -inf }
0x17ba   : > { %2484 = vmax.xlane.f32.xlu1 %v2483_v60 }
0x17cb   : > { %2310 = vrot.lane.b32.xlu1 %v12241_v55, %s11727_s23 }
0x17cf   : > { %2587 = vrot.lane.b32.xlu1 %v2189_v42, %s11726_s22 }
0x17d3   : > { %2589 = vrot.lane.b32.xlu1 %v2194_v44, %s11726_s22 }
0x1846   : > { %v2489_v52 = vpop.xlane.xlu0 %2488 }
0x1847   : > { %v2491_v62 = vsub.f32 %v2482_v49, %v2489_v52  ;;  %v2485_v63 = vpop.xlane.xlu1 %2484 }
0x1848   : > { %v2490_v46 = vsub.f32 %v2481_v57, %v2485_v63 }
0x1849   : > { %v2494_v0 = vmul.f32 1.442695, %v2491_v62 }
0x184a   : > { %v2492_v1 = vmul.f32 1.442695, %v2490_v46 }
0x184b   : > { %11529 = vpow2.f32 %v2494_v0  ;;  %v2311_v2 = vpop.permute.xlu1 %2310 }
0x184c   : > { %v2386_v4 = vadd.f32 %v2385_v47, %v2311_v2  ;;  %v2391_v5 = vadd.f32 %v9857_v45, %v2311_v2  ;;  %11531 = vpow2.f32 %v2492_v1 }
0x184e   : > { %v12309_v6 = vpack.c.bf16 %v2391_v5, %v2386_v4  ;;  %v11342_v8 = vpack.i.bf16 %v2391_v5, %v2386_v4  ;;  %v1377_v4 = vld [vmem:[%s13670_s2 + $0x2b8] sm:$0xff]  ;;  %v1378_v5 = vld [vmem:[%s13670_s2 + $0x2c0] sm:$0xff] }
0x184f   : > { %v2588_v26 = vpop.permute.xlu1 %2587 }
0x1850   : > { %10743 = vmatprep.subr.bf16.mxu1 %v12309_v6 }
0x1851   : > { %10745 = vmatpush3.bf16.msra.mxu1 %v12309_v6 }
0x1853   : > { %v2590_v28 = vpop.permute.xlu1 %2589 }
0x1855   : > { %v11530_v55 = vpop.eup %11529 }
0x1856   : > { %v2499_v9 = vsel %vm2486_vm11, %v11530_v55, 0.0  ;;  %v11532_v10 = vpop.eup %11531 }
0x1857   : > { %2500 = vadd.xlane.f32.xlu0 %v2499_v9  ;;  %v2496_v11 = vsel %vm477_vm2, %v11532_v10, 0.0  ;;  %v1380_v9 = vld [vmem:[%s13670_s2 + $0x2d0] sm:$0xff] }
0x185b   : > { %2497 = vadd.xlane.f32.xlu0 %v2496_v11 }
0x1871   : > { %11338 = vrot.lane.b32.xlu0 %v11337_v37, %s11726_s22 }
0x18e4   : > { %v2501_v12 = vpop.xlane.xlu0 %2500 }
0x18e5   : > { %11533 = vrcp.f32 %v2501_v12 }
0x18e8   : > { %v2498_v14 = vpop.xlane.xlu0 %2497 }
0x18e9   : > { %11535 = vrcp.f32 %v2498_v14 }
0x18ec   : > { %v11339_v15 = vpop.permute.xlu0 %11338 }
0x18ed   : > { %v11341_v16 = vunpack.i.h.bf16 %v11339_v15  ;;  %v11340_v13 = vunpack.i.l.bf16 %v11339_v15 }
0x18ef   : > { %v12316_v17 = vpack.c.bf16 %v11341_v16, %v11340_v13  ;;  %v11534_v18 = vpop.eup %11533 }
0x18f0   : > { %v2505_v25 = vmul.f32 %v11534_v18, %v11530_v55  ;;  %v12348_v55 = vpack.c.bf16 %v1378_v5, %v1377_v4  ;;  %v9043_v18 = vld [vmem:[%s13670_s2 + $0x319] ss:$0 sm:$0xff]  ;;  %v1420_v4 = vld [vmem:[%s13670_s2 + $0x380] sm:$0xff] }
0x18f1   : > { %10748 = vmatprep.subr.msk.bf16.mxu1 %vm11924_vm3, %v12316_v17 }
0x18f3   : > { %v11536_v22 = vpop.eup %11535 }
0x18f4   : > { %v2503_v23 = vmul.f32 %v11536_v22, %v11532_v10 }
0x18f6   : > { %9869 = vmatprep.mubr.msk.f32.mxu1 %vm477_vm2, %v2503_v23 }
0x18f7   : > { %9870 = vmatmul.mubr.msk.f32.vlgmr.msra.gmra.mrb[26].mxu1 %vm477_vm2, %v2505_v25 }
0x18f8   : > { %10751 = vmatpush3.bf16.xpose.msk.msra.mxu1 %vm11924_vm3, %v12316_v17  ;;  %9876 = vmatprep.mubr.msk.f32.mxu1 %vm477_vm2, %v2588_v26 }
0x18ff   : > { %9877 = vmatmul.mubr.msk.f32.vlgmr.msra.gmra.mrb[28].mxu1 %vm477_vm2, %v2590_v28 }
0x19ca   : > { %v9871_v27 = vpop.f32.mrb[26].mxu1 }
0x19cb   : > { %v2578_v29 = vpop.f32.mrb[27].mxu1 }
0x19d2   : > { %v9878_v30 = vpop.f32.mrb[28].mxu1 }
0x19d3   : > { %v2679_v33 = vmul.f32 0.25, %v9878_v30  ;;  %v2669_v54 = vpop.f32.mrb[29].mxu1 }
0x19d4   : > { %v2678_v34 = vmul.f32 0.25, %v2669_v54 }
0x19d5   : > { %v2683_v35 = vsel %vm2486_vm11, %v2679_v33, -inf }
0x19d6   : > { %2684 = vmax.xlane.f32.xlu0 %v2683_v35  ;;  %v2680_v36 = vsel %vm477_vm2, %v2678_v34, -inf }
0x19d7   : > { %2681 = vmax.xlane.f32.xlu1 %v2680_v36 }
0x19e8   : > { %11343 = vrot.lane.b32.xlu1 %v11342_v8, %s11726_s22  ;;  %v1379_v8 = vld [vmem:[%s13670_s2 + $0x2c8] sm:$0xff] }
0x19e9   : > { %v12353_v10 = vpack.c.bf16 %v1380_v9, %v1379_v8 }
0x1a63   : > { %v2685_v37 = vpop.xlane.xlu0 %2684 }
0x1a64   : > { %v2687_v39 = vsub.f32 %v2679_v33, %v2685_v37  ;;  %v2682_v40 = vpop.xlane.xlu1 %2681 }
0x1a65   : > { %v2686_v42 = vsub.f32 %v2678_v34, %v2682_v40 }
0x1a66   : > { %v2690_v44 = vmul.f32 1.442695, %v2687_v39 }
0x1a67   : > { %v2688_v45 = vmul.f32 1.442695, %v2686_v42 }
0x1a68   : > { %v11344_v47 = vpop.permute.xlu1 %11343 }
0x1a69   : > { %11537 = vpow2.f32 %v2688_v45  ;;  %v11346_v48 = vunpack.i.h.bf16 %v11344_v47  ;;  %v11345_v49 = vunpack.i.l.bf16 %v11344_v47  ;;  %v1412_v47 = vld [vmem:[%s13670_s2 + $0x340] sm:$0xff] }
0x1a6a   : > { %11539 = vpow2.f32 %v2690_v44  ;;  %v1411_v44 = vld [vmem:[%s13670_s2 + $0x338] sm:$0xff] }
0x1a6b   : > { %v12331_v50 = vpack.c.bf16 %v11346_v48, %v11345_v49  ;;  %v1413_v48 = vld [vmem:[%s13670_s2 + $0x348] sm:$0xff] }
0x1a6c   : > { %v12390_v49 = vpack.c.bf16 %v1413_v48, %v1412_v47  ;;  %v9051_v47 = vld [vmem:[%s13670_s2 + $0x398] ss:$0 sm:$0xff] }
0x1a6d   : > { %10753 = vmatprep.subr.bf16.mxu0 %v12331_v50 }
0x1a6e   : > { %10755 = vmatpush3.bf16.msra.mxu0 %v12331_v50 }
0x1a6f   : > { %10757 = vmatprep.subr.bf16.mxu0 %v12348_v55 }
0x1a73   : > { %v11538_v57 = vpop.eup %11537 }
0x1a74   : > { %v2692_v59 = vsel %vm477_vm2, %v11538_v57, 0.0  ;;  %v11540_v60 = vpop.eup %11539 }
0x1a75   : > { %2693 = vadd.xlane.f32.xlu0 %v2692_v59  ;;  %v2695_v52 = vsel %vm2486_vm11, %v11540_v60, 0.0  ;;  %v12402_v59 = vld [vmem:[%s13670_s2 + $0x258] sm:$0xff] }
0x1a79   : > { %2696 = vadd.xlane.f32.xlu0 %v2695_v52  ;;  %v1415_v52 = vld [vmem:[%s13670_s2 + $0x358] sm:$0xff] }
0x1b02   : > { %v2694_v62 = vpop.xlane.xlu0 %2693 }
0x1b03   : > { %11541 = vrcp.f32 %v2694_v62  ;;  %v1416_v62 = vld [vmem:[%s13670_s2 + $0x360] sm:$0xff] }
0x1b06   : > { %v2697_v63 = vpop.xlane.xlu0 %2696 }
0x1b07   : > { %11543 = vrcp.f32 %v2697_v63  ;;  %v1417_v63 = vld [vmem:[%s13670_s2 + $0x368] sm:$0xff] }
0x1b0d   : > { %v11542_v46 = vpop.eup %11541 }
0x1b0e   : > { %v2699_v0 = vmul.f32 %v11542_v46, %v11538_v57  ;;  %v12397_v57 = vld [vmem:[%s13670_s2 + $0x250] sm:$0xff]  ;;  %v12415_v46 = vpack.c.bf16 %v1416_v62, %v1415_v52 }
0x1b10   : > { %9883 = vmatprep.mubr.msk.f32.mxu0 %vm477_vm2, %v2699_v0  ;;  %v1418_v0 = vld [vmem:[%s13670_s2 + $0x370] sm:$0xff] }
0x1b11   : > { %v11544_v1 = vpop.eup %11543 }
0x1b12   : > { %v2701_v2 = vmul.f32 %v11544_v1, %v11540_v60  ;;  %v10788_v60 = vpack.c.bf16 %v12402_v59, %v12397_v57  ;;  %v12420_v1 = vpack.c.bf16 %v1418_v0, %v1417_v63 }
0x1b14   : > { %9884 = vmatmul.mubr.msk.f32.vlgmr.msra.gmra.mrb[16].mxu0 %vm477_vm2, %v2701_v2  ;;  %v1419_v2 = vld [vmem:[%s13670_s2 + $0x378] sm:$0xff] }
0x1b15   : > { %10759 = vmatpush3.bf16.msra.mxu0 %v12348_v55  ;;  %v12431_v5 = vpack.c.bf16 %v1420_v4, %v1419_v2 }
0x1b16   : > { %10761 = vmatprep.subr.bf16.mxu0 %v12353_v10 }
0x1b19   : > { %10763 = vmatpush3.bf16.msra.mxu0 %v12353_v10 }
0x1b1a   : > { %10773 = vmatprep.subr.bf16.mxu0 %v12415_v46 }
0x1be7   : > { %v9885_v11 = vpop.f32.mrb[16].mxu0 }
0x1be8   : > { %2795 = vrot.lane.b32.xlu1 %v9885_v11, %s11729_s8  ;;  %v2782_v12 = vpop.f32.mrb[17].mxu0 }
0x1be9   : > { %2793 = vrot.lane.b32.xlu0 %v2782_v12, %s11729_s8 }
0x1c5a   : > { %v2796_v14 = vpop.permute.xlu1 %2795 }
0x1c5b   : > { %v2794_v15 = vpop.permute.xlu0 %2793  ;;  %v2800_v13 = vsel %vm477_vm2, %v9871_v27, %v2796_v14 }
0x1c5c   : > { %v2799_v16 = vsel %vm477_vm2, %v2578_v29, %v2794_v15 }
0x1c5d   : > { %9894 = vmatprep.mubr.msk.f32.mxu0 %vm336_vm1, %v2799_v16 }
0x1c5e   : > { %9895 = vmatmul.mubr.msk.f32.vlgmr.msra.gmra.mrb[18].mxu0 %vm336_vm1, %v2800_v13  ;;  %v9046_v13 = vld [vmem:[%s13670_s2 + $0x321] ss:$0 sm:$0xff] }
0x1c5f   : > { %10775 = vmatpush3.bf16.msra.mxu0 %v12415_v46 }
0x1c60   : > { %10777 = vmatprep.subr.bf16.mxu0 %v12420_v1 }
0x1c63   : > { %10779 = vmatpush3.bf16.msra.mxu0 %v12420_v1 }
0x1c64   : > { %10781 = vmatprep.subr.bf16.mxu0 %v12431_v5 }
0x1c67   : > { %10783 = vmatpush3.bf16.msra.mxu0 %v12431_v5 }
0x1d31   : > { %v9896_v22 = vpop.f32.mrb[18].mxu0 }
0x1d32   : > { %v2883_v23 = vadd.f32 %v9896_v22, %v9043_v18  ;;  %v2877_v25 = vpop.f32.mrb[19].mxu0 }
0x1d33   : > { %v2878_v26 = vadd.f32 %v9043_v18, %v2877_v25  ;;  %v9047_v25 = vld [vmem:[%s13670_s2 + $0x329] ss:$0 sm:$0xff] }
0x1d34   : > { %v2887_v28 = vadd.f32 %v2883_v23, %v12281_v53 }
0x1d35   : > { %v2886_v30 = vadd.f32 %v2878_v26, %v12279_v31  ;;  %v1410_v31 = vld [vmem:[%s13670_s2 + $0x330] sm:$0xff] }
0x1d36   : > { %v2891_v29 = vsel %vm2074_vm10, %v2887_v28, 0.0  ;;  %v12380_v45 = vpack.c.bf16 %v1411_v44, %v1410_v31 }
0x1d37   : > { %2892 = vadd.xlane.f32.xlu0 %v2891_v29  ;;  %v2888_v27 = vsel %vm336_vm1, %v2886_v30, 0.0  ;;  %v1385_v29 = vld [vmem:[%s13670_s2 + $0x268] sm:$0xff] }
0x1d38   : > { %2889 = vadd.xlane.f32.xlu1 %v2888_v27  ;;  %10765 = vmatprep.subr.bf16.mxu1 %v12380_v45 }
0x1d39   : > { %10767 = vmatpush3.bf16.msra.mxu1 %v12380_v45 }
0x1d3a   : > { %10769 = vmatprep.subr.bf16.mxu1 %v12390_v49 }
0x1d3d   : > { %10771 = vmatpush3.bf16.msra.mxu1 %v12390_v49 }
0x1d3e   : > { %10789 = vmatprep.subr.bf16.mxu1 %v10788_v60 }
0x1dc4   : > { %v2893_v33 = vpop.xlane.xlu0 %2892 }
0x1dc5   : > { %v2895_v54 = vmul.f32 0.03125, %v2893_v33  ;;  %v2890_v34 = vpop.xlane.xlu1 %2889 }
0x1dc6   : > { %v2894_v35 = vmul.f32 0.03125, %v2890_v34  ;;  %v1421_v34 = vld [vmem:[%s13670_s2 + $0x388] sm:$0xff] }
0x1dc7   : > { %v2897_v36 = vsub.f32 %v2887_v28, %v2895_v54 }
0x1dc8   : > { %v2896_v37 = vsub.f32 %v2886_v30, %v2894_v35  ;;  %v1384_v30 = vld [vmem:[%s13670_s2 + $0x260] sm:$0xff]  ;;  %v1422_v35 = vld [vmem:[%s13670_s2 + $0x390] sm:$0xff] }
0x1dc9   : > { %v2899_v39 = vmul.f32 %v2897_v36, %v2897_v36  ;;  %v10792_v54 = vpack.c.bf16 %v1385_v29, %v1384_v30 }
0x1dca   : > { %v2898_v40 = vmul.f32 %v2896_v37, %v2896_v37 }
0x1dcb   : > { %v2903_v42 = vsel %vm2074_vm10, %v2899_v39, 0.0 }
0x1dcc   : > { %2904 = vadd.xlane.f32.xlu1 %v2903_v42  ;;  %v2900_v53 = vsel %vm336_vm1, %v2898_v40, 0.0 }
0x1dcd   : > { %2901 = vadd.xlane.f32.xlu0 %v2900_v53 }
0x1e59   : > { %v2905_v8 = vpop.xlane.xlu1 %2904 }
0x1e5a   : > { %v2907_v9 = vmul.f32 0.03125, %v2905_v8  ;;  %v2902_v11 = vpop.xlane.xlu0 %2901 }
0x1e5b   : > { %v2906_v12 = vmul.f32 0.03125, %v2902_v11 }
0x1e5c   : > { %v2909_v14 = vadd.f32 1e-05, %v2907_v9 }
0x1e5d   : > { %v2908_v15 = vadd.f32 1e-05, %v2906_v12 }
0x1e5e   : > { %11545 = vrsqrt.f32 %v2909_v14 }
0x1e5f   : > { %11547 = vrsqrt.f32 %v2908_v15 }
0x1e68   : > { %v11546_v16 = vpop.eup %11545 }
0x1e69   : > { %v11548_v18 = vpop.eup %11547  ;;  %v2913_v22 = vmul.f32 %v11546_v16, %v2897_v36  ;;  %v12460_v36 = vpack.c.bf16 %v1422_v35, %v1421_v34 }
0x1e6a   : > { %v2912_v23 = vmul.f32 %v11548_v18, %v2896_v37 }
0x1e6b   : > { %v2919_v26 = vmul.f32 %v9046_v13, %v2913_v22  ;;  %10785 = vmatprep.subr.bf16.mxu0 %v12460_v36 }
0x1e6c   : > { %v2918_v28 = vmul.f32 %v9046_v13, %v2912_v23  ;;  %10787 = vmatpush3.bf16.msra.mxu0 %v12460_v36  ;;  %v11352_v23 = vpack.i.bf16 %v1385_v29, %v1384_v30 }
0x1e6d   : > { %v2925_v33 = vadd.f32 %v9047_v25, %v2919_v26  ;;  %v12484_v26 = vld [vmem:[%s13670_s2 + $0x292] ss:$0 sm:$0xff] }
0x1e6e   : > { %v2924_v27 = vadd.f32 %v9047_v25, %v2918_v28  ;;  %v11347_v25 = vpack.i.bf16 %v12402_v59, %v12397_v57 }
0x1e70   : > { %9905 = vmatprep.mubr.msk.f32.mxu1 %vm336_vm1, %v2924_v27 }
0x1e71   : > { %9906 = vmatmul.mubr.msk.f32.vlgmr.msra.gmra.mrb[30].mxu1 %vm336_vm1, %v2925_v33 }
0x1e72   : > { %10791 = vmatpush3.bf16.msra.mxu1 %v10788_v60  ;;  %9935 = vmatprep.mubr.msk.f32.mxu1 %vm336_vm1, %v12246_v58  ;;  %v9048_v58 = vld [vmem:[%s13670_s2 + $0x350] ss:$0 sm:$0xff] }
0x1e73   : > { %10793 = vmatprep.subr.bf16.mxu1 %v10792_v54 }
0x1e76   : > { %10795 = vmatpush3.bf16.msra.mxu1 %v10792_v54 }
0x1e79   : > { %9936 = vmatmul.mubr.msk.f32.vlgmr.msra.gmra.mrb[32].mxu1 %vm336_vm1, %v12271_v24 }
0x1f44   : > { %v9907_v37 = vpop.f32.mrb[30].mxu1 }
0x1f45   : > { %v3008_v24 = vadd.f32 %v9907_v37, %v9048_v58  ;;  %v3002_v39 = vpop.f32.mrb[31].mxu1 }
0x1f46   : > { %v3003_v40 = vadd.f32 %v9048_v58, %v3002_v39 }
0x1f47   : > { %v3012_v53 = vmax.f32 %v3008_v24, 0.0 }
0x1f48   : > { %v3011_v42 = vmax.f32 %v3003_v40, 0.0 }
0x1f4a   : > { %9924 = vmatprep.mubr.msk.f32.mxu0 %vm248_vm0, %v3011_v42 }
0x1f4b   : > { %9925 = vmatmul.mubr.msk.f32.vlgmr.msra.gmra.mrb[20].mxu0 %vm248_vm0, %v3012_v53  ;;  %v9054_v53 = vld [vmem:[%s13670_s2 + $0x322] ss:$0 sm:$0xff] }
0x1f4c   : > { %v12469_v31 = vpop.f32.mrb[32].mxu1 }
0x1f4d   : > { %v3208_v44 = vpop.f32.mrb[33].mxu1 }
0x1f4e   : > { %v12490_v28 = vadd.f32 %v12484_v26, %v3208_v44 }
0x201e   : > { %v9926_v48 = vpop.f32.mrb[20].mxu0 }
0x201f   : > { %v3095_v60 = vadd.f32 %v9926_v48, %v9051_v47  ;;  %v3089_v52 = vpop.f32.mrb[21].mxu0 }
0x2020   : > { %v3090_v62 = vadd.f32 %v9051_v47, %v3089_v52 }
0x2021   : > { %v3099_v63 = vadd.f32 %v3095_v60, %v2925_v33  ;;  %v9055_v60 = vld [vmem:[%s13670_s2 + $0x32a] ss:$0 sm:$0xff] }
0x2022   : > { %v3098_v0 = vadd.f32 %v3090_v62, %v2924_v27 }
0x2023   : > { %v3103_v2 = vsel %vm2074_vm10, %v3099_v63, 0.0 }
0x2024   : > { %3104 = vadd.xlane.f32.xlu1 %v3103_v2  ;;  %v3100_v4 = vsel %vm336_vm1, %v3098_v0, 0.0 }
0x2025   : > { %3101 = vadd.xlane.f32.xlu0 %v3100_v4 }
0x20b1   : > { %v3105_v8 = vpop.xlane.xlu1 %3104 }
0x20b2   : > { %v3107_v9 = vmul.f32 0.03125, %v3105_v8  ;;  %v3102_v11 = vpop.xlane.xlu0 %3101 }
0x20b3   : > { %v3106_v12 = vmul.f32 0.03125, %v3102_v11 }
0x20b4   : > { %v3109_v14 = vsub.f32 %v3099_v63, %v3107_v9 }
0x20b5   : > { %v3108_v15 = vsub.f32 %v3098_v0, %v3106_v12 }
0x20b6   : > { %v3111_v16 = vmul.f32 %v3109_v14, %v3109_v14 }
0x20b7   : > { %v3110_v13 = vmul.f32 %v3108_v15, %v3108_v15 }
0x20b8   : > { %v3115_v18 = vsel %vm2074_vm10, %v3111_v16, 0.0 }
0x20b9   : > { %3116 = vadd.xlane.f32.xlu1 %v3115_v18  ;;  %v3112_v22 = vsel %vm336_vm1, %v3110_v13, 0.0 }
0x20ba   : > { %3113 = vadd.xlane.f32.xlu0 %v3112_v22 }
0x20ca   : > { %11353 = vrot.lane.b32.xlu1 %v11352_v23, %s11724_s20 }
0x20ce   : > { %3234 = vrot.lane.b32.xlu1 %v12484_v26, %s11724_s20 }
0x20d0   : > { %11348 = vrot.lane.b32.xlu0 %v11347_v25, %s11724_s20 }
0x20d4   : > { %3603 = vrot.lane.b32.xlu0 %v12490_v28, %s11726_s22 }
0x20d8   : > { %11363 = vrot.lane.b32.xlu0 %v11347_v25, %s11727_s23  ;;  %v12535_v25 = vadd.f32 %v12469_v31, %v12484_v26  ;;  %v12552_v31 = vld [vmem:[%s13670_s2 + $0x278] sm:$0xff] }
0x2146   : > { %v3117_v30 = vpop.xlane.xlu1 %3116 }
0x2147   : > { %v3119_v29 = vmul.f32 0.03125, %v3117_v30  ;;  %v3114_v27 = vpop.xlane.xlu0 %3113 }
0x2148   : > { %v3118_v57 = vmul.f32 0.03125, %v3114_v27 }
0x2149   : > { %v3121_v59 = vadd.f32 1e-05, %v3119_v29  ;;  %v12547_v29 = vld [vmem:[%s13670_s2 + $0x270] sm:$0xff] }
0x214a   : > { %v3120_v33 = vadd.f32 1e-05, %v3118_v57  ;;  %v11354_v54 = vpop.permute.xlu1 %11353 }
0x214b   : > { %11549 = vrsqrt.f32 %v3121_v59  ;;  %v11349_v34 = vpop.permute.xlu0 %11348  ;;  %v11356_v35 = vunpack.i.h.bf16 %v11354_v54  ;;  %v11355_v58 = vunpack.i.l.bf16 %v11354_v54  ;;  %v12556_v59 = vpack.c.bf16 %v12552_v31, %v12547_v29 }
0x214c   : > { %11551 = vrsqrt.f32 %v3120_v33  ;;  %v11351_v37 = vunpack.i.h.bf16 %v11349_v34  ;;  %v11350_v24 = vunpack.i.l.bf16 %v11349_v34  ;;  %v12568_v34 = vld [vmem:[%s13670_s2 + $0x280] sm:$0xff] }
0x214d   : > { %v12496_v40 = vpack.c.bf16 %v11356_v35, %v11355_v58  ;;  %v12573_v35 = vld [vmem:[%s13670_s2 + $0x288] sm:$0xff] }
0x214e   : > { %v12494_v39 = vpack.c.bf16 %v11351_v37, %v11350_v24  ;;  %v12520_v11 = vpop.permute.xlu1 %3234 }
0x214f   : > { %v12518_v2 = vpop.permute.xlu0 %3603 }
0x2150   : > { %10797 = vmatprep.subr.bf16.mxu1 %v12494_v39 }
0x2151   : > { %10799 = vmatpush3.bf16.msra.mxu1 %v12494_v39 }
0x2152   : > { %10801 = vmatprep.subr.bf16.mxu1 %v12496_v40 }
0x2153   : > { %v11364_v4 = vpop.permute.xlu0 %11363 }
0x2154   : > { %v11366_v8 = vunpack.i.h.bf16 %v11364_v4  ;;  %v11365_v9 = vunpack.i.l.bf16 %v11364_v4 }
0x2155   : > { %v11550_v42 = vpop.eup %11549  ;;  %10803 = vmatpush3.bf16.msra.mxu1 %v12496_v40 }
0x2156   : > { %v11552_v44 = vpop.eup %11551  ;;  %v3125_v47 = vmul.f32 %v11550_v42, %v3109_v14  ;;  %v12522_v12 = vpack.c.bf16 %v11366_v8, %v11365_v9  ;;  %v12579_v42 = vpack.c.bf16 %v12573_v35, %v12568_v34 }
0x2157   : > { %v3124_v48 = vmul.f32 %v11552_v44, %v3108_v15 }
0x2158   : > { %v3131_v52 = vmul.f32 %v9054_v53, %v3125_v47  ;;  %10805 = vmatprep.subr.bf16.mxu0 %v12522_v12 }
0x2159   : > { %v3130_v62 = vmul.f32 %v9054_v53, %v3124_v48  ;;  %10807 = vmatpush3.bf16.msra.mxu0 %v12522_v12 }
0x215a   : > { %v3137_v0 = vadd.f32 %v9055_v60, %v3131_v52 }
0x215b   : > { %v12508_v63 = vadd.f32 %v9055_v60, %v3130_v62 }
0x215d   : > { %9946 = vmatprep.mubr.msk.f32.mxu1 %vm336_vm1, %v12508_v63  ;;  %9957 = vmatprep.mubr.msk.f32.mxu0 %vm336_vm1, %v12508_v63 }
0x215e   : > { %9947 = vmatmul.mubr.msk.f32.vlgmr.msra.gmra.mrb[34].mxu1 %vm336_vm1, %v3137_v0 }
0x215f   : > { %9964 = vmatprep.mubr.msk.f32.mxu1 %vm477_vm2, %v12490_v28 }
0x2231   : > { %v9948_v14 = vpop.f32.mrb[34].mxu1 }
0x2232   : > { %v3315_v15 = vadd.f32 %v9948_v14, %v12520_v11  ;;  %v3309_v16 = vpop.f32.mrb[35].mxu1 }
0x2233   : > { %v3310_v13 = vadd.f32 %v3309_v16, %v12520_v11 }
0x2235   : > { %v11357_v18 = vpack.i.bf16 %v3315_v15, %v3310_v13  ;;  %v10812_v22 = vpack.c.bf16 %v3315_v15, %v3310_v13 }
0x2237   : > { %11358 = vrot.lane.b32.xlu1 %v11357_v18, %s11726_s22  ;;  %10814 = vmatprep.subr.msk.bf16.mxu1 %vm11924_vm3, %v10812_v22 }
0x2238   : > { %10817 = vmatpush3.bf16.xpose.msk.msra.mxu1 %vm11924_vm3, %v10812_v22 }
0x223b   : > { %3605 = vrot.lane.b32.xlu1 %v12535_v25, %s11726_s22 }
0x223f   : > { %11368 = vrot.lane.b32.xlu1 %v11352_v23, %s11727_s23  ;;  %9965 = vmatmul.mubr.msk.f32.vlgmr.msra.gmra.mrb[36].mxu1 %vm477_vm2, %v12535_v25 }
0x2240   : > { %9978 = vmatprep.mubr.msk.f32.mxu1 %vm477_vm2, %v12518_v2 }
0x22a9   : > { %v11359_v30 = vpop.permute.xlu1 %11358 }
0x22aa   : > { %v11361_v27 = vunpack.i.h.bf16 %v11359_v30  ;;  %v11360_v57 = vunpack.i.l.bf16 %v11359_v30 }
0x22ac   : > { %v10824_v23 = vpack.c.bf16 %v11361_v27, %v11360_v57 }
0x22ad   : > { %v12558_v33 = vpop.permute.xlu1 %3605 }
0x22ae   : > { %10826 = vmatprep.subr.msk.bf16.mxu1 %vm11924_vm3, %v10824_v23 }
0x22af   : > { %10829 = vmatpush3.bf16.xpose.msk.msra.mxu1 %vm11924_vm3, %v10824_v23 }
0x22b0   : > { %10845 = vmatprep.subr.bf16.mxu1 %v12556_v59 }
0x22b1   : > { %v11369_v54 = vpop.permute.xlu1 %11368 }
0x22b2   : > { %v11371_v58 = vunpack.i.h.bf16 %v11369_v54  ;;  %v11370_v37 = vunpack.i.l.bf16 %v11369_v54 }
0x22b4   : > { %v12575_v24 = vpack.c.bf16 %v11371_v58, %v11370_v37 }
0x22b6   : > { %10809 = vmatprep.subr.bf16.mxu0 %v12575_v24  ;;  %9979 = vmatmul.mubr.msk.f32.vlgmr.msra.gmra.mrb[38].mxu1 %vm477_vm2, %v12558_v33 }
0x22b7   : > { %10811 = vmatpush3.bf16.msra.mxu0 %v12575_v24  ;;  %10847 = vmatpush3.bf16.msra.mxu1 %v12556_v59 }
0x22b8   : > { %10007 = vmatprep.mubr.msk.f32.mxu1 %vm336_vm1, %v12508_v63  ;;  %10849 = vmatprep.subr.bf16.mxu1 %v12579_v42 }
0x22ba   : > { %9958 = vmatmul.mubr.msk.f32.vlgmr.msra.gmra.mrb[22].mxu0 %vm336_vm1, %v3137_v0 }
0x22bb   : > { %10851 = vmatpush3.bf16.msra.mxu1 %v12579_v42 }
0x22be   : > { %10008 = vmatmul.mubr.msk.f32.vlgmr.msra.gmra.mrb[40].mxu1 %vm336_vm1, %v3137_v0 }
0x2312   : > { %v9966_v53 = vpop.f32.mrb[36].mxu1 }
0x2313   : > { %v3496_v44 = vmul.f32 0.25, %v9966_v53  ;;  %v3486_v47 = vpop.f32.mrb[37].mxu1 }
0x2314   : > { %v3495_v48 = vmul.f32 0.25, %v3486_v47 }
0x2315   : > { %v3500_v60 = vsel %vm1658_vm5, %v3496_v44, -inf }
0x2316   : > { %3501 = vmax.xlane.f32.xlu1 %v3500_v60  ;;  %v3497_v52 = vsel %vm1658_vm5, %v3495_v48, -inf }
0x2317   : > { %3498 = vmax.xlane.f32.xlu0 %v3497_v52 }
0x2389   : > { %v9980_v62 = vpop.f32.mrb[38].mxu1 }
0x238a   : > { %v3685_v4 = vpop.f32.mrb[39].mxu1  ;;  %v3695_v9 = vmul.f32 0.25, %v9980_v62 }
0x238b   : > { %v3694_v8 = vmul.f32 0.25, %v3685_v4 }
0x238c   : > { %v3699_v13 = vsel %vm1658_vm5, %v3695_v9, -inf }
0x238d   : > { %v9959_v14 = vpop.f32.mrb[22].mxu0  ;;  %v3696_v15 = vsel %vm1658_vm5, %v3694_v8, -inf }
0x238e   : > { %v3399_v16 = vpop.f32.mrb[23].mxu0  ;;  %3697 = vmax.xlane.f32.xlu0 %v3696_v15 }
0x2391   : > { %v12595_v0 = vpop.f32.mrb[40].mxu1 }
0x2392   : > { %v12598_v18 = vpop.f32.mrb[41].mxu1  ;;  %3700 = vmax.xlane.f32.xlu0 %v3699_v13 }
0x23a3   : > { %v3502_v22 = vpop.xlane.xlu1 %3501 }
0x23a4   : > { %v3504_v30 = vsub.f32 %v3496_v44, %v3502_v22  ;;  %v3499_v27 = vpop.xlane.xlu0 %3498 }
0x23a5   : > { %v3503_v57 = vsub.f32 %v3495_v48, %v3499_v27 }
0x23a6   : > { %v3507_v23 = vmul.f32 1.442695, %v3504_v30 }
0x23a7   : > { %v3505_v54 = vmul.f32 1.442695, %v3503_v57 }
0x23a8   : > { %11553 = vpow2.f32 %v3507_v23  ;;  %3330 = vrot.lane.b32.xlu0 %v12484_v26, %s11727_s23 }
0x23a9   : > { %11555 = vpow2.f32 %v3505_v54 }
0x23b2   : > { %v11554_v58 = vpop.eup %11553 }
0x23b3   : > { %v3512_v37 = vsel %vm1658_vm5, %v11554_v58, 0.0  ;;  %v11556_v53 = vpop.eup %11555 }
0x23b4   : > { %3513 = vadd.xlane.f32.xlu1 %v3512_v37  ;;  %v3509_v47 = vsel %vm1658_vm5, %v11556_v53, 0.0 }
0x23b8   : > { %3510 = vadd.xlane.f32.xlu1 %v3509_v47 }
0x241b   : > { %v3698_v60 = vpop.xlane.xlu0 %3697 }
0x241c   : > { %v3702_v52 = vsub.f32 %v3694_v8, %v3698_v60 }
0x241e   : > { %v3704_v48 = vmul.f32 1.442695, %v3702_v52 }
0x241f   : > { %v3701_v44 = vpop.xlane.xlu0 %3700 }
0x2420   : > { %v3703_v62 = vsub.f32 %v3695_v9, %v3701_v44 }
0x2422   : > { %v3706_v4 = vmul.f32 1.442695, %v3703_v62 }
0x2423   : > { %v12604_v15 = vpop.permute.xlu0 %3330 }
0x2424   : > { %11557 = vpow2.f32 %v3706_v4  ;;  %v3400_v26 = vadd.f32 %v3399_v16, %v12604_v15  ;;  %v3405_v13 = vadd.f32 %v9959_v14, %v12604_v15 }
0x2425   : > { %11559 = vpow2.f32 %v3704_v48 }
0x2426   : > { %v10818_v22 = vpack.c.bf16 %v3405_v13, %v3400_v26  ;;  %v11372_v30 = vpack.i.bf16 %v3405_v13, %v3400_v26 }
0x2428   : > { %10820 = vmatprep.subr.msk.bf16.mxu0 %vm12125_vm9, %v10818_v22 }
0x2429   : > { %10823 = vmatpush3.bf16.msk.msra.mxu0 %vm12125_vm9, %v10818_v22 }
0x242e   : > { %v11558_v8 = vpop.eup %11557 }
0x242f   : > { %v3711_v9 = vsel %vm1658_vm5, %v11558_v8, 0.0  ;;  %v11560_v27 = vpop.eup %11559 }
0x2430   : > { %3712 = vadd.xlane.f32.xlu1 %v3711_v9  ;;  %v3708_v57 = vsel %vm1658_vm5, %v11560_v27, 0.0  ;;  %v1387_v9 = vld [vmem:[%s13670_s2 + $0x2d8] sm:$0xff] }
0x2434   : > { %3709 = vadd.xlane.f32.xlu1 %v3708_v57  ;;  %v1388_v57 = vld [vmem:[%s13670_s2 + $0x2e0] sm:$0xff] }
0x2441   : > { %v3514_v16 = vpop.xlane.xlu1 %3513 }
0x2442   : > { %11561 = vrcp.f32 %v3514_v16  ;;  %v12629_v16 = vpack.c.bf16 %v1388_v57, %v1387_v9  ;;  %v12662_v9 = vld [vmem:[%s13670_s2 + $0x293] ss:$0 sm:$0xff]  ;;  %v11387_v57 = vpack.i.bf16 %v12552_v31, %v12547_v29 }
0x2445   : > { %v3511_v14 = vpop.xlane.xlu1 %3510  ;;  %11373 = vrot.lane.b32.xlu1 %v11372_v30, %s11726_s22 }
0x2446   : > { %11563 = vrcp.f32 %v3511_v14 }
0x244c   : > { %v11562_v23 = vpop.eup %11561 }
0x244d   : > { %v3518_v47 = vmul.f32 %v11562_v23, %v11554_v58 }
0x2450   : > { %v11564_v54 = vpop.eup %11563 }
0x2451   : > { %v3516_v37 = vmul.f32 %v11564_v54, %v11556_v53 }
0x2453   : > { %9971 = vmatprep.mubr.msk.f32.mxu0 %vm1658_vm5, %v3516_v37 }
0x2454   : > { %9972 = vmatmul.mubr.msk.f32.vlgmr.msra.gmra.mrb[24].mxu0 %vm1658_vm5, %v3518_v47 }
0x24bd   : > { %v3713_v60 = vpop.xlane.xlu1 %3712 }
0x24be   : > { %11565 = vrcp.f32 %v3713_v60 }
0x24c1   : > { %v3710_v52 = vpop.xlane.xlu1 %3709 }
0x24c2   : > { %11567 = vrcp.f32 %v3710_v52 }
0x24c5   : > { %v11374_v44 = vpop.permute.xlu1 %11373 }
0x24c6   : > { %v11376_v62 = vunpack.i.h.bf16 %v11374_v44  ;;  %v11375_v48 = vunpack.i.l.bf16 %v11374_v44  ;;  %v9077_v44 = vld [vmem:[%s13670_s2 + $0x31a] ss:$0 sm:$0xff] }
0x24c8   : > { %v10830_v4 = vpack.c.bf16 %v11376_v62, %v11375_v48  ;;  %v11566_v26 = vpop.eup %11565 }
0x24c9   : > { %v3717_v13 = vmul.f32 %v11566_v26, %v11558_v8  ;;  %v1389_v8 = vld [vmem:[%s13670_s2 + $0x2e8] sm:$0xff] }
0x24ca   : > { %10832 = vmatprep.subr.msk.bf16.mxu0 %vm12125_vm9, %v10830_v4 }
0x24cb   : > { %10835 = vmatpush3.bf16.msk.msra.mxu0 %vm12125_vm9, %v10830_v4 }
0x24cc   : > { %v11568_v58 = vpop.eup %11567  ;;  %10837 = vmatprep.subr.bf16.mxu0 %v12629_v16 }
0x24cd   : > { %v3715_v53 = vmul.f32 %v11568_v58, %v11560_v27  ;;  %v1390_v27 = vld [vmem:[%s13670_s2 + $0x2f0] sm:$0xff] }
0x24ce   : > { %v12639_v14 = vpack.c.bf16 %v1390_v27, %v1389_v8 }
0x24cf   : > { %9985 = vmatprep.mubr.msk.f32.mxu0 %vm1658_vm5, %v3715_v53 }
0x24d0   : > { %9986 = vmatmul.mubr.msk.f32.vlgmr.msra.gmra.mrb[26].mxu0 %vm1658_vm5, %v3717_v13 }
0x24d1   : > { %10839 = vmatpush3.bf16.msra.mxu0 %v12629_v16 }
0x24d2   : > { %10841 = vmatprep.subr.bf16.mxu0 %v12639_v14 }
0x24d5   : > { %10843 = vmatpush3.bf16.msra.mxu0 %v12639_v14 }
0x2527   : > { %v9973_v22 = vpop.f32.mrb[24].mxu0 }
0x2528   : > { %v3594_v30 = vpop.f32.mrb[25].mxu0 }
0x25a3   : > { %v9987_v23 = vpop.f32.mrb[26].mxu0 }
0x25a4   : > { %v3798_v54 = vpop.f32.mrb[27].mxu0 }
0x25a5   : > { %3809 = vrot.lane.b32.xlu0 %v3798_v54, %s11729_s8 }
0x25a9   : > { %3811 = vrot.lane.b32.xlu0 %v9987_v23, %s11729_s8 }
0x2617   : > { %v3810_v37 = vpop.permute.xlu0 %3809 }
0x2618   : > { %v3815_v47 = vsel %vm477_vm2, %v3594_v30, %v3810_v37 }
0x2619   : > { %9996 = vmatprep.mubr.msk.f32.mxu0 %vm336_vm1, %v3815_v47 }
0x261b   : > { %v3812_v60 = vpop.permute.xlu0 %3811 }
0x261c   : > { %v3816_v52 = vsel %vm477_vm2, %v9973_v22, %v3812_v60  ;;  %v11382_v22 = vpack.i.bf16 %v12573_v35, %v12568_v34 }
0x261d   : > { %9997 = vmatmul.mubr.msk.f32.vlgmr.msra.gmra.mrb[28].mxu0 %vm336_vm1, %v3816_v52 }
0x26f0   : > { %v9998_v62 = vpop.f32.mrb[28].mxu0 }
0x26f1   : > { %v3899_v48 = vadd.f32 %v9998_v62, %v9077_v44  ;;  %v3893_v4 = vpop.f32.mrb[29].mxu0 }
0x26f2   : > { %v3894_v26 = vadd.f32 %v9077_v44, %v3893_v4 }
0x26f3   : > { %v3903_v58 = vadd.f32 %v3899_v48, %v12236_v51 }
0x26f4   : > { %v3902_v53 = vadd.f32 %v3894_v26, %v12243_v56 }
0x26f5   : > { %v3907_v13 = vsel %vm336_vm1, %v3903_v58, 0.0 }
0x26f6   : > { %3908 = vadd.xlane.f32.xlu1 %v3907_v13  ;;  %v3904_v30 = vsel %vm336_vm1, %v3902_v53, 0.0 }
0x26f7   : > { %3905 = vadd.xlane.f32.xlu0 %v3904_v30 }
0x2707   : > { %11383 = vrot.lane.b32.xlu1 %v11382_v22, %s11724_s20 }
0x270b   : > { %4040 = vrot.lane.b32.xlu1 %v12662_v9, %s11724_s20 }
0x270f   : > { %11388 = vrot.lane.b32.xlu1 %v11387_v57, %s11727_s23 }
0x2783   : > { %v3909_v8 = vpop.xlane.xlu1 %3908 }
0x2784   : > { %v3911_v27 = vmul.f32 0.03125, %v3909_v8  ;;  %v3906_v23 = vpop.xlane.xlu0 %3905 }
0x2785   : > { %v3910_v54 = vmul.f32 0.03125, %v3906_v23 }
0x2786   : > { %v3913_v34 = vsub.f32 %v3903_v58, %v3911_v27 }
0x2787   : > { %v3912_v35 = vsub.f32 %v3902_v53, %v3910_v54  ;;  %v11384_v44 = vpop.permute.xlu1 %11383 }
0x2788   : > { %v3915_v37 = vmul.f32 %v3913_v34, %v3913_v34  ;;  %v11386_v27 = vunpack.i.h.bf16 %v11384_v44 }
0x2789   : > { %v3914_v60 = vmul.f32 %v3912_v35, %v3912_v35 }
0x278a   : > { %v3919_v47 = vsel %vm336_vm1, %v3915_v37, 0.0 }
0x278b   : > { %3920 = vadd.xlane.f32.xlu0 %v3919_v47  ;;  %v3916_v52 = vsel %vm336_vm1, %v3914_v60, 0.0  ;;  %v12671_v62 = vpop.permute.xlu1 %4040 }
0x278c   : > { %13719 = vst [vmem:[#allocation3_spill] sm:$0xff] %v12671_v62 }
0x278f   : > { %3917 = vadd.xlane.f32.xlu0 %v3916_v52  ;;  %v11389_v29 = vpop.permute.xlu1 %11388 }
0x2790   : > { %v11391_v31 = vunpack.i.h.bf16 %v11389_v29  ;;  %v11390_v48 = vunpack.i.l.bf16 %v11389_v29 }
0x2792   : > { %v12675_v4 = vpack.c.bf16 %v11391_v31, %v11390_v48 }
0x2794   : > { %10861 = vmatprep.subr.bf16.mxu1 %v12675_v4 }
0x2795   : > { %10863 = vmatpush3.bf16.msra.mxu1 %v12675_v4 }
0x27a5   : > { %11378 = vrot.lane.b32.xlu0 %v11387_v57, %s11724_s20  ;;  %v11385_v57 = vunpack.i.l.bf16 %v11384_v44 }
0x27a9   : > { %11393 = vrot.lane.b32.xlu0 %v11382_v22, %s11727_s23  ;;  %v12679_v22 = vpack.c.bf16 %v11386_v27, %v11385_v57  ;;  %v11685_v57 = vld [vmem:[%s13670_s2 + $0x1f0] sm:$0xff] }
0x2818   : > { %v3921_v26 = vpop.xlane.xlu0 %3920 }
0x2819   : > { %v3923_v58 = vmul.f32 0.03125, %v3921_v26  ;;  %v9080_v26 = vld [vmem:[%s13670_s2 + $0x323] ss:$0 sm:$0xff] }
0x281b   : > { %v3925_v53 = vadd.f32 1e-05, %v3923_v58 }
0x281c   : > { %v3918_v13 = vpop.xlane.xlu0 %3917 }
0x281d   : > { %11569 = vrsqrt.f32 %v3925_v53  ;;  %v3922_v30 = vmul.f32 0.03125, %v3918_v13  ;;  %v9081_v13 = vld [vmem:[%s13670_s2 + $0x32b] ss:$0 sm:$0xff] }
0x281f   : > { %v3924_v8 = vadd.f32 1e-05, %v3922_v30 }
0x2820   : > { %v11379_v23 = vpop.permute.xlu0 %11378 }
0x2821   : > { %11571 = vrsqrt.f32 %v3924_v8  ;;  %v11381_v54 = vunpack.i.h.bf16 %v11379_v23  ;;  %v11380_v37 = vunpack.i.l.bf16 %v11379_v23 }
0x2823   : > { %v12681_v47 = vpack.c.bf16 %v11381_v54, %v11380_v37  ;;  %v4015_v37 = vadd.f32 %v12662_v9, %v12598_v18  ;;  %v4020_v18 = vadd.f32 %v12595_v0, %v12662_v9 }
0x2824   : > { %v11394_v60 = vpop.permute.xlu0 %11393 }
0x2825   : > { %v11396_v52 = vunpack.i.h.bf16 %v11394_v60  ;;  %v11395_v29 = vunpack.i.l.bf16 %v11394_v60  ;;  %10853 = vmatprep.subr.bf16.mxu0 %v12681_v47 }
0x2826   : > { %10855 = vmatpush3.bf16.msra.mxu0 %v12681_v47 }
0x2827   : > { %v11570_v31 = vpop.eup %11569  ;;  %v12685_v48 = vpack.c.bf16 %v11396_v52, %v11395_v29  ;;  %10857 = vmatprep.subr.bf16.mxu0 %v12679_v22 }
0x2828   : > { %v3929_v44 = vmul.f32 %v11570_v31, %v3913_v34 }
0x2829   : > { %10865 = vmatprep.subr.bf16.mxu1 %v12685_v48 }
0x282a   : > { %10867 = vmatpush3.bf16.msra.mxu1 %v12685_v48  ;;  %10859 = vmatpush3.bf16.msra.mxu0 %v12679_v22  ;;  %v3935_v53 = vmul.f32 %v9080_v26, %v3929_v44 }
0x282b   : > { %v11572_v58 = vpop.eup %11571 }
0x282c   : > { %v3928_v30 = vmul.f32 %v11572_v58, %v3912_v35  ;;  %v12697_v27 = vadd.f32 %v9081_v13, %v3935_v53  ;;  %v11686_v35 = vld [vmem:[%s13670_s2 + $0x1f8] sm:$0xff] }
0x282e   : > { %v3934_v8 = vmul.f32 %v9080_v26, %v3928_v30  ;;  %v3943_v54 = vadd.f32 %v11686_v35, %v12697_v27 }
0x2830   : > { %v12699_v34 = vadd.f32 %v9081_v13, %v3934_v8 }
0x2832   : > { %10029 = vmatprep.mubr.msk.f32.mxu1 %vm336_vm1, %v12699_v34  ;;  %v3942_v23 = vadd.f32 %v11685_v57, %v12699_v34 }
0x2833   : > { %10030 = vmatmul.mubr.msk.f32.vlgmr.msra.gmra.mrb[42].mxu1 %vm336_vm1, %v12697_v27 }
0x2834   : > { %10018 = vmatprep.mubr.msk.f32.mxu0 %vm336_vm1, %v3942_v23 }
0x2835   : > { %10019 = vmatmul.mubr.msk.f32.vlgmr.msra.gmra.mrb[30].mxu0 %vm336_vm1, %v3943_v54 }
0x2836   : > { %10036 = vmatprep.mubr.msk.f32.mxu0 %vm477_vm2, %v4015_v37 }
0x2906   : > { %v10031_v60 = vpop.f32.mrb[42].mxu1 }
0x2907   : > { %v4211_v52 = vpop.f32.mrb[43].mxu1 }
0x2908   : > { %v10020_v29 = vpop.f32.mrb[30].mxu0 }
0x2909   : > { %v4121_v31 = vadd.f32 %v10020_v29, %v12671_v62  ;;  %v4115_v44 = vpop.f32.mrb[31].mxu0 }
0x290a   : > { %v4116_v26 = vadd.f32 %v4115_v44, %v12671_v62 }
0x290c   : > { %v11397_v58 = vpack.i.bf16 %v4121_v31, %v4116_v26  ;;  %v10868_v53 = vpack.c.bf16 %v4121_v31, %v4116_v26 }
0x290e   : > { %10870 = vmatprep.subr.msk.bf16.mxu0 %vm11924_vm3, %v10868_v53 }
0x290f   : > { %10873 = vmatpush3.bf16.xpose.msk.msra.mxu0 %vm11924_vm3, %v10868_v53 }
0x2916   : > { %10037 = vmatmul.mubr.msk.f32.vlgmr.msra.gmra.mrb[32].mxu0 %vm477_vm2, %v4020_v18 }
0x29e9   : > { %v10038_v13 = vpop.f32.mrb[32].mxu0 }
0x29ea   : > { %v4308_v30 = vmul.f32 0.25, %v10038_v13  ;;  %v4298_v8 = vpop.f32.mrb[33].mxu0 }
0x29eb   : > { %v4307_v57 = vmul.f32 0.25, %v4298_v8 }
0x29ec   : > { %v4312_v23 = vsel %vm2486_vm11, %v4308_v30, -inf }
0x29ed   : > { %4313 = vmax.xlane.f32.xlu0 %v4312_v23  ;;  %v4309_v35 = vsel %vm477_vm2, %v4307_v57, -inf }
0x29ee   : > { %4310 = vmax.xlane.f32.xlu1 %v4309_v35 }
0x29ff   : > { %4136 = vrot.lane.b32.xlu1 %v12662_v9, %s11727_s23 }
0x2a03   : > { %4412 = vrot.lane.b32.xlu1 %v4015_v37, %s11726_s22 }
0x2a07   : > { %4414 = vrot.lane.b32.xlu1 %v4020_v18, %s11726_s22 }
0x2a7a   : > { %v4314_v0 = vpop.xlane.xlu0 %4313 }
0x2a7b   : > { %v4316_v54 = vsub.f32 %v4308_v30, %v4314_v0  ;;  %v4311_v29 = vpop.xlane.xlu1 %4310 }
0x2a7c   : > { %v4315_v31 = vsub.f32 %v4307_v57, %v4311_v29 }
0x2a7d   : > { %v4319_v44 = vmul.f32 1.442695, %v4316_v54 }
0x2a7e   : > { %v4317_v26 = vmul.f32 1.442695, %v4315_v31 }
0x2a7f   : > { %11573 = vpow2.f32 %v4319_v44  ;;  %v12733_v53 = vpop.permute.xlu1 %4136  ;;  %v1424_v44 = vld [vmem:[%s13670_s2 + $0x3a0] sm:$0xff] }
0x2a80   : > { %13720 = vst [vmem:[#allocation4_spill] sm:$0xff] %v12733_v53  ;;  %v4212_v13 = vadd.f32 %v4211_v52, %v12733_v53  ;;  %v4217_v8 = vadd.f32 %v10031_v60, %v12733_v53  ;;  %11575 = vpow2.f32 %v4317_v26 }
0x2a82   : > { %v10874_v23 = vpack.c.bf16 %v4217_v8, %v4212_v13  ;;  %v11402_v9 = vpack.i.bf16 %v4217_v8, %v4212_v13 }
0x2a84   : > { %10875 = vmatprep.subr.bf16.mxu1 %v10874_v23 }
0x2a85   : > { %10877 = vmatpush3.bf16.msra.mxu1 %v10874_v23 }
0x2a89   : > { %v11574_v37 = vpop.eup %11573 }
0x2a8a   : > { %v4324_v18 = vsel %vm2486_vm11, %v11574_v37, 0.0  ;;  %v11576_v30 = vpop.eup %11575 }
0x2a8b   : > { %4325 = vadd.xlane.f32.xlu0 %v4324_v18  ;;  %v4321_v57 = vsel %vm477_vm2, %v11576_v30, 0.0  ;;  %v4413_v18 = vpop.permute.xlu1 %4412 }
0x2a8f   : > { %4322 = vadd.xlane.f32.xlu0 %v4321_v57  ;;  %v1426_v57 = vld [vmem:[%s13670_s2 + $0x3b0] sm:$0xff] }
0x2aa5   : > { %11398 = vrot.lane.b32.xlu0 %v11397_v58, %s11726_s22  ;;  %v1425_v58 = vld [vmem:[%s13670_s2 + $0x3a8] sm:$0xff] }
0x2aa6   : > { %v12748_v23 = vpack.c.bf16 %v1425_v58, %v1424_v44 }
0x2aa8   : > { %13721 = vst [vmem:[#allocation5_spill] sm:$0xff] %v12748_v23 }
0x2b18   : > { %v4326_v35 = vpop.xlane.xlu0 %4325 }
0x2b19   : > { %11577 = vrcp.f32 %v4326_v35  ;;  %v4415_v35 = vpop.permute.xlu1 %4414 }
0x2b1c   : > { %v4323_v52 = vpop.xlane.xlu0 %4322 }
0x2b1d   : > { %11579 = vrcp.f32 %v4323_v52 }
0x2b20   : > { %v11399_v60 = vpop.permute.xlu0 %11398 }
0x2b21   : > { %v11401_v0 = vunpack.i.h.bf16 %v11399_v60  ;;  %v11400_v54 = vunpack.i.l.bf16 %v11399_v60 }
0x2b23   : > { %v10878_v29 = vpack.c.bf16 %v11401_v0, %v11400_v54  ;;  %v11578_v31 = vpop.eup %11577 }
0x2b24   : > { %v4330_v8 = vmul.f32 %v11578_v31, %v11574_v37  ;;  %v1427_v37 = vld [vmem:[%s13670_s2 + $0x3b8] sm:$0xff] }
0x2b25   : > { %10880 = vmatprep.subr.msk.bf16.mxu1 %vm11924_vm3, %v10878_v29 }
0x2b27   : > { %v11580_v26 = vpop.eup %11579 }
0x2b28   : > { %v4328_v13 = vmul.f32 %v11580_v26, %v11576_v30  ;;  %v12762_v30 = vpack.c.bf16 %v1427_v37, %v1426_v57 }
0x2b2a   : > { %10043 = vmatprep.mubr.msk.f32.mxu1 %vm477_vm2, %v4328_v13  ;;  %13722 = vst [vmem:[#allocation6_spill] sm:$0xff] %v12762_v30 }
0x2b2b   : > { %10044 = vmatmul.mubr.msk.f32.vlgmr.msra.gmra.mrb[44].mxu1 %vm477_vm2, %v4330_v8 }
0x2b2c   : > { %10883 = vmatpush3.bf16.xpose.msk.msra.mxu1 %vm11924_vm3, %v10878_v29  ;;  %10050 = vmatprep.mubr.msk.f32.mxu1 %vm477_vm2, %v4413_v18 }
0x2b2d   : > { %10897 = vmatprep.subr.bf16.mxu1 %v12748_v23 }
0x2b33   : > { %10051 = vmatmul.mubr.msk.f32.vlgmr.msra.gmra.mrb[46].mxu1 %vm477_vm2, %v4415_v35 }
0x2b34   : > { %10899 = vmatpush3.bf16.msra.mxu1 %v12748_v23  ;;  %10079 = vmatprep.mubr.msk.f32.mxu1 %vm336_vm1, %v12699_v34 }
0x2b35   : > { %10901 = vmatprep.subr.bf16.mxu1 %v12762_v30 }
0x2b38   : > { %10903 = vmatpush3.bf16.msra.mxu1 %v12762_v30 }
0x2b39   : > { %10908 = vmatprep.subr.bf16.mxu1 %v13673_v3 }
0x2b3b   : > { %10080 = vmatmul.mubr.msk.f32.vlgmr.msra.gmra.mrb[48].mxu1 %vm336_vm1, %v12697_v27 }
0x2bfe   : > { %v12773_v52 = vpop.f32.mrb[44].mxu1 }
0x2bff   : > { %v12775_v60 = vpop.f32.mrb[45].mxu1 }
0x2c06   : > { %v10052_v0 = vpop.f32.mrb[46].mxu1 }
0x2c07   : > { %v4504_v54 = vmul.f32 0.25, %v10052_v0  ;;  %v4494_v29 = vpop.f32.mrb[47].mxu1 }
0x2c08   : > { %v4503_v31 = vmul.f32 0.25, %v4494_v29 }
0x2c09   : > { %v4508_v44 = vsel %vm2486_vm11, %v4504_v54, -inf }
0x2c0a   : > { %4509 = vmax.xlane.f32.xlu0 %v4508_v44  ;;  %v4505_v34 = vsel %vm477_vm2, %v4503_v31, -inf }
0x2c0b   : > { %4506 = vmax.xlane.f32.xlu1 %v4505_v34 }
0x2c0e   : > { %v10081_v58 = vpop.f32.mrb[48].mxu1 }
0x2c0f   : > { %v4781_v26 = vpop.f32.mrb[49].mxu1 }
0x2c1c   : > { %11403 = vrot.lane.b32.xlu1 %v11402_v9, %s11726_s22 }
0x2c97   : > { %v4510_v13 = vpop.xlane.xlu0 %4509 }
0x2c98   : > { %v4512_v27 = vsub.f32 %v4504_v54, %v4510_v13  ;;  %v4507_v8 = vpop.xlane.xlu1 %4506 }
0x2c99   : > { %v4511_v18 = vsub.f32 %v4503_v31, %v4507_v8 }
0x2c9a   : > { %v4515_v57 = vmul.f32 1.442695, %v4512_v27 }
0x2c9b   : > { %v4513_v37 = vmul.f32 1.442695, %v4511_v18 }
0x2c9c   : > { %v11404_v35 = vpop.permute.xlu1 %11403 }
0x2c9d   : > { %11581 = vpow2.f32 %v4513_v37  ;;  %v11406_v0 = vunpack.i.h.bf16 %v11404_v35  ;;  %v11405_v29 = vunpack.i.l.bf16 %v11404_v35  ;;  %v1399_v37 = vld [vmem:[%s13670_s2 + $0x308] sm:$0xff] }
0x2c9e   : > { %11583 = vpow2.f32 %v4515_v57  ;;  %v1398_v57 = vld [vmem:[%s13670_s2 + $0x300] sm:$0xff] }
0x2c9f   : > { %v10884_v3 = vpack.c.bf16 %v11406_v0, %v11405_v29  ;;  %v1429_v29 = vld [vmem:[%s13670_s2 + $0x3c8] sm:$0xff] }
0x2ca1   : > { %10885 = vmatprep.subr.bf16.mxu0 %v10884_v3 }
0x2ca2   : > { %10887 = vmatpush3.bf16.msra.mxu0 %v10884_v3  ;;  %v1397_v3 = vld [vmem:[%s13670_s2 + $0x2f8] sm:$0xff] }
0x2ca3   : > { %v12793_v35 = vpack.c.bf16 %v1398_v57, %v1397_v3 }
0x2ca5   : > { %13723 = vst [vmem:[#allocation7_spill] sm:$0xff] %v12793_v35  ;;  %10889 = vmatprep.subr.bf16.mxu0 %v12793_v35 }
0x2ca7   : > { %v11582_v44 = vpop.eup %11581 }
0x2ca8   : > { %v4517_v34 = vsel %vm477_vm2, %v11582_v44, 0.0  ;;  %v11584_v30 = vpop.eup %11583 }
0x2ca9   : > { %4518 = vadd.xlane.f32.xlu0 %v4517_v34  ;;  %v4520_v9 = vsel %vm2486_vm11, %v11584_v30, 0.0 }
0x2cad   : > { %4521 = vadd.xlane.f32.xlu0 %v4520_v9 }
0x2d36   : > { %v4519_v54 = vpop.xlane.xlu0 %4518 }
0x2d37   : > { %11585 = vrcp.f32 %v4519_v54 }
0x2d3a   : > { %v4522_v31 = vpop.xlane.xlu0 %4521 }
0x2d3b   : > { %11587 = vrcp.f32 %v4522_v31  ;;  %v9104_v31 = vld [vmem:[%s13670_s2 + $0x3c0] ss:$0 sm:$0xff] }
0x2d41   : > { %v11586_v13 = vpop.eup %11585 }
0x2d42   : > { %v4524_v27 = vmul.f32 %v11586_v13, %v11582_v44  ;;  %v1430_v44 = vld [vmem:[%s13670_s2 + $0x3d0] sm:$0xff]  ;;  %v4782_v13 = vadd.f32 %v9104_v31, %v4781_v26 }
0x2d43   : > { %v12810_v34 = vpack.c.bf16 %v1430_v44, %v1429_v29 }
0x2d44   : > { %10057 = vmatprep.mubr.msk.f32.mxu0 %vm477_vm2, %v4524_v27  ;;  %v4787_v27 = vadd.f32 %v10081_v58, %v9104_v31 }
0x2d45   : > { %v11588_v8 = vpop.eup %11587  ;;  %13725 = vst [vmem:[#allocation9_spill] sm:$0xff] %v12810_v34 }
0x2d46   : > { %v4526_v18 = vmul.f32 %v11588_v8, %v11584_v30  ;;  %v1400_v30 = vld [vmem:[%s13670_s2 + $0x310] sm:$0xff]  ;;  %v4790_v8 = vmul.f32 %v4782_v13, %v4782_v13 }
0x2d47   : > { %v12798_v0 = vpack.c.bf16 %v1400_v30, %v1399_v37 }
0x2d48   : > { %10058 = vmatmul.mubr.msk.f32.vlgmr.msra.gmra.mrb[34].mxu0 %vm477_vm2, %v4526_v18  ;;  %v4791_v18 = vmul.f32 %v4787_v27, %v4787_v27  ;;  %v4792_v3 = vmul.f32 %v4790_v8, %v4782_v13 }
0x2d49   : > { %13724 = vst [vmem:[#allocation8_spill] sm:$0xff] %v12798_v0  ;;  %10891 = vmatpush3.bf16.msra.mxu0 %v12793_v35 }
0x2d4a   : > { %10893 = vmatprep.subr.bf16.mxu0 %v12798_v0  ;;  %v4793_v57 = vmul.f32 %v4791_v18, %v4787_v27  ;;  %v4794_v37 = vmul.f32 0.044715, %v4792_v3 }
0x2d4c   : > { %v4795_v30 = vmul.f32 0.044715, %v4793_v57  ;;  %v4796_v29 = vadd.f32 %v4794_v37, %v4782_v13  ;;  %v1438_v57 = vld [vmem:[%s13670_s2 + $0x410] sm:$0xff]  ;;  %v1439_v37 = vld [vmem:[%s13670_s2 + $0x418] sm:$0xff] }
0x2d4d   : > { %10895 = vmatpush3.bf16.msra.mxu0 %v12798_v0 }
0x2d4e   : > { %10905 = vmatprep.subr.bf16.mxu0 %v12810_v34  ;;  %v4797_v44 = vadd.f32 %v4795_v30, %v4787_v27  ;;  %v4798_v0 = vmul.f32 0.7978846, %v4796_v29  ;;  %v12863_v30 = vpack.c.bf16 %v1439_v37, %v1438_v57  ;;  %v1440_v29 = vld [vmem:[%s13670_s2 + $0x420] sm:$0xff]  ;;  %v9107_v57 = vld [vmem:[%s13670_s2 + $0x3d8] ss:$0 sm:$0xff]  ;;  %v13688_v37 = vmov 0.0  }
0x2d4f   : > { %10121 = vmatprep.mubr.msk.f32.mxu1 %vm11731_vm12, %v13688_v37 }
0x2d50   : > { %v4799_v35 = vmul.f32 0.7978846, %v4797_v44  ;;  %11589 = vtanh.f32 %v4798_v0  ;;  %v1441_v44 = vld [vmem:[%s13670_s2 + $0x428] sm:$0xff] }
0x2d52   : > { %11591 = vtanh.f32 %v4799_v35 }
0x2e1b   : > { %v10059_v9 = vpop.f32.mrb[34].mxu0 }
0x2e1c   : > { %4620 = vrot.lane.b32.xlu1 %v10059_v9, %s11729_s8  ;;  %v4607_v54 = vpop.f32.mrb[35].mxu0  ;;  %v11590_v9 = vpop.eup %11589 }
0x2e1d   : > { %4618 = vrot.lane.b32.xlu0 %v4607_v54, %s11729_s8  ;;  %v11592_v54 = vpop.eup %11591  ;;  %v4802_v23 = vadd.f32 1.0, %v11590_v9  ;;  %v12873_v9 = vpack.c.bf16 %v1441_v44, %v1440_v29 }
0x2e1e   : > { %v4803_v62 = vadd.f32 1.0, %v11592_v54  ;;  %v1442_v54 = vld [vmem:[%s13670_s2 + $0x430] sm:$0xff] }
0x2e1f   : > { %v4804_v53 = vmul.f32 0.5, %v4802_v23  ;;  %v13726_v23 = vmov 0.0|0.0   ;;  %13727 = vst [vmem:[#allocation10_spill] sm:$0xff] %v12873_v9 }
0x2e20   : > { %v4805_v58 = vmul.f32 0.5, %v4803_v62  ;;  %v1432_v62 = vld [vmem:[%s13670_s2 + $0x3e0] sm:$0xff] }
0x2e21   : > { %v4806_v18 = vmul.f32 %v4804_v53, %v4782_v13  ;;  %v1434_v53 = vld [vmem:[%s13670_s2 + $0x3f0] sm:$0xff]  ;;  %v1436_v13 = vld [vmem:[%s13670_s2 + $0x400] sm:$0xff] }
0x2e22   : > { %v4807_v35 = vmul.f32 %v4805_v58, %v4787_v27  ;;  %v1437_v27 = vld [vmem:[%s13670_s2 + $0x408] sm:$0xff] }
0x2e23   : > { %v12853_v3 = vpack.c.bf16 %v1437_v27, %v1436_v13 }
0x2e26   : > { %v13757_v32 = vld [vmem:[#allocation10_spill] sm:$0xff] }
0x2e8e   : > { %v4621_v56 = vpop.permute.xlu1 %4620 }
0x2e8f   : > { %v4619_v26 = vpop.permute.xlu0 %4618  ;;  %v4625_v8 = vsel %vm477_vm2, %v12773_v52, %v4621_v56  ;;  %v1433_v56 = vld [vmem:[%s13670_s2 + $0x3e8] sm:$0xff] }
0x2e90   : > { %v4624_v31 = vsel %vm477_vm2, %v12775_v60, %v4619_v26  ;;  %v12837_v52 = vpack.c.bf16 %v1433_v56, %v1432_v62  ;;  %v1435_v60 = vld [vmem:[%s13670_s2 + $0x3f8] sm:$0xff] }
0x2e91   : > { %10068 = vmatprep.mubr.msk.f32.mxu0 %vm336_vm1, %v4624_v31  ;;  %v12843_v0 = vpack.c.bf16 %v1435_v60, %v1434_v53  ;;  %v1443_v26 = vld [vmem:[%s13670_s2 + $0x438] sm:$0xff]  ;;  %v1444_v31 = vld [vmem:[%s13670_s2 + $0x440] sm:$0xff] }
0x2e92   : > { %10069 = vmatmul.mubr.msk.f32.vlgmr.msra.gmra.mrb[36].mxu0 %vm336_vm1, %v4625_v8  ;;  %10910 = vmatpush3.bf16.msra.mxu1 %v12837_v52  ;;  %v12883_v58 = vpack.c.bf16 %v1443_v26, %v1442_v54  ;;  %v1445_v8 = vld [vmem:[%s13670_s2 + $0x448] sm:$0xff]  ;;  %v1447_v62 = vld [vmem:[%s13670_s2 + $0x458] sm:$0xff] }
0x2e93   : > { %10907 = vmatpush3.bf16.msra.mxu0 %v12810_v34  ;;  %10086 = vmatprep.mubr.msk.f32.mxu0 %vm477_vm2, %v4806_v18  ;;  %v12894_v18 = vpack.c.bf16 %v1445_v8, %v1444_v31  ;;  %v9101_v53 = vld [vmem:[%s13670_s2 + $0x31b] ss:$0 sm:$0xff] }
0x2e94   : > { %10932 = vmatprep.subr.bf16.mxu0 %v13726_v23  ;;  %10911 = vmatprep.subr.bf16.mxu1 %v13726_v23  ;;  %13728 = vst [vmem:[#allocation11_spill] sm:$0xff] %v12883_v58 }
0x2e95   : > { %13729 = vst [vmem:[#allocation12_spill] sm:$0xff] %v12894_v18 }
0x2e96   : > { %10087 = vmatmul.mubr.msk.f32.vlgmr.msra.gmra.mrb[38].mxu0 %vm477_vm2, %v4807_v35  ;;  %10913 = vmatpush3.bf16.msra.mxu1 %v12843_v0  ;;  %v1446_v35 = vld [vmem:[%s13670_s2 + $0x450] sm:$0xff] }
0x2e97   : > { %10914 = vmatprep.subr.bf16.mxu1 %v13726_v23  ;;  %v12904_v56 = vpack.c.bf16 %v1447_v62, %v1446_v35  ;;  %10156 = vmatprep.mubr.msk.f32.mxu0 %vm11731_vm12, %v13688_v37 }
0x2e99   : > { %13730 = vst [vmem:[#allocation13_spill] sm:$0xff] %v12904_v56 }
0x2e9a   : > { %10916 = vmatpush3.bf16.msra.mxu1 %v12853_v3 }
0x2e9b   : > { %10917 = vmatprep.subr.bf16.mxu1 %v13726_v23 }
0x2e9e   : > { %10919 = vmatpush3.bf16.msra.mxu1 %v12863_v30 }
0x2e9f   : > { %10920 = vmatprep.subr.bf16.mxu1 %v13726_v23 }
0x2ea2   : > { %10922 = vmatpush3.bf16.msra.mxu1 %v12873_v9 }
0x2ea3   : > { %10923 = vmatprep.subr.bf16.mxu1 %v13726_v23 }
0x2ea6   : > { %10925 = vmatpush3.bf16.msra.mxu1 %v12883_v58 }
0x2ea7   : > { %10926 = vmatprep.subr.bf16.mxu1 %v13726_v23 }
0x2eaa   : > { %10928 = vmatpush3.bf16.msra.mxu1 %v12894_v18 }
0x2eab   : > { %10929 = vmatprep.subr.bf16.mxu1 %v13726_v23 }
0x2eae   : > { %10931 = vmatpush3.bf16.msra.mxu1 %v12904_v56 }
0x2eaf   : > { %10956 = vmatprep.subr.bf16.mxu1 %v13726_v23 }
0x2f65   : > { %v10070_v60 = vpop.f32.mrb[36].mxu0 }
0x2f66   : > { %v4702_v13 = vpop.f32.mrb[37].mxu0 }
0x2f67   : > { %v4703_v27 = vadd.f32 %v9101_v53, %v4702_v13 }
0x2f69   : > { %v12919_v29 = vadd.f32 %v4703_v27, %v12508_v63  ;;  %v10088_v44 = vpop.f32.mrb[38].mxu0 }
0x2f6a   : > { %v4890_v54 = vadd.f32 %v10088_v44, %v9107_v57  ;;  %v4884_v26 = vpop.f32.mrb[39].mxu0 }
0x2f6b   : > { %v4885_v31 = vadd.f32 %v9107_v57, %v4884_v26  ;;  %4918 = vrot.lane.b32.xlu0 %v12919_v29, %s11724_s20  ;;  %4912 = vrot.lane.b32.xlu1 %v12919_v29, %s11733_s25 }
0x2f6c   : > { %v4894_v8 = vmul.f32 %v4890_v54, %v4890_v54 }
0x2f6d   : > { %v4893_v35 = vmul.f32 %v4885_v31, %v4885_v31 }
0x2f6e   : > { %v4896_v62 = vmul.f32 %v4894_v8, %v4890_v54 }
0x2f6f   : > { %v4895_v53 = vmul.f32 %v4893_v35, %v4885_v31  ;;  %4915 = vrot.lane.b32.xlu1 %v12919_v29, %s11727_s23  ;;  %v1449_v35 = vld [vmem:[%s13670_s2 + $0x468] sm:$0xff] }
0x2f70   : > { %v4898_v63 = vmul.f32 0.044715, %v4896_v62  ;;  %v1450_v62 = vld [vmem:[%s13670_s2 + $0x470] sm:$0xff] }
0x2f71   : > { %v4897_v60 = vmul.f32 0.044715, %v4895_v53  ;;  %v1451_v53 = vld [vmem:[%s13670_s2 + $0x478] sm:$0xff] }
0x2f72   : > { %v4900_v13 = vadd.f32 %v4898_v63, %v4890_v54  ;;  %v12940_v63 = vpack.c.bf16 %v1450_v62, %v1449_v35  ;;  %v1460_v35 = vld [vmem:[%s13670_s2 + $0x4c0] sm:$0xff] }
0x2f73   : > { %v4899_v27 = vadd.f32 %v4897_v60, %v4885_v31  ;;  %v1456_v60 = vld [vmem:[%s13670_s2 + $0x4a0] sm:$0xff] }
0x2f74   : > { %v4902_v44 = vmul.f32 0.7978846, %v4900_v13  ;;  %13731 = vst [vmem:[#allocation14_spill] sm:$0xff] %v12940_v63  ;;  %10934 = vmatpush3.bf16.msra.mxu0 %v12940_v63 }
0x2f75   : > { %v4901_v57 = vmul.f32 0.7978846, %v4899_v27  ;;  %10935 = vmatprep.subr.bf16.mxu0 %v13726_v23  ;;  %v1457_v27 = vld [vmem:[%s13670_s2 + $0x4a8] sm:$0xff] }
0x2f76   : > { %11593 = vtanh.f32 %v4902_v44  ;;  %v1458_v44 = vld [vmem:[%s13670_s2 + $0x4b0] sm:$0xff] }
0x2f77   : > { %11595 = vtanh.f32 %v4901_v57  ;;  %v12981_v57 = vpack.c.bf16 %v1458_v44, %v1457_v27 }
0x2f79   : > { %13735 = vst [vmem:[#allocation18_spill] sm:$0xff] %v12981_v57 }
0x2f80   : > { %v11594_v26 = vpop.eup %11593 }
0x2f81   : > { %v11596_v37 = vpop.eup %11595  ;;  %v4906_v34 = vadd.f32 1.0, %v11594_v26  ;;  %v1459_v26 = vld [vmem:[%s13670_s2 + $0x4b8] sm:$0xff] }
0x2f82   : > { %v4905_v56 = vadd.f32 1.0, %v11596_v37  ;;  %v1454_v37 = vld [vmem:[%s13670_s2 + $0x490] sm:$0xff]  ;;  %v12991_v62 = vpack.c.bf16 %v1460_v35, %v1459_v26 }
0x2f83   : > { %v4908_v18 = vmul.f32 0.5, %v4906_v34  ;;  %v1452_v34 = vld [vmem:[%s13670_s2 + $0x480] sm:$0xff] }
0x2f84   : > { %v4907_v58 = vmul.f32 0.5, %v4905_v56  ;;  %v1453_v56 = vld [vmem:[%s13670_s2 + $0x488] sm:$0xff]  ;;  %13736 = vst [vmem:[#allocation19_spill] sm:$0xff] %v12991_v62 }
0x2f85   : > { %v12927_v9 = vmul.f32 %v4908_v18, %v4890_v54  ;;  %v12948_v18 = vpack.c.bf16 %v1452_v34, %v1451_v53  ;;  %v12960_v54 = vpack.c.bf16 %v1454_v37, %v1453_v56  ;;  %v1461_v53 = vld [vmem:[%s13670_s2 + $0x4c8] sm:$0xff]  ;;  %v1462_v34 = vld [vmem:[%s13670_s2 + $0x4d0] sm:$0xff] }
0x2f86   : > { %v12929_v8 = vmul.f32 %v4907_v58, %v4885_v31  ;;  %v1455_v31 = vld [vmem:[%s13670_s2 + $0x498] sm:$0xff]  ;;  %v13009_v37 = vld [vmem:[%s13670_s2 + $0x4f0] sm:$0xf] }
0x2f87   : > { %13732 = vst [vmem:[#allocation15_spill] sm:$0xff] %v12948_v18  ;;  %10937 = vmatpush3.bf16.msra.mxu0 %v12948_v18  ;;  %13733 = vst [vmem:[#allocation16_spill] sm:$0xff] %v12960_v54  ;;  %v12971_v13 = vpack.c.bf16 %v1456_v60, %v1455_v31  ;;  %v13702_v31 = vrot.slane %v13009_v37, 7 }
0x2f88   : > { %v11412_v58 = vpack.i.bf16 %v12927_v9, %v12929_v8  ;;  %10938 = vmatprep.subr.bf16.mxu0 %v13726_v23  ;;  %13738 = vst [vmem:[#allocation21_spill] sm:$0xff] %v13009_v37 }
0x2f89   : > { %13734 = vst [vmem:[#allocation17_spill] sm:$0xff] %v12971_v13 }
0x2f8a   : > { %11413 = vrot.lane.b32.xlu0 %v11412_v58, %s11729_s8  ;;  %11408 = vrot.lane.b32.xlu1 %v11412_v58, %s11734_s11 }
0x2f8b   : > { %10940 = vmatpush3.bf16.msra.mxu0 %v12960_v54 }
0x2f8c   : > { %10941 = vmatprep.subr.bf16.mxu0 %v13726_v23 }
0x2f8e   : > { %11418 = vrot.lane.b32.xlu1 %v11412_v58, %s11735_s18  ;;  %v13001_v58 = vpack.c.bf16 %v1462_v34, %v1461_v53 }
0x2f8f   : > { %10943 = vmatpush3.bf16.msra.mxu0 %v12971_v13 }
0x2f90   : > { %10944 = vmatprep.subr.bf16.mxu0 %v13726_v23  ;;  %13737 = vst [vmem:[#allocation20_spill] sm:$0xff] %v13001_v58 }
0x2f93   : > { %10946 = vmatpush3.bf16.msra.mxu0 %v12981_v57 }
0x2f94   : > { %10947 = vmatprep.subr.bf16.mxu0 %v13726_v23 }
0x2f97   : > { %10949 = vmatpush3.bf16.msra.mxu0 %v12991_v62 }
0x2f98   : > { %10950 = vmatprep.subr.bf16.mxu0 %v13726_v23 }
0x2f9b   : > { %10952 = vmatpush3.bf16.msra.mxu0 %v13001_v58  ;;  %v13739_v58 = vmov 0.0  }
0x2f9c   : > { %10953 = vmatprep.subr.bf16.mxu0 %v13726_v23 }
0x2fdd   : > { %v4913_v56 = vpop.permute.xlu1 %4912  ;;  %v4919_v44 = vpop.permute.xlu0 %4918 }
0x2fde   : > { %v4921_v60 = vsel %vm336_vm1, %v12919_v29, %v4913_v56 }
0x2fe1   : > { %v4916_v27 = vpop.permute.xlu1 %4915 }
0x2fe2   : > { %v4922_v26 = vsel %vm248_vm0, %v4921_v60, %v4916_v27 }
0x2fe3   : > { %v4924_v35 = vsel %vm4923_vm13, %v4922_v26, %v4919_v44 }
0x2fe4   : > { %v4928_v53 = vmul.f32 %v13702_v31, %v4924_v35 }
0x2fe6   : > { %v4934_v34 = vrot.slane %v4928_v53, 1 }
0x2fe8   : > { %10122 = vmatmul.mubr.f32.vlgmr.msra.gmra.mrb[50].mxu1 %v4934_v34 }
0x2fe9   : > { %10163 = vmatprep.mubr.msk.f32.mxu1 %vm11731_vm12, %v13739_v58 }
0x2ffc   : > { %v11414_v62 = vpop.permute.xlu0 %11413  ;;  %v11409_v57 = vpop.permute.xlu1 %11408 }
0x2ffd   : > { %v11411_v13 = vunpack.i.h.bf16 %v11409_v57  ;;  %v11410_v54 = vunpack.i.l.bf16 %v11409_v57  ;;  %v11416_v56 = vunpack.i.h.bf16 %v11414_v62  ;;  %v11415_v18 = vunpack.i.l.bf16 %v11414_v62 }
0x2ffe   : > { %v13740_v62 = vmov 0 }
0x2fff   : > { %v5104_v60 = vsel %vm5102_vm14, %v12927_v9, %v11411_v13  ;;  %v5103_v27 = vsel %vm5102_vm14, %v12929_v8, %v11410_v54  ;;  %v13741_v62 = vsel %vm13030_vm7, 4294967295, %v13740_v62  ;;  %v1463_v8 = vld [vmem:[%s13670_s2 + $0x4d8] sm:$0xff]  ;;  %v9110_v13 = vld [vmem:[%s13670_s2 + $0x460] ss:$0 sm:$0xff] }
0x3000   : > { %v11419_v44 = vpop.permute.xlu1 %11418  ;;  %v5105_v53 = vsel %vm477_vm2, %v5103_v27, %v11415_v18  ;;  %v5106_v34 = vsel %vm477_vm2, %v5104_v60, %v11416_v56  ;;  %13742 = vst [vmem:[#allocation22_spill] sm:$0xff] %v13741_v62  ;;  %v1464_v18 = vld [vmem:[%s13670_s2 + $0x4e0] sm:$0xff] }
0x3001   : > { %v11421_v26 = vunpack.i.h.bf16 %v11419_v44  ;;  %v11420_v35 = vunpack.i.l.bf16 %v11419_v44  ;;  %v13043_v54 = vpack.c.bf16 %v1464_v18, %v1463_v8  ;;  %v1359_v44 = vld [vmem:[%s13671_s3 + $0x8] sm:$0xff]  ;;  %v1467_v8 = vld [vmem:[%s13670_s2 + $0x4f8] sm:$0xf] }
0x3003   : > { %v5108_v31 = vsel %vm5107_vm15, %v5105_v53, %v11420_v35  ;;  %v5109_v57 = vsel %vm5107_vm15, %v5106_v34, %v11421_v26  ;;  %13743 = vst [vmem:[#allocation23_spill] sm:$0xff] %v13043_v54  ;;  %10955 = vmatpush3.bf16.msra.mxu0 %v13043_v54  ;;  %v1361_v26 = vld [vmem:[%s13671_s3 + $0x18] sm:$0xff]  ;;  %v1358_v35 = vld [vmem:[%s13671_s3] sm:$0xff]  ;;  %v1360_v34 = vld [vmem:[%s13671_s3 + $0x10] sm:$0xff] }
0x3004   : > { %v10957_v9 = vpack.c.bf16 %v5109_v57, %v5108_v31  ;;  %v13059_v53 = vpack.c.bf16 %v1361_v26, %v1359_v44  ;;  %v13064_v57 = vpack.c.bf16 %v1360_v34, %v1358_v35  ;;  %v1470_v26 = vld [vmem:[%s13670_s2 + $0x510] sm:$0xff]  ;;  %v1471_v35 = vld [vmem:[%s13670_s2 + $0x518] sm:$0xff] }
0x3006   : > { %10959 = vmatpush3.bf16.xpose.msk.msra.mxu1 %vm13030_vm7, %v10957_v9  ;;  %13744 = vst [vmem:[#allocation24_spill] sm:$0xff] %v13059_v53  ;;  %13745 = vst [vmem:[#allocation25_spill] sm:$0xff] %v13064_v57  ;;  %10961 = vmatprep.subr.bf16.mxu0 %v13059_v53  ;;  %v9111_v9 = vld [vmem:[%s13670_s2 + $0x4e8] ss:$0 sm:$0xff] }
0x3007   : > { %10970 = vmatprep.subr.bf16.mxu1 %v13726_v23 }
0x30bb   : > { %v5002_v31 = vpop.f32.mrb[50].mxu1 }
0x30bc   : > { %v5003_v56 = vadd.f32 %v9110_v13, %v5002_v31  ;;  %v10123_v60 = vpop.f32.mrb[51].mxu1 }
0x30bd   : > { %v1468_v60 = vld [vmem:[%s13670_s2 + $0x500] sm:$0xff] }
0x30be   : > { %v5006_v27 = vmax.f32 %v5003_v56, 0.0 }
0x30c0   : > { %10157 = vmatmul.mubr.f32.vlgmr.msra.gmra.mrb[40].mxu0 %v5006_v27  ;;  %v1469_v27 = vld [vmem:[%s13670_s2 + $0x508] sm:$0xff] }
0x30c1   : > { %5256 = vmatprep.mubr.f32.mxu0 %v13739_v58  ;;  %10963 = vmatpush1.bf16.msra.mxu0 %v13064_v57  ;;  %v13084_v44 = vpack.c.bf16 %v1469_v27, %v1468_v60  ;;  %v1473_v60 = vld [vmem:[%s13670_s2 + $0x528] sm:$0xff] }
0x30c2   : > { %10964 = vmatprep.subr.bf16.mxu0 %v13726_v23 }
0x30c3   : > { %13746 = vst [vmem:[#allocation26_spill] sm:$0xff] %v13084_v44 }
0x3193   : > { %v5077_v18 = vpop.f32.mrb[40].mxu0 }
0x3194   : > { %v5078_v13 = vadd.f32 %v9111_v9, %v5077_v18  ;;  %v10158_v31 = vpop.f32.mrb[41].mxu0  ;;  %v11687_v18 = vld [vmem:[%s12064_s6] sm:$0xff] }
0x3195   : > { %v11688_v31 = vld [vmem:[%s13670_s2 + $0x208] sm:$0x1f] }
0x3196   : > { %v5081_v56 = vmul.f32 %v5078_v13, %v1467_v8  ;;  %v13094_v8 = vpack.c.bf16 %v1471_v35, %v1470_v26  ;;  %v13100_v13 = vrot.slane %v11687_v18, 7 }
0x3198   : > { %10164 = vmatmul.mubr.msk.f32.vlgmr.msra.gmra.mrb[52].mxu1 %vm336_vm1, %v5081_v56  ;;  %13747 = vst [vmem:[#allocation27_spill] sm:$0xff] %v13094_v8  ;;  %v13109_v56 = vsel %vm13707_vm4, %v11688_v31, %v13100_v13  ;;  %vm5417_vm4 = vcmask 1043456  }
0x3199   : > { %10185 = vmatprep.mubr.msk.f32.mxu1 %vm11731_vm12, %v13739_v58 }
0x326b   : > { %v5185_v34 = vpop.f32.mrb[52].mxu1 }
0x326c   : > { %v10165_v9 = vpop.f32.mrb[53].mxu1  ;;  %9115 = vmatmul.mubr.msk.f32.vlgmr.msra.gmra.mrb[42].mxu0 %vm477_vm2, %v5185_v34 }
0x326d   : > { %10966 = vmatpush3.bf16.msra.mxu0 %v13084_v44  ;;  %10174 = vmatprep.mubr.msk.f32.mxu0 %vm11731_vm12, %v13739_v58  ;;  %v1472_v9 = vld [vmem:[%s13670_s2 + $0x520] sm:$0x1] }
0x326e   : > { %10967 = vmatprep.subr.bf16.mxu0 %v13726_v23 }
0x3271   : > { %10969 = vmatpush3.bf16.msra.mxu0 %v13094_v8 }
0x3272   : > { %10977 = vmatprep.subr.bf16.mxu0 %v12057_v7 }
0x3274   : > { %10175 = vmatmul.mubr.msk.f32.vlgmr.msra.gmra.mrb[44].mxu0 %vm336_vm1, %v12919_v29  ;;  %v1474_v29 = vld [vmem:[%s13670_s2 + $0x530] sm:$0xff] }
0x3275   : > { %10979 = vmatpush3.bf16.msra.mxu0 %v12057_v7  ;;  %10196 = vmatprep.mubr.msk.f32.mxu0 %vm336_vm1, %v13109_v56  ;;  %v13126_v27 = vpack.c.bf16 %v1474_v29, %v1473_v60  ;;  %v1475_v7 = vld [vmem:[%s13670_s2 + $0x538] sm:$0xff] }
0x3276   : > { %10981 = vmatprep.subr.bf16.mxu0 %v12083_v19 }
0x3277   : > { %13748 = vst [vmem:[#allocation28_spill] sm:$0xff] %v13126_v27  ;;  %10972 = vmatpush3.bf16.msra.mxu1 %v13126_v27 }
0x3278   : > { %10973 = vmatprep.subr.bf16.mxu1 %v13726_v23 }
0x3279   : > { %10983 = vmatpush3.bf16.msra.mxu0 %v12083_v19  ;;  %v1476_v19 = vld [vmem:[%s13670_s2 + $0x540] sm:$0xff] }
0x327a   : > { %v13136_v26 = vpack.c.bf16 %v1476_v19, %v1475_v7  ;;  %v11689_v7 = vld [vmem:[%s13670_s2 + $0x290] ss:$0 sm:$0xff] }
0x327c   : > { %10197 = vmatmul.mubr.msk.f32.vlgmr.msra.gmra.mrb[46].mxu0 %vm336_vm1, %v13100_v13  ;;  %13749 = vst [vmem:[#allocation29_spill] sm:$0xff] %v13136_v26  ;;  %10975 = vmatpush3.bf16.msra.mxu1 %v13136_v26 }
0x333f   : > { %v5258_v35 = vpop.f32.mrb[42].mxu0 }
0x3340   : > { %v13139_v34 = vpop.f32.mrb[43].mxu0 }
0x3341   : > { %13750 = vst [vmem:[#allocation30_spill] sm:$0xff] %v13139_v34 }
0x3347   : > { %v5331_v18 = vpop.f32.mrb[44].mxu0 }
0x3348   : > { %v5332_v31 = vadd.f32 %v5331_v18, %v1472_v9  ;;  %v10176_v60 = vpop.f32.mrb[45].mxu0 }
0x334a   : > { %v5335_v29 = vmax.f32 %v5332_v31, 0.0 }
0x334c   : > { %10186 = vmatmul.mubr.msk.f32.vlgmr.msra.gmra.mrb[54].mxu1 %vm336_vm1, %v5335_v29 }
0x334f   : > { %v10198_v8 = vpop.f32.mrb[46].mxu0 }
0x3350   : > { %v5500_v19 = vadd.f32 %v11689_v7, %v10198_v8  ;;  %v5494_v44 = vpop.f32.mrb[47].mxu0 }
0x3351   : > { %v5495_v26 = vadd.f32 %v11689_v7, %v5494_v44 }
0x3353   : > { %10203 = vmatprep.mubr.msk.f32.mxu1 %vm477_vm2, %v5495_v26  ;;  %v13149_v34 = vpack.i.bf16 %v5500_v19, %v5495_v26 }
0x3355   : > { %11428 = vrot.lane.b32.xlu1 %v13149_v34, %s11725_s21  ;;  %11423 = vrot.lane.b32.xlu0 %v13149_v34, %s11724_s20 }
0x3359   : > { %5706 = vrot.lane.b32.xlu1 %v5500_v19, %s11726_s22  ;;  %5704 = vrot.lane.b32.xlu0 %v5495_v26, %s11726_s22 }
0x33c7   : > { %v11429_v9 = vpop.permute.xlu1 %11428  ;;  %v11424_v18 = vpop.permute.xlu0 %11423 }
0x33c8   : > { %v11431_v31 = vunpack.i.h.bf16 %v11429_v9  ;;  %v11430_v8 = vunpack.i.l.bf16 %v11429_v9  ;;  %v11426_v60 = vunpack.i.h.bf16 %v11424_v18  ;;  %v11425_v44 = vunpack.i.l.bf16 %v11424_v18 }
0x33ca   : > { %v10984_v29 = vpack.c.bf16 %v11426_v60, %v11425_v44  ;;  %v10996_v7 = vpack.c.bf16 %v11431_v31, %v11430_v8 }
0x33cb   : > { %v5705_v27 = vpop.permute.xlu0 %5704  ;;  %v5707_v26 = vpop.permute.xlu1 %5706 }
0x33cc   : > { %10986 = vmatprep.subr.msk.bf16.mxu1 %vm11924_vm3, %v10984_v29 }
0x33cd   : > { %10989 = vmatpush3.bf16.xpose.msk.msra.mxu1 %vm11924_vm3, %v10984_v29 }
0x33ce   : > { %10998 = vmatprep.subr.msk.bf16.mxu1 %vm11924_vm3, %v10996_v7 }
0x33d4   : > { %10204 = vmatmul.mubr.msk.f32.vlgmr.msra.gmra.mrb[56].mxu1 %vm477_vm2, %v5500_v19  ;;  %v1477_v19 = vld [vmem:[%s13670_s2 + $0x548] sm:$0x1] }
0x33d5   : > { %11001 = vmatpush3.bf16.xpose.msk.msra.mxu1 %vm11924_vm3, %v10996_v7  ;;  %10217 = vmatprep.mubr.msk.f32.mxu1 %vm477_vm2, %v5705_v27 }
0x33d6   : > { %11017 = vmatprep.subr.bf16.mxu1 %v12254_v20 }
0x33dc   : > { %10218 = vmatmul.mubr.msk.f32.vlgmr.msra.gmra.mrb[58].mxu1 %vm477_vm2, %v5707_v26 }
0x33dd   : > { %11019 = vmatpush3.bf16.msra.mxu1 %v12254_v20 }
0x33de   : > { %11021 = vmatprep.subr.bf16.mxu1 %v12259_v21 }
0x33e1   : > { %11023 = vmatpush3.bf16.msra.mxu1 %v12259_v21 }
0x33e2   : > { %11031 = vmatprep.subr.bf16.mxu1 %v12309_v6 }
0x341f   : > { %v5405_v9 = vpop.f32.mrb[54].mxu1 }
0x3420   : > { %v5406_v27 = vadd.f32 %v5405_v9, %v1477_v19  ;;  %v10187_v18 = vpop.f32.mrb[55].mxu1 }
0x3422   : > { %v5410_v31 = vsel %vm5409_vm8, %v5406_v27, 0.0 }
0x3423   : > { %v5413_v8 = vrot.slane %v5410_v31, 4 }
0x3425   : > { %v13178_v20 = vsel %vm5417_vm4, %v5258_v35, %v5413_v8 }
0x3426   : > { %13751 = vst [vmem:[#allocation31_spill] sm:$0xff] %v13178_v20 }
0x34a7   : > { %v10205_v60 = vpop.f32.mrb[56].mxu1 }
0x34a8   : > { %v5593_v44 = vmul.f32 0.25, %v10205_v60  ;;  %v5583_v21 = vpop.f32.mrb[57].mxu1 }
0x34a9   : > { %v5592_v29 = vmul.f32 0.25, %v5583_v21 }
0x34aa   : > { %v5597_v7 = vsel %vm1662_vm6, %v5593_v44, -inf }
0x34ab   : > { %5598 = vmax.xlane.f32.xlu1 %v5597_v7  ;;  %v5594_v26 = vsel %vm1658_vm5, %v5592_v29, -inf }
0x34ac   : > { %5595 = vmax.xlane.f32.xlu0 %v5594_v26 }
0x34af   : > { %v10219_v57 = vpop.f32.mrb[58].mxu1 }
0x34b0   : > { %v5786_v19 = vpop.f32.mrb[59].mxu1  ;;  %v5796_v18 = vmul.f32 0.25, %v10219_v57 }
0x34b1   : > { %v5795_v9 = vmul.f32 0.25, %v5786_v19 }
0x34b2   : > { %v5800_v35 = vsel %vm1662_vm6, %v5796_v18, -inf }
0x34b3   : > { %v5797_v27 = vsel %vm1658_vm5, %v5795_v9, -inf }
0x34b4   : > { %5798 = vmax.xlane.f32.xlu0 %v5797_v27 }
0x34b8   : > { %5801 = vmax.xlane.f32.xlu0 %v5800_v35 }
0x3538   : > { %v5599_v31 = vpop.xlane.xlu1 %5598 }
0x3539   : > { %v5601_v8 = vsub.f32 %v5593_v44, %v5599_v31  ;;  %v5596_v60 = vpop.xlane.xlu0 %5595 }
0x353a   : > { %v5600_v21 = vsub.f32 %v5592_v29, %v5596_v60 }
0x353b   : > { %v5604_v20 = vmul.f32 1.442695, %v5601_v8 }
0x353c   : > { %v5602_v62 = vmul.f32 1.442695, %v5600_v21 }
0x353d   : > { %11597 = vpow2.f32 %v5604_v20 }
0x353e   : > { %11599 = vpow2.f32 %v5602_v62 }
0x3541   : > { %v5799_v7 = vpop.xlane.xlu0 %5798 }
0x3542   : > { %v5803_v26 = vsub.f32 %v5795_v9, %v5799_v7 }
0x3544   : > { %v5805_v37 = vmul.f32 1.442695, %v5803_v26 }
0x3545   : > { %v5802_v53 = vpop.xlane.xlu0 %5801 }
0x3546   : > { %11601 = vpow2.f32 %v5805_v37  ;;  %v5804_v57 = vsub.f32 %v5796_v18, %v5802_v53 }
0x3547   : > { %v11598_v19 = vpop.eup %11597 }
0x3548   : > { %v11600_v54 = vpop.eup %11599  ;;  %v5807_v27 = vmul.f32 1.442695, %v5804_v57  ;;  %v5609_v63 = vsel %vm1662_vm6, %v11598_v19, 0.0 }
0x3549   : > { %5610 = vadd.xlane.f32.xlu1 %v5609_v63  ;;  %v5606_v44 = vsel %vm1658_vm5, %v11600_v54, 0.0 }
0x354a   : > { %11603 = vpow2.f32 %v5807_v27  ;;  %5607 = vadd.xlane.f32.xlu0 %v5606_v44 }
0x3550   : > { %v11602_v29 = vpop.eup %11601 }
0x3551   : > { %v5809_v20 = vsel %vm1658_vm5, %v11602_v29, 0.0 }
0x3552   : > { %5810 = vadd.xlane.f32.xlu0 %v5809_v20 }
0x3554   : > { %v11604_v62 = vpop.eup %11603 }
0x3555   : > { %v5812_v9 = vsel %vm1662_vm6, %v11604_v62, 0.0 }
0x3556   : > { %5813 = vadd.xlane.f32.xlu1 %v5812_v9 }
0x3567   : > { %11438 = vrot.lane.b32.xlu1 %v13149_v34, %s11728_s24 }
0x3568   : > { %11433 = vrot.lane.b32.xlu0 %v13149_v34, %s11727_s23 }
0x35d6   : > { %v5611_v63 = vpop.xlane.xlu1 %5610 }
0x35d7   : > { %v5608_v37 = vpop.xlane.xlu0 %5607 }
0x35d8   : > { %11605 = vrcp.f32 %v5608_v37 }
0x35d9   : > { %11607 = vrcp.f32 %v5611_v63 }
0x35df   : > { %v5811_v53 = vpop.xlane.xlu0 %5810 }
0x35e0   : > { %11609 = vrcp.f32 %v5811_v53 }
0x35e2   : > { %v11606_v18 = vpop.eup %11605 }
0x35e3   : > { %v5814_v35 = vpop.xlane.xlu1 %5813  ;;  %v11434_v31 = vpop.permute.xlu0 %11433  ;;  %v5613_v8 = vmul.f32 %v11606_v18, %v11600_v54 }
0x35e4   : > { %11611 = vrcp.f32 %v5814_v35  ;;  %v11436_v60 = vunpack.i.h.bf16 %v11434_v31  ;;  %v11435_v21 = vunpack.i.l.bf16 %v11434_v31  ;;  %v11608_v26 = vpop.eup %11607 }
0x35e5   : > { %10210 = vmatprep.mubr.msk.f32.mxu0 %vm1658_vm5, %v5613_v8  ;;  %v5615_v20 = vmul.f32 %v11608_v26, %v11598_v19  ;;  %v11690_v8 = vld [vmem:[%s13670_s2 + $0x318] ss:$0 sm:$0xff] }
0x35e6   : > { %v10990_v7 = vpack.c.bf16 %v11436_v60, %v11435_v21 }
0x35e7   : > { %v11439_v57 = vpop.permute.xlu1 %11438 }
0x35e8   : > { %v11441_v27 = vunpack.i.h.bf16 %v11439_v57  ;;  %v11440_v34 = vunpack.i.l.bf16 %v11439_v57  ;;  %10992 = vmatprep.subr.msk.bf16.mxu0 %vm12125_vm9, %v10990_v7 }
0x35e9   : > { %10995 = vmatpush3.bf16.msk.msra.mxu0 %vm12125_vm9, %v10990_v7 }
0x35ea   : > { %v11610_v44 = vpop.eup %11609  ;;  %v11002_v9 = vpack.c.bf16 %v11441_v27, %v11440_v34 }
0x35eb   : > { %v5816_v54 = vmul.f32 %v11610_v44, %v11602_v29 }
0x35ec   : > { %10211 = vmatmul.mubr.msk.f32.vlgmr.msra.gmra.mrb[48].mxu0 %vm1658_vm5, %v5615_v20  ;;  %11004 = vmatprep.subr.msk.bf16.mxu0 %vm12125_vm9, %v11002_v9 }
0x35ed   : > { %11007 = vmatpush3.bf16.msk.msra.mxu0 %vm12125_vm9, %v11002_v9  ;;  %10224 = vmatprep.mubr.msk.f32.mxu0 %vm1658_vm5, %v5816_v54 }
0x35ee   : > { %v11612_v37 = vpop.eup %11611  ;;  %11009 = vmatprep.subr.bf16.mxu0 %v12166_v41 }
0x35ef   : > { %v5818_v63 = vmul.f32 %v11612_v37, %v11604_v62 }
0x35f1   : > { %10225 = vmatmul.mubr.msk.f32.vlgmr.msra.gmra.mrb[50].mxu0 %vm1658_vm5, %v5818_v63 }
0x35f2   : > { %11011 = vmatpush3.bf16.msra.mxu0 %v12166_v41 }
0x35f3   : > { %11013 = vmatprep.subr.bf16.mxu0 %v12171_v43 }
0x35f6   : > { %11015 = vmatpush3.bf16.msra.mxu0 %v12171_v43 }
0x35f7   : > { %11026 = vmatprep.subr.msk.bf16.mxu0 %vm11924_vm3, %v12291_v38 }
0x36bf   : > { %v10212_v19 = vpop.f32.mrb[48].mxu0 }
0x36c0   : > { %v5695_v29 = vpop.f32.mrb[49].mxu0 }
0x36c4   : > { %v10226_v53 = vpop.f32.mrb[50].mxu0 }
0x36c5   : > { %v5898_v18 = vpop.f32.mrb[51].mxu0 }
0x36c6   : > { %5909 = vrot.lane.b32.xlu1 %v5898_v18, %s11729_s8 }
0x36ca   : > { %5911 = vrot.lane.b32.xlu1 %v10226_v53, %s11729_s8 }
0x3738   : > { %v5910_v62 = vpop.permute.xlu1 %5909 }
0x3739   : > { %v5915_v35 = vsel %vm477_vm2, %v5695_v29, %v5910_v62 }
0x373a   : > { %10235 = vmatprep.mubr.msk.f32.mxu0 %vm336_vm1, %v5915_v35 }
0x373c   : > { %v5912_v41 = vpop.permute.xlu1 %5911 }
0x373d   : > { %v5916_v43 = vsel %vm477_vm2, %v10212_v19, %v5912_v41 }
0x373e   : > { %10236 = vmatmul.mubr.msk.f32.vlgmr.msra.gmra.mrb[52].mxu0 %vm336_vm1, %v5916_v43 }
0x373f   : > { %11029 = vmatpush3.bf16.xpose.msk.msra.mxu0 %vm11924_vm3, %v12291_v38 }
0x3740   : > { %11041 = vmatprep.subr.bf16.mxu0 %v12331_v50 }
0x3811   : > { %v10237_v31 = vpop.f32.mrb[52].mxu0 }
0x3812   : > { %v5995_v60 = vadd.f32 %v11690_v8, %v10237_v31  ;;  %v5989_v21 = vpop.f32.mrb[53].mxu0 }
0x3813   : > { %v5990_v7 = vadd.f32 %v11690_v8, %v5989_v21  ;;  %v11691_v8 = vld [vmem:[%s13670_s2 + $0x320] ss:$0 sm:$0xff] }
0x3814   : > { %v5999_v26 = vadd.f32 %v5995_v60, %v13100_v13 }
0x3815   : > { %v5998_v57 = vadd.f32 %v5990_v7, %v13109_v56 }
0x3816   : > { %v6003_v27 = vsel %vm2074_vm10, %v5999_v26, 0.0 }
0x3817   : > { %6004 = vadd.xlane.f32.xlu1 %v6003_v27  ;;  %v6000_v34 = vsel %vm336_vm1, %v5998_v57, 0.0 }
0x3818   : > { %6001 = vadd.xlane.f32.xlu0 %v6000_v34 }
0x38a4   : > { %v6005_v38 = vpop.xlane.xlu1 %6004 }
0x38a5   : > { %v6007_v44 = vmul.f32 0.03125, %v6005_v38  ;;  %v6002_v20 = vpop.xlane.xlu0 %6001 }
0x38a6   : > { %v6006_v9 = vmul.f32 0.03125, %v6002_v20  ;;  %v11693_v20 = vld [vmem:[%s13670_s2 + $0x291] ss:$0 sm:$0xff] }
0x38a7   : > { %v6009_v54 = vsub.f32 %v5999_v26, %v6007_v44  ;;  %v11692_v26 = vld [vmem:[%s13670_s2 + $0x328] ss:$0 sm:$0xff] }
0x38a8   : > { %v6008_v37 = vsub.f32 %v5998_v57, %v6006_v9 }
0x38a9   : > { %v6011_v29 = vmul.f32 %v6009_v54, %v6009_v54 }
0x38aa   : > { %v6010_v63 = vmul.f32 %v6008_v37, %v6008_v37 }
0x38ab   : > { %v6015_v13 = vsel %vm2074_vm10, %v6011_v29, 0.0 }
0x38ac   : > { %v6012_v19 = vsel %vm336_vm1, %v6010_v63, 0.0 }
0x38ad   : > { %6013 = vadd.xlane.f32.xlu0 %v6012_v19 }
0x38b1   : > { %6016 = vadd.xlane.f32.xlu0 %v6015_v13 }
0x393a   : > { %v6014_v56 = vpop.xlane.xlu0 %6013 }
0x393b   : > { %v6018_v53 = vmul.f32 0.03125, %v6014_v56 }
0x393d   : > { %v6020_v18 = vadd.f32 1e-05, %v6018_v53 }
0x393e   : > { %v6017_v62 = vpop.xlane.xlu0 %6016 }
0x393f   : > { %11613 = vrsqrt.f32 %v6020_v18  ;;  %v6019_v35 = vmul.f32 0.03125, %v6017_v62 }
0x3941   : > { %v6021_v41 = vadd.f32 1e-05, %v6019_v35 }
0x3943   : > { %11615 = vrsqrt.f32 %v6021_v41 }
0x3949   : > { %v11614_v43 = vpop.eup %11613 }
0x394a   : > { %v6024_v31 = vmul.f32 %v11614_v43, %v6008_v37 }
0x394c   : > { %v6026_v60 = vmul.f32 %v11691_v8, %v6024_v31 }
0x394d   : > { %v11616_v21 = vpop.eup %11615 }
0x394e   : > { %v6025_v7 = vmul.f32 %v11616_v21, %v6009_v54  ;;  %v13236_v57 = vadd.f32 %v11692_v26, %v6026_v60 }
0x3950   : > { %10246 = vmatprep.mubr.msk.f32.mxu1 %vm336_vm1, %v13236_v57  ;;  %v6027_v27 = vmul.f32 %v11691_v8, %v6025_v7 }
0x3952   : > { %v13240_v34 = vadd.f32 %v11692_v26, %v6027_v27 }
0x3954   : > { %10247 = vmatmul.mubr.msk.f32.vlgmr.msra.gmra.mrb[60].mxu1 %vm336_vm1, %v13240_v34 }
0x3955   : > { %11033 = vmatpush3.bf16.msra.mxu1 %v12309_v6 }
0x3956   : > { %11036 = vmatprep.subr.msk.bf16.mxu1 %vm11924_vm3, %v12316_v17 }
0x3a27   : > { %v10248_v38 = vpop.f32.mrb[60].mxu1 }
0x3a28   : > { %v6102_v44 = vpop.f32.mrb[61].mxu1  ;;  %v6108_v54 = vadd.f32 %v11693_v20, %v10248_v38 }
0x3a29   : > { %v6103_v9 = vadd.f32 %v11693_v20, %v6102_v44 }
0x3a2b   : > { %10253 = vmatprep.mubr.msk.f32.mxu0 %vm477_vm2, %v6103_v9 }
0x3a2c   : > { %10254 = vmatmul.mubr.msk.f32.vlgmr.msra.gmra.mrb[54].mxu0 %vm477_vm2, %v6108_v54 }
0x3a2d   : > { %11043 = vmatpush3.bf16.msra.mxu0 %v12331_v50 }
0x3a2e   : > { %11045 = vmatprep.subr.bf16.mxu0 %v12348_v55 }
0x3aff   : > { %v10255_v6 = vpop.f32.mrb[54].mxu0 }
0x3b00   : > { %v6193_v37 = vmul.f32 0.25, %v10255_v6  ;;  %v6183_v63 = vpop.f32.mrb[55].mxu0 }
0x3b01   : > { %v6192_v19 = vmul.f32 0.25, %v6183_v63 }
0x3b02   : > { %v6197_v29 = vsel %vm2486_vm11, %v6193_v37, -inf }
0x3b03   : > { %6198 = vmax.xlane.f32.xlu1 %v6197_v29  ;;  %v6194_v13 = vsel %vm477_vm2, %v6192_v19, -inf }
0x3b04   : > { %6195 = vmax.xlane.f32.xlu0 %v6194_v13 }
0x3b90   : > { %v6199_v56 = vpop.xlane.xlu1 %6198 }
0x3b91   : > { %v6201_v53 = vsub.f32 %v6193_v37, %v6199_v56  ;;  %v6196_v18 = vpop.xlane.xlu0 %6195 }
0x3b92   : > { %v6200_v62 = vsub.f32 %v6192_v19, %v6196_v18 }
0x3b93   : > { %v6204_v35 = vmul.f32 1.442695, %v6201_v53 }
0x3b94   : > { %v6202_v41 = vmul.f32 1.442695, %v6200_v62 }
0x3b95   : > { %11617 = vpow2.f32 %v6204_v35 }
0x3b96   : > { %11619 = vpow2.f32 %v6202_v41 }
0x3b9f   : > { %v11618_v50 = vpop.eup %11617 }
0x3ba0   : > { %v11620_v43 = vpop.eup %11619  ;;  %v6209_v31 = vsel %vm2486_vm11, %v11618_v50, 0.0 }
0x3ba1   : > { %6210 = vadd.xlane.f32.xlu1 %v6209_v31  ;;  %v6206_v8 = vsel %vm477_vm2, %v11620_v43, 0.0 }
0x3ba2   : > { %6207 = vadd.xlane.f32.xlu0 %v6206_v8 }
0x3bb2   : > { %6299 = vrot.lane.b32.xlu1 %v6108_v54, %s11726_s22 }
0x3bb8   : > { %6297 = vrot.lane.b32.xlu0 %v6103_v9, %s11726_s22 }
0x3c2e   : > { %v6211_v60 = vpop.xlane.xlu1 %6210 }
0x3c2f   : > { %11621 = vrcp.f32 %v6211_v60  ;;  %v6208_v21 = vpop.xlane.xlu0 %6207 }
0x3c30   : > { %11623 = vrcp.f32 %v6208_v21 }
0x3c32   : > { %v6300_v20 = vpop.permute.xlu1 %6299 }
0x3c33   : > { %v6298_v44 = vpop.permute.xlu0 %6297 }
0x3c39   : > { %v11622_v7 = vpop.eup %11621 }
0x3c3a   : > { %v11624_v26 = vpop.eup %11623  ;;  %v6215_v38 = vmul.f32 %v11622_v7, %v11618_v50 }
0x3c3b   : > { %v6213_v27 = vmul.f32 %v11624_v26, %v11620_v43 }
0x3c3d   : > { %10260 = vmatprep.mubr.msk.f32.mxu1 %vm477_vm2, %v6213_v27 }
0x3c3e   : > { %10261 = vmatmul.mubr.msk.f32.vlgmr.msra.gmra.mrb[62].mxu1 %vm477_vm2, %v6215_v38 }
0x3c3f   : > { %11039 = vmatpush3.bf16.xpose.msk.msra.mxu1 %vm11924_vm3, %v12316_v17  ;;  %10267 = vmatprep.mubr.msk.f32.mxu1 %vm477_vm2, %v6298_v44 }
0x3c40   : > { %11053 = vmatprep.subr.bf16.mxu1 %v12380_v45 }
0x3c46   : > { %10268 = vmatmul.mubr.msk.f32.vlgmr.msra.gmra.mrb[64].mxu1 %vm477_vm2, %v6300_v20 }
0x3c47   : > { %11055 = vmatpush3.bf16.msra.mxu1 %v12380_v45 }
0x3c48   : > { %11057 = vmatprep.subr.bf16.mxu1 %v12390_v49 }
0x3c4b   : > { %11059 = vmatpush3.bf16.msra.mxu1 %v12390_v49 }
0x3c4c   : > { %11077 = vmatprep.subr.bf16.mxu1 %v12494_v39 }
0x3d11   : > { %v10262_v9 = vpop.f32.mrb[62].mxu1 }
0x3d12   : > { %v6288_v54 = vpop.f32.mrb[63].mxu1 }
0x3d19   : > { %v10269_v6 = vpop.f32.mrb[64].mxu1 }
0x3d1a   : > { %v6381_v37 = vmul.f32 0.25, %v10269_v6  ;;  %v6371_v17 = vpop.f32.mrb[65].mxu1 }
0x3d1b   : > { %v6380_v63 = vmul.f32 0.25, %v6371_v17 }
0x3d1c   : > { %v6385_v19 = vsel %vm2486_vm11, %v6381_v37, -inf }
0x3d1d   : > { %6386 = vmax.xlane.f32.xlu0 %v6385_v19  ;;  %v6382_v29 = vsel %vm477_vm2, %v6380_v63, -inf }
0x3d1e   : > { %6383 = vmax.xlane.f32.xlu1 %v6382_v29 }
0x3daa   : > { %v6387_v13 = vpop.xlane.xlu0 %6386 }
0x3dab   : > { %v6389_v45 = vsub.f32 %v6381_v37, %v6387_v13  ;;  %v6384_v56 = vpop.xlane.xlu1 %6383 }
0x3dac   : > { %v6388_v53 = vsub.f32 %v6380_v63, %v6384_v56 }
0x3dad   : > { %v6392_v18 = vmul.f32 1.442695, %v6389_v45 }
0x3dae   : > { %v6390_v49 = vmul.f32 1.442695, %v6388_v53 }
0x3daf   : > { %11625 = vpow2.f32 %v6392_v18 }
0x3db0   : > { %11627 = vpow2.f32 %v6390_v49 }
0x3db9   : > { %v11626_v62 = vpop.eup %11625 }
0x3dba   : > { %v11628_v35 = vpop.eup %11627  ;;  %v6397_v41 = vsel %vm2486_vm11, %v11626_v62, 0.0 }
0x3dbb   : > { %6398 = vadd.xlane.f32.xlu1 %v6397_v41  ;;  %v6394_v50 = vsel %vm477_vm2, %v11628_v35, 0.0 }
0x3dbc   : > { %6395 = vadd.xlane.f32.xlu0 %v6394_v50 }
0x3e48   : > { %v6399_v43 = vpop.xlane.xlu1 %6398 }
0x3e49   : > { %11629 = vrcp.f32 %v6399_v43  ;;  %v6396_v31 = vpop.xlane.xlu0 %6395 }
0x3e4a   : > { %11631 = vrcp.f32 %v6396_v31 }
0x3e53   : > { %v11630_v8 = vpop.eup %11629 }
0x3e54   : > { %v11632_v60 = vpop.eup %11631  ;;  %v6403_v7 = vmul.f32 %v11630_v8, %v11626_v62 }
0x3e55   : > { %v6401_v21 = vmul.f32 %v11632_v60, %v11628_v35 }
0x3e57   : > { %10274 = vmatprep.mubr.msk.f32.mxu0 %vm477_vm2, %v6401_v21  ;;  %v11695_v21 = vld [vmem:[%s13670_s2 + $0x321] ss:$0 sm:$0xff] }
0x3e58   : > { %10275 = vmatmul.mubr.msk.f32.vlgmr.msra.gmra.mrb[56].mxu0 %vm477_vm2, %v6403_v7 }
0x3e59   : > { %11047 = vmatpush3.bf16.msra.mxu0 %v12348_v55 }
0x3e5a   : > { %11049 = vmatprep.subr.bf16.mxu0 %v12353_v10 }
0x3e5d   : > { %11051 = vmatpush3.bf16.msra.mxu0 %v12353_v10  ;;  %v11694_v10 = vld [vmem:[%s13670_s2 + $0x319] ss:$0 sm:$0xff] }
0x3e5e   : > { %11061 = vmatprep.subr.bf16.mxu0 %v12415_v46 }
0x3f2b   : > { %v10276_v26 = vpop.f32.mrb[56].mxu0 }
0x3f2c   : > { %6489 = vrot.lane.b32.xlu1 %v10276_v26, %s11729_s8  ;;  %v6476_v27 = vpop.f32.mrb[57].mxu0 }
0x3f2d   : > { %6487 = vrot.lane.b32.xlu0 %v6476_v27, %s11729_s8  ;;  %v11696_v27 = vld [vmem:[%s13670_s2 + $0x329] ss:$0 sm:$0xff] }
0x3f9e   : > { %v6490_v38 = vpop.permute.xlu1 %6489 }
0x3f9f   : > { %v6488_v44 = vpop.permute.xlu0 %6487  ;;  %v6494_v6 = vsel %vm477_vm2, %v10262_v9, %v6490_v38 }
0x3fa0   : > { %v6493_v20 = vsel %vm477_vm2, %v6288_v54, %v6488_v44 }
0x3fa1   : > { %10285 = vmatprep.mubr.msk.f32.mxu0 %vm336_vm1, %v6493_v20 }
0x3fa2   : > { %10286 = vmatmul.mubr.msk.f32.vlgmr.msra.gmra.mrb[58].mxu0 %vm336_vm1, %v6494_v6  ;;  %v11697_v6 = vld [vmem:[%s13670_s2 + $0x350] ss:$0 sm:$0xff] }
0x3fa3   : > { %11063 = vmatpush3.bf16.msra.mxu0 %v12415_v46 }
0x3fa4   : > { %11065 = vmatprep.subr.bf16.mxu0 %v12420_v1 }
0x3fa7   : > { %11067 = vmatpush3.bf16.msra.mxu0 %v12420_v1 }
0x3fa8   : > { %11069 = vmatprep.subr.bf16.mxu0 %v12431_v5 }
0x3fab   : > { %11071 = vmatpush3.bf16.msra.mxu0 %v12431_v5 }
0x3fac   : > { %11073 = vmatprep.subr.bf16.mxu0 %v12460_v36 }
0x3faf   : > { %11075 = vmatpush3.bf16.msra.mxu0 %v12460_v36 }
0x4075   : > { %v10287_v55 = vpop.f32.mrb[58].mxu0 }
0x4076   : > { %v6573_v9 = vadd.f32 %v11694_v10, %v10287_v55  ;;  %v6567_v54 = vpop.f32.mrb[59].mxu0 }
0x4077   : > { %v6568_v46 = vadd.f32 %v11694_v10, %v6567_v54 }
0x4078   : > { %v6577_v37 = vadd.f32 %v6573_v9, %v13240_v34 }
0x4079   : > { %v6576_v1 = vadd.f32 %v6568_v46, %v13236_v57 }
0x407a   : > { %v6581_v17 = vsel %vm2074_vm10, %v6577_v37, 0.0 }
0x407b   : > { %6582 = vadd.xlane.f32.xlu0 %v6581_v17  ;;  %v6578_v5 = vsel %vm336_vm1, %v6576_v1, 0.0 }
0x407c   : > { %6579 = vadd.xlane.f32.xlu1 %v6578_v5 }
0x4108   : > { %v6583_v63 = vpop.xlane.xlu0 %6582 }
0x4109   : > { %v6585_v36 = vmul.f32 0.03125, %v6583_v63  ;;  %v6580_v19 = vpop.xlane.xlu1 %6579 }
0x410a   : > { %v6584_v29 = vmul.f32 0.03125, %v6580_v19 }
0x410b   : > { %v6587_v13 = vsub.f32 %v6577_v37, %v6585_v36 }
0x410c   : > { %v6586_v45 = vsub.f32 %v6576_v1, %v6584_v29 }
0x410d   : > { %v6589_v56 = vmul.f32 %v6587_v13, %v6587_v13 }
0x410e   : > { %v6588_v53 = vmul.f32 %v6586_v45, %v6586_v45 }
0x410f   : > { %v6593_v18 = vsel %vm2074_vm10, %v6589_v56, 0.0 }
0x4110   : > { %6594 = vadd.xlane.f32.xlu1 %v6593_v18  ;;  %v6590_v34 = vsel %vm336_vm1, %v6588_v53, 0.0 }
0x4111   : > { %6591 = vadd.xlane.f32.xlu0 %v6590_v34 }
0x419d   : > { %v6595_v57 = vpop.xlane.xlu1 %6594 }
0x419e   : > { %v6597_v49 = vmul.f32 0.03125, %v6595_v57  ;;  %v6592_v62 = vpop.xlane.xlu0 %6591 }
0x419f   : > { %v6596_v35 = vmul.f32 0.03125, %v6592_v62 }
0x41a0   : > { %v6599_v41 = vadd.f32 1e-05, %v6597_v49 }
0x41a1   : > { %v6598_v50 = vadd.f32 1e-05, %v6596_v35 }
0x41a2   : > { %11633 = vrsqrt.f32 %v6599_v41 }
0x41a3   : > { %11635 = vrsqrt.f32 %v6598_v50 }
0x41ac   : > { %v11634_v43 = vpop.eup %11633 }
0x41ad   : > { %v11636_v31 = vpop.eup %11635  ;;  %v6603_v8 = vmul.f32 %v11634_v43, %v6587_v13 }
0x41ae   : > { %v6602_v60 = vmul.f32 %v11636_v31, %v6586_v45 }
0x41af   : > { %v6605_v7 = vmul.f32 %v11695_v21, %v6603_v8 }
0x41b0   : > { %v6604_v26 = vmul.f32 %v11695_v21, %v6602_v60 }
0x41b1   : > { %v6607_v44 = vadd.f32 %v11696_v27, %v6605_v7 }
0x41b2   : > { %v6606_v38 = vadd.f32 %v11696_v27, %v6604_v26  ;;  %v11699_v26 = vld [vmem:[%s13670_s2 + $0x322] ss:$0 sm:$0xff] }
0x41b4   : > { %10296 = vmatprep.mubr.msk.f32.mxu1 %vm336_vm1, %v6606_v38 }
0x41b5   : > { %10297 = vmatmul.mubr.msk.f32.vlgmr.msra.gmra.mrb[66].mxu1 %vm336_vm1, %v6607_v44 }
0x41b6   : > { %11079 = vmatpush3.bf16.msra.mxu1 %v12494_v39 }
0x41b7   : > { %11081 = vmatprep.subr.bf16.mxu1 %v12496_v40 }
0x41ba   : > { %11083 = vmatpush3.bf16.msra.mxu1 %v12496_v40  ;;  %v11698_v40 = vld [vmem:[%s13670_s2 + $0x398] ss:$0 sm:$0xff] }
0x41bb   : > { %11085 = vmatprep.subr.bf16.mxu1 %v12522_v12 }
0x4288   : > { %v10298_v20 = vpop.f32.mrb[66].mxu1 }
0x4289   : > { %v6686_v55 = vadd.f32 %v11697_v6, %v10298_v20  ;;  %v6680_v10 = vpop.f32.mrb[67].mxu1 }
0x428a   : > { %v6681_v9 = vadd.f32 %v11697_v6, %v6680_v10 }
0x428b   : > { %v6690_v46 = vmax.f32 %v6686_v55, 0.0 }
0x428c   : > { %v6689_v54 = vmax.f32 %v6681_v9, 0.0 }
0x428e   : > { %10315 = vmatprep.mubr.msk.f32.mxu0 %vm248_vm0, %v6689_v54 }
0x428f   : > { %10316 = vmatmul.mubr.msk.f32.vlgmr.msra.gmra.mrb[60].mxu0 %vm248_vm0, %v6690_v46 }
0x4290   : > { %10344 = vmatprep.mubr.msk.f32.mxu0 %vm477_vm2, %v12490_v28 }
0x4362   : > { %v10317_v39 = vpop.f32.mrb[60].mxu0 }
0x4363   : > { %v6769_v37 = vadd.f32 %v11698_v40, %v10317_v39  ;;  %v6763_v1 = vpop.f32.mrb[61].mxu0 }
0x4364   : > { %v6764_v17 = vadd.f32 %v11698_v40, %v6763_v1 }
0x4365   : > { %v6773_v5 = vadd.f32 %v6769_v37, %v6607_v44  ;;  %v11700_v44 = vld [vmem:[%s13670_s2 + $0x32a] ss:$0 sm:$0xff] }
0x4366   : > { %v6772_v63 = vadd.f32 %v6764_v17, %v6606_v38 }
0x4367   : > { %v6777_v36 = vsel %vm2074_vm10, %v6773_v5, 0.0 }
0x4368   : > { %6778 = vadd.xlane.f32.xlu1 %v6777_v36  ;;  %v6774_v19 = vsel %vm336_vm1, %v6772_v63, 0.0 }
0x4369   : > { %6775 = vadd.xlane.f32.xlu0 %v6774_v19 }
0x43f5   : > { %v6779_v29 = vpop.xlane.xlu1 %6778 }
0x43f6   : > { %v6781_v13 = vmul.f32 0.03125, %v6779_v29  ;;  %v6776_v45 = vpop.xlane.xlu0 %6775 }
0x43f7   : > { %v6780_v28 = vmul.f32 0.03125, %v6776_v45 }
0x43f8   : > { %v6783_v56 = vsub.f32 %v6773_v5, %v6781_v13 }
0x43f9   : > { %v6782_v53 = vsub.f32 %v6772_v63, %v6780_v28 }
0x43fa   : > { %v6785_v18 = vmul.f32 %v6783_v56, %v6783_v56 }
0x43fb   : > { %v6784_v34 = vmul.f32 %v6782_v53, %v6782_v53 }
0x43fc   : > { %v6789_v57 = vsel %vm2074_vm10, %v6785_v18, 0.0 }
0x43fd   : > { %6790 = vadd.xlane.f32.xlu1 %v6789_v57  ;;  %v6786_v49 = vsel %vm336_vm1, %v6784_v34, 0.0 }
0x43fe   : > { %6787 = vadd.xlane.f32.xlu0 %v6786_v49 }
0x448a   : > { %v6791_v62 = vpop.xlane.xlu1 %6790 }
0x448b   : > { %v6793_v35 = vmul.f32 0.03125, %v6791_v62  ;;  %v6788_v41 = vpop.xlane.xlu0 %6787 }
0x448c   : > { %v6792_v50 = vmul.f32 0.03125, %v6788_v41 }
0x448d   : > { %v6795_v43 = vadd.f32 1e-05, %v6793_v35 }
0x448e   : > { %v6794_v31 = vadd.f32 1e-05, %v6792_v50 }
0x448f   : > { %11637 = vrsqrt.f32 %v6795_v43 }
0x4490   : > { %11639 = vrsqrt.f32 %v6794_v31 }
0x4499   : > { %v11638_v8 = vpop.eup %11637 }
0x449a   : > { %v11640_v60 = vpop.eup %11639  ;;  %v6799_v21 = vmul.f32 %v11638_v8, %v6783_v56 }
0x449b   : > { %v6798_v7 = vmul.f32 %v11640_v60, %v6782_v53 }
0x449c   : > { %v6801_v27 = vmul.f32 %v11699_v26, %v6799_v21 }
0x449d   : > { %v6800_v38 = vmul.f32 %v11699_v26, %v6798_v7 }
0x449e   : > { %v13339_v6 = vadd.f32 %v11700_v44, %v6801_v27 }
0x449f   : > { %v13337_v20 = vadd.f32 %v11700_v44, %v6800_v38 }
0x44a1   : > { %10326 = vmatprep.mubr.msk.f32.mxu1 %vm336_vm1, %v13337_v20 }
0x44a2   : > { %10327 = vmatmul.mubr.msk.f32.vlgmr.msra.gmra.mrb[68].mxu1 %vm336_vm1, %v13339_v6 }
0x44a3   : > { %11087 = vmatpush3.bf16.msra.mxu1 %v12522_v12  ;;  %10337 = vmatprep.mubr.msk.f32.mxu1 %vm336_vm1, %v13337_v20 }
0x44a4   : > { %11089 = vmatprep.subr.bf16.mxu1 %v12575_v24 }
0x44a7   : > { %11091 = vmatpush3.bf16.msra.mxu1 %v12575_v24 }
0x44aa   : > { %10338 = vmatmul.mubr.msk.f32.vlgmr.msra.gmra.mrb[70].mxu1 %vm336_vm1, %v13339_v6 }
0x4575   : > { %v10328_v55 = vpop.f32.mrb[68].mxu1 }
0x4576   : > { %v6882_v10 = vadd.f32 %v10328_v55, %v12520_v11  ;;  %v6876_v9 = vpop.f32.mrb[69].mxu1 }
0x4577   : > { %v6877_v54 = vadd.f32 %v6876_v9, %v12520_v11 }
0x4579   : > { %v11442_v46 = vpack.i.bf16 %v6882_v10, %v6877_v54  ;;  %v11092_v39 = vpack.c.bf16 %v6882_v10, %v6877_v54 }
0x457b   : > { %11094 = vmatprep.subr.msk.bf16.mxu0 %vm11924_vm3, %v11092_v39 }
0x457c   : > { %11097 = vmatpush3.bf16.xpose.msk.msra.mxu0 %vm11924_vm3, %v11092_v39 }
0x457d   : > { %v10339_v12 = vpop.f32.mrb[70].mxu1 }
0x457e   : > { %v13359_v24 = vadd.f32 %v10339_v12, %v12604_v15  ;;  %v6951_v40 = vpop.f32.mrb[71].mxu1 }
0x457f   : > { %v13362_v37 = vadd.f32 %v6951_v40, %v12604_v15 }
0x4581   : > { %v11447_v1 = vpack.i.bf16 %v13359_v24, %v13362_v37  ;;  %v11098_v11 = vpack.c.bf16 %v13359_v24, %v13362_v37 }
0x4583   : > { %11100 = vmatprep.subr.msk.bf16.mxu1 %vm12125_vm9, %v11098_v11  ;;  %10345 = vmatmul.mubr.msk.f32.vlgmr.msra.gmra.mrb[62].mxu0 %vm477_vm2, %v12535_v25 }
0x4584   : > { %11103 = vmatpush3.bf16.msk.msra.mxu1 %vm12125_vm9, %v11098_v11 }
0x4656   : > { %v10346_v17 = vpop.f32.mrb[62].mxu0 }
0x4657   : > { %v7042_v5 = vmul.f32 0.25, %v10346_v17  ;;  %v7032_v63 = vpop.f32.mrb[63].mxu0 }
0x4658   : > { %v7041_v15 = vmul.f32 0.25, %v7032_v63 }
0x4659   : > { %v7046_v36 = vsel %vm1658_vm5, %v7042_v5, -inf }
0x465a   : > { %7047 = vmax.xlane.f32.xlu1 %v7046_v36  ;;  %v7043_v19 = vsel %vm1658_vm5, %v7041_v15, -inf }
0x465b   : > { %7044 = vmax.xlane.f32.xlu0 %v7043_v19 }
0x46e7   : > { %v7048_v29 = vpop.xlane.xlu1 %7047 }
0x46e8   : > { %v7050_v13 = vsub.f32 %v7042_v5, %v7048_v29  ;;  %v7045_v45 = vpop.xlane.xlu0 %7044 }
0x46e9   : > { %v7049_v28 = vsub.f32 %v7041_v15, %v7045_v45 }
0x46ea   : > { %v7053_v56 = vmul.f32 1.442695, %v7050_v13 }
0x46eb   : > { %v7051_v53 = vmul.f32 1.442695, %v7049_v28 }
0x46ec   : > { %11641 = vpow2.f32 %v7053_v56  ;;  %v11701_v56 = vld [vmem:[%s13670_s2 + $0x31a] ss:$0 sm:$0xff] }
0x46ed   : > { %11643 = vpow2.f32 %v7051_v53 }
0x46f6   : > { %v11642_v25 = vpop.eup %11641 }
0x46f7   : > { %v11644_v18 = vpop.eup %11643  ;;  %v7058_v34 = vsel %vm1658_vm5, %v11642_v25, 0.0 }
0x46f8   : > { %7059 = vadd.xlane.f32.xlu1 %v7058_v34  ;;  %v7055_v57 = vsel %vm1658_vm5, %v11644_v18, 0.0 }
0x46f9   : > { %7056 = vadd.xlane.f32.xlu0 %v7055_v57  ;;  %v13752_v57 = vld [vmem:[#allocation2_spill] sm:$0xff] }
0x470f   : > { %11443 = vrot.lane.b32.xlu0 %v11442_v46, %s11726_s22 }
0x4785   : > { %v7060_v49 = vpop.xlane.xlu1 %7059 }
0x4786   : > { %11645 = vrcp.f32 %v7060_v49  ;;  %v7057_v62 = vpop.xlane.xlu0 %7056 }
0x4787   : > { %11647 = vrcp.f32 %v7057_v62 }
0x478a   : > { %v11444_v35 = vpop.permute.xlu0 %11443 }
0x478b   : > { %v11446_v41 = vunpack.i.h.bf16 %v11444_v35  ;;  %v11445_v50 = vunpack.i.l.bf16 %v11444_v35 }
0x478d   : > { %v11104_v43 = vpack.c.bf16 %v11446_v41, %v11445_v50 }
0x478f   : > { %11106 = vmatprep.subr.msk.bf16.mxu1 %vm11924_vm3, %v11104_v43 }
0x4790   : > { %v11646_v31 = vpop.eup %11645 }
0x4791   : > { %v11648_v8 = vpop.eup %11647  ;;  %v7064_v21 = vmul.f32 %v11646_v31, %v11642_v25 }
0x4792   : > { %v7062_v60 = vmul.f32 %v11648_v8, %v11644_v18 }
0x4794   : > { %10351 = vmatprep.mubr.msk.f32.mxu1 %vm1658_vm5, %v7062_v60 }
0x4795   : > { %10352 = vmatmul.mubr.msk.f32.vlgmr.msra.gmra.mrb[72].mxu1 %vm1658_vm5, %v7064_v21 }
0x4796   : > { %11109 = vmatpush3.bf16.xpose.msk.msra.mxu1 %vm11924_vm3, %v11104_v43  ;;  %10358 = vmatprep.mubr.msk.f32.mxu1 %vm477_vm2, %v12518_v2 }
0x4797   : > { %11125 = vmatprep.subr.bf16.mxu1 %v12556_v59 }
0x479d   : > { %10359 = vmatmul.mubr.msk.f32.vlgmr.msra.gmra.mrb[74].mxu1 %vm477_vm2, %v12558_v33 }
0x479e   : > { %11127 = vmatpush3.bf16.msra.mxu1 %v12556_v59  ;;  %10387 = vmatprep.mubr.msk.f32.mxu1 %vm336_vm1, %v13337_v20 }
0x479f   : > { %11129 = vmatprep.subr.bf16.mxu1 %v12579_v42 }
0x47a2   : > { %11131 = vmatpush3.bf16.msra.mxu1 %v12579_v42 }
0x47a3   : > { %11141 = vmatprep.subr.bf16.mxu1 %v12675_v4 }
0x47a5   : > { %10388 = vmatmul.mubr.msk.f32.vlgmr.msra.gmra.mrb[76].mxu1 %vm336_vm1, %v13339_v6 }
0x47a6   : > { %11143 = vmatpush3.bf16.msra.mxu1 %v12675_v4 }
0x47a7   : > { %11145 = vmatprep.subr.bf16.mxu1 %v12685_v48 }
0x47aa   : > { %11147 = vmatpush3.bf16.msra.mxu1 %v12685_v48 }
0x4868   : > { %v10353_v2 = vpop.f32.mrb[72].mxu1 }
0x4869   : > { %v7140_v59 = vpop.f32.mrb[73].mxu1 }
0x4870   : > { %v10360_v33 = vpop.f32.mrb[74].mxu1 }
0x4871   : > { %v7223_v7 = vpop.f32.mrb[75].mxu1  ;;  %v7233_v27 = vmul.f32 0.25, %v10360_v33 }
0x4872   : > { %v7232_v26 = vmul.f32 0.25, %v7223_v7 }
0x4873   : > { %v7237_v44 = vsel %vm1658_vm5, %v7233_v27, -inf }
0x4874   : > { %v7234_v38 = vsel %vm1658_vm5, %v7232_v26, -inf }
0x4875   : > { %7235 = vmax.xlane.f32.xlu1 %v7234_v38 }
0x4878   : > { %v13402_v42 = vpop.f32.mrb[76].mxu1 }
0x4879   : > { %v13405_v6 = vpop.f32.mrb[77].mxu1  ;;  %7238 = vmax.xlane.f32.xlu1 %v7237_v44 }
0x4902   : > { %v7236_v4 = vpop.xlane.xlu1 %7235 }
0x4903   : > { %v7240_v55 = vsub.f32 %v7232_v26, %v7236_v4  ;;  %v11702_v4 = vld [vmem:[%s13670_s2 + $0x323] ss:$0 sm:$0xff] }
0x4905   : > { %v7242_v9 = vmul.f32 1.442695, %v7240_v55 }
0x4906   : > { %v7239_v10 = vpop.xlane.xlu1 %7238 }
0x4907   : > { %v7241_v48 = vsub.f32 %v7233_v27, %v7239_v10 }
0x4909   : > { %v7244_v54 = vmul.f32 1.442695, %v7241_v48 }
0x490b   : > { %11649 = vpow2.f32 %v7244_v54 }
0x490c   : > { %11651 = vpow2.f32 %v7242_v9  ;;  %v11703_v9 = vld [vmem:[%s13670_s2 + $0x32b] ss:$0 sm:$0xff] }
0x4915   : > { %v11650_v46 = vpop.eup %11649 }
0x4916   : > { %v7249_v39 = vsel %vm1658_vm5, %v11650_v46, 0.0  ;;  %v11652_v12 = vpop.eup %11651 }
0x4917   : > { %7250 = vadd.xlane.f32.xlu1 %v7249_v39  ;;  %v7246_v40 = vsel %vm1658_vm5, %v11652_v12, 0.0 }
0x491b   : > { %7247 = vadd.xlane.f32.xlu1 %v7246_v40 }
0x492c   : > { %11448 = vrot.lane.b32.xlu1 %v11447_v1, %s11726_s22 }
0x49a4   : > { %v7251_v11 = vpop.xlane.xlu1 %7250 }
0x49a5   : > { %11653 = vrcp.f32 %v7251_v11  ;;  %v11705_v11 = vld [vmem:[%s13670_s2 + $0x1f8] sm:$0xff] }
0x49a8   : > { %v7248_v17 = vpop.xlane.xlu1 %7247 }
0x49a9   : > { %11655 = vrcp.f32 %v7248_v17 }
0x49ac   : > { %v11449_v5 = vpop.permute.xlu1 %11448 }
0x49ad   : > { %v11451_v63 = vunpack.i.h.bf16 %v11449_v5  ;;  %v11450_v15 = vunpack.i.l.bf16 %v11449_v5  ;;  %v11706_v5 = vld [vmem:[%s13670_s2 + $0x293] ss:$0 sm:$0xff] }
0x49af   : > { %v11110_v36 = vpack.c.bf16 %v11451_v63, %v11450_v15  ;;  %v11654_v19 = vpop.eup %11653  ;;  %v7537_v63 = vadd.f32 %v11706_v5, %v13405_v6 }
0x49b0   : > { %v7255_v37 = vmul.f32 %v11654_v19, %v11650_v46  ;;  %v11704_v46 = vld [vmem:[%s13670_s2 + $0x1f0] sm:$0xff] }
0x49b1   : > { %11112 = vmatprep.subr.msk.bf16.mxu0 %vm12125_vm9, %v11110_v36 }
0x49b2   : > { %11115 = vmatpush3.bf16.msk.msra.mxu0 %vm12125_vm9, %v11110_v36  ;;  %v13753_v36 = vld [vmem:[#allocation4_spill] sm:$0xff] }
0x49b3   : > { %v11656_v29 = vpop.eup %11655  ;;  %11117 = vmatprep.subr.bf16.mxu0 %v12629_v16 }
0x49b4   : > { %v7253_v24 = vmul.f32 %v11656_v29, %v11652_v12 }
0x49b6   : > { %10365 = vmatprep.mubr.msk.f32.mxu0 %vm1658_vm5, %v7253_v24 }
0x49b7   : > { %10366 = vmatmul.mubr.msk.f32.vlgmr.msra.gmra.mrb[64].mxu0 %vm1658_vm5, %v7255_v37 }
0x49b8   : > { %11119 = vmatpush3.bf16.msra.mxu0 %v12629_v16 }
0x49b9   : > { %11121 = vmatprep.subr.bf16.mxu0 %v12639_v14 }
0x49bc   : > { %11123 = vmatpush3.bf16.msra.mxu0 %v12639_v14 }
0x49bd   : > { %11133 = vmatprep.subr.bf16.mxu0 %v12681_v47 }
0x4a8a   : > { %v10367_v1 = vpop.f32.mrb[64].mxu0 }
0x4a8b   : > { %v7336_v61 = vpop.f32.mrb[65].mxu0 }
0x4a8c   : > { %7347 = vrot.lane.b32.xlu0 %v7336_v61, %s11729_s8 }
0x4a90   : > { %7349 = vrot.lane.b32.xlu0 %v10367_v1, %s11729_s8  ;;  %v13754_v1 = vld [vmem:[#allocation3_spill] sm:$0xff] }
0x4afe   : > { %v7348_v13 = vpop.permute.xlu0 %7347 }
0x4aff   : > { %v7353_v45 = vsel %vm477_vm2, %v7140_v59, %v7348_v13 }
0x4b00   : > { %10376 = vmatprep.mubr.msk.f32.mxu0 %vm336_vm1, %v7353_v45 }
0x4b02   : > { %v7350_v28 = vpop.permute.xlu0 %7349 }
0x4b03   : > { %v7354_v16 = vsel %vm477_vm2, %v10353_v2, %v7350_v28 }
0x4b04   : > { %10377 = vmatmul.mubr.msk.f32.vlgmr.msra.gmra.mrb[66].mxu0 %vm336_vm1, %v7354_v16 }
0x4b05   : > { %11135 = vmatpush3.bf16.msra.mxu0 %v12681_v47 }
0x4b06   : > { %11137 = vmatprep.subr.bf16.mxu0 %v12679_v22 }
0x4b09   : > { %11139 = vmatpush3.bf16.msra.mxu0 %v12679_v22 }
0x4bd7   : > { %v10378_v14 = vpop.f32.mrb[66].mxu0 }
0x4bd8   : > { %v7433_v53 = vadd.f32 %v11701_v56, %v10378_v14  ;;  %v7427_v25 = vpop.f32.mrb[67].mxu0 }
0x4bd9   : > { %v7428_v18 = vadd.f32 %v11701_v56, %v7427_v25  ;;  %v7542_v56 = vadd.f32 %v11706_v5, %v13402_v42 }
0x4bda   : > { %v7437_v34 = vadd.f32 %v7433_v53, %v12236_v51 }
0x4bdb   : > { %v7436_v49 = vadd.f32 %v7428_v18, %v13752_v57 }
0x4bdc   : > { %v7441_v62 = vsel %vm336_vm1, %v7437_v34, 0.0 }
0x4bdd   : > { %7442 = vadd.xlane.f32.xlu1 %v7441_v62  ;;  %v7438_v47 = vsel %vm336_vm1, %v7436_v49, 0.0 }
0x4bde   : > { %7439 = vadd.xlane.f32.xlu0 %v7438_v47 }
0x4c6a   : > { %v7443_v35 = vpop.xlane.xlu1 %7442 }
0x4c6b   : > { %v7445_v22 = vmul.f32 0.03125, %v7443_v35  ;;  %v7440_v41 = vpop.xlane.xlu0 %7439 }
0x4c6c   : > { %v7444_v50 = vmul.f32 0.03125, %v7440_v41 }
0x4c6d   : > { %v7447_v43 = vsub.f32 %v7437_v34, %v7445_v22 }
0x4c6e   : > { %v7446_v31 = vsub.f32 %v7436_v49, %v7444_v50 }
0x4c6f   : > { %v7449_v21 = vmul.f32 %v7447_v43, %v7447_v43 }
0x4c70   : > { %v7448_v8 = vmul.f32 %v7446_v31, %v7446_v31 }
0x4c71   : > { %v7453_v51 = vsel %vm336_vm1, %v7449_v21, 0.0 }
0x4c72   : > { %v7450_v60 = vsel %vm336_vm1, %v7448_v8, 0.0 }
0x4c73   : > { %7451 = vadd.xlane.f32.xlu0 %v7450_v60 }
0x4c77   : > { %7454 = vadd.xlane.f32.xlu0 %v7453_v51 }
0x4d00   : > { %v7452_v2 = vpop.xlane.xlu0 %7451 }
0x4d01   : > { %v7456_v59 = vmul.f32 0.03125, %v7452_v2 }
0x4d03   : > { %v7458_v33 = vadd.f32 1e-05, %v7456_v59 }
0x4d04   : > { %v7455_v7 = vpop.xlane.xlu0 %7454 }
0x4d05   : > { %11657 = vrsqrt.f32 %v7458_v33  ;;  %v7457_v26 = vmul.f32 0.03125, %v7455_v7 }
0x4d07   : > { %v7459_v27 = vadd.f32 1e-05, %v7457_v26 }
0x4d09   : > { %11659 = vrsqrt.f32 %v7459_v27 }
0x4d0f   : > { %v11658_v38 = vpop.eup %11657 }
0x4d10   : > { %v7462_v44 = vmul.f32 %v11658_v38, %v7446_v31 }
0x4d12   : > { %v7464_v55 = vmul.f32 %v11702_v4, %v7462_v44 }
0x4d13   : > { %v11660_v10 = vpop.eup %11659 }
0x4d14   : > { %v7463_v48 = vmul.f32 %v11660_v10, %v7447_v43  ;;  %v13448_v54 = vadd.f32 %v11703_v9, %v7464_v55  ;;  %v13756_v10 = vld [vmem:[#allocation6_spill] sm:$0xff] }
0x4d16   : > { %10409 = vmatprep.mubr.msk.f32.mxu1 %vm336_vm1, %v13448_v54  ;;  %v7468_v39 = vadd.f32 %v11704_v46, %v13448_v54  ;;  %v7465_v12 = vmul.f32 %v11702_v4, %v7463_v48  ;;  %v13755_v4 = vld [vmem:[#allocation5_spill] sm:$0xff]  ;;  %v13759_v48 = vld [vmem:[#allocation12_spill] sm:$0xff] }
0x4d18   : > { %10398 = vmatprep.mubr.msk.f32.mxu0 %vm336_vm1, %v7468_v39  ;;  %v13457_v40 = vadd.f32 %v11703_v9, %v7465_v12 }
0x4d1a   : > { %10410 = vmatmul.mubr.msk.f32.vlgmr.msra.gmra.mrb[78].mxu1 %vm336_vm1, %v13457_v40  ;;  %v7469_v17 = vadd.f32 %v11705_v11, %v13457_v40 }
0x4d1c   : > { %10399 = vmatmul.mubr.msk.f32.vlgmr.msra.gmra.mrb[68].mxu0 %vm336_vm1, %v7469_v17 }
0x4d1d   : > { %10416 = vmatprep.mubr.msk.f32.mxu0 %vm477_vm2, %v7537_v63 }
0x4ded   : > { %v10411_v15 = vpop.f32.mrb[78].mxu1 }
0x4dee   : > { %v13472_v19 = vadd.f32 %v10411_v15, %v13753_v36  ;;  %v7698_v29 = vpop.f32.mrb[79].mxu1 }
0x4def   : > { %v13475_v24 = vadd.f32 %v7698_v29, %v13753_v36  ;;  %v10400_v37 = vpop.f32.mrb[68].mxu0 }
0x4df0   : > { %v7623_v61 = vadd.f32 %v10400_v37, %v13754_v1  ;;  %v7617_v13 = vpop.f32.mrb[69].mxu0 }
0x4df1   : > { %v11457_v45 = vpack.i.bf16 %v13472_v19, %v13475_v24  ;;  %v11154_v6 = vpack.c.bf16 %v13472_v19, %v13475_v24  ;;  %v7618_v28 = vadd.f32 %v7617_v13, %v13754_v1 }
0x4df3   : > { %v11452_v16 = vpack.i.bf16 %v7623_v61, %v7618_v28  ;;  %v11148_v14 = vpack.c.bf16 %v7623_v61, %v7618_v28  ;;  %11155 = vmatprep.subr.bf16.mxu1 %v11154_v6  ;;  %v13761_v28 = vld [vmem:[#allocation7_spill] sm:$0xff] }
0x4df4   : > { %11157 = vmatpush3.bf16.msra.mxu1 %v11154_v6 }
0x4df5   : > { %11150 = vmatprep.subr.msk.bf16.mxu0 %vm11924_vm3, %v11148_v14 }
0x4df6   : > { %11153 = vmatpush3.bf16.xpose.msk.msra.mxu0 %vm11924_vm3, %v11148_v14 }
0x4dfd   : > { %10417 = vmatmul.mubr.msk.f32.vlgmr.msra.gmra.mrb[70].mxu0 %vm477_vm2, %v7542_v56 }
0x4ed0   : > { %v10418_v53 = vpop.f32.mrb[70].mxu0 }
0x4ed1   : > { %v7795_v25 = vmul.f32 0.25, %v10418_v53  ;;  %v7785_v18 = vpop.f32.mrb[71].mxu0 }
0x4ed2   : > { %v7794_v34 = vmul.f32 0.25, %v7785_v18 }
0x4ed3   : > { %v7799_v57 = vsel %vm2486_vm11, %v7795_v25, -inf }
0x4ed4   : > { %7800 = vmax.xlane.f32.xlu1 %v7799_v57  ;;  %v7796_v49 = vsel %vm477_vm2, %v7794_v34, -inf  ;;  %v13762_v57 = vld [vmem:[#allocation8_spill] sm:$0xff] }
0x4ed5   : > { %7797 = vmax.xlane.f32.xlu0 %v7796_v49  ;;  %v13763_v49 = vld [vmem:[#allocation9_spill] sm:$0xff] }
0x4f61   : > { %v7801_v62 = vpop.xlane.xlu1 %7800 }
0x4f62   : > { %v7803_v47 = vsub.f32 %v7795_v25, %v7801_v62  ;;  %v7798_v35 = vpop.xlane.xlu0 %7797 }
0x4f63   : > { %v7802_v22 = vsub.f32 %v7794_v34, %v7798_v35  ;;  %v11707_v35 = vld [vmem:[%s13670_s2 + $0x3c0] ss:$0 sm:$0xff] }
0x4f64   : > { %v7806_v41 = vmul.f32 1.442695, %v7803_v47 }
0x4f65   : > { %v7804_v50 = vmul.f32 1.442695, %v7802_v22 }
0x4f66   : > { %11661 = vpow2.f32 %v7806_v41 }
0x4f67   : > { %11663 = vpow2.f32 %v7804_v50 }
0x4f70   : > { %v11662_v42 = vpop.eup %11661 }
0x4f71   : > { %v11664_v43 = vpop.eup %11663  ;;  %v7811_v31 = vsel %vm2486_vm11, %v11662_v42, 0.0 }
0x4f72   : > { %7812 = vadd.xlane.f32.xlu1 %v7811_v31  ;;  %v7808_v8 = vsel %vm477_vm2, %v11664_v43, 0.0 }
0x4f73   : > { %7809 = vadd.xlane.f32.xlu0 %v7808_v8 }
0x4f83   : > { %7899 = vrot.lane.b32.xlu1 %v7537_v63, %s11726_s22 }
0x4f87   : > { %7901 = vrot.lane.b32.xlu1 %v7542_v56, %s11726_s22 }
0x4f89   : > { %11453 = vrot.lane.b32.xlu0 %v11452_v16, %s11726_s22 }
0x4fff   : > { %v7813_v60 = vpop.xlane.xlu1 %7812 }
0x5000   : > { %11665 = vrcp.f32 %v7813_v60  ;;  %v7810_v21 = vpop.xlane.xlu0 %7809 }
0x5001   : > { %11667 = vrcp.f32 %v7810_v21 }
0x5003   : > { %v7900_v44 = vpop.permute.xlu1 %7899 }
0x5004   : > { %v11454_v51 = vpop.permute.xlu0 %11453 }
0x5005   : > { %v11456_v2 = vunpack.i.h.bf16 %v11454_v51  ;;  %v11455_v59 = vunpack.i.l.bf16 %v11454_v51 }
0x5007   : > { %v11158_v33 = vpack.c.bf16 %v11456_v2, %v11455_v59  ;;  %v7902_v55 = vpop.permute.xlu1 %7901 }
0x5009   : > { %11160 = vmatprep.subr.msk.bf16.mxu1 %vm11924_vm3, %v11158_v33 }
0x500a   : > { %v11666_v7 = vpop.eup %11665 }
0x500b   : > { %v11668_v26 = vpop.eup %11667  ;;  %v7817_v38 = vmul.f32 %v11666_v7, %v11662_v42 }
0x500c   : > { %v7815_v27 = vmul.f32 %v11668_v26, %v11664_v43 }
0x500e   : > { %10423 = vmatprep.mubr.msk.f32.mxu1 %vm477_vm2, %v7815_v27 }
0x500f   : > { %10424 = vmatmul.mubr.msk.f32.vlgmr.msra.gmra.mrb[80].mxu1 %vm477_vm2, %v7817_v38 }
0x5010   : > { %11163 = vmatpush3.bf16.xpose.msk.msra.mxu1 %vm11924_vm3, %v11158_v33  ;;  %10430 = vmatprep.mubr.msk.f32.mxu1 %vm477_vm2, %v7900_v44 }
0x5011   : > { %11177 = vmatprep.subr.bf16.mxu1 %v13755_v4 }
0x5017   : > { %10431 = vmatmul.mubr.msk.f32.vlgmr.msra.gmra.mrb[82].mxu1 %vm477_vm2, %v7902_v55 }
0x5018   : > { %11179 = vmatpush3.bf16.msra.mxu1 %v13755_v4  ;;  %10459 = vmatprep.mubr.msk.f32.mxu1 %vm336_vm1, %v13448_v54 }
0x5019   : > { %11181 = vmatprep.subr.bf16.mxu1 %v13756_v10 }
0x501c   : > { %11183 = vmatpush3.bf16.msra.mxu1 %v13756_v10 }
0x501d   : > { %11188 = vmatprep.subr.bf16.mxu1 %v13726_v23 }
0x501f   : > { %10460 = vmatmul.mubr.msk.f32.vlgmr.msra.gmra.mrb[84].mxu1 %vm336_vm1, %v13457_v40 }
0x5020   : > { %11190 = vmatpush3.bf16.msra.mxu1 %v12837_v52  ;;  %10501 = vmatprep.mubr.msk.f32.mxu1 %vm11731_vm12, %v13739_v58  ;;  %v13758_v52 = vld [vmem:[#allocation11_spill] sm:$0xff] }
0x5021   : > { %11191 = vmatprep.subr.bf16.mxu1 %v13726_v23 }
0x5024   : > { %11193 = vmatpush3.bf16.msra.mxu1 %v12843_v0  ;;  %v13760_v0 = vld [vmem:[#allocation13_spill] sm:$0xff] }
0x5025   : > { %11194 = vmatprep.subr.bf16.mxu1 %v13726_v23 }
0x5028   : > { %11196 = vmatpush3.bf16.msra.mxu1 %v12853_v3 }
0x5029   : > { %11197 = vmatprep.subr.bf16.mxu1 %v13726_v23 }
0x502c   : > { %11199 = vmatpush3.bf16.msra.mxu1 %v12863_v30 }
0x502d   : > { %11200 = vmatprep.subr.bf16.mxu1 %v13726_v23 }
0x5030   : > { %11202 = vmatpush3.bf16.msra.mxu1 %v13757_v32 }
0x5031   : > { %11203 = vmatprep.subr.bf16.mxu1 %v13726_v23 }
0x5034   : > { %11205 = vmatpush3.bf16.msra.mxu1 %v13758_v52 }
0x5035   : > { %11206 = vmatprep.subr.bf16.mxu1 %v13726_v23 }
0x5038   : > { %11208 = vmatpush3.bf16.msra.mxu1 %v13759_v48 }
0x5039   : > { %11209 = vmatprep.subr.bf16.mxu1 %v13726_v23 }
0x503c   : > { %11211 = vmatpush3.bf16.msra.mxu1 %v13760_v0  ;;  %v13764_v0 = vld [vmem:[#allocation14_spill] sm:$0xff] }
0x503d   : > { %11236 = vmatprep.subr.bf16.mxu1 %v13726_v23 }
0x50e2   : > { %v13531_v3 = vpop.f32.mrb[80].mxu1 }
0x50e3   : > { %v13533_v30 = vpop.f32.mrb[81].mxu1 }
0x50ea   : > { %v10432_v9 = vpop.f32.mrb[82].mxu1 }
0x50eb   : > { %v7991_v54 = vmul.f32 0.25, %v10432_v9  ;;  %v7981_v46 = vpop.f32.mrb[83].mxu1  ;;  %v13767_v9 = vld [vmem:[#allocation17_spill] sm:$0xff] }
0x50ec   : > { %v7990_v39 = vmul.f32 0.25, %v7981_v46  ;;  %v13769_v46 = vld [vmem:[#allocation19_spill] sm:$0xff] }
0x50ed   : > { %v7995_v12 = vsel %vm2486_vm11, %v7991_v54, -inf }
0x50ee   : > { %7996 = vmax.xlane.f32.xlu0 %v7995_v12  ;;  %v7992_v40 = vsel %vm477_vm2, %v7990_v39, -inf  ;;  %v13771_v12 = vld [vmem:[#allocation23_spill] sm:$0xff] }
0x50ef   : > { %7993 = vmax.xlane.f32.xlu1 %v7992_v40  ;;  %v13772_v40 = vld [vmem:[#allocation24_spill] sm:$0xff] }
0x50f2   : > { %v10461_v11 = vpop.f32.mrb[84].mxu1 }
0x50f3   : > { %v8260_v17 = vpop.f32.mrb[85].mxu1  ;;  %v8266_v41 = vadd.f32 %v11707_v35, %v10461_v11 }
0x50f4   : > { %v8261_v22 = vadd.f32 %v11707_v35, %v8260_v17 }
0x50f5   : > { %v8270_v42 = vmul.f32 %v8266_v41, %v8266_v41 }
0x50f6   : > { %v8269_v50 = vmul.f32 %v8261_v22, %v8261_v22 }
0x50f7   : > { %v8272_v31 = vmul.f32 %v8270_v42, %v8266_v41 }
0x50f8   : > { %v8271_v43 = vmul.f32 %v8269_v50, %v8261_v22 }
0x50f9   : > { %v8274_v60 = vmul.f32 0.044715, %v8272_v31 }
0x50fa   : > { %v8273_v8 = vmul.f32 0.044715, %v8271_v43 }
0x50fb   : > { %v8276_v51 = vadd.f32 %v8274_v60, %v8266_v41 }
0x50fc   : > { %v8275_v21 = vadd.f32 %v8273_v8, %v8261_v22  ;;  %v13773_v8 = vld [vmem:[#allocation21_spill] sm:$0xff] }
0x50fd   : > { %v8278_v59 = vmul.f32 0.7978846, %v8276_v51  ;;  %v13774_v60 = vrot.slane %v13773_v8, 7 }
0x50fe   : > { %v8277_v2 = vmul.f32 0.7978846, %v8275_v21 }
0x5100   : > { %11458 = vrot.lane.b32.xlu1 %v11457_v45, %s11726_s22 }
0x517b   : > { %v7997_v5 = vpop.xlane.xlu0 %7996 }
0x517c   : > { %v7999_v63 = vsub.f32 %v7991_v54, %v7997_v5  ;;  %v7994_v15 = vpop.xlane.xlu1 %7993  ;;  %v13768_v54 = vld [vmem:[#allocation18_spill] sm:$0xff]  ;;  %v11708_v5 = vld [vmem:[%s13670_s2 + $0x31b] ss:$0 sm:$0xff] }
0x517d   : > { %v7998_v36 = vsub.f32 %v7990_v39, %v7994_v15  ;;  %v13770_v39 = vld [vmem:[#allocation20_spill] sm:$0xff] }
0x517e   : > { %v8002_v29 = vmul.f32 1.442695, %v7999_v63 }
0x517f   : > { %v8000_v37 = vmul.f32 1.442695, %v7998_v36 }
0x5180   : > { %v11459_v1 = vpop.permute.xlu1 %11458 }
0x5181   : > { %11669 = vpow2.f32 %v8000_v37  ;;  %v11461_v61 = vunpack.i.h.bf16 %v11459_v1  ;;  %v11460_v13 = vunpack.i.l.bf16 %v11459_v1 }
0x5182   : > { %11671 = vpow2.f32 %v8002_v29  ;;  %v11709_v29 = vld [vmem:[%s13670_s2 + $0x3d8] ss:$0 sm:$0xff] }
0x5183   : > { %v11164_v6 = vpack.c.bf16 %v11461_v61, %v11460_v13 }
0x5185   : > { %11165 = vmatprep.subr.bf16.mxu0 %v11164_v6 }
0x5186   : > { %11167 = vmatpush3.bf16.msra.mxu0 %v11164_v6 }
0x5187   : > { %11169 = vmatprep.subr.bf16.mxu0 %v13761_v28 }
0x518b   : > { %v11670_v16 = vpop.eup %11669 }
0x518c   : > { %v8004_v19 = vsel %vm477_vm2, %v11670_v16, 0.0  ;;  %v11672_v24 = vpop.eup %11671 }
0x518d   : > { %8005 = vadd.xlane.f32.xlu0 %v8004_v19  ;;  %v8007_v45 = vsel %vm2486_vm11, %v11672_v24, 0.0 }
0x5191   : > { %8008 = vadd.xlane.f32.xlu0 %v8007_v45 }
0x521a   : > { %v8006_v14 = vpop.xlane.xlu0 %8005 }
0x521b   : > { %11673 = vrcp.f32 %v8006_v14 }
0x521e   : > { %v8009_v56 = vpop.xlane.xlu0 %8008 }
0x521f   : > { %11675 = vrcp.f32 %v8009_v56 }
0x5220   : > { %11677 = vtanh.f32 %v8277_v2 }
0x5221   : > { %11679 = vtanh.f32 %v8278_v59 }
0x5225   : > { %v11674_v53 = vpop.eup %11673 }
0x5226   : > { %v8011_v25 = vmul.f32 %v11674_v53, %v11670_v16 }
0x5228   : > { %10437 = vmatprep.mubr.msk.f32.mxu0 %vm477_vm2, %v8011_v25 }
0x5229   : > { %v11676_v18 = vpop.eup %11675 }
0x522a   : > { %v8013_v34 = vmul.f32 %v11676_v18, %v11672_v24  ;;  %v11678_v33 = vpop.eup %11677 }
0x522b   : > { %v11680_v7 = vpop.eup %11679  ;;  %v8281_v26 = vadd.f32 1.0, %v11678_v33 }
0x522c   : > { %10438 = vmatmul.mubr.msk.f32.vlgmr.msra.gmra.mrb[72].mxu0 %vm477_vm2, %v8013_v34  ;;  %v8282_v27 = vadd.f32 1.0, %v11680_v7 }
0x522d   : > { %11171 = vmatpush3.bf16.msra.mxu0 %v13761_v28  ;;  %v8283_v38 = vmul.f32 0.5, %v8281_v26 }
0x522e   : > { %11173 = vmatprep.subr.bf16.mxu0 %v13762_v57  ;;  %v8284_v55 = vmul.f32 0.5, %v8282_v27 }
0x522f   : > { %v8285_v52 = vmul.f32 %v8283_v38, %v8261_v22 }
0x5230   : > { %v8286_v48 = vmul.f32 %v8284_v55, %v8266_v41 }
0x5231   : > { %11175 = vmatpush3.bf16.msra.mxu0 %v13762_v57 }
0x5232   : > { %11185 = vmatprep.subr.bf16.mxu0 %v13763_v49 }
0x52ff   : > { %v10439_v62 = vpop.f32.mrb[72].mxu0 }
0x5300   : > { %8107 = vrot.lane.b32.xlu1 %v10439_v62, %s11729_s8  ;;  %v8094_v47 = vpop.f32.mrb[73].mxu0 }
0x5301   : > { %8105 = vrot.lane.b32.xlu0 %v8094_v47, %s11729_s8 }
0x5372   : > { %v8108_v44 = vpop.permute.xlu1 %8107 }
0x5373   : > { %v8106_v4 = vpop.permute.xlu0 %8105  ;;  %v8112_v32 = vsel %vm477_vm2, %v13531_v3, %v8108_v44  ;;  %v13765_v3 = vld [vmem:[#allocation15_spill] sm:$0xff] }
0x5374   : > { %v8111_v10 = vsel %vm477_vm2, %v13533_v30, %v8106_v4  ;;  %v13766_v30 = vld [vmem:[#allocation16_spill] sm:$0xff] }
0x5375   : > { %10448 = vmatprep.mubr.msk.f32.mxu0 %vm336_vm1, %v8111_v10 }
0x5376   : > { %10449 = vmatmul.mubr.msk.f32.vlgmr.msra.gmra.mrb[74].mxu0 %vm336_vm1, %v8112_v32 }
0x5377   : > { %11187 = vmatpush3.bf16.msra.mxu0 %v13763_v49  ;;  %10466 = vmatprep.mubr.msk.f32.mxu0 %vm477_vm2, %v8285_v52 }
0x5378   : > { %11212 = vmatprep.subr.bf16.mxu0 %v13726_v23 }
0x537a   : > { %10467 = vmatmul.mubr.msk.f32.vlgmr.msra.gmra.mrb[76].mxu0 %vm477_vm2, %v8286_v48 }
0x537b   : > { %11214 = vmatpush3.bf16.msra.mxu0 %v13764_v0  ;;  %10536 = vmatprep.mubr.msk.f32.mxu0 %vm11731_vm12, %v13739_v58 }
0x537c   : > { %11215 = vmatprep.subr.bf16.mxu0 %v13726_v23 }
0x537f   : > { %11217 = vmatpush3.bf16.msra.mxu0 %v13765_v3 }
0x5380   : > { %11218 = vmatprep.subr.bf16.mxu0 %v13726_v23 }
0x5383   : > { %11220 = vmatpush3.bf16.msra.mxu0 %v13766_v30 }
0x5384   : > { %11221 = vmatprep.subr.bf16.mxu0 %v13726_v23 }
0x5387   : > { %11223 = vmatpush3.bf16.msra.mxu0 %v13767_v9 }
0x5388   : > { %11224 = vmatprep.subr.bf16.mxu0 %v13726_v23 }
0x538b   : > { %11226 = vmatpush3.bf16.msra.mxu0 %v13768_v54  ;;  %v11710_v54 = vld [vmem:[%s13670_s2 + $0x460] ss:$0 sm:$0xff] }
0x538c   : > { %11227 = vmatprep.subr.bf16.mxu0 %v13726_v23 }
0x538f   : > { %11229 = vmatpush3.bf16.msra.mxu0 %v13769_v46 }
0x5390   : > { %11230 = vmatprep.subr.bf16.mxu0 %v13726_v23 }
0x5393   : > { %11232 = vmatpush3.bf16.msra.mxu0 %v13770_v39 }
0x5394   : > { %11233 = vmatprep.subr.bf16.mxu0 %v13726_v23 }
0x5397   : > { %11235 = vmatpush3.bf16.msra.mxu0 %v13771_v12 }
0x5398   : > { %11241 = vmatprep.subr.bf16.mxu0 %v13772_v40  ;;  %v13776_v40 = vld [vmem:[#allocation25_spill] sm:$0xff] }
0x5449   : > { %v10450_v11 = vpop.f32.mrb[74].mxu0 }
0x544a   : > { %v8185_v17 = vpop.f32.mrb[75].mxu0 }
0x544b   : > { %v8186_v63 = vadd.f32 %v11708_v5, %v8185_v17  ;;  %v11711_v17 = vld [vmem:[%s13670_s2 + $0x4e8] ss:$0 sm:$0xff] }
0x544d   : > { %v13587_v15 = vadd.f32 %v8186_v63, %v13337_v20  ;;  %v10468_v36 = vpop.f32.mrb[76].mxu0 }
0x544e   : > { %v8365_v37 = vadd.f32 %v11709_v29, %v10468_v36  ;;  %v8359_v1 = vpop.f32.mrb[77].mxu0  ;;  %v11712_v36 = vld [vmem:[%s13670_s2 + $0x4f8] sm:$0xf] }
0x544f   : > { %v8360_v61 = vadd.f32 %v11709_v29, %v8359_v1  ;;  %8393 = vrot.lane.b32.xlu0 %v13587_v15, %s11724_s20  ;;  %8387 = vrot.lane.b32.xlu1 %v13587_v15, %s11733_s25  ;;  %v13778_v1 = vld [vmem:[#allocation29_spill] sm:$0xff] }
0x5450   : > { %v8369_v13 = vmul.f32 %v8365_v37, %v8365_v37 }
0x5451   : > { %v8368_v6 = vmul.f32 %v8360_v61, %v8360_v61 }
0x5452   : > { %v8371_v28 = vmul.f32 %v8369_v13, %v8365_v37 }
0x5453   : > { %v8370_v16 = vmul.f32 %v8368_v6, %v8360_v61  ;;  %8390 = vrot.lane.b32.xlu1 %v13587_v15, %s11727_s23  ;;  %v13779_v6 = vld [vmem:[#allocation26_spill] sm:$0xff] }
0x5454   : > { %v8373_v20 = vmul.f32 0.044715, %v8371_v28  ;;  %v13780_v28 = vld [vmem:[#allocation27_spill] sm:$0xff] }
0x5455   : > { %v8372_v19 = vmul.f32 0.044715, %v8370_v16  ;;  %v5414_v16 = vrot.slane %v13739_v58, 4 }
0x5456   : > { %v8375_v24 = vadd.f32 %v8373_v20, %v8365_v37 }
0x5457   : > { %v8374_v45 = vadd.f32 %v8372_v19, %v8360_v61 }
0x5458   : > { %v8377_v14 = vmul.f32 0.7978846, %v8375_v24 }
0x5459   : > { %v8376_v56 = vmul.f32 0.7978846, %v8374_v45 }
0x545a   : > { %11681 = vtanh.f32 %v8377_v14  ;;  %v13781_v14 = vld [vmem:[#allocation30_spill] sm:$0xff] }
0x545b   : > { %11683 = vtanh.f32 %v8376_v56 }
0x5464   : > { %v11682_v53 = vpop.eup %11681 }
0x5465   : > { %v11684_v25 = vpop.eup %11683  ;;  %v8381_v18 = vadd.f32 1.0, %v11682_v53 }
0x5466   : > { %v8380_v34 = vadd.f32 1.0, %v11684_v25 }
0x5467   : > { %v8383_v57 = vmul.f32 0.5, %v8381_v18 }
0x5468   : > { %v8382_v49 = vmul.f32 0.5, %v8380_v34 }
0x5469   : > { %v8385_v62 = vmul.f32 %v8383_v57, %v8365_v37  ;;  %v13777_v37 = vld [vmem:[#allocation28_spill] sm:$0xff]  ;;  %v11714_v57 = vld [vmem:[%s13670_s2 + $0x548] sm:$0x1] }
0x546a   : > { %v8384_v47 = vmul.f32 %v8382_v49, %v8360_v61 }
0x546c   : > { %v11467_v35 = vpack.i.bf16 %v8385_v62, %v8384_v47 }
0x546e   : > { %11468 = vrot.lane.b32.xlu0 %v11467_v35, %s11729_s8  ;;  %11463 = vrot.lane.b32.xlu1 %v11467_v35, %s11734_s11 }
0x5472   : > { %11473 = vrot.lane.b32.xlu1 %v11467_v35, %s11735_s18 }
0x54c1   : > { %v8388_v22 = vpop.permute.xlu1 %8387  ;;  %v8394_v42 = vpop.permute.xlu0 %8393 }
0x54c2   : > { %v8396_v41 = vsel %vm336_vm1, %v13587_v15, %v8388_v22 }
0x54c5   : > { %v8391_v50 = vpop.permute.xlu1 %8390 }
0x54c6   : > { %v8397_v43 = vsel %vm248_vm0, %v8396_v41, %v8391_v50  ;;  %vm13782_vm0 = vcmask 1044480   ;;  %v13783_v50 = vld [vmem:[#allocation31_spill] sm:$0xff] }
0x54c7   : > { %v8398_v31 = vsel %vm4923_vm13, %v8397_v43, %v8394_v42 }
0x54c8   : > { %v8399_v21 = vmul.f32 %v8398_v31, %v13774_v60 }
0x54ca   : > { %v8401_v51 = vrot.slane %v8399_v21, 1 }
0x54cc   : > { %10502 = vmatmul.mubr.f32.vlgmr.msra.gmra.mrb[86].mxu1 %v8401_v51 }
0x54cd   : > { %10543 = vmatprep.mubr.msk.f32.mxu1 %vm11731_vm12, %v13739_v58 }
0x54e0   : > { %v11469_v2 = vpop.permute.xlu0 %11468  ;;  %v11464_v59 = vpop.permute.xlu1 %11463 }
0x54e1   : > { %v11466_v33 = vunpack.i.h.bf16 %v11464_v59  ;;  %v11465_v7 = vunpack.i.l.bf16 %v11464_v59  ;;  %v11471_v26 = vunpack.i.h.bf16 %v11469_v2  ;;  %v11470_v27 = vunpack.i.l.bf16 %v11469_v2 }
0x54e3   : > { %v8566_v38 = vsel %vm5102_vm14, %v8385_v62, %v11466_v33  ;;  %v8565_v44 = vsel %vm5102_vm14, %v8384_v47, %v11465_v7 }
0x54e4   : > { %v11474_v4 = vpop.permute.xlu1 %11473  ;;  %v8567_v32 = vsel %vm477_vm2, %v8565_v44, %v11470_v27  ;;  %v8568_v52 = vsel %vm477_vm2, %v8566_v38, %v11471_v26 }
0x54e5   : > { %v11476_v55 = vunpack.i.h.bf16 %v11474_v4  ;;  %v11475_v10 = vunpack.i.l.bf16 %v11474_v4 }
0x54e7   : > { %v8569_v48 = vsel %vm5107_vm15, %v8567_v32, %v11475_v10  ;;  %v8570_v0 = vsel %vm5107_vm15, %v8568_v52, %v11476_v55 }
0x54e8   : > { %v11237_v3 = vpack.c.bf16 %v8570_v0, %v8569_v48 }
0x54ea   : > { %11239 = vmatpush3.bf16.xpose.msk.msra.mxu1 %vm13030_vm7, %v11237_v3 }
0x54eb   : > { %11250 = vmatprep.subr.bf16.mxu1 %v13726_v23 }
0x559f   : > { %v8469_v9 = vpop.f32.mrb[86].mxu1 }
0x55a0   : > { %v8470_v46 = vadd.f32 %v11710_v54, %v8469_v9  ;;  %v10503_v39 = vpop.f32.mrb[87].mxu1 }
0x55a2   : > { %v8473_v12 = vmax.f32 %v8470_v46, 0.0 }
0x55a4   : > { %10537 = vmatmul.mubr.f32.vlgmr.msra.gmra.mrb[78].mxu0 %v8473_v12 }
0x55a5   : > { %11243 = vmatpush1.bf16.msra.mxu0 %v13776_v40  ;;  %8717 = vmatprep.mubr.f32.mxu0 %v13739_v58 }
0x55a6   : > { %11244 = vmatprep.subr.bf16.mxu0 %v13726_v23 }
0x5677   : > { %v8540_v11 = vpop.f32.mrb[78].mxu0 }
0x5678   : > { %v8541_v5 = vadd.f32 %v11711_v17, %v8540_v11  ;;  %v10538_v63 = vpop.f32.mrb[79].mxu0 }
0x567a   : > { %v8544_v29 = vmul.f32 %v11712_v36, %v8541_v5 }
0x567c   : > { %10544 = vmatmul.mubr.msk.f32.vlgmr.msra.gmra.mrb[88].mxu1 %vm336_vm1, %v8544_v29 }
0x567d   : > { %11252 = vmatpush3.bf16.msra.mxu1 %v13777_v37  ;;  %10565 = vmatprep.mubr.msk.f32.mxu1 %vm11731_vm12, %v13739_v58 }
0x567e   : > { %11253 = vmatprep.subr.bf16.mxu1 %v13726_v23 }
0x5681   : > { %11255 = vmatpush3.bf16.msra.mxu1 %v13778_v1 }
0x574f   : > { %v8646_v61 = vpop.f32.mrb[88].mxu1 }
0x5750   : > { %v10545_v13 = vpop.f32.mrb[89].mxu1  ;;  %9203 = vmatmul.mubr.msk.f32.vlgmr.msra.gmra.mrb[80].mxu0 %vm477_vm2, %v8646_v61  ;;  %vm13784_vm2 = vmmov %vm13782_vm0 }
0x5751   : > { %11246 = vmatpush3.bf16.msra.mxu0 %v13779_v6  ;;  %10554 = vmatprep.mubr.msk.f32.mxu0 %vm11731_vm12, %v13739_v58  ;;  %v11713_v58 = vld [vmem:[%s13670_s2 + $0x520] sm:$0x1] }
0x5752   : > { %11247 = vmatprep.subr.bf16.mxu0 %v13726_v23  ;;  %v5419_v23 = vsel %vm5417_vm4, %v13781_v14, %v5414_v16 }
0x5755   : > { %11249 = vmatpush3.bf16.msra.mxu0 %v13780_v28 }
0x5758   : > { %10555 = vmatmul.mubr.msk.f32.vlgmr.msra.gmra.mrb[82].mxu0 %vm336_vm1, %v13587_v15 }
0x5823   : > { %v8719_v20 = vpop.f32.mrb[80].mxu0 }
0x5824   : > { %v8721_v19 = vpop.f32.mrb[81].mxu0 }
0x5825   : > { %v8875_v24 = vsel %vm5417_vm4, %v8721_v19, %v5414_v16 }
0x5826   : > { %v8879_v45 = vrot.slane %v8875_v24, 3 }
0x5828   : > { %v8883_v56 = vsel %vm13782_vm0, %v5419_v23, %v8879_v45  ;;  %8887 = vst [vmem:[%s214_s19 + $0x18] sm:$0x3] %v8879_v45 }
0x5829   : > { %8885 = vst [vmem:[%s214_s19 + $0x8] sm:$0xff] %v8883_v56 }
0x582b   : > { %v8792_v15 = vpop.f32.mrb[82].mxu0 }
0x582c   : > { %v8793_v53 = vadd.f32 %v11713_v58, %v8792_v15  ;;  %v10556_v25 = vpop.f32.mrb[83].mxu0 }
0x582e   : > { %v8796_v18 = vmax.f32 %v8793_v53, 0.0 }
0x5830   : > { %10566 = vmatmul.mubr.msk.f32.vlgmr.msra.gmra.mrb[90].mxu1 %vm336_vm1, %v8796_v18 }
0x5903   : > { %v8866_v34 = vpop.f32.mrb[90].mxu1 }
0x5904   : > { %v8867_v49 = vadd.f32 %v11714_v57, %v8866_v34  ;;  %v10567_v62 = vpop.f32.mrb[91].mxu1 }
0x5906   : > { %v8870_v47 = vsel %vm5409_vm8, %v8867_v49, 0.0 }
0x5907   : > { %v8872_v35 = vrot.slane %v8870_v47, 4 }
0x5909   : > { %v8874_v22 = vsel %vm5417_vm4, %v8719_v20, %v8872_v35 }
0x590a   : > { %v8878_v41 = vrot.slane %v8874_v22, 3 }
0x590c   : > { %v8882_v42 = vsel %vm13784_vm2, %v13783_v50, %v8878_v41  ;;  %8886 = vst [vmem:[%s214_s19 + $0x10] sm:$0x3] %v8878_v41 }
0x590d   : > { %8884 = vst [vmem:[%s214_s19] sm:$0xff] %v8882_v42 }
0x590e PF: > { %s14_s15 = sadd.s32 1, %s11721_s15  }
0x590f   : > { %p11_p4 = scmp.ge.s32.totalorder %s14_s15, 4  }
0x5911   :  { %13 = sbr.rel (!%p11_p4) target bundleno = 1 (0x1), region = 69 }

</bundles_post_ra>
